<compile_context>
chip_gen: v7x
topology: tpu7x:2x2x1
jax: 0.10.0
libtpu: 0.0.40
codegen_flags: <defaults>
</compile_context>

<pallas_src>
import jax
import jax.numpy as jnp
from jax.experimental import pallas as pl
from jax.experimental.pallas import tpu as pltpu


# ----------------------------------------------------------------------------- helpers

def _device_kind() -> str:
    try:
        return jax.devices()[0].device_kind.lower()
    except Exception:
        return ""


def _default_elementwise_dtype():
    # bf16 VPU/EUP exist on v6e/v7x; v5e and older would upcast bf16 elementwise anyway,
    # so keep the activation math in f32 there (matmul operands can still be bf16).
    kind = _device_kind()
    if "v6" in kind or "v7" in kind:
        return jnp.bfloat16
    return jnp.float32


def _pick_batch_tile(batch):
    # Big lane-dense tiles amortize the ~0.35us/step pipeline overhead.  The 4096 cap keeps
    # double-buffered blocks (~8 MiB total incl. lane-padding + intermediates) safely under
    # v5e's 16 MiB scoped-VMEM default without touching vmem_limit_bytes.
    for t in (4096, 2048, 1024, 512, 256, 128):
        if batch >= 2 * t:
            return t
    return 128


def _softplus(z):
    # Numerically stable softplus using only exp/log/abs/max (lowers cleanly in f32 and bf16).
    return jnp.maximum(z, 0) + jnp.log(1.0 + jnp.exp(-jnp.abs(z)))


# ----------------------------------------------------------------------------- kernel

def _make_kernel(mm_dt, act_dt):
    def kernel(x_ref, wi_ref, bi_ref, w1_ref, b1_ref, w2_ref, b2_ref,
               w3_ref, b3_ref, o_ref):
        # x tile arrives in its native (tb, F) layout; the dot_general contracts the F axis
        # of both operands, so the transpose happens on-chip (XLU) instead of through HBM.
        x_t = x_ref[...].astype(mm_dt)                                    # (tb, F)

        # individual layer: Linear + Softplus   (Dropout p=0.25 is identity in eval mode)
        z = jax.lax.dot_general(wi_ref[...], x_t, (((1,), (1,)), ((), ())),
                                preferred_element_type=jnp.float32) + bi_ref[...]
        h = _softplus(z.astype(act_dt))                                   # (h1, tb), batch on lanes

        # shared fc1 + Softplus
        z = jnp.dot(w1_ref[...], h.astype(mm_dt),
                    preferred_element_type=jnp.float32) + b1_ref[...]
        h = _softplus(z.astype(act_dt))

        # shared fc2 + Softplus
        z = jnp.dot(w2_ref[...], h.astype(mm_dt),
                    preferred_element_type=jnp.float32) + b2_ref[...]
        h = _softplus(z.astype(act_dt))

        # shared fc3 + LogSoftmax over the class (sublane) axis -- fully lane-dense math
        logits = jnp.dot(w3_ref[...], h.astype(mm_dt),
                         preferred_element_type=jnp.float32) + b3_ref[...]  # (n_anc, tb) f32
        m = jnp.max(logits, axis=0, keepdims=True)
        lse = m + jnp.log(jnp.sum(jnp.exp(logits - m), axis=0, keepdims=True))
        logp = logits - lse

        # On-chip transpose to the caller's (batch, class) layout: small masked store
        # (n_anc lanes) but tiny volume, and it deletes the XLA output transpose entirely.
        o_ref[...] = logp.T.astype(o_ref.dtype)

    return kernel


# ----------------------------------------------------------------------------- wrapper

def individual_model_forward(x, params, *, batch_tile=None,
                             matmul_dtype=jnp.bfloat16, elementwise_dtype=None):
    """x: (B, n_features) -> (B, n_ancestry) log-probabilities (eval-mode forward).

    matmul_dtype:      dtype of the MXU operands (accumulation is f32 regardless).  Pass x
                       already in bf16 to also halve its HBM read traffic.
    elementwise_dtype: dtype of the softplus chain; defaults to bf16 on v6e/v7x, f32 otherwise.
    """
    B, F = x.shape
    h1 = params["w_ind"].shape[0]
    h2 = params["w1"].shape[0]
    n_anc = params["w3"].shape[0]

    mm_dt = jnp.dtype(matmul_dtype)
    act_dt = jnp.dtype(_default_elementwise_dtype() if elementwise_dtype is None
                       else elementwise_dtype)

    tb = _pick_batch_tile(B) if batch_tile is None else int(batch_tile)
    num_blocks = pl.cdiv(B, tb)
    Bp = num_blocks * tb
    if Bp != B:                                  # pad batch to the tile; sliced back below
        x = jnp.pad(x, ((0, Bp - B), (0, 0)))

    # PyTorch-style (out, in) weights; biases as (out, 1) columns so they broadcast over lanes.
    wi, w1, w2, w3 = (params[k].astype(mm_dt) for k in ("w_ind", "w1", "w2", "w3"))
    bi, b1, b2, b3 = (params[k].reshape(-1, 1).astype(jnp.float32)
                      for k in ("b_ind", "b1", "b2", "b3"))

    full = lambda i: (0, 0)

    # Advisory scheduling hint for XLA around the custom call.
    flops = 2 * Bp * (F * h1 + h1 * h2 + h2 * h2 + h2 * n_anc)
    transcendentals = Bp * (2 * (h1 + 2 * h2) + n_anc + 1)
    param_bytes = sum(int(a.size) * a.dtype.itemsize
                      for a in (wi, bi, w1, b1, w2, b2, w3, b3))
    bytes_accessed = int(x.size) * x.dtype.itemsize + Bp * n_anc * 4 + param_bytes
    cost = pl.CostEstimate(flops=flops, transcendentals=transcendentals,
                           bytes_accessed=bytes_accessed)

    # Dual-TensorCore split: plain "parallel" is a near no-op on v7x, so ask for an explicit
    # per-core split of the batch grid axis there (kept off single-TC generations).
    kind = _device_kind()
    if "v7" in kind and num_blocks % 2 == 0:
        dim_sem = (pltpu.CORE_PARALLEL,)
    else:
        dim_sem = (pltpu.PARALLEL,)

    out = pl.pallas_call(
        _make_kernel(mm_dt, act_dt),
        out_shape=jax.ShapeDtypeStruct((Bp, n_anc), jnp.float32),
        grid_spec=pltpu.PrefetchScalarGridSpec(
            num_scalar_prefetch=0,
            grid=(num_blocks,),
            in_specs=[
                pl.BlockSpec((tb, F), lambda i: (i, 0)),    # x tile in native (B, F) layout
                pl.BlockSpec((h1, F), full),                # w_ind  (resident across steps)
                pl.BlockSpec((h1, 1), full),                # b_ind
                pl.BlockSpec((h2, h1), full),               # w1
                pl.BlockSpec((h2, 1), full),                # b1
                pl.BlockSpec((h2, h2), full),               # w2
                pl.BlockSpec((h2, 1), full),                # b2
                pl.BlockSpec((n_anc, h2), full),            # w3
                pl.BlockSpec((n_anc, 1), full),             # b3
            ],
            out_specs=pl.BlockSpec((tb, n_anc), lambda i: (i, 0)),
        ),
        compiler_params=pltpu.CompilerParams(dimension_semantics=dim_sem),
        cost_estimate=cost,
    )(x, wi, bi, w1, b1, w2, b2, w3, b3)

    return out if Bp == B else out[:B]


# ----------------------------------------------------------------------------- params / reference

def init_params(key, n_features, hidden1, hidden2, n_ancestry):
    """Deterministic xavier_uniform weights ((out, in) layout), biases = 0.01."""
    def xavier(k, fan_out, fan_in):
        bound = jnp.sqrt(6.0 / (fan_in + fan_out))
        return jax.random.uniform(k, (fan_out, fan_in), jnp.float32,
                                  minval=-bound, maxval=bound)

    k0, k1, k2, k3 = jax.random.split(key, 4)
    return {
        "w_ind": xavier(k0, hidden1, n_features),
        "b_ind": jnp.full((hidden1,), 0.01, jnp.float32),
        "w1": xavier(k1, hidden2, hidden1),
        "b1": jnp.full((hidden2,), 0.01, jnp.float32),
        "w2": xavier(k2, hidden2, hidden2),
        "b2": jnp.full((hidden2,), 0.01, jnp.float32),
        "w3": xavier(k3, n_ancestry, hidden2),
        "b3": jnp.full((n_ancestry,), 0.01, jnp.float32),
    }


def _reference(x, p):
    """Pure-JAX reference in the standard (batch, feature) layout (eval mode)."""
    h = jax.nn.softplus(x @ p["w_ind"].T + p["b_ind"])
    h = jax.nn.softplus(h @ p["w1"].T + p["b1"])
    h = jax.nn.softplus(h @ p["w2"].T + p["b2"])
    logits = h @ p["w3"].T + p["b3"]
    return jax.nn.log_softmax(logits, axis=-1)


# ----------------------------------------------------------------------------- main

if __name__ == "__main__":
    n_features, hidden1, hidden2, n_ancestry = 64, 32, 32, 8
    batch = 4099            # deliberately not tile-aligned: exercises padding + multi-step grid

    key = jax.random.PRNGKey(0)
    k_x, k_p = jax.random.split(key)
    x = jax.random.normal(k_x, (batch, n_features), jnp.float32)
    params = init_params(k_p, n_features, hidden1, hidden2, n_ancestry)

    ref = _reference(x, params)

    # 1) Full-precision configuration: must match the reference tightly.
    out_f32 = jax.block_until_ready(
        individual_model_forward(x, params, matmul_dtype=jnp.float32,
                                 elementwise_dtype=jnp.float32))
    assert out_f32.shape == (batch, n_ancestry)
    assert jnp.allclose(out_f32, ref, atol=1e-4, rtol=1e-4), \
        float(jnp.max(jnp.abs(out_f32 - ref)))

    # 2) Default fast path (bf16 matmuls; bf16 softplus on v6e/v7x): looser tolerance.
    out = jax.block_until_ready(individual_model_forward(x, params))
    assert out.shape == (batch, n_ancestry)
    assert bool(jnp.all(jnp.isfinite(out)))
    assert jnp.allclose(out, ref, atol=0.1, rtol=0.1), \
        float(jnp.max(jnp.abs(out - ref)))

    print("KERNEL_OK")
</pallas_src>

<mosaic_0001>
module attributes {stable_mosaic.version = 11 : i64} {
  func.func @kernel(%arg0: i32, %arg1: memref<2048x64xf32, #tpu.memory_space<vmem>>, %arg2: memref<32x64xf32, #tpu.memory_space<vmem>>, %arg3: memref<32x1xf32, #tpu.memory_space<vmem>>, %arg4: memref<32x32xf32, #tpu.memory_space<vmem>>, %arg5: memref<32x1xf32, #tpu.memory_space<vmem>>, %arg6: memref<32x32xf32, #tpu.memory_space<vmem>>, %arg7: memref<32x1xf32, #tpu.memory_space<vmem>>, %arg8: memref<8x32xf32, #tpu.memory_space<vmem>>, %arg9: memref<8x1xf32, #tpu.memory_space<vmem>>, %arg10: memref<2048x8xf32, #tpu.memory_space<vmem>>) attributes {dimension_semantics = [#tpu.dimension_semantics<parallel>], iteration_bounds = array<i64: 3>, scalar_prefetch = 0 : i64, scratch_operands = 0 : i64, tpu.core_type = #tpu.core_type<tc>, window_params = [{transform_indices = @transform_0, window_bounds = array<i64: 2048, 64>}, {pipeline_mode = #tpu.pipeline_mode<synchronous>, transform_indices = @transform_1, window_bounds = array<i64: 32, 64>}, {pipeline_mode = #tpu.pipeline_mode<synchronous>, transform_indices = @transform_2, window_bounds = array<i64: 32, 1>}, {pipeline_mode = #tpu.pipeline_mode<synchronous>, transform_indices = @transform_3, window_bounds = array<i64: 32, 32>}, {pipeline_mode = #tpu.pipeline_mode<synchronous>, transform_indices = @transform_4, window_bounds = array<i64: 32, 1>}, {pipeline_mode = #tpu.pipeline_mode<synchronous>, transform_indices = @transform_5, window_bounds = array<i64: 32, 32>}, {pipeline_mode = #tpu.pipeline_mode<synchronous>, transform_indices = @transform_6, window_bounds = array<i64: 32, 1>}, {pipeline_mode = #tpu.pipeline_mode<synchronous>, transform_indices = @transform_7, window_bounds = array<i64: 8, 32>}, {pipeline_mode = #tpu.pipeline_mode<synchronous>, transform_indices = @transform_8, window_bounds = array<i64: 8, 1>}, {transform_indices = @transform_9, window_bounds = array<i64: 2048, 8>}]} {
    %c0 = arith.constant 0 : index
    %c0_0 = arith.constant 0 : index
    %0 = vector.load %arg1[%c0, %c0_0] : memref<2048x64xf32, #tpu.memory_space<vmem>>, vector<2048x64xf32>
    %c0_1 = arith.constant 0 : index
    %c0_2 = arith.constant 0 : index
    %1 = vector.load %arg2[%c0_1, %c0_2] : memref<32x64xf32, #tpu.memory_space<vmem>>, vector<32x64xf32>
    %cst = arith.constant dense<0.000000e+00> : vector<32x2048xf32>
    %2 = tpu.matmul %1, %0, %cst {dimension_numbers = #tpu.dot_dimension_numbers<[1], [1], [0], [0], [0, 0, 1, 0], [], []>} : vector<32x64xf32>, vector<2048x64xf32>, vector<32x2048xf32> -> vector<32x2048xf32>
    %c0_3 = arith.constant 0 : index
    %c0_4 = arith.constant 0 : index
    %3 = vector.load %arg3[%c0_3, %c0_4] : memref<32x1xf32, #tpu.memory_space<vmem>>, vector<32x1xf32>
    %4 = vector.broadcast %3 : vector<32x1xf32> to vector<32x2048xf32>
    %5 = arith.addf %2, %4 : vector<32x2048xf32>
    %cst_5 = arith.constant 0.000000e+00 : f32
    %6 = vector.broadcast %cst_5 : f32 to vector<32x2048xf32>
    %7 = arith.maximumf %5, %6 : vector<32x2048xf32>
    %8 = math.absf %5 : vector<32x2048xf32>
    %cst_6 = arith.constant 0.000000e+00 : f32
    %9 = vector.broadcast %cst_6 : f32 to vector<32x2048xf32>
    %10 = arith.subf %9, %8 : vector<32x2048xf32>
    %11 = math.exp %10 : vector<32x2048xf32>
    %cst_7 = arith.constant 1.000000e+00 : f32
    %12 = vector.broadcast %cst_7 : f32 to vector<32x2048xf32>
    %13 = arith.addf %12, %11 : vector<32x2048xf32>
    %14 = math.log %13 : vector<32x2048xf32>
    %15 = arith.addf %7, %14 : vector<32x2048xf32>
    %c0_8 = arith.constant 0 : index
    %c0_9 = arith.constant 0 : index
    %16 = vector.load %arg4[%c0_8, %c0_9] : memref<32x32xf32, #tpu.memory_space<vmem>>, vector<32x32xf32>
    %cst_10 = arith.constant dense<0.000000e+00> : vector<32x2048xf32>
    %17 = tpu.matmul %16, %15, %cst_10 {dimension_numbers = #tpu.dot_dimension_numbers<[1], [0], [0], [1], [0, 0, 1, 1], [], []>} : vector<32x32xf32>, vector<32x2048xf32>, vector<32x2048xf32> -> vector<32x2048xf32>
    %c0_11 = arith.constant 0 : index
    %c0_12 = arith.constant 0 : index
    %18 = vector.load %arg5[%c0_11, %c0_12] : memref<32x1xf32, #tpu.memory_space<vmem>>, vector<32x1xf32>
    %19 = vector.broadcast %18 : vector<32x1xf32> to vector<32x2048xf32>
    %20 = arith.addf %17, %19 : vector<32x2048xf32>
    %cst_13 = arith.constant 0.000000e+00 : f32
    %21 = vector.broadcast %cst_13 : f32 to vector<32x2048xf32>
    %22 = arith.maximumf %20, %21 : vector<32x2048xf32>
    %23 = math.absf %20 : vector<32x2048xf32>
    %cst_14 = arith.constant 0.000000e+00 : f32
    %24 = vector.broadcast %cst_14 : f32 to vector<32x2048xf32>
    %25 = arith.subf %24, %23 : vector<32x2048xf32>
    %26 = math.exp %25 : vector<32x2048xf32>
    %cst_15 = arith.constant 1.000000e+00 : f32
    %27 = vector.broadcast %cst_15 : f32 to vector<32x2048xf32>
    %28 = arith.addf %27, %26 : vector<32x2048xf32>
    %29 = math.log %28 : vector<32x2048xf32>
    %30 = arith.addf %22, %29 : vector<32x2048xf32>
    %c0_16 = arith.constant 0 : index
    %c0_17 = arith.constant 0 : index
    %31 = vector.load %arg6[%c0_16, %c0_17] : memref<32x32xf32, #tpu.memory_space<vmem>>, vector<32x32xf32>
    %cst_18 = arith.constant dense<0.000000e+00> : vector<32x2048xf32>
    %32 = tpu.matmul %31, %30, %cst_18 {dimension_numbers = #tpu.dot_dimension_numbers<[1], [0], [0], [1], [0, 0, 1, 1], [], []>} : vector<32x32xf32>, vector<32x2048xf32>, vector<32x2048xf32> -> vector<32x2048xf32>
    %c0_19 = arith.constant 0 : index
    %c0_20 = arith.constant 0 : index
    %33 = vector.load %arg7[%c0_19, %c0_20] : memref<32x1xf32, #tpu.memory_space<vmem>>, vector<32x1xf32>
    %34 = vector.broadcast %33 : vector<32x1xf32> to vector<32x2048xf32>
    %35 = arith.addf %32, %34 : vector<32x2048xf32>
    %cst_21 = arith.constant 0.000000e+00 : f32
    %36 = vector.broadcast %cst_21 : f32 to vector<32x2048xf32>
    %37 = arith.maximumf %35, %36 : vector<32x2048xf32>
    %38 = math.absf %35 : vector<32x2048xf32>
    %cst_22 = arith.constant 0.000000e+00 : f32
    %39 = vector.broadcast %cst_22 : f32 to vector<32x2048xf32>
    %40 = arith.subf %39, %38 : vector<32x2048xf32>
    %41 = math.exp %40 : vector<32x2048xf32>
    %cst_23 = arith.constant 1.000000e+00 : f32
    %42 = vector.broadcast %cst_23 : f32 to vector<32x2048xf32>
    %43 = arith.addf %42, %41 : vector<32x2048xf32>
    %44 = math.log %43 : vector<32x2048xf32>
    %45 = arith.addf %37, %44 : vector<32x2048xf32>
    %c0_24 = arith.constant 0 : index
    %c0_25 = arith.constant 0 : index
    %46 = vector.load %arg8[%c0_24, %c0_25] : memref<8x32xf32, #tpu.memory_space<vmem>>, vector<8x32xf32>
    %cst_26 = arith.constant dense<0.000000e+00> : vector<8x2048xf32>
    %47 = tpu.matmul %46, %45, %cst_26 {dimension_numbers = #tpu.dot_dimension_numbers<[1], [0], [0], [1], [0, 0, 1, 1], [], []>} : vector<8x32xf32>, vector<32x2048xf32>, vector<8x2048xf32> -> vector<8x2048xf32>
    %c0_27 = arith.constant 0 : index
    %c0_28 = arith.constant 0 : index
    %48 = vector.load %arg9[%c0_27, %c0_28] : memref<8x1xf32, #tpu.memory_space<vmem>>, vector<8x1xf32>
    %49 = vector.broadcast %48 : vector<8x1xf32> to vector<8x2048xf32>
    %50 = arith.addf %47, %49 : vector<8x2048xf32>
    %cst_29 = arith.constant dense<0xFF800000> : vector<2048xf32>
    %51 = vector.multi_reduction <maximumf>, %50, %cst_29 [0] : vector<8x2048xf32> to vector<2048xf32>
    %52 = vector.shape_cast %51 : vector<2048xf32> to vector<1x2048xf32>
    %53 = vector.broadcast %52 : vector<1x2048xf32> to vector<8x2048xf32>
    %54 = arith.subf %50, %53 : vector<8x2048xf32>
    %55 = math.exp %54 : vector<8x2048xf32>
    %cst_30 = arith.constant dense<0.000000e+00> : vector<2048xf32>
    %56 = vector.multi_reduction <add>, %55, %cst_30 [0] : vector<8x2048xf32> to vector<2048xf32>
    %57 = vector.shape_cast %56 : vector<2048xf32> to vector<1x2048xf32>
    %58 = math.log %57 : vector<1x2048xf32>
    %59 = arith.addf %52, %58 : vector<1x2048xf32>
    %60 = vector.broadcast %59 : vector<1x2048xf32> to vector<8x2048xf32>
    %61 = arith.subf %50, %60 : vector<8x2048xf32>
    %62 = tpu.transpose %61, [1, 0] : vector<8x2048xf32> -> vector<2048x8xf32>
    %c0_31 = arith.constant 0 : index
    %c0_32 = arith.constant 0 : index
    %63 = vector.load %arg10[%c0_31, %c0_32] : memref<2048x8xf32, #tpu.memory_space<vmem>>, vector<2048x8xf32>
    tpu.vector_store %arg10[%c0_31, %c0_32], %62 {strides = array<i32>} : memref<2048x8xf32, #tpu.memory_space<vmem>>, vector<2048x8xf32>,
    return
  }
  func.func @transform_0(%arg0: i32) -> (i32, i32) {
    %c0_i32 = arith.constant 0 : i32
    %c0_i32_0 = arith.constant 0 : i32
    return %arg0, %c0_i32 : i32, i32
  }
  func.func @transform_1(%arg0: i32) -> (i32, i32) {
    %c0_i32 = arith.constant 0 : i32
    %c0_i32_0 = arith.constant 0 : i32
    %c0_i32_1 = arith.constant 0 : i32
    return %c0_i32, %c0_i32_0 : i32, i32
  }
  func.func @transform_2(%arg0: i32) -> (i32, i32) {
    %c0_i32 = arith.constant 0 : i32
    %c0_i32_0 = arith.constant 0 : i32
    %c0_i32_1 = arith.constant 0 : i32
    return %c0_i32, %c0_i32_0 : i32, i32
  }
  func.func @transform_3(%arg0: i32) -> (i32, i32) {
    %c0_i32 = arith.constant 0 : i32
    %c0_i32_0 = arith.constant 0 : i32
    %c0_i32_1 = arith.constant 0 : i32
    return %c0_i32, %c0_i32_0 : i32, i32
  }
  func.func @transform_4(%arg0: i32) -> (i32, i32) {
    %c0_i32 = arith.constant 0 : i32
    %c0_i32_0 = arith.constant 0 : i32
    %c0_i32_1 = arith.constant 0 : i32
    return %c0_i32, %c0_i32_0 : i32, i32
  }
  func.func @transform_5(%arg0: i32) -> (i32, i32) {
    %c0_i32 = arith.constant 0 : i32
    %c0_i32_0 = arith.constant 0 : i32
    %c0_i32_1 = arith.constant 0 : i32
    return %c0_i32, %c0_i32_0 : i32, i32
  }
  func.func @transform_6(%arg0: i32) -> (i32, i32) {
    %c0_i32 = arith.constant 0 : i32
    %c0_i32_0 = arith.constant 0 : i32
    %c0_i32_1 = arith.constant 0 : i32
    return %c0_i32, %c0_i32_0 : i32, i32
  }
  func.func @transform_7(%arg0: i32) -> (i32, i32) {
    %c0_i32 = arith.constant 0 : i32
    %c0_i32_0 = arith.constant 0 : i32
    %c0_i32_1 = arith.constant 0 : i32
    return %c0_i32, %c0_i32_0 : i32, i32
  }
  func.func @transform_8(%arg0: i32) -> (i32, i32) {
    %c0_i32 = arith.constant 0 : i32
    %c0_i32_0 = arith.constant 0 : i32
    %c0_i32_1 = arith.constant 0 : i32
    return %c0_i32, %c0_i32_0 : i32, i32
  }
  func.func @transform_9(%arg0: i32) -> (i32, i32) {
    %c0_i32 = arith.constant 0 : i32
    %c0_i32_0 = arith.constant 0 : i32
    return %arg0, %c0_i32 : i32, i32
  }
}

</mosaic_0001>

<bundles_post_ra>
// kernel: tpu_custom_call.1
= control target key start
LH: loop header
LB: loop body
LE: loop exit
PB: predicated region body
PF: predicated region fallthrough
CT: control target
= control target key end

     0   :  { %s9234_s30 = smov 0   ;;  %s11919_s0 = inlined_call_operand.vmem [shape: f32[6144,64], index: 0, kind: input, shape index: {}]   ;;  %s11920_s1 = inlined_call_operand.vmem [shape: f32[32,64], index: 1, kind: input, shape index: {}]   ;;  %s11921_s2 = inlined_call_operand.vmem [shape: f32[32,1], index: 2, kind: input, shape index: {}]   ;;  %s11922_s3 = inlined_call_operand.vmem [shape: f32[32,32], index: 3, kind: input, shape index: {}]   ;;  %s11923_s4 = inlined_call_operand.vmem [shape: f32[32,1], index: 4, kind: input, shape index: {}]   ;;  %s11924_s5 = inlined_call_operand.vmem [shape: f32[32,32], index: 5, kind: input, shape index: {}]   ;;  %s11925_s6 = inlined_call_operand.vmem [shape: f32[32,1], index: 6, kind: input, shape index: {}]   ;;  %s11926_s7 = inlined_call_operand.vmem [shape: f32[8,32], index: 7, kind: input, shape index: {}]   ;;  %s11927_s8 = inlined_call_operand.vmem [shape: f32[8,1], index: 8, kind: input, shape index: {}]   ;;  %s11928_s9 = inlined_call_operand.vmem [shape: f32[6144,8], index: 9, kind: output, shape index: {}]  }
   0x1 LB: > { %s7053_s10 = sadd.s32 4294967295, %s9180_s30   ;;  %p7057_p0 = scmp.ge.s32.totalorder %s9180_s30, 1  ;;  %s9180_s30 = sphi %s9234_s30, %s19_s30  }
   0x2   : > { %p288_p1 = scmp.lt.s32.totalorder %s9180_s30, 4 }
   0x4   : > { %p289_p2 = pnand %p7057_p0, %p288_p1 }
   0x5   : > { %s7058_s11 = sshll.u32 (!%p289_p2), %s7053_s10, 8  ;;  %vm620_vm0 = vcmask (!%p289_p2), 523264   ;;  %v9245_v0 = vld [vmem:[%s11920_s1] sm:$0xff] (!%p289_p2)  ;;  %v9182_v2 = vmov (!%p289_p2), 0   ;;  %v9183_v3 = vmov (!%p289_p2), 0.0   ;;  %vm2717_vm2 = vcmask (!%p289_p2), 261120  }
   0x6   : > { %292 = sbr.rel (%p289_p2) target bundleno = 1833 (0x729), region = 56  ;;  %p325_p3 = scmp.lt.s32.totalorder (!%p289_p2), %s7058_s11, 767  ;;  %7456 = vmatprep.mubr.msk.f32.mxu0 (!%p289_p2), %vm620_vm0, %v9245_v0  ;;  %7496 = vmatprep.mubr.msk.f32.mxu1 (!%p289_p2), %vm620_vm0, %v9245_v0  ;;  %v596_v1 = vld [vmem:[%s11921_s2] sm:$0xff] (!%p289_p2)  ;;  %vm9266_vm1 = vmpackc.low (!%p289_p2), %vm620_vm0, %vm620_vm0  ;;  %vm6740_vm3 = vcmask (!%p289_p2), 64512  }
   0x7   : > { %8330 = vset.pattern.permute.xlu0 (!%p289_p2), %v9182_v2  ;;  %8331 = vset.pattern.permute.xlu1 (!%p289_p2), %v9182_v2 }
   0x8   : > { %602 = vperm.xlu0 (!%p289_p2), %8330, %v596_v1  }
   0xd   : > { %s11932_s11 = smov (!%p325_p3, %s7058_s11), 767 }
   0xe   : > { %s7059_s16 = sshll.u32 %s11932_s11, 3 }
   0xf   : > { %s9262_s19 = scalar_lea.vmem %s11919_s0, %s7059_s16  ;;  %s11294_s18 = scalar_lea.vmem %s11928_s9, %s7059_s16 }
  0x10   : > { %v352_v4 = vld [vmem:[%s9262_s19 + $0x80] sm:$0xff]  ;;  %v353_v5 = vld [vmem:[%s9262_s19 + $0x88] sm:$0xff]  ;;  %v354_v15 = vld [vmem:[%s9262_s19 + $0x90] sm:$0xff] }
  0x11   : > { %v384_v6 = vld [vmem:[%s9262_s19 + $0x180] sm:$0xff]  ;;  %v7744_v7 = vpack.c.bf16 %v353_v5, %v352_v4  ;;  %v385_v8 = vld [vmem:[%s9262_s19 + $0x188] sm:$0xff]  ;;  %v355_v17 = vld [vmem:[%s9262_s19 + $0x98] sm:$0xff] }
  0x12   : > { %v336_v9 = vld [vmem:[%s9262_s19] sm:$0xff]  ;;  %v337_v10 = vld [vmem:[%s9262_s19 + $0x8] sm:$0xff]  ;;  %v7792_v11 = vpack.c.bf16 %v385_v8, %v384_v6  ;;  %v386_v18 = vld [vmem:[%s9262_s19 + $0x190] sm:$0xff]  ;;  %v7750_v20 = vpack.c.bf16 %v355_v17, %v354_v15 }
  0x13   : > { %v7747_v12 = vpack.c.bf16 %v337_v10, %v336_v9  ;;  %v368_v13 = vld [vmem:[%s9262_s19 + $0x100] sm:$0xff]  ;;  %v369_v14 = vld [vmem:[%s9262_s19 + $0x108] sm:$0xff]  ;;  %7746 = vmatprep.subr.msk.bf16.mxu0 %vm9266_vm1, %v7744_v7  ;;  %v387_v19 = vld [vmem:[%s9262_s19 + $0x198] sm:$0xff] }
  0x14   : > { %v7795_v16 = vpack.c.bf16 %v369_v14, %v368_v13  ;;  %7794 = vmatprep.subr.msk.bf16.mxu1 %vm9266_vm1, %v7792_v11  ;;  %v7798_v21 = vpack.c.bf16 %v387_v19, %v386_v18  ;;  %v338_v22 = vld [vmem:[%s9262_s19 + $0x10] sm:$0xff]  ;;  %v339_v23 = vld [vmem:[%s9262_s19 + $0x18] sm:$0xff]  ;;  %v356_v26 = vld [vmem:[%s9262_s19 + $0xa0] sm:$0xff] }
  0x15   : > { %7749 = vmatpush3.bf16.xpose.msk.msra.mxu0 %vm9266_vm1, %v7747_v12  ;;  %v370_v24 = vld [vmem:[%s9262_s19 + $0x110] sm:$0xff]  ;;  %v371_v25 = vld [vmem:[%s9262_s19 + $0x118] sm:$0xff]  ;;  %v357_v27 = vld [vmem:[%s9262_s19 + $0xa8] sm:$0xff]  ;;  %v7753_v30 = vpack.c.bf16 %v339_v23, %v338_v22 }
  0x16   : > { %7797 = vmatpush3.bf16.xpose.msk.msra.mxu1 %vm9266_vm1, %v7795_v16  ;;  %7752 = vmatprep.subr.msk.bf16.mxu0 %vm9266_vm1, %v7750_v20  ;;  %v388_v28 = vld [vmem:[%s9262_s19 + $0x1a0] sm:$0xff]  ;;  %v389_v29 = vld [vmem:[%s9262_s19 + $0x1a8] sm:$0xff]  ;;  %v7801_v31 = vpack.c.bf16 %v371_v25, %v370_v24  ;;  %v7756_v32 = vpack.c.bf16 %v357_v27, %v356_v26  ;;  %v358_v38 = vld [vmem:[%s9262_s19 + $0xb0] sm:$0xff] }
  0x17   : > { %7800 = vmatprep.subr.msk.bf16.mxu1 %vm9266_vm1, %v7798_v21  ;;  %v7804_v33 = vpack.c.bf16 %v389_v29, %v388_v28  ;;  %v340_v34 = vld [vmem:[%s9262_s19 + $0x20] sm:$0xff]  ;;  %v341_v35 = vld [vmem:[%s9262_s19 + $0x28] sm:$0xff]  ;;  %v359_v39 = vld [vmem:[%s9262_s19 + $0xb8] sm:$0xff] }
  0x18   : > { %v372_v36 = vld [vmem:[%s9262_s19 + $0x120] sm:$0xff]  ;;  %v373_v37 = vld [vmem:[%s9262_s19 + $0x128] sm:$0xff]  ;;  %v390_v40 = vld [vmem:[%s9262_s19 + $0x1b0] sm:$0xff]  ;;  %v7759_v42 = vpack.c.bf16 %v341_v35, %v340_v34  ;;  %v7762_v44 = vpack.c.bf16 %v359_v39, %v358_v38 }
  0x19   : > { %v391_v41 = vld [vmem:[%s9262_s19 + $0x1b8] sm:$0xff]  ;;  %v7807_v43 = vpack.c.bf16 %v373_v37, %v372_v36  ;;  %v342_v46 = vld [vmem:[%s9262_s19 + $0x30] sm:$0xff]  ;;  %v360_v50 = vld [vmem:[%s9262_s19 + $0xc0] sm:$0xff] }
  0x1a   : > { %v7810_v45 = vpack.c.bf16 %v391_v41, %v390_v40  ;;  %v343_v47 = vld [vmem:[%s9262_s19 + $0x38] sm:$0xff]  ;;  %v374_v48 = vld [vmem:[%s9262_s19 + $0x130] sm:$0xff]  ;;  %v361_v51 = vld [vmem:[%s9262_s19 + $0xc8] sm:$0xff] }
  0x1b   : > { %v375_v49 = vld [vmem:[%s9262_s19 + $0x138] sm:$0xff]  ;;  %v392_v52 = vld [vmem:[%s9262_s19 + $0x1c0] sm:$0xff]  ;;  %v393_v53 = vld [vmem:[%s9262_s19 + $0x1c8] sm:$0xff]  ;;  %v7765_v54 = vpack.c.bf16 %v343_v47, %v342_v46  ;;  %v7768_v56 = vpack.c.bf16 %v361_v51, %v360_v50 }
  0x1c   : > { %v7813_v55 = vpack.c.bf16 %v375_v49, %v374_v48  ;;  %v7816_v57 = vpack.c.bf16 %v393_v53, %v392_v52  ;;  %v344_v58 = vld [vmem:[%s9262_s19 + $0x40] sm:$0xff]  ;;  %v345_v59 = vld [vmem:[%s9262_s19 + $0x48] sm:$0xff]  ;;  %v362_v62 = vld [vmem:[%s9262_s19 + $0xd0] sm:$0xff] }
  0x1d   : > { %7755 = vmatpush3.bf16.xpose.msk.msra.mxu0 %vm9266_vm1, %v7753_v30  ;;  %v376_v60 = vld [vmem:[%s9262_s19 + $0x140] sm:$0xff]  ;;  %v377_v61 = vld [vmem:[%s9262_s19 + $0x148] sm:$0xff]  ;;  %v363_v63 = vld [vmem:[%s9262_s19 + $0xd8] sm:$0xff]  ;;  %v7771_v4 = vpack.c.bf16 %v345_v59, %v344_v58 }
  0x1e   : > { %7803 = vmatpush3.bf16.xpose.msk.msra.mxu1 %vm9266_vm1, %v7801_v31  ;;  %7758 = vmatprep.subr.msk.bf16.mxu0 %vm9266_vm1, %v7756_v32  ;;  %v394_v1 = vld [vmem:[%s9262_s19 + $0x1d0] sm:$0xff]  ;;  %v395_v2 = vld [vmem:[%s9262_s19 + $0x1d8] sm:$0xff]  ;;  %v7819_v5 = vpack.c.bf16 %v377_v61, %v376_v60  ;;  %v7774_v6 = vpack.c.bf16 %v363_v63, %v362_v62  ;;  %v364_v12 = vld [vmem:[%s9262_s19 + $0xe0] sm:$0xff] }
  0x1f   : > { %7806 = vmatprep.subr.msk.bf16.mxu1 %vm9266_vm1, %v7804_v33  ;;  %v7822_v7 = vpack.c.bf16 %v395_v2, %v394_v1  ;;  %v346_v8 = vld [vmem:[%s9262_s19 + $0x50] sm:$0xff]  ;;  %v347_v9 = vld [vmem:[%s9262_s19 + $0x58] sm:$0xff]  ;;  %v365_v13 = vld [vmem:[%s9262_s19 + $0xe8] sm:$0xff] }
  0x20   : > { %v378_v10 = vld [vmem:[%s9262_s19 + $0x150] sm:$0xff]  ;;  %v379_v11 = vld [vmem:[%s9262_s19 + $0x158] sm:$0xff]  ;;  %v396_v14 = vld [vmem:[%s9262_s19 + $0x1e0] sm:$0xff]  ;;  %v7777_v16 = vpack.c.bf16 %v347_v9, %v346_v8  ;;  %v7780_v18 = vpack.c.bf16 %v365_v13, %v364_v12 }
  0x21   : > { %v397_v15 = vld [vmem:[%s9262_s19 + $0x1e8] sm:$0xff]  ;;  %v7825_v17 = vpack.c.bf16 %v379_v11, %v378_v10  ;;  %v348_v20 = vld [vmem:[%s9262_s19 + $0x60] sm:$0xff]  ;;  %v366_v25 = vld [vmem:[%s9262_s19 + $0xf0] sm:$0xff] }
  0x22   : > { %v7828_v19 = vpack.c.bf16 %v397_v15, %v396_v14  ;;  %v597_v21 = vld [vmem:[%s11921_s2 + $0x8] sm:$0xff]  ;;  %v380_v23 = vld [vmem:[%s9262_s19 + $0x160] sm:$0xff]  ;;  %v367_v26 = vld [vmem:[%s9262_s19 + $0xf8] sm:$0xff] }
  0x23   : > { %v349_v22 = vld [vmem:[%s9262_s19 + $0x68] sm:$0xff]  ;;  %v398_v27 = vld [vmem:[%s9262_s19 + $0x1f0] sm:$0xff]  ;;  %607 = vperm.xlu0 %8330, %v597_v21   ;;  %v399_v28 = vld [vmem:[%s9262_s19 + $0x1f8] sm:$0xff]  ;;  %v7786_v33 = vpack.c.bf16 %v367_v26, %v366_v25 }
  0x24   : > { %v381_v24 = vld [vmem:[%s9262_s19 + $0x168] sm:$0xff]  ;;  %v2693_v29 = vld [vmem:[%s11923_s4] sm:$0xff]  ;;  %v598_v30 = vld [vmem:[%s11921_s2 + $0x10] sm:$0xff]  ;;  %v7783_v31 = vpack.c.bf16 %v349_v22, %v348_v20  ;;  %v7834_v35 = vpack.c.bf16 %v399_v28, %v398_v27 }
  0x25   : > { %7761 = vmatpush3.bf16.xpose.msk.msra.mxu0 %vm9266_vm1, %v7759_v42  ;;  %612 = vperm.xlu1 %8331, %v598_v30   ;;  %v7831_v32 = vpack.c.bf16 %v381_v24, %v380_v23  ;;  %v599_v34 = vld [vmem:[%s11921_s2 + $0x18] sm:$0xff]  ;;  %v2695_v36 = vld [vmem:[%s11923_s4 + $0x10] sm:$0xff]  ;;  %v2694_v40 = vld [vmem:[%s11923_s4 + $0x8] sm:$0xff] }
  0x26   : > { %7809 = vmatpush3.bf16.xpose.msk.msra.mxu1 %vm9266_vm1, %v7807_v43  ;;  %7764 = vmatprep.subr.msk.bf16.mxu0 %vm9266_vm1, %v7762_v44  ;;  %v350_v37 = vld [vmem:[%s9262_s19 + $0x70] sm:$0xff]  ;;  %v351_v38 = vld [vmem:[%s9262_s19 + $0x78] sm:$0xff]  ;;  %v416_v42 = vld [vmem:[%s9262_s19 + $0x280] sm:$0xff] }
  0x27   : > { %7812 = vmatprep.subr.msk.bf16.mxu1 %vm9266_vm1, %v7810_v45  ;;  %2699 = vperm.xlu0 %8330, %v2693_v29   ;;  %v382_v39 = vld [vmem:[%s9262_s19 + $0x170] sm:$0xff]  ;;  %v383_v41 = vld [vmem:[%s9262_s19 + $0x178] sm:$0xff]  ;;  %v417_v43 = vld [vmem:[%s9262_s19 + $0x288] sm:$0xff]  ;;  %v7789_v47 = vpack.c.bf16 %v351_v38, %v350_v37 }
  0x28   : > { %v448_v44 = vld [vmem:[%s9262_s19 + $0x380] sm:$0xff]  ;;  %v449_v45 = vld [vmem:[%s9262_s19 + $0x388] sm:$0xff]  ;;  %v7837_v48 = vpack.c.bf16 %v383_v41, %v382_v39  ;;  %v7840_v49 = vpack.c.bf16 %v417_v43, %v416_v42  ;;  %v2696_v50 = vld [vmem:[%s11923_s4 + $0x18] sm:$0xff] }
  0x29   : > { %617 = vperm.xlu1 %8331, %v599_v34   ;;  %v4022_v46 = vld [vmem:[%s11925_s6] sm:$0xff]  ;;  %v7888_v51 = vpack.c.bf16 %v449_v45, %v448_v44  ;;  %v4024_v52 = vld [vmem:[%s11925_s6 + $0x10] sm:$0xff]  ;;  %v419_v59 = vld [vmem:[%s9262_s19 + $0x298] sm:$0xff] }
  0x2a   : > { %v400_v53 = vld [vmem:[%s9262_s19 + $0x200] sm:$0xff]  ;;  %v418_v58 = vld [vmem:[%s9262_s19 + $0x290] sm:$0xff]  ;;  %v451_v63 = vld [vmem:[%s9262_s19 + $0x398] sm:$0xff] }
  0x2b   : > { %2709 = vperm.xlu0 %8330, %v2695_v36   ;;  %v5347_v60 = vld [vmem:[%s11927_s8] sm:$0xff]  ;;  %v450_v62 = vld [vmem:[%s9262_s19 + $0x390] sm:$0xff]  ;;  %v9450_v2 = vld [vmem:[%s11920_s1 + $0x8] sm:$0xff] }
  0x2c   : > { %v403_v8 = vld [vmem:[%s9262_s19 + $0x218] sm:$0xff]  ;;  %v434_v9 = vld [vmem:[%s9262_s19 + $0x310] sm:$0xff]  ;;  %v420_v12 = vld [vmem:[%s9262_s19 + $0x2a0] sm:$0xff] }
  0x2d   : > { %7767 = vmatpush3.bf16.xpose.msk.msra.mxu0 %vm9266_vm1, %v7765_v54  ;;  %2704 = vperm.xlu1 %8331, %v2694_v40   ;;  %v401_v54 = vld [vmem:[%s9262_s19 + $0x208] sm:$0xff]  ;;  %v435_v10 = vld [vmem:[%s9262_s19 + $0x318] sm:$0xff]  ;;  %v452_v15 = vld [vmem:[%s9262_s19 + $0x3a0] sm:$0xff] }
  0x2e   : > { %7815 = vmatpush3.bf16.xpose.msk.msra.mxu1 %vm9266_vm1, %v7813_v55  ;;  %7770 = vmatprep.subr.msk.bf16.mxu0 %vm9266_vm1, %v7768_v56  ;;  %v4023_v55 = vld [vmem:[%s11925_s6 + $0x8] sm:$0xff]  ;;  %v432_v56 = vld [vmem:[%s9262_s19 + $0x300] sm:$0xff]  ;;  %v7843_v61 = vpack.c.bf16 %v401_v54, %v400_v53  ;;  %v4025_v11 = vld [vmem:[%s11925_s6 + $0x18] sm:$0xff] }
  0x2f   : > { %7818 = vmatprep.subr.msk.bf16.mxu1 %vm9266_vm1, %v7816_v57  ;;  %4028 = vperm.xlu0 %8330, %v4022_v46   ;;  %v433_v57 = vld [vmem:[%s9262_s19 + $0x308] sm:$0xff]  ;;  %v404_v21 = vld [vmem:[%s9262_s19 + $0x220] sm:$0xff]  ;;  %v422_v25 = vld [vmem:[%s9262_s19 + $0x2b0] sm:$0xff] }
  0x30   : > { %v7891_v1 = vpack.c.bf16 %v433_v57, %v432_v56  ;;  %v421_v13 = vld [vmem:[%s9262_s19 + $0x2a8] sm:$0xff]  ;;  %v436_v23 = vld [vmem:[%s9262_s19 + $0x320] sm:$0xff]  ;;  %v423_v26 = vld [vmem:[%s9262_s19 + $0x2b8] sm:$0xff] }
  0x31   : > { %2714 = vperm.xlu1 %8331, %v2696_v50   ;;  %v405_v22 = vld [vmem:[%s9262_s19 + $0x228] sm:$0xff]  ;;  %v454_v27 = vld [vmem:[%s9262_s19 + $0x3b0] sm:$0xff]  ;;  %v455_v28 = vld [vmem:[%s9262_s19 + $0x3b8] sm:$0xff] }
  0x32   : > { %v437_v24 = vld [vmem:[%s9262_s19 + $0x328] sm:$0xff]  ;;  %v7855_v29 = vpack.c.bf16 %v405_v22, %v404_v21  ;;  %v407_v34 = vld [vmem:[%s9262_s19 + $0x238] sm:$0xff]  ;;  %v424_v37 = vld [vmem:[%s9262_s19 + $0x2c0] sm:$0xff] }
  0x33   : > { %4038 = vperm.xlu0 %8330, %v4024_v52   ;;  %v7903_v30 = vpack.c.bf16 %v437_v24, %v436_v23  ;;  %v439_v36 = vld [vmem:[%s9262_s19 + $0x338] sm:$0xff]  ;;  %v425_v38 = vld [vmem:[%s9262_s19 + $0x2c8] sm:$0xff]  ;;  %v456_v39 = vld [vmem:[%s9262_s19 + $0x3c0] sm:$0xff] }
  0x34   : > { %v457_v40 = vld [vmem:[%s9262_s19 + $0x3c8] sm:$0xff]  ;;  %v7864_v43 = vpack.c.bf16 %v425_v38, %v424_v37  ;;  %v408_v45 = vld [vmem:[%s9262_s19 + $0x240] sm:$0xff]  ;;  %v427_v50 = vld [vmem:[%s9262_s19 + $0x2d8] sm:$0xff] }
  0x35   : > { %7773 = vmatpush3.bf16.xpose.msk.msra.mxu0 %vm9266_vm1, %v7771_v4  ;;  %4033 = vperm.xlu1 %8331, %v4023_v55   ;;  %v7846_v4 = vpack.c.bf16 %v419_v59, %v418_v58  ;;  %v7912_v44 = vpack.c.bf16 %v457_v40, %v456_v39  ;;  %v409_v46 = vld [vmem:[%s9262_s19 + $0x248] sm:$0xff]  ;;  %v459_v52 = vld [vmem:[%s9262_s19 + $0x3d8] sm:$0xff]  ;;  %v410_v57 = vld [vmem:[%s9262_s19 + $0x250] sm:$0xff] }
  0x36   : > { %7821 = vmatpush3.bf16.xpose.msk.msra.mxu1 %vm9266_vm1, %v7819_v5  ;;  %7776 = vmatprep.subr.msk.bf16.mxu0 %vm9266_vm1, %v7774_v6  ;;  %v7894_v5 = vpack.c.bf16 %v451_v63, %v450_v62  ;;  %v9465_v6 = vld [vmem:[%s11920_s1 + $0x10] sm:$0xff]  ;;  %v7867_v53 = vpack.c.bf16 %v409_v46, %v408_v45  ;;  %v411_v58 = vld [vmem:[%s9262_s19 + $0x258] sm:$0xff]  ;;  %v429_v62 = vld [vmem:[%s9262_s19 + $0x2e8] sm:$0xff] }
  0x37   : > { %7824 = vmatprep.subr.msk.bf16.mxu1 %vm9266_vm1, %v7822_v7  ;;  %5350 = vperm.xlu0 %8330, %v5347_v60   ;;  %v402_v7 = vld [vmem:[%s9262_s19 + $0x210] sm:$0xff]  ;;  %v443_v60 = vld [vmem:[%s9262_s19 + $0x358] sm:$0xff]  ;;  %v460_v63 = vld [vmem:[%s9262_s19 + $0x3e0] sm:$0xff] }
  0x38   : > { %v7849_v14 = vpack.c.bf16 %v403_v8, %v402_v7  ;;  %v442_v59 = vld [vmem:[%s9262_s19 + $0x350] sm:$0xff]  ;;  %v415_v23 = vld [vmem:[%s9262_s19 + $0x278] sm:$0xff]  ;;  %v497_v37 = vld [vmem:[%s9262_s19 + $0x508] sm:$0xff] }
  0x39   : > { %4043 = vperm.xlu1 %8331, %v4025_v11   ;;  %v444_v11 = vld [vmem:[%s9262_s19 + $0x360] sm:$0xff]  ;;  %v414_v22 = vld [vmem:[%s9262_s19 + $0x270] sm:$0xff]  ;;  %v483_v39 = vld [vmem:[%s9262_s19 + $0x498] sm:$0xff] }
  0x3a   : > { %v446_v24 = vld [vmem:[%s9262_s19 + $0x370] sm:$0xff] }
  0x3b   : > { %v482_v38 = vld [vmem:[%s9262_s19 + $0x490] sm:$0xff] }
  0x3c   : > { %v466_v46 = vld [vmem:[%s9262_s19 + $0x410] sm:$0xff] }
  0x3d   : > { %7779 = vmatpush3.bf16.xpose.msk.msra.mxu0 %vm9266_vm1, %v7777_v16  ;;  %v453_v16 = vld [vmem:[%s9262_s19 + $0x3a8] sm:$0xff] }
  0x3e   : > { %7827 = vmatpush3.bf16.xpose.msk.msra.mxu1 %vm9266_vm1, %v7825_v17  ;;  %7782 = vmatprep.subr.msk.bf16.mxu0 %vm9266_vm1, %v7780_v18  ;;  %v7897_v17 = vpack.c.bf16 %v435_v10, %v434_v9  ;;  %v9495_v18 = vld [vmem:[%s11920_s1 + $0x18] sm:$0xff]  ;;  %v7900_v20 = vpack.c.bf16 %v453_v16, %v452_v15  ;;  %v412_v9 = vld [vmem:[%s9262_s19 + $0x260] sm:$0xff]  ;;  %v413_v10 = vld [vmem:[%s9262_s19 + $0x268] sm:$0xff] }
  0x3f   : > { %7830 = vmatprep.subr.msk.bf16.mxu1 %vm9266_vm1, %v7828_v19  ;;  %v7852_v19 = vpack.c.bf16 %v421_v13, %v420_v12  ;;  %v445_v12 = vld [vmem:[%s9262_s19 + $0x368] sm:$0xff]  ;;  %v430_v13 = vld [vmem:[%s9262_s19 + $0x2f0] sm:$0xff]  ;;  %v463_v16 = vld [vmem:[%s9262_s19 + $0x3f8] sm:$0xff] }
  0x40   : > { %v462_v15 = vld [vmem:[%s9262_s19 + $0x3f0] sm:$0xff] }
  0x41   : > { %v7930_v21 = vpack.c.bf16 %v463_v16, %v462_v15  ;;  %v489_v15 = vld [vmem:[%s9262_s19 + $0x4c8] sm:$0xff]  ;;  %v520_v16 = vld [vmem:[%s9262_s19 + $0x5c0] sm:$0xff] }
  0x45   : > { %7785 = vmatpush3.bf16.xpose.msk.msra.mxu0 %vm9266_vm1, %v7783_v31  ;;  %v7858_v31 = vpack.c.bf16 %v423_v26, %v422_v25  ;;  %v447_v25 = vld [vmem:[%s9262_s19 + $0x378] sm:$0xff]  ;;  %v480_v26 = vld [vmem:[%s9262_s19 + $0x480] sm:$0xff] }
  0x46   : > { %7833 = vmatpush3.bf16.xpose.msk.msra.mxu1 %vm9266_vm1, %v7831_v32  ;;  %7788 = vmatprep.subr.msk.bf16.mxu0 %vm9266_vm1, %v7786_v33  ;;  %v7906_v32 = vpack.c.bf16 %v455_v28, %v454_v27  ;;  %v406_v33 = vld [vmem:[%s9262_s19 + $0x230] sm:$0xff]  ;;  %v481_v27 = vld [vmem:[%s9262_s19 + $0x488] sm:$0xff]  ;;  %v512_v28 = vld [vmem:[%s9262_s19 + $0x580] sm:$0xff] }
  0x47   : > { %7836 = vmatprep.subr.msk.bf16.mxu1 %vm9266_vm1, %v7834_v35  ;;  %v438_v35 = vld [vmem:[%s9262_s19 + $0x330] sm:$0xff]  ;;  %v7861_v41 = vpack.c.bf16 %v407_v34, %v406_v33  ;;  %v464_v34 = vld [vmem:[%s9262_s19 + $0x400] sm:$0xff] }
  0x48   : > { %v7909_v42 = vpack.c.bf16 %v439_v36, %v438_v35  ;;  %v465_v35 = vld [vmem:[%s9262_s19 + $0x408] sm:$0xff]  ;;  %v496_v36 = vld [vmem:[%s9262_s19 + $0x500] sm:$0xff] }
  0x49   : > { %v7939_v40 = vpack.c.bf16 %v465_v35, %v464_v34  ;;  %v474_v35 = vld [vmem:[%s9262_s19 + $0x450] sm:$0xff] }
  0x4d   : > { %7791 = vmatpush3.bf16.xpose.msk.msra.mxu0 %vm9266_vm1, %v7789_v47  ;;  %v440_v47 = vld [vmem:[%s9262_s19 + $0x340] sm:$0xff] }
  0x4e   : > { %7839 = vmatpush3.bf16.xpose.msk.msra.mxu1 %vm9266_vm1, %v7837_v48  ;;  %7842 = vmatprep.subr.msk.bf16.mxu0 %vm9266_vm1, %v7840_v49  ;;  %v441_v48 = vld [vmem:[%s9262_s19 + $0x348] sm:$0xff]  ;;  %v426_v49 = vld [vmem:[%s9262_s19 + $0x2d0] sm:$0xff] }
  0x4f   : > { %7890 = vmatprep.subr.msk.bf16.mxu1 %vm9266_vm1, %v7888_v51  ;;  %v458_v51 = vld [vmem:[%s9262_s19 + $0x3d0] sm:$0xff]  ;;  %v7915_v54 = vpack.c.bf16 %v441_v48, %v440_v47  ;;  %v7870_v55 = vpack.c.bf16 %v427_v50, %v426_v49  ;;  %v467_v47 = vld [vmem:[%s9262_s19 + $0x418] sm:$0xff]  ;;  %v484_v50 = vld [vmem:[%s9262_s19 + $0x4a0] sm:$0xff] }
  0x50   : > { %v7918_v56 = vpack.c.bf16 %v459_v52, %v458_v51  ;;  %v498_v48 = vld [vmem:[%s9262_s19 + $0x510] sm:$0xff]  ;;  %v499_v49 = vld [vmem:[%s9262_s19 + $0x518] sm:$0xff]  ;;  %v485_v51 = vld [vmem:[%s9262_s19 + $0x4a8] sm:$0xff]  ;;  %v7945_v52 = vpack.c.bf16 %v467_v47, %v466_v46 }
  0x51   : > { %v476_v47 = vld [vmem:[%s9262_s19 + $0x460] sm:$0xff] }
  0x54   : > { %7457 = vmatmul.mubr.msk.f32.vlgmr.msra.gmra.mrb[0].mxu0 %vm620_vm0, %v9245_v0 }
  0x55   : > { %7497 = vmatmul.mubr.msk.f32.vlgmr.msra.gmra.mrb[0].mxu1 %vm620_vm0, %v9245_v0  ;;  %7845 = vmatpush3.bf16.xpose.msk.msra.mxu0 %vm9266_vm1, %v7843_v61  ;;  %v428_v61 = vld [vmem:[%s9262_s19 + $0x2e0] sm:$0xff] }
  0x56   : > { %7893 = vmatpush3.bf16.xpose.msk.msra.mxu1 %vm9266_vm1, %v7891_v1  ;;  %7458 = vmatprep.mubr.msk.f32.mxu0 %vm620_vm0, %v9450_v2  ;;  %v461_v1 = vld [vmem:[%s9262_s19 + $0x3e8] sm:$0xff]  ;;  %v7876_v7 = vpack.c.bf16 %v429_v62, %v428_v61  ;;  %v486_v62 = vld [vmem:[%s9262_s19 + $0x4b0] sm:$0xff] }
  0x57   : > { %7498 = vmatprep.mubr.msk.f32.mxu1 %vm620_vm0, %v9450_v2  ;;  %7848 = vmatprep.subr.msk.bf16.mxu0 %vm9266_vm1, %v7846_v4  ;;  %v7873_v4 = vpack.c.bf16 %v411_v58, %v410_v57  ;;  %v7924_v8 = vpack.c.bf16 %v461_v1, %v460_v63  ;;  %v468_v58 = vld [vmem:[%s9262_s19 + $0x420] sm:$0xff]  ;;  %v501_v61 = vld [vmem:[%s9262_s19 + $0x528] sm:$0xff]  ;;  %v487_v63 = vld [vmem:[%s9262_s19 + $0x4b8] sm:$0xff] }
  0x58   : > { %7459 = vmatmul.mubr.msk.f32.gmra.mrb[2].mxu0 %vm620_vm0, %v9450_v2  ;;  %7896 = vmatprep.subr.msk.bf16.mxu1 %vm9266_vm1, %v7894_v5  ;;  %v7921_v5 = vpack.c.bf16 %v443_v60, %v442_v59  ;;  %v469_v59 = vld [vmem:[%s9262_s19 + $0x428] sm:$0xff]  ;;  %v500_v60 = vld [vmem:[%s9262_s19 + $0x520] sm:$0xff]  ;;  %v518_v1 = vld [vmem:[%s9262_s19 + $0x5b0] sm:$0xff] }
  0x59   : > { %7499 = vmatmul.mubr.msk.f32.gmra.mrb[2].mxu1 %vm620_vm0, %v9450_v2  ;;  %7460 = vmatprep.mubr.msk.f32.mxu0 %vm620_vm0, %v9465_v6 }
  0x5a   : > { %7500 = vmatprep.mubr.msk.f32.mxu1 %vm620_vm0, %v9465_v6 }
  0x5c   : > { %7461 = vmatmul.mubr.msk.f32.gmra.mrb[4].mxu0 %vm620_vm0, %v9465_v6 }
  0x5d   : > { %7501 = vmatmul.mubr.msk.f32.gmra.mrb[4].mxu1 %vm620_vm0, %v9465_v6  ;;  %7851 = vmatpush3.bf16.xpose.msk.msra.mxu0 %vm9266_vm1, %v7849_v14  ;;  %v431_v14 = vld [vmem:[%s9262_s19 + $0x2f8] sm:$0xff] }
  0x5e   : > { %7899 = vmatpush3.bf16.xpose.msk.msra.mxu1 %vm9266_vm1, %v7897_v17  ;;  %7462 = vmatprep.mubr.msk.f32.mxu0 %vm620_vm0, %v9495_v18  ;;  %v7879_v17 = vpack.c.bf16 %v413_v10, %v412_v9  ;;  %v470_v10 = vld [vmem:[%s9262_s19 + $0x430] sm:$0xff] }
  0x5f   : > { %7502 = vmatprep.mubr.msk.f32.mxu1 %vm620_vm0, %v9495_v18  ;;  %7854 = vmatprep.subr.msk.bf16.mxu0 %vm9266_vm1, %v7852_v19  ;;  %v7927_v19 = vpack.c.bf16 %v445_v12, %v444_v11  ;;  %v471_v11 = vld [vmem:[%s9262_s19 + $0x438] sm:$0xff]  ;;  %v502_v12 = vld [vmem:[%s9262_s19 + $0x530] sm:$0xff] }
  0x60   : > { %7463 = vmatmul.mubr.msk.f32.gmra.mrb[6].mxu0 %vm620_vm0, %v9495_v18  ;;  %7902 = vmatprep.subr.msk.bf16.mxu1 %vm9266_vm1, %v7900_v20  ;;  %v7882_v20 = vpack.c.bf16 %v431_v14, %v430_v13  ;;  %v503_v13 = vld [vmem:[%s9262_s19 + $0x538] sm:$0xff]  ;;  %v488_v14 = vld [vmem:[%s9262_s19 + $0x4c0] sm:$0xff] }
  0x61   : > { %7503 = vmatmul.mubr.msk.f32.gmra.mrb[6].mxu1 %vm620_vm0, %v9495_v18  ;;  %7536 = vmatprep.mubr.msk.f32.mxu0 %vm620_vm0, %v9245_v0 }
  0x62   : > { %7576 = vmatprep.mubr.msk.f32.mxu1 %vm620_vm0, %v9245_v0 }
  0x65   : > { %7857 = vmatpush3.bf16.xpose.msk.msra.mxu0 %vm9266_vm1, %v7855_v29  ;;  %v513_v29 = vld [vmem:[%s9262_s19 + $0x588] sm:$0xff] }
  0x66   : > { %7905 = vmatpush3.bf16.xpose.msk.msra.mxu1 %vm9266_vm1, %v7903_v30  ;;  %7860 = vmatprep.subr.msk.bf16.mxu0 %vm9266_vm1, %v7858_v31  ;;  %v7885_v30 = vpack.c.bf16 %v415_v23, %v414_v22  ;;  %v7933_v31 = vpack.c.bf16 %v447_v25, %v446_v24  ;;  %v7984_v33 = vpack.c.bf16 %v513_v29, %v512_v28  ;;  %v472_v23 = vld [vmem:[%s9262_s19 + $0x440] sm:$0xff]  ;;  %v473_v24 = vld [vmem:[%s9262_s19 + $0x448] sm:$0xff]  ;;  %v491_v28 = vld [vmem:[%s9262_s19 + $0x4d8] sm:$0xff] }
  0x67   : > { %7908 = vmatprep.subr.msk.bf16.mxu1 %vm9266_vm1, %v7906_v32  ;;  %v7936_v32 = vpack.c.bf16 %v481_v27, %v480_v26  ;;  %v504_v25 = vld [vmem:[%s9262_s19 + $0x540] sm:$0xff]  ;;  %v505_v26 = vld [vmem:[%s9262_s19 + $0x548] sm:$0xff]  ;;  %v490_v27 = vld [vmem:[%s9262_s19 + $0x4d0] sm:$0xff] }
  0x68   : > { %v522_v29 = vld [vmem:[%s9262_s19 + $0x5d0] sm:$0xff] }
  0x6d   : > { %7863 = vmatpush3.bf16.xpose.msk.msra.mxu0 %vm9266_vm1, %v7861_v41  ;;  %v514_v41 = vld [vmem:[%s9262_s19 + $0x590] sm:$0xff] }
  0x6e   : > { %7911 = vmatpush3.bf16.xpose.msk.msra.mxu1 %vm9266_vm1, %v7909_v42  ;;  %7866 = vmatprep.subr.msk.bf16.mxu0 %vm9266_vm1, %v7864_v43  ;;  %v515_v42 = vld [vmem:[%s9262_s19 + $0x598] sm:$0xff]  ;;  %v7987_v43 = vpack.c.bf16 %v497_v37, %v496_v36  ;;  %v506_v37 = vld [vmem:[%s9262_s19 + $0x550] sm:$0xff] }
  0x6f   : > { %7914 = vmatprep.subr.msk.bf16.mxu1 %vm9266_vm1, %v7912_v44  ;;  %v7942_v44 = vpack.c.bf16 %v483_v39, %v482_v38  ;;  %v7990_v45 = vpack.c.bf16 %v515_v42, %v514_v41  ;;  %v475_v36 = vld [vmem:[%s9262_s19 + $0x458] sm:$0xff]  ;;  %v492_v39 = vld [vmem:[%s9262_s19 + $0x4e0] sm:$0xff]  ;;  %v525_v42 = vld [vmem:[%s9262_s19 + $0x5e8] sm:$0xff] }
  0x70   : > { %v507_v38 = vld [vmem:[%s9262_s19 + $0x558] sm:$0xff]  ;;  %v524_v41 = vld [vmem:[%s9262_s19 + $0x5e0] sm:$0xff] }
  0x71   : > { %v8020_v46 = vpack.c.bf16 %v525_v42, %v524_v41  ;;  %v582_v41 = vld [vmem:[%s9262_s19 + $0x7b0] sm:$0xff]  ;;  %v583_v42 = vld [vmem:[%s9262_s19 + $0x7b8] sm:$0xff] }
  0x75   : > { %7869 = vmatpush3.bf16.xpose.msk.msra.mxu0 %vm9266_vm1, %v7867_v53  ;;  %v516_v53 = vld [vmem:[%s9262_s19 + $0x5a0] sm:$0xff] }
  0x76   : > { %7917 = vmatpush3.bf16.xpose.msk.msra.mxu1 %vm9266_vm1, %v7915_v54  ;;  %7872 = vmatprep.subr.msk.bf16.mxu0 %vm9266_vm1, %v7870_v55  ;;  %v517_v54 = vld [vmem:[%s9262_s19 + $0x5a8] sm:$0xff]  ;;  %v7993_v55 = vpack.c.bf16 %v499_v49, %v498_v48  ;;  %v508_v49 = vld [vmem:[%s9262_s19 + $0x560] sm:$0xff] }
  0x77   : > { %7920 = vmatprep.subr.msk.bf16.mxu1 %vm9266_vm1, %v7918_v56  ;;  %v7948_v56 = vpack.c.bf16 %v485_v51, %v484_v50  ;;  %v7996_v57 = vpack.c.bf16 %v517_v54, %v516_v53  ;;  %v477_v48 = vld [vmem:[%s9262_s19 + $0x468] sm:$0xff]  ;;  %v494_v51 = vld [vmem:[%s9262_s19 + $0x4f0] sm:$0xff]  ;;  %v527_v54 = vld [vmem:[%s9262_s19 + $0x5f8] sm:$0xff] }
  0x78   : > { %v509_v50 = vld [vmem:[%s9262_s19 + $0x568] sm:$0xff]  ;;  %v526_v53 = vld [vmem:[%s9262_s19 + $0x5f0] sm:$0xff] }
  0x7d   : > { %7875 = vmatpush3.bf16.xpose.msk.msra.mxu0 %vm9266_vm1, %v7873_v4  ;;  %v519_v4 = vld [vmem:[%s9262_s19 + $0x5b8] sm:$0xff] }
  0x7e   : > { %7923 = vmatpush3.bf16.xpose.msk.msra.mxu1 %vm9266_vm1, %v7921_v5  ;;  %7878 = vmatprep.subr.msk.bf16.mxu0 %vm9266_vm1, %v7876_v7  ;;  %v7951_v5 = vpack.c.bf16 %v469_v59, %v468_v58  ;;  %v7999_v7 = vpack.c.bf16 %v501_v61, %v500_v60  ;;  %v8002_v9 = vpack.c.bf16 %v519_v4, %v518_v1  ;;  %v478_v59 = vld [vmem:[%s9262_s19 + $0x470] sm:$0xff]  ;;  %v479_v60 = vld [vmem:[%s9262_s19 + $0x478] sm:$0xff]  ;;  %v545_v1 = vld [vmem:[%s9262_s19 + $0x688] sm:$0xff] }
  0x7f   : > { %7926 = vmatprep.subr.msk.bf16.mxu1 %vm9266_vm1, %v7924_v8  ;;  %v7954_v8 = vpack.c.bf16 %v487_v63, %v486_v62  ;;  %v8026_v58 = vpack.c.bf16 %v527_v54, %v526_v53  ;;  %v510_v61 = vld [vmem:[%s9262_s19 + $0x570] sm:$0xff]  ;;  %v511_v62 = vld [vmem:[%s9262_s19 + $0x578] sm:$0xff]  ;;  %v544_v63 = vld [vmem:[%s9262_s19 + $0x680] sm:$0xff] }
  0x80   : > { %v576_v4 = vld [vmem:[%s9262_s19 + $0x780] sm:$0xff]  ;;  %v553_v53 = vld [vmem:[%s9262_s19 + $0x6c8] sm:$0xff] }
  0x81   : > { %v584_v54 = vld [vmem:[%s9262_s19 + $0x7c0] sm:$0xff] }
  0x85   : > { %7881 = vmatpush3.bf16.xpose.msk.msra.mxu0 %vm9266_vm1, %v7879_v17  ;;  %v521_v17 = vld [vmem:[%s9262_s19 + $0x5c8] sm:$0xff] }
  0x86   : > { %7929 = vmatpush3.bf16.xpose.msk.msra.mxu1 %vm9266_vm1, %v7927_v19  ;;  %7884 = vmatprep.subr.msk.bf16.mxu0 %vm9266_vm1, %v7882_v20  ;;  %v7957_v19 = vpack.c.bf16 %v471_v11, %v470_v10  ;;  %v8005_v20 = vpack.c.bf16 %v503_v13, %v502_v12  ;;  %v8008_v22 = vpack.c.bf16 %v521_v17, %v520_v16  ;;  %v528_v11 = vld [vmem:[%s9262_s19 + $0x600] sm:$0xff]  ;;  %v529_v12 = vld [vmem:[%s9262_s19 + $0x608] sm:$0xff]  ;;  %v547_v16 = vld [vmem:[%s9262_s19 + $0x698] sm:$0xff] }
  0x87   : > { %7932 = vmatprep.subr.msk.bf16.mxu1 %vm9266_vm1, %v7930_v21  ;;  %v7960_v21 = vpack.c.bf16 %v489_v15, %v488_v14  ;;  %v560_v13 = vld [vmem:[%s9262_s19 + $0x700] sm:$0xff]  ;;  %v561_v14 = vld [vmem:[%s9262_s19 + $0x708] sm:$0xff]  ;;  %v546_v15 = vld [vmem:[%s9262_s19 + $0x690] sm:$0xff]  ;;  %v8035_v17 = vpack.c.bf16 %v529_v12, %v528_v11 }
  0x88   : > { %v538_v12 = vld [vmem:[%s9262_s19 + $0x650] sm:$0xff] }
  0x8d   : > { %7887 = vmatpush3.bf16.xpose.msk.msra.mxu0 %vm9266_vm1, %v7885_v30  ;;  %v523_v30 = vld [vmem:[%s9262_s19 + $0x5d8] sm:$0xff] }
  0x8e   : > { %7935 = vmatpush3.bf16.xpose.msk.msra.mxu1 %vm9266_vm1, %v7933_v31  ;;  %7938 = vmatprep.subr.msk.bf16.mxu0 %vm9266_vm1, %v7936_v32  ;;  %v7963_v31 = vpack.c.bf16 %v473_v24, %v472_v23  ;;  %v8011_v32 = vpack.c.bf16 %v505_v26, %v504_v25  ;;  %v8014_v34 = vpack.c.bf16 %v523_v30, %v522_v29  ;;  %v530_v24 = vld [vmem:[%s9262_s19 + $0x610] sm:$0xff]  ;;  %v531_v25 = vld [vmem:[%s9262_s19 + $0x618] sm:$0xff]  ;;  %v580_v30 = vld [vmem:[%s9262_s19 + $0x7a0] sm:$0xff] }
  0x8f   : > { %7986 = vmatprep.subr.msk.bf16.mxu1 %vm9266_vm1, %v7984_v33  ;;  %v7966_v33 = vpack.c.bf16 %v491_v28, %v490_v27  ;;  %v563_v26 = vld [vmem:[%s9262_s19 + $0x718] sm:$0xff]  ;;  %v548_v27 = vld [vmem:[%s9262_s19 + $0x6a0] sm:$0xff]  ;;  %v549_v28 = vld [vmem:[%s9262_s19 + $0x6a8] sm:$0xff]  ;;  %v8041_v29 = vpack.c.bf16 %v531_v25, %v530_v24 }
  0x90   : > { %v540_v25 = vld [vmem:[%s9262_s19 + $0x660] sm:$0xff] }
  0x94   : > { %7537 = vmatmul.mubr.msk.f32.vlgmr.msra.gmra.mrb[8].mxu0 %vm620_vm0, %v9245_v0 }
  0x95   : > { %7577 = vmatmul.mubr.msk.f32.vlgmr.msra.gmra.mrb[8].mxu1 %vm620_vm0, %v9245_v0  ;;  %7941 = vmatpush3.bf16.xpose.msk.msra.mxu0 %vm9266_vm1, %v7939_v40  ;;  %v493_v40 = vld [vmem:[%s9262_s19 + $0x4e8] sm:$0xff] }
  0x96   : > { %7989 = vmatpush3.bf16.xpose.msk.msra.mxu1 %vm9266_vm1, %v7987_v43  ;;  %7538 = vmatprep.mubr.msk.f32.mxu0 %vm620_vm0, %v9450_v2  ;;  %v7969_v43 = vpack.c.bf16 %v475_v36, %v474_v35  ;;  %v532_v35 = vld [vmem:[%s9262_s19 + $0x620] sm:$0xff]  ;;  %v533_v36 = vld [vmem:[%s9262_s19 + $0x628] sm:$0xff] }
  0x97   : > { %7578 = vmatprep.mubr.msk.f32.mxu1 %vm620_vm0, %v9450_v2  ;;  %7944 = vmatprep.subr.msk.bf16.mxu0 %vm9266_vm1, %v7942_v44  ;;  %v8017_v44 = vpack.c.bf16 %v507_v38, %v506_v37  ;;  %v564_v37 = vld [vmem:[%s9262_s19 + $0x720] sm:$0xff]  ;;  %v565_v38 = vld [vmem:[%s9262_s19 + $0x728] sm:$0xff] }
  0x98   : > { %7539 = vmatmul.mubr.msk.f32.gmra.mrb[10].mxu0 %vm620_vm0, %v9450_v2  ;;  %7992 = vmatprep.subr.msk.bf16.mxu1 %vm9266_vm1, %v7990_v45  ;;  %v7972_v45 = vpack.c.bf16 %v493_v40, %v492_v39  ;;  %v550_v39 = vld [vmem:[%s9262_s19 + $0x6b0] sm:$0xff]  ;;  %v551_v40 = vld [vmem:[%s9262_s19 + $0x6b8] sm:$0xff] }
  0x99   : > { %7579 = vmatmul.mubr.msk.f32.gmra.mrb[10].mxu1 %vm620_vm0, %v9450_v2  ;;  %7540 = vmatprep.mubr.msk.f32.mxu0 %vm620_vm0, %v9465_v6 }
  0x9a   : > { %7580 = vmatprep.mubr.msk.f32.mxu1 %vm620_vm0, %v9465_v6 }
  0x9c   : > { %7541 = vmatmul.mubr.msk.f32.gmra.mrb[12].mxu0 %vm620_vm0, %v9465_v6 }
  0x9d   : > { %7581 = vmatmul.mubr.msk.f32.gmra.mrb[12].mxu1 %vm620_vm0, %v9465_v6  ;;  %7947 = vmatpush3.bf16.xpose.msk.msra.mxu0 %vm9266_vm1, %v7945_v52  ;;  %v495_v52 = vld [vmem:[%s9262_s19 + $0x4f8] sm:$0xff] }
  0x9e   : > { %7995 = vmatpush3.bf16.xpose.msk.msra.mxu1 %vm9266_vm1, %v7993_v55  ;;  %7542 = vmatprep.mubr.msk.f32.mxu0 %vm620_vm0, %v9495_v18  ;;  %v7975_v55 = vpack.c.bf16 %v477_v48, %v476_v47  ;;  %v8098_v47 = vpack.c.bf16 %v583_v42, %v582_v41  ;;  %v534_v48 = vld [vmem:[%s9262_s19 + $0x630] sm:$0xff] }
  0x9f   : > { %7582 = vmatprep.mubr.msk.f32.mxu1 %vm620_vm0, %v9495_v18  ;;  %7950 = vmatprep.subr.msk.bf16.mxu0 %vm9266_vm1, %v7948_v56  ;;  %v8023_v56 = vpack.c.bf16 %v509_v50, %v508_v49  ;;  %v535_v49 = vld [vmem:[%s9262_s19 + $0x638] sm:$0xff]  ;;  %v566_v50 = vld [vmem:[%s9262_s19 + $0x730] sm:$0xff] }
  0xa0   : > { %7543 = vmatmul.mubr.msk.f32.gmra.mrb[14].mxu0 %vm620_vm0, %v9495_v18  ;;  %7998 = vmatprep.subr.msk.bf16.mxu1 %vm9266_vm1, %v7996_v57  ;;  %v7978_v57 = vpack.c.bf16 %v495_v52, %v494_v51  ;;  %v567_v51 = vld [vmem:[%s9262_s19 + $0x738] sm:$0xff]  ;;  %v552_v52 = vld [vmem:[%s9262_s19 + $0x6c0] sm:$0xff] }
  0xa1   : > { %7583 = vmatmul.mubr.msk.f32.gmra.mrb[14].mxu1 %vm620_vm0, %v9495_v18  ;;  %7616 = vmatprep.mubr.msk.f32.mxu0 %vm620_vm0, %v9245_v0 }
  0xa2   : > { %7656 = vmatprep.mubr.msk.f32.mxu1 %vm620_vm0, %v9245_v0 }
  0xa5   : > { %7953 = vmatpush3.bf16.xpose.msk.msra.mxu0 %vm9266_vm1, %v7951_v5  ;;  %v577_v5 = vld [vmem:[%s9262_s19 + $0x788] sm:$0xff] }
  0xa6   : > { %8001 = vmatpush3.bf16.xpose.msk.msra.mxu1 %vm9266_vm1, %v7999_v7  ;;  %7956 = vmatprep.subr.msk.bf16.mxu0 %vm9266_vm1, %v7954_v8  ;;  %v7981_v7 = vpack.c.bf16 %v479_v60, %v478_v59  ;;  %v8029_v8 = vpack.c.bf16 %v511_v62, %v510_v61  ;;  %v8080_v10 = vpack.c.bf16 %v577_v5, %v576_v4  ;;  %v536_v60 = vld [vmem:[%s9262_s19 + $0x640] sm:$0xff]  ;;  %v537_v61 = vld [vmem:[%s9262_s19 + $0x648] sm:$0xff]  ;;  %v555_v4 = vld [vmem:[%s9262_s19 + $0x6d8] sm:$0xff] }
  0xa7   : > { %8004 = vmatprep.subr.msk.bf16.mxu1 %vm9266_vm1, %v8002_v9  ;;  %v8032_v9 = vpack.c.bf16 %v545_v1, %v544_v63  ;;  %v568_v62 = vld [vmem:[%s9262_s19 + $0x740] sm:$0xff]  ;;  %v569_v63 = vld [vmem:[%s9262_s19 + $0x748] sm:$0xff]  ;;  %v554_v1 = vld [vmem:[%s9262_s19 + $0x6d0] sm:$0xff] }
  0xa8   : > { %v586_v5 = vld [vmem:[%s9262_s19 + $0x7d0] sm:$0xff] }
  0xad   : > { %7959 = vmatpush3.bf16.xpose.msk.msra.mxu0 %vm9266_vm1, %v7957_v19  ;;  %v578_v19 = vld [vmem:[%s9262_s19 + $0x790] sm:$0xff] }
  0xae   : > { %8007 = vmatpush3.bf16.xpose.msk.msra.mxu1 %vm9266_vm1, %v8005_v20  ;;  %7962 = vmatprep.subr.msk.bf16.mxu0 %vm9266_vm1, %v7960_v21  ;;  %v579_v20 = vld [vmem:[%s9262_s19 + $0x798] sm:$0xff]  ;;  %v8083_v21 = vpack.c.bf16 %v561_v14, %v560_v13  ;;  %v570_v14 = vld [vmem:[%s9262_s19 + $0x750] sm:$0xff] }
  0xaf   : > { %8010 = vmatprep.subr.msk.bf16.mxu1 %vm9266_vm1, %v8008_v22  ;;  %v8038_v22 = vpack.c.bf16 %v547_v16, %v546_v15  ;;  %v8086_v23 = vpack.c.bf16 %v579_v20, %v578_v19  ;;  %v539_v13 = vld [vmem:[%s9262_s19 + $0x658] sm:$0xff]  ;;  %v556_v16 = vld [vmem:[%s9262_s19 + $0x6e0] sm:$0xff]  ;;  %v589_v20 = vld [vmem:[%s9262_s19 + $0x7e8] sm:$0xff] }
  0xb0   : > { %v571_v15 = vld [vmem:[%s9262_s19 + $0x758] sm:$0xff]  ;;  %v588_v19 = vld [vmem:[%s9262_s19 + $0x7e0] sm:$0xff] }
  0xb1   : > { %v8116_v24 = vpack.c.bf16 %v589_v20, %v588_v19 }
  0xb5   : > { %7965 = vmatpush3.bf16.xpose.msk.msra.mxu0 %vm9266_vm1, %v7963_v31  ;;  %v581_v31 = vld [vmem:[%s9262_s19 + $0x7a8] sm:$0xff] }
  0xb6   : > { %8013 = vmatpush3.bf16.xpose.msk.msra.mxu1 %vm9266_vm1, %v8011_v32  ;;  %7968 = vmatprep.subr.msk.bf16.mxu0 %vm9266_vm1, %v7966_v33  ;;  %v8044_v33 = vpack.c.bf16 %v549_v28, %v548_v27  ;;  %v573_v27 = vld [vmem:[%s9262_s19 + $0x768] sm:$0xff]  ;;  %v558_v28 = vld [vmem:[%s9262_s19 + $0x6f0] sm:$0xff] }
  0xb7   : > { %8016 = vmatprep.subr.msk.bf16.mxu1 %vm9266_vm1, %v8014_v34  ;;  %v8092_v34 = vpack.c.bf16 %v581_v31, %v580_v30  ;;  %v590_v30 = vld [vmem:[%s9262_s19 + $0x7f0] sm:$0xff]  ;;  %v591_v31 = vld [vmem:[%s9262_s19 + $0x7f8] sm:$0xff] }
  0xbd   : > { %7971 = vmatpush3.bf16.xpose.msk.msra.mxu0 %vm9266_vm1, %v7969_v43  ;;  %v8047_v43 = vpack.c.bf16 %v533_v36, %v532_v35  ;;  %v8122_v35 = vpack.c.bf16 %v591_v31, %v590_v30  ;;  %v542_v36 = vld [vmem:[%s9262_s19 + $0x670] sm:$0xff] }
  0xbe   : > { %8019 = vmatpush3.bf16.xpose.msk.msra.mxu1 %vm9266_vm1, %v8017_v44  ;;  %7974 = vmatprep.subr.msk.bf16.mxu0 %vm9266_vm1, %v7972_v45  ;;  %v9848_v44 = vld [vmem:[%s11920_s1] sm:$0xff]  ;;  %v8095_v45 = vpack.c.bf16 %v565_v38, %v564_v37  ;;  %v543_v37 = vld [vmem:[%s9262_s19 + $0x678] sm:$0xff]  ;;  %v574_v38 = vld [vmem:[%s9262_s19 + $0x770] sm:$0xff] }
  0xbf   : > { %8022 = vmatprep.subr.msk.bf16.mxu1 %vm9266_vm1, %v8020_v46  ;;  %v8050_v46 = vpack.c.bf16 %v551_v40, %v550_v39  ;;  %v575_v39 = vld [vmem:[%s9262_s19 + $0x778] sm:$0xff]  ;;  %v8077_v40 = vpack.c.bf16 %v543_v37, %v542_v36 }
  0xc0   : > { %v8125_v41 = vpack.c.bf16 %v575_v39, %v574_v38 }
  0xc5   : > { %7977 = vmatpush3.bf16.xpose.msk.msra.mxu0 %vm9266_vm1, %v7975_v55  ;;  %v585_v55 = vld [vmem:[%s9262_s19 + $0x7c8] sm:$0xff] }
  0xc6   : > { %8025 = vmatpush3.bf16.xpose.msk.msra.mxu1 %vm9266_vm1, %v8023_v56  ;;  %7980 = vmatprep.subr.msk.bf16.mxu0 %vm9266_vm1, %v7978_v57  ;;  %v8053_v56 = vpack.c.bf16 %v535_v49, %v534_v48  ;;  %v8101_v57 = vpack.c.bf16 %v567_v51, %v566_v50  ;;  %v8104_v59 = vpack.c.bf16 %v585_v55, %v584_v54 }
  0xc7   : > { %8028 = vmatprep.subr.msk.bf16.mxu1 %vm9266_vm1, %v8026_v58  ;;  %v8056_v58 = vpack.c.bf16 %v553_v53, %v552_v52 }
  0xcd   : > { %7983 = vmatpush3.bf16.xpose.msk.msra.mxu0 %vm9266_vm1, %v7981_v7  ;;  %v587_v7 = vld [vmem:[%s9262_s19 + $0x7d8] sm:$0xff] }
  0xce   : > { %8031 = vmatpush3.bf16.xpose.msk.msra.mxu1 %vm9266_vm1, %v8029_v8  ;;  %8034 = vmatprep.subr.msk.bf16.mxu0 %vm9266_vm1, %v8032_v9  ;;  %v8059_v8 = vpack.c.bf16 %v537_v61, %v536_v60  ;;  %v8107_v9 = vpack.c.bf16 %v569_v63, %v568_v62  ;;  %v8110_v11 = vpack.c.bf16 %v587_v7, %v586_v5 }
  0xcf   : > { %8082 = vmatprep.subr.msk.bf16.mxu1 %vm9266_vm1, %v8080_v10  ;;  %v8062_v10 = vpack.c.bf16 %v555_v4, %v554_v1 }
  0xd4   : > { %7617 = vmatmul.mubr.msk.f32.vlgmr.msra.gmra.mrb[16].mxu0 %vm620_vm0, %v9245_v0 }
  0xd5   : > { %7657 = vmatmul.mubr.msk.f32.vlgmr.msra.gmra.mrb[16].mxu1 %vm620_vm0, %v9245_v0  ;;  %8037 = vmatpush3.bf16.xpose.msk.msra.mxu0 %vm9266_vm1, %v8035_v17  ;;  %v562_v0 = vld [vmem:[%s9262_s19 + $0x710] sm:$0xff]  ;;  %v557_v17 = vld [vmem:[%s9262_s19 + $0x6e8] sm:$0xff] }
  0xd6   : > { %8085 = vmatpush3.bf16.xpose.msk.msra.mxu1 %vm9266_vm1, %v8083_v21  ;;  %7618 = vmatprep.mubr.msk.f32.mxu0 %vm620_vm0, %v9450_v2  ;;  %v8089_v32 = vpack.c.bf16 %v563_v26, %v562_v0  ;;  %v8065_v21 = vpack.c.bf16 %v539_v13, %v538_v12  ;;  %v541_v0 = vld [vmem:[%s9262_s19 + $0x668] sm:$0xff]  ;;  %v572_v26 = vld [vmem:[%s9262_s19 + $0x760] sm:$0xff] }
  0xd7   : > { %7658 = vmatprep.mubr.msk.f32.mxu1 %vm620_vm0, %v9450_v2  ;;  %8040 = vmatprep.subr.msk.bf16.mxu0 %vm9266_vm1, %v8038_v22  ;;  %v8113_v22 = vpack.c.bf16 %v571_v15, %v570_v14 }
  0xd8   : > { %7619 = vmatmul.mubr.msk.f32.gmra.mrb[18].mxu0 %vm620_vm0, %v9450_v2  ;;  %8088 = vmatprep.subr.msk.bf16.mxu1 %vm9266_vm1, %v8086_v23  ;;  %v8068_v23 = vpack.c.bf16 %v557_v17, %v556_v16 }
  0xd9   : > { %7659 = vmatmul.mubr.msk.f32.gmra.mrb[18].mxu1 %vm620_vm0, %v9450_v2  ;;  %7620 = vmatprep.mubr.msk.f32.mxu0 %vm620_vm0, %v9465_v6 }
  0xda   : > { %7660 = vmatprep.mubr.msk.f32.mxu1 %vm620_vm0, %v9465_v6 }
  0xdc   : > { %7621 = vmatmul.mubr.msk.f32.gmra.mrb[20].mxu0 %vm620_vm0, %v9465_v6 }
  0xdd   : > { %7661 = vmatmul.mubr.msk.f32.gmra.mrb[20].mxu1 %vm620_vm0, %v9465_v6  ;;  %8043 = vmatpush3.bf16.xpose.msk.msra.mxu0 %vm9266_vm1, %v8041_v29  ;;  %v559_v29 = vld [vmem:[%s9262_s19 + $0x6f8] sm:$0xff] }
  0xde   : > { %8091 = vmatpush3.bf16.xpose.msk.msra.mxu1 %vm9266_vm1, %v8089_v32  ;;  %7622 = vmatprep.mubr.msk.f32.mxu0 %vm620_vm0, %v9495_v18  ;;  %v8071_v32 = vpack.c.bf16 %v541_v0, %v540_v25 }
  0xdf   : > { %7662 = vmatprep.mubr.msk.f32.mxu1 %vm620_vm0, %v9495_v18  ;;  %8046 = vmatprep.subr.msk.bf16.mxu0 %vm9266_vm1, %v8044_v33  ;;  %v8119_v33 = vpack.c.bf16 %v573_v27, %v572_v26 }
  0xe0   : > { %7623 = vmatmul.mubr.msk.f32.gmra.mrb[22].mxu0 %vm620_vm0, %v9495_v18  ;;  %8094 = vmatprep.subr.msk.bf16.mxu1 %vm9266_vm1, %v8092_v34  ;;  %v8074_v34 = vpack.c.bf16 %v559_v29, %v558_v28 }
  0xe1   : > { %7663 = vmatmul.mubr.msk.f32.gmra.mrb[22].mxu1 %vm620_vm0, %v9495_v18  ;;  %7696 = vmatprep.mubr.msk.f32.mxu0 %vm620_vm0, %v9848_v44 }
  0xe2   : > { %7736 = vmatprep.mubr.msk.f32.mxu1 %vm620_vm0, %v9848_v44 }
  0xe5   : > { %8049 = vmatpush3.bf16.xpose.msk.msra.mxu0 %vm9266_vm1, %v8047_v43 }
  0xe6   : > { %8097 = vmatpush3.bf16.xpose.msk.msra.mxu1 %vm9266_vm1, %v8095_v45  ;;  %8052 = vmatprep.subr.msk.bf16.mxu0 %vm9266_vm1, %v8050_v46 }
  0xe7   : > { %8100 = vmatprep.subr.msk.bf16.mxu1 %vm9266_vm1, %v8098_v47 }
  0xed   : > { %8055 = vmatpush3.bf16.xpose.msk.msra.mxu0 %vm9266_vm1, %v8053_v56 }
  0xee   : > { %8103 = vmatpush3.bf16.xpose.msk.msra.mxu1 %vm9266_vm1, %v8101_v57  ;;  %8058 = vmatprep.subr.msk.bf16.mxu0 %vm9266_vm1, %v8056_v58 }
  0xef   : > { %8106 = vmatprep.subr.msk.bf16.mxu1 %vm9266_vm1, %v8104_v59 }
  0xf5   : > { %8061 = vmatpush3.bf16.xpose.msk.msra.mxu0 %vm9266_vm1, %v8059_v8  ;;  %v9996_v8 = vpop.permute.xlu1 %612 }
  0xf6   : > { %8109 = vmatpush3.bf16.xpose.msk.msra.mxu1 %vm9266_vm1, %v8107_v9  ;;  %8064 = vmatprep.subr.msk.bf16.mxu0 %vm9266_vm1, %v8062_v10 }
  0xf7   : > { %8112 = vmatprep.subr.msk.bf16.mxu1 %vm9266_vm1, %v8110_v11 }
  0xfd   : > { %8067 = vmatpush3.bf16.xpose.msk.msra.mxu0 %vm9266_vm1, %v8065_v21 }
  0xfe   : > { %8115 = vmatpush3.bf16.xpose.msk.msra.mxu1 %vm9266_vm1, %v8113_v22  ;;  %8070 = vmatprep.subr.msk.bf16.mxu0 %vm9266_vm1, %v8068_v23 }
  0xff   : > { %8118 = vmatprep.subr.msk.bf16.mxu1 %vm9266_vm1, %v8116_v24 }
 0x105   : > { %8073 = vmatpush3.bf16.xpose.msk.msra.mxu0 %vm9266_vm1, %v8071_v32 }
 0x106   : > { %8121 = vmatpush3.bf16.xpose.msk.msra.mxu1 %vm9266_vm1, %v8119_v33  ;;  %8076 = vmatprep.subr.msk.bf16.mxu0 %vm9266_vm1, %v8074_v34  ;;  %v10013_v34 = vpop.permute.xlu1 %617 }
 0x107   : > { %8124 = vmatprep.subr.msk.bf16.mxu1 %vm9266_vm1, %v8122_v35 }
 0x10d   : > { %8079 = vmatpush3.bf16.xpose.msk.msra.mxu0 %vm9266_vm1, %v8077_v40 }
 0x10e   : > { %8127 = vmatpush3.bf16.xpose.msk.msra.mxu1 %vm9266_vm1, %v8125_v41 }
 0x114   : > { %7697 = vmatmul.mubr.msk.f32.vlgmr.msra.gmra.mrb[24].mxu0 %vm620_vm0, %v9848_v44 }
 0x115   : > { %7737 = vmatmul.mubr.msk.f32.vlgmr.msra.gmra.mrb[24].mxu1 %vm620_vm0, %v9848_v44  ;;  %7698 = vmatprep.mubr.msk.f32.mxu0 %vm620_vm0, %v9450_v2 }
 0x116   : > { %7738 = vmatprep.mubr.msk.f32.mxu1 %vm620_vm0, %v9450_v2 }
 0x118   : > { %7699 = vmatmul.mubr.msk.f32.gmra.mrb[26].mxu0 %vm620_vm0, %v9450_v2 }
 0x119   : > { %7739 = vmatmul.mubr.msk.f32.gmra.mrb[26].mxu1 %vm620_vm0, %v9450_v2  ;;  %7700 = vmatprep.mubr.msk.f32.mxu0 %vm620_vm0, %v9465_v6  ;;  %v9964_v2 = vpop.permute.xlu0 %602 }
 0x11a   : > { %7740 = vmatprep.mubr.msk.f32.mxu1 %vm620_vm0, %v9465_v6 }
 0x11c   : > { %7701 = vmatmul.mubr.msk.f32.gmra.mrb[28].mxu0 %vm620_vm0, %v9465_v6 }
 0x11d   : > { %7741 = vmatmul.mubr.msk.f32.gmra.mrb[28].mxu1 %vm620_vm0, %v9465_v6  ;;  %7702 = vmatprep.mubr.msk.f32.mxu0 %vm620_vm0, %v9495_v18  ;;  %v9979_v49 = vpop.permute.xlu0 %607 }
 0x11e   : > { %7742 = vmatprep.mubr.msk.f32.mxu1 %vm620_vm0, %v9495_v18 }
 0x120   : > { %7703 = vmatmul.mubr.msk.f32.gmra.mrb[30].mxu0 %vm620_vm0, %v9495_v18 }
 0x121   : > { %7743 = vmatmul.mubr.msk.f32.gmra.mrb[30].mxu1 %vm620_vm0, %v9495_v18  ;;  %2794 = vmatprep.mubr.f32.mxu0 %v9183_v3 }
 0x122   : > { %2883 = vmatprep.mubr.f32.mxu1 %v9183_v3 }
 0x127   : > { %v1467_v6 = vpop.f32.mrb[0].mxu0 }
 0x128   : > { %v9967_v42 = vadd.f32 %v1467_v6, %v9964_v2  ;;  %v1556_v43 = vpop.f32.mrb[0].mxu1  ;;  %v1469_v44 = vpop.f32.mrb[1].mxu0 }
 0x129   : > { %v9970_v45 = vadd.f32 %v1556_v43, %v9964_v2  ;;  %v9973_v46 = vadd.f32 %v1469_v44, %v9964_v2  ;;  %v1558_v18 = vpop.f32.mrb[1].mxu1 }
 0x12a   : > { %v2177_v47 = vand.u32 2147483647, %v9967_v42  ;;  %v9977_v48 = vadd.f32 %v1558_v18, %v9964_v2 }
 0x12b   : > { %v2179_v50 = vand.u32 2147483647, %v9970_v45  ;;  %v2178_v51 = vand.u32 2147483647, %v9973_v46  ;;  %v1473_v54 = vpop.f32.mrb[2].mxu0 }
 0x12c   : > { %v2241_v52 = vsub.f32 0.0, %v2177_v47  ;;  %v2180_v53 = vand.u32 2147483647, %v9977_v48  ;;  %v1562_v55 = vpop.f32.mrb[2].mxu1  ;;  %v9985_v58 = vadd.f32 %v1473_v54, %v9979_v49  ;;  %v1475_v60 = vpop.f32.mrb[3].mxu0 }
 0x12d   : > { %v2243_v56 = vsub.f32 0.0, %v2179_v50  ;;  %v2242_v57 = vsub.f32 0.0, %v2178_v51  ;;  %v9988_v59 = vadd.f32 %v1562_v55, %v9979_v49  ;;  %v1564_v61 = vpop.f32.mrb[3].mxu1  ;;  %v9991_v1 = vadd.f32 %v1475_v60, %v9979_v49 }
 0x12e   : > { %v2305_v62 = vmul.f32 1.442695, %v2241_v52  ;;  %v2244_v63 = vsub.f32 0.0, %v2180_v53  ;;  %v9994_v4 = vadd.f32 %v1564_v61, %v9979_v49  ;;  %v2193_v10 = vand.u32 2147483647, %v9985_v58 }
 0x12f   : > { %v2309_v5 = vmul.f32 1.442695, %v2243_v56  ;;  %v2307_v7 = vmul.f32 1.442695, %v2242_v57  ;;  %v2195_v11 = vand.u32 2147483647, %v9988_v59 }
 0x130   : > { %8332 = vpow2.f32 %v2305_v62  ;;  %v2311_v9 = vmul.f32 1.442695, %v2244_v63  ;;  %v2194_v12 = vand.u32 2147483647, %v9991_v1  ;;  %v1479_v13 = vpop.f32.mrb[4].mxu0  ;;  %v1568_v14 = vpop.f32.mrb[4].mxu1 }
 0x131   : > { %8334 = vpow2.f32 %v2309_v5  ;;  %v2257_v15 = vsub.f32 0.0, %v2193_v10  ;;  %v2259_v16 = vsub.f32 0.0, %v2195_v11  ;;  %v2196_v17 = vand.u32 2147483647, %v9994_v4  ;;  %v1481_v19 = vpop.f32.mrb[5].mxu0  ;;  %v1570_v20 = vpop.f32.mrb[5].mxu1 }
 0x132   : > { %8336 = vpow2.f32 %v2307_v7  ;;  %v2258_v21 = vsub.f32 0.0, %v2194_v12  ;;  %v10003_v22 = vadd.f32 %v1479_v13, %v9996_v8  ;;  %v10006_v23 = vadd.f32 %v1568_v14, %v9996_v8 }
 0x133   : > { %8338 = vpow2.f32 %v2311_v9  ;;  %v1485_v24 = vpop.f32.mrb[6].mxu0  ;;  %v2337_v25 = vmul.f32 1.442695, %v2257_v15  ;;  %v2341_v0 = vmul.f32 1.442695, %v2259_v16  ;;  %v2260_v26 = vsub.f32 0.0, %v2196_v17 }
 0x134   : > { %v10009_v27 = vadd.f32 %v1481_v19, %v9996_v8  ;;  %v1574_v28 = vpop.f32.mrb[6].mxu1  ;;  %v2339_v29 = vmul.f32 1.442695, %v2258_v21  ;;  %v2209_v30 = vand.u32 2147483647, %v10003_v22  ;;  %v1487_v33 = vpop.f32.mrb[7].mxu0  ;;  %v10017_v37 = vadd.f32 %v1570_v20, %v9996_v8 }
 0x135   : > { %8340 = vpow2.f32 %v2337_v25  ;;  %v2343_v31 = vmul.f32 1.442695, %v2260_v26  ;;  %v2211_v32 = vand.u32 2147483647, %v10006_v23  ;;  %v1576_v38 = vpop.f32.mrb[7].mxu1  ;;  %v10020_v40 = vadd.f32 %v1485_v24, %v10013_v34 }
 0x136   : > { %8342 = vpow2.f32 %v2341_v0  ;;  %v2273_v35 = vsub.f32 0.0, %v2209_v30  ;;  %v2210_v36 = vand.u32 2147483647, %v10009_v27  ;;  %v2212_v18 = vand.u32 2147483647, %v10017_v37 }
 0x137   : > { %8344 = vpow2.f32 %v2339_v29  ;;  %v2275_v39 = vsub.f32 0.0, %v2211_v32  ;;  %v10024_v47 = vadd.f32 %v1574_v28, %v10013_v34  ;;  %v2225_v52 = vand.u32 2147483647, %v10020_v40 }
 0x138   : > { %8346 = vpow2.f32 %v2343_v31  ;;  %v2369_v41 = vmul.f32 1.442695, %v2273_v35  ;;  %v2274_v6 = vsub.f32 0.0, %v2210_v36  ;;  %v2276_v55 = vsub.f32 0.0, %v2212_v18 }
 0x139   : > { %v2373_v44 = vmul.f32 1.442695, %v2275_v39  ;;  %v10028_v61 = vadd.f32 %v1487_v33, %v10013_v34  ;;  %v2227_v5 = vand.u32 2147483647, %v10024_v47  ;;  %v2289_v7 = vsub.f32 0.0, %v2225_v52 }
 0x13a   : > { %v8333_v43 = vpop.eup %8332  ;;  %8348 = vpow2.f32 %v2369_v41  ;;  %v2371_v60 = vmul.f32 1.442695, %v2274_v6  ;;  %v2375_v63 = vmul.f32 1.442695, %v2276_v55  ;;  %v10033_v11 = vadd.f32 %v1576_v38, %v10013_v34 }
 0x13b   : > { %v8335_v50 = vpop.eup %8334  ;;  %v2433_v51 = vadd.f32 1.0, %v8333_v43  ;;  %8350 = vpow2.f32 %v2373_v44  ;;  %v2226_v9 = vand.u32 2147483647, %v10028_v61  ;;  %v2291_v16 = vsub.f32 0.0, %v2227_v5 }
 0x13c   : > { %v8337_v53 = vpop.eup %8336  ;;  %v2435_v54 = vadd.f32 1.0, %v8335_v50  ;;  %v2228_v17 = vand.u32 2147483647, %v10033_v11  ;;  %v2401_v21 = vmul.f32 1.442695, %v2289_v7  ;;  %v2113_v39 = vmax.f32 %v9967_v42, 0.0 }
 0x13d   : > { %v8339_v56 = vpop.eup %8338  ;;  %8352 = vlog2.f32 %v2433_v51  ;;  %v2434_v57 = vadd.f32 1.0, %v8337_v53  ;;  %v2290_v24 = vsub.f32 0.0, %v2226_v9  ;;  %v2405_v29 = vmul.f32 1.442695, %v2291_v16 }
 0x13e   : > { %8354 = vlog2.f32 %v2435_v54  ;;  %v2436_v62 = vadd.f32 1.0, %v8339_v56  ;;  %v2292_v0 = vsub.f32 0.0, %v2228_v17  ;;  %v2115_v41 = vmax.f32 %v9970_v45, 0.0 }
 0x13f   : > { %8356 = vlog2.f32 %v2434_v57  ;;  %v8341_v10 = vpop.eup %8340  ;;  %v2403_v31 = vmul.f32 1.442695, %v2290_v24  ;;  %v2114_v18 = vmax.f32 %v9973_v46, 0.0  ;;  %v2116_v53 = vmax.f32 %v9977_v48, 0.0 }
 0x140   : > { %8358 = vlog2.f32 %v2436_v62  ;;  %v8343_v12 = vpop.eup %8342  ;;  %v2449_v13 = vadd.f32 1.0, %v8341_v10  ;;  %v2407_v33 = vmul.f32 1.442695, %v2292_v0  ;;  %v2129_v54 = vmax.f32 %v9985_v58, 0.0 }
 0x141   : > { %8360 = vpow2.f32 %v2371_v60  ;;  %v8345_v14 = vpop.eup %8344  ;;  %v2451_v15 = vadd.f32 1.0, %v8343_v12  ;;  %v2131_v55 = vmax.f32 %v9988_v59, 0.0  ;;  %v2130_v45 = vmax.f32 %v9991_v1, 0.0 }
 0x142   : > { %8362 = vpow2.f32 %v2375_v63  ;;  %v8347_v19 = vpop.eup %8346  ;;  %v2450_v20 = vadd.f32 1.0, %v8345_v14  ;;  %v2132_v60 = vmax.f32 %v9994_v4, 0.0 }
 0x143   : > { %8364 = vlog2.f32 %v2449_v13  ;;  %v2452_v25 = vadd.f32 1.0, %v8347_v19 }
 0x144   : > { %8366 = vlog2.f32 %v2451_v15  ;;  %v8349_v26 = vpop.eup %8348 }
 0x145   : > { %8368 = vlog2.f32 %v2450_v20  ;;  %v8351_v28 = vpop.eup %8350  ;;  %v2465_v6 = vadd.f32 1.0, %v8349_v26 }
 0x146   : > { %8370 = vlog2.f32 %v2452_v25  ;;  %v2467_v50 = vadd.f32 1.0, %v8351_v28 }
 0x147   : > { %v8353_v30 = vpop.eup %8352  ;;  %8372 = vpow2.f32 %v2401_v21 }
 0x148   : > { %v8355_v32 = vpop.eup %8354  ;;  %8374 = vpow2.f32 %v2405_v29  ;;  %v2498_v44 = vmul.f32 0.6931472, %v8353_v30 }
 0x149   : > { %v8357_v35 = vpop.eup %8356  ;;  %8376 = vpow2.f32 %v2403_v31  ;;  %v2502_v52 = vmul.f32 0.6931472, %v8355_v32 }
 0x14a   : > { %v8359_v36 = vpop.eup %8358  ;;  %8378 = vpow2.f32 %v2407_v33  ;;  %v2500_v42 = vmul.f32 0.6931472, %v8357_v35  ;;  %v2625_v9 = vadd.f32 %v2498_v44, %v2113_v39  ;;  %v2145_v39 = vmax.f32 %v10003_v22, 0.0 }
 0x14b   : > { %v8361_v38 = vpop.eup %8360  ;;  %v2504_v63 = vmul.f32 0.6931472, %v8359_v36  ;;  %8380 = vlog2.f32 %v2465_v6  ;;  %v2627_v12 = vadd.f32 %v2502_v52, %v2115_v41  ;;  %v2161_v41 = vmax.f32 %v10020_v40, 0.0 }
 0x14c   : > { %v8363_v43 = vpop.eup %8362  ;;  %v2466_v5 = vadd.f32 1.0, %v8361_v38  ;;  %8382 = vlog2.f32 %v2467_v50  ;;  %v2626_v15 = vadd.f32 %v2500_v42, %v2114_v18  ;;  %v2147_v50 = vmax.f32 %v10006_v23, 0.0 }
 0x14d   : > { %v8365_v51 = vpop.eup %8364  ;;  %v2468_v14 = vadd.f32 1.0, %v8363_v43  ;;  %v2628_v4 = vadd.f32 %v2504_v63, %v2116_v53  ;;  %v2148_v22 = vmax.f32 %v10017_v37, 0.0  ;;  %v2162_v40 = vmax.f32 %v10028_v61, 0.0 }
 0x14e   : > { %v8367_v56 = vpop.eup %8366  ;;  %v2530_v57 = vmul.f32 0.6931472, %v8365_v51  ;;  %8384 = vlog2.f32 %v2466_v5  ;;  %v2164_v23 = vmax.f32 %v10033_v11, 0.0 }
 0x14f   : > { %v8369_v62 = vpop.eup %8368  ;;  %v2534_v46 = vmul.f32 0.6931472, %v8367_v56  ;;  %v2163_v56 = vmax.f32 %v10024_v47, 0.0 }
 0x150   : > { %v8371_v7 = vpop.eup %8370  ;;  %v2641_v10 = vadd.f32 %v2530_v57, %v2129_v54  ;;  %v2532_v48 = vmul.f32 0.6931472, %v8369_v62  ;;  %v2146_v54 = vmax.f32 %v10009_v27, 0.0 }
 0x151   : > { %v8373_v58 = vpop.eup %8372  ;;  %v2643_v59 = vadd.f32 %v2534_v46, %v2131_v55  ;;  %v2536_v13 = vmul.f32 0.6931472, %v8371_v7 }
 0x152   : > { %v8130_v16 = vpack.c.bf16 %v2641_v10, %v2625_v9  ;;  %v2642_v1 = vadd.f32 %v2532_v48, %v2130_v45  ;;  %v2481_v17 = vadd.f32 1.0, %v8373_v58  ;;  %v8375_v21 = vpop.eup %8374 }
 0x153   : > { %v8138_v19 = vpack.c.bf16 %v2643_v59, %v2627_v12  ;;  %v2644_v20 = vadd.f32 %v2536_v13, %v2132_v60  ;;  %v8377_v25 = vpop.eup %8376  ;;  %v2483_v0 = vadd.f32 1.0, %v8375_v21 }
 0x154   : > { %8386 = vlog2.f32 %v2481_v17  ;;  %v8128_v24 = vpack.c.bf16 %v2642_v1, %v2626_v15  ;;  %v8379_v28 = vpop.eup %8378  ;;  %v2482_v29 = vadd.f32 1.0, %v8377_v25 }
 0x155   : > { %8388 = vlog2.f32 %v2468_v14  ;;  %v8136_v26 = vpack.c.bf16 %v2644_v20, %v2628_v4  ;;  %v2484_v30 = vadd.f32 1.0, %v8379_v28  ;;  %v8381_v31 = vpop.eup %8380  ;;  %v10064_v14 = vld [vmem:[%s11922_s3] sm:$0xff] }
 0x156   : > { %8129 = vmatprep.subr.bf16.mxu0 %v8128_v24  ;;  %8390 = vlog2.f32 %v2483_v0  ;;  %v8383_v32 = vpop.eup %8382  ;;  %v2562_v35 = vmul.f32 0.6931472, %v8381_v31 }
 0x157   : > { %8137 = vmatprep.subr.bf16.mxu1 %v8136_v26  ;;  %8131 = vmatpush1.bf16.msra.mxu0 %v8130_v16  ;;  %8392 = vlog2.f32 %v2482_v29  ;;  %v2566_v43 = vmul.f32 0.6931472, %v8383_v32 }
 0x158   : > { %8139 = vmatpush1.bf16.msra.mxu1 %v8138_v19  ;;  %8394 = vlog2.f32 %v2484_v30  ;;  %v8385_v33 = vpop.eup %8384  ;;  %v2657_v18 = vadd.f32 %v2562_v35, %v2145_v39  ;;  %v10087_v30 = vld [vmem:[%s11922_s3 + $0x8] sm:$0xff] }
 0x159   : > { %v2564_v51 = vmul.f32 0.6931472, %v8385_v33  ;;  %v2659_v62 = vadd.f32 %v2566_v43, %v2147_v50  ;;  %v10103_v43 = vld [vmem:[%s11922_s3 + $0x10] sm:$0xff] }
 0x15b   : > { %v2658_v5 = vadd.f32 %v2564_v51, %v2146_v54 }
 0x15e   : > { %v8387_v36 = vpop.eup %8386 }
 0x15f   : > { %v8389_v38 = vpop.eup %8388  ;;  %v2594_v6 = vmul.f32 0.6931472, %v8387_v36 }
 0x160   : > { %v8391_v44 = vpop.eup %8390  ;;  %v2568_v55 = vmul.f32 0.6931472, %v8389_v38 }
 0x161   : > { %v2673_v52 = vadd.f32 %v2594_v6, %v2161_v41  ;;  %v8393_v53 = vpop.eup %8392  ;;  %v2598_v42 = vmul.f32 0.6931472, %v8391_v44 }
 0x162   : > { %v8395_v57 = vpop.eup %8394  ;;  %v2596_v60 = vmul.f32 0.6931472, %v8393_v53  ;;  %v2660_v9 = vadd.f32 %v2568_v55, %v2148_v22 }
 0x163   : > { %v8134_v45 = vpack.c.bf16 %v2673_v52, %v2657_v18  ;;  %v2675_v63 = vadd.f32 %v2598_v42, %v2163_v56  ;;  %v2600_v46 = vmul.f32 0.6931472, %v8395_v57 }
 0x164   : > { %v2674_v7 = vadd.f32 %v2596_v60, %v2162_v40 }
 0x165   : > { %v8142_v27 = vpack.c.bf16 %v2675_v63, %v2659_v62  ;;  %v2676_v10 = vadd.f32 %v2600_v46, %v2164_v23 }
 0x166   : > { %v8132_v48 = vpack.c.bf16 %v2674_v7, %v2658_v5  ;;  %v10129_v5 = vld [vmem:[%s11922_s3 + $0x18] sm:$0xff] }
 0x167   : > { %v1645_v47 = vpop.f32.mrb[8].mxu0  ;;  %v8140_v58 = vpack.c.bf16 %v2676_v10, %v2660_v9 }
 0x168   : > { %v10053_v12 = vadd.f32 %v1645_v47, %v9964_v2  ;;  %v1734_v37 = vpop.f32.mrb[8].mxu1  ;;  %v1647_v59 = vpop.f32.mrb[9].mxu0  ;;  %8133 = vmatprep.subr.bf16.mxu0 %v8132_v48 }
 0x169   : > { %v10056_v61 = vadd.f32 %v1734_v37, %v9964_v2  ;;  %v10059_v11 = vadd.f32 %v1647_v59, %v9964_v2  ;;  %v1736_v13 = vpop.f32.mrb[9].mxu1  ;;  %8141 = vmatprep.subr.bf16.mxu1 %v8140_v58  ;;  %8135 = vmatpush1.bf16.msra.mxu0 %v8134_v45 }
 0x16a   : > { %v2181_v15 = vand.u32 2147483647, %v10053_v12  ;;  %v10068_v16 = vadd.f32 %v1736_v13, %v9964_v2  ;;  %8143 = vmatpush1.bf16.msra.mxu1 %v8142_v27 }
 0x16b   : > { %v2183_v1 = vand.u32 2147483647, %v10056_v61  ;;  %v2182_v17 = vand.u32 2147483647, %v10059_v11  ;;  %v1651_v20 = vpop.f32.mrb[10].mxu0 }
 0x16c   : > { %v2245_v4 = vsub.f32 0.0, %v2181_v15  ;;  %v2184_v19 = vand.u32 2147483647, %v10068_v16  ;;  %v1740_v21 = vpop.f32.mrb[10].mxu1  ;;  %7350 = vmatmul.mubr.msk.f32.vlgmr.msra.gmra.mrb[32].mxu0 %vm2717_vm2, %v10064_v14  ;;  %v10076_v0 = vadd.f32 %v1651_v20, %v9979_v49  ;;  %v1653_v28 = vpop.f32.mrb[11].mxu0 }
 0x16d   : > { %v2247_v24 = vsub.f32 0.0, %v2183_v1  ;;  %v2246_v25 = vsub.f32 0.0, %v2182_v17  ;;  %v10079_v26 = vadd.f32 %v1740_v21, %v9979_v49  ;;  %v1742_v29 = vpop.f32.mrb[11].mxu1  ;;  %7354 = vmatmul.mubr.msk.f32.vlgmr.msra.gmra.mrb[32].mxu1 %vm2717_vm2, %v10064_v14  ;;  %2800 = vmatprep.mubr.f32.mxu0 %v9183_v3  ;;  %v10090_v33 = vadd.f32 %v1653_v28, %v9979_v49 }
 0x16e   : > { %v2313_v31 = vmul.f32 1.442695, %v2245_v4  ;;  %v2248_v32 = vsub.f32 0.0, %v2184_v19  ;;  %v10093_v35 = vadd.f32 %v1742_v29, %v9979_v49  ;;  %2889 = vmatprep.mubr.f32.mxu1 %v9183_v3  ;;  %v2197_v41 = vand.u32 2147483647, %v10076_v0 }
 0x16f   : > { %v2317_v36 = vmul.f32 1.442695, %v2247_v24  ;;  %v2315_v38 = vmul.f32 1.442695, %v2246_v25  ;;  %v2199_v6 = vand.u32 2147483647, %v10079_v26 }
 0x170   : > { %8396 = vpow2.f32 %v2313_v31  ;;  %v2319_v39 = vmul.f32 1.442695, %v2248_v32  ;;  %7351 = vmatmul.mubr.msk.f32.gmra.mrb[34].mxu0 %vm2717_vm2, %v10087_v30  ;;  %v2198_v44 = vand.u32 2147483647, %v10090_v33  ;;  %v1657_v18 = vpop.f32.mrb[12].mxu0  ;;  %v1746_v50 = vpop.f32.mrb[12].mxu1 }
 0x171   : > { %8398 = vpow2.f32 %v2317_v36  ;;  %7355 = vmatmul.mubr.msk.f32.gmra.mrb[34].mxu1 %vm2717_vm2, %v10087_v30  ;;  %2806 = vmatprep.mubr.f32.mxu0 %v9183_v3  ;;  %v2261_v51 = vsub.f32 0.0, %v2197_v41  ;;  %v2263_v52 = vsub.f32 0.0, %v2199_v6  ;;  %v2200_v53 = vand.u32 2147483647, %v10093_v35  ;;  %v1659_v54 = vpop.f32.mrb[13].mxu0  ;;  %v1748_v55 = vpop.f32.mrb[13].mxu1 }
 0x172   : > { %8400 = vpow2.f32 %v2315_v38  ;;  %2895 = vmatprep.mubr.f32.mxu1 %v9183_v3  ;;  %v2262_v56 = vsub.f32 0.0, %v2198_v44  ;;  %v10112_v42 = vadd.f32 %v1657_v18, %v9996_v8  ;;  %v10115_v57 = vadd.f32 %v1746_v50, %v9996_v8 }
 0x173   : > { %8402 = vpow2.f32 %v2319_v39  ;;  %v1663_v22 = vpop.f32.mrb[14].mxu0  ;;  %v2345_v45 = vmul.f32 1.442695, %v2261_v51  ;;  %v2349_v40 = vmul.f32 1.442695, %v2263_v52  ;;  %v2264_v60 = vsub.f32 0.0, %v2200_v53 }
 0x174   : > { %v10118_v62 = vadd.f32 %v1659_v54, %v9996_v8  ;;  %v1752_v63 = vpop.f32.mrb[14].mxu1  ;;  %7352 = vmatmul.mubr.msk.f32.gmra.mrb[36].mxu0 %vm2717_vm2, %v10103_v43  ;;  %v2347_v23 = vmul.f32 1.442695, %v2262_v56  ;;  %v2213_v46 = vand.u32 2147483647, %v10112_v42  ;;  %v1665_v27 = vpop.f32.mrb[15].mxu0  ;;  %v10135_v47 = vadd.f32 %v1748_v55, %v9996_v8 }
 0x175   : > { %7356 = vmatmul.mubr.msk.f32.gmra.mrb[36].mxu1 %vm2717_vm2, %v10103_v43  ;;  %2812 = vmatprep.mubr.f32.mxu0 %v9183_v3  ;;  %8404 = vpow2.f32 %v2345_v45  ;;  %v2351_v7 = vmul.f32 1.442695, %v2264_v60  ;;  %v2215_v9 = vand.u32 2147483647, %v10115_v57  ;;  %v1754_v58 = vpop.f32.mrb[15].mxu1  ;;  %v10138_v59 = vadd.f32 %v1663_v22, %v10013_v34 }
 0x176   : > { %2901 = vmatprep.mubr.f32.mxu1 %v9183_v3  ;;  %8406 = vpow2.f32 %v2349_v40  ;;  %v2277_v10 = vsub.f32 0.0, %v2213_v46  ;;  %v2214_v48 = vand.u32 2147483647, %v10118_v62  ;;  %v2216_v4 = vand.u32 2147483647, %v10135_v47 }
 0x177   : > { %8408 = vpow2.f32 %v2347_v23  ;;  %v2279_v37 = vsub.f32 0.0, %v2215_v9  ;;  %v10146_v19 = vadd.f32 %v1752_v63, %v10013_v34  ;;  %v2229_v24 = vand.u32 2147483647, %v10138_v59 }
 0x178   : > { %7353 = vmatmul.mubr.msk.f32.gmra.mrb[38].mxu0 %vm2717_vm2, %v10129_v5  ;;  %8410 = vpow2.f32 %v2351_v7  ;;  %v2377_v13 = vmul.f32 1.442695, %v2277_v10  ;;  %v2278_v15 = vsub.f32 0.0, %v2214_v48  ;;  %v2280_v29 = vsub.f32 0.0, %v2216_v4 }
 0x179   : > { %7357 = vmatmul.mubr.msk.f32.gmra.mrb[38].mxu1 %vm2717_vm2, %v10129_v5  ;;  %v2381_v17 = vmul.f32 1.442695, %v2279_v37  ;;  %2972 = vmatprep.mubr.f32.mxu0 %v9183_v3  ;;  %v10152_v38 = vadd.f32 %v1665_v27, %v10013_v34  ;;  %v2231_v6 = vand.u32 2147483647, %v10146_v19  ;;  %v2293_v44 = vsub.f32 0.0, %v2229_v24 }
 0x17a   : > { %v8397_v1 = vpop.eup %8396  ;;  %8412 = vpow2.f32 %v2377_v13  ;;  %3061 = vmatprep.mubr.f32.mxu1 %v9183_v3  ;;  %v2379_v36 = vmul.f32 1.442695, %v2278_v15  ;;  %v2383_v41 = vmul.f32 1.442695, %v2280_v29  ;;  %v10157_v51 = vadd.f32 %v1754_v58, %v10013_v34 }
 0x17b   : > { %v8399_v20 = vpop.eup %8398  ;;  %v2437_v21 = vadd.f32 1.0, %v8397_v1  ;;  %8414 = vpow2.f32 %v2381_v17  ;;  %v2230_v18 = vand.u32 2147483647, %v10152_v38  ;;  %v2295_v56 = vsub.f32 0.0, %v2231_v6 }
 0x17c   : > { %v8401_v25 = vpop.eup %8400  ;;  %v2439_v28 = vadd.f32 1.0, %v8399_v20  ;;  %v2232_v22 = vand.u32 2147483647, %v10157_v51  ;;  %v2409_v60 = vmul.f32 1.442695, %v2293_v44  ;;  %v2117_v17 = vmax.f32 %v10053_v12, 0.0 }
 0x17d   : > { %v8403_v31 = vpop.eup %8402  ;;  %8416 = vlog2.f32 %v2437_v21  ;;  %v2438_v32 = vadd.f32 1.0, %v8401_v25  ;;  %v2294_v63 = vsub.f32 0.0, %v2230_v18  ;;  %v2413_v27 = vmul.f32 1.442695, %v2295_v56 }
 0x17e   : > { %8418 = vlog2.f32 %v2439_v28  ;;  %v2440_v39 = vadd.f32 1.0, %v8403_v31  ;;  %v2296_v46 = vsub.f32 0.0, %v2232_v22  ;;  %v2119_v4 = vmax.f32 %v10056_v61, 0.0 }
 0x17f   : > { %8420 = vlog2.f32 %v2438_v32  ;;  %v8405_v50 = vpop.eup %8404  ;;  %v2411_v48 = vmul.f32 1.442695, %v2294_v63  ;;  %v2118_v25 = vmax.f32 %v10059_v11, 0.0  ;;  %v2120_v32 = vmax.f32 %v10068_v16, 0.0 }
 0x180   : > { %8422 = vlog2.f32 %v2440_v39  ;;  %v8407_v52 = vpop.eup %8406  ;;  %v2453_v53 = vadd.f32 1.0, %v8405_v50  ;;  %v2415_v37 = vmul.f32 1.442695, %v2296_v46  ;;  %v2135_v39 = vmax.f32 %v10079_v26, 0.0 }
 0x181   : > { %8424 = vpow2.f32 %v2379_v36  ;;  %v8409_v54 = vpop.eup %8408  ;;  %v2455_v55 = vadd.f32 1.0, %v8407_v52  ;;  %v2133_v36 = vmax.f32 %v10076_v0, 0.0  ;;  %v2134_v61 = vmax.f32 %v10090_v33, 0.0 }
 0x182   : > { %8426 = vpow2.f32 %v2383_v41  ;;  %v8411_v45 = vpop.eup %8410  ;;  %v2454_v40 = vadd.f32 1.0, %v8409_v54  ;;  %v2136_v44 = vmax.f32 %v10093_v35, 0.0 }
 0x183   : > { %8428 = vlog2.f32 %v2453_v53  ;;  %v2456_v23 = vadd.f32 1.0, %v8411_v45 }
 0x184   : > { %8430 = vlog2.f32 %v2455_v55  ;;  %v8413_v7 = vpop.eup %8412 }
 0x185   : > { %8432 = vlog2.f32 %v2454_v40  ;;  %v8415_v9 = vpop.eup %8414  ;;  %v2469_v20 = vadd.f32 1.0, %v8413_v7 }
 0x186   : > { %8434 = vlog2.f32 %v2456_v23  ;;  %v2471_v28 = vadd.f32 1.0, %v8415_v9 }
 0x187   : > { %v8417_v10 = vpop.eup %8416  ;;  %8436 = vpow2.f32 %v2409_v60 }
 0x188   : > { %v8419_v58 = vpop.eup %8418  ;;  %8438 = vpow2.f32 %v2413_v27  ;;  %v2506_v24 = vmul.f32 0.6931472, %v8417_v10 }
 0x189   : > { %v8421_v13 = vpop.eup %8420  ;;  %8440 = vpow2.f32 %v2411_v48  ;;  %v2510_v31 = vmul.f32 0.6931472, %v8419_v58 }
 0x18a   : > { %v8423_v15 = vpop.eup %8422  ;;  %8442 = vpow2.f32 %v2415_v37  ;;  %v2508_v12 = vmul.f32 0.6931472, %v8421_v13  ;;  %v2629_v54 = vadd.f32 %v2506_v24, %v2117_v17  ;;  %v2149_v24 = vmax.f32 %v10112_v42, 0.0 }
 0x18b   : > { %v8425_v1 = vpop.eup %8424  ;;  %v2512_v50 = vmul.f32 0.6931472, %v8423_v15  ;;  %8444 = vlog2.f32 %v2469_v20  ;;  %v2631_v56 = vadd.f32 %v2510_v31, %v2119_v4  ;;  %v2152_v42 = vmax.f32 %v10135_v47, 0.0 }
 0x18c   : > { %v8427_v21 = vpop.eup %8426  ;;  %v2470_v52 = vadd.f32 1.0, %v8425_v1  ;;  %8446 = vlog2.f32 %v2471_v28  ;;  %v2630_v40 = vadd.f32 %v2508_v12, %v2118_v25  ;;  %v2165_v25 = vmax.f32 %v10138_v59, 0.0 }
 0x18d   : > { %v8429_v29 = vpop.eup %8428  ;;  %v2472_v45 = vadd.f32 1.0, %v8427_v21  ;;  %v2632_v35 = vadd.f32 %v2512_v50, %v2120_v32  ;;  %v2166_v59 = vmax.f32 %v10152_v38, 0.0 }
 0x18e   : > { %v8431_v41 = vpop.eup %8430  ;;  %v2538_v6 = vmul.f32 0.6931472, %v8429_v29  ;;  %8448 = vlog2.f32 %v2470_v52 }
 0x18f   : > { %v8433_v18 = vpop.eup %8432  ;;  %v2542_v11 = vmul.f32 0.6931472, %v8431_v41 }
 0x190   : > { %v8435_v53 = vpop.eup %8434  ;;  %v2645_v55 = vadd.f32 %v2538_v6, %v2133_v36  ;;  %v2540_v16 = vmul.f32 0.6931472, %v8433_v18  ;;  %v2151_v36 = vmax.f32 %v10115_v57, 0.0  ;;  %v2150_v6 = vmax.f32 %v10118_v62, 0.0 }
 0x191   : > { %v8437_v0 = vpop.eup %8436  ;;  %v2647_v26 = vadd.f32 %v2542_v11, %v2135_v39  ;;  %v2544_v22 = vmul.f32 0.6931472, %v8435_v53  ;;  %v2168_v57 = vmax.f32 %v10157_v51, 0.0 }
 0x192   : > { %v8146_v60 = vpack.c.bf16 %v2645_v55, %v2629_v54  ;;  %v2646_v33 = vadd.f32 %v2540_v16, %v2134_v61  ;;  %v2485_v63 = vadd.f32 1.0, %v8437_v0  ;;  %v8439_v7 = vpop.eup %8438 }
 0x193   : > { %v8154_v23 = vpack.c.bf16 %v2647_v26, %v2631_v56  ;;  %v2648_v46 = vadd.f32 %v2544_v22, %v2136_v44  ;;  %v8441_v27 = vpop.eup %8440  ;;  %v2487_v10 = vadd.f32 1.0, %v8439_v7  ;;  %v2167_v44 = vmax.f32 %v10146_v19, 0.0 }
 0x194   : > { %8450 = vlog2.f32 %v2485_v63  ;;  %v8144_v9 = vpack.c.bf16 %v2646_v33, %v2630_v40  ;;  %v8443_v58 = vpop.eup %8442  ;;  %v2486_v37 = vadd.f32 1.0, %v8441_v27 }
 0x195   : > { %8452 = vlog2.f32 %v2472_v45  ;;  %v8152_v48 = vpack.c.bf16 %v2648_v46, %v2632_v35  ;;  %v2488_v13 = vadd.f32 1.0, %v8443_v58  ;;  %v8445_v15 = vpop.eup %8444 }
 0x196   : > { %8145 = vmatprep.subr.bf16.mxu0 %v8144_v9  ;;  %8454 = vlog2.f32 %v2487_v10  ;;  %v8447_v1 = vpop.eup %8446  ;;  %v2570_v4 = vmul.f32 0.6931472, %v8445_v15 }
 0x197   : > { %8153 = vmatprep.subr.bf16.mxu1 %v8152_v48  ;;  %8147 = vmatpush1.bf16.msra.mxu0 %v8146_v60  ;;  %8456 = vlog2.f32 %v2486_v37  ;;  %v2574_v29 = vmul.f32 0.6931472, %v8447_v1 }
 0x198   : > { %8155 = vmatpush1.bf16.msra.mxu1 %v8154_v23  ;;  %8458 = vlog2.f32 %v2488_v13  ;;  %v8449_v17 = vpop.eup %8448  ;;  %v2661_v32 = vadd.f32 %v2570_v4, %v2149_v24 }
 0x199   : > { %v2572_v39 = vmul.f32 0.6931472, %v8449_v17  ;;  %v2663_v53 = vadd.f32 %v2574_v29, %v2151_v36 }
 0x19b   : > { %v2662_v16 = vadd.f32 %v2572_v39, %v2150_v6 }
 0x19e   : > { %v8451_v20 = vpop.eup %8450 }
 0x19f   : > { %v8453_v21 = vpop.eup %8452  ;;  %v2602_v28 = vmul.f32 0.6931472, %v8451_v20 }
 0x1a0   : > { %v8455_v31 = vpop.eup %8454  ;;  %v2576_v61 = vmul.f32 0.6931472, %v8453_v21 }
 0x1a1   : > { %v2677_v41 = vadd.f32 %v2602_v28, %v2165_v25  ;;  %v8457_v12 = vpop.eup %8456  ;;  %v2606_v18 = vmul.f32 0.6931472, %v8455_v31 }
 0x1a2   : > { %v8459_v50 = vpop.eup %8458  ;;  %v2604_v52 = vmul.f32 0.6931472, %v8457_v12  ;;  %v2664_v56 = vadd.f32 %v2576_v61, %v2152_v42 }
 0x1a3   : > { %v8150_v11 = vpack.c.bf16 %v2677_v41, %v2661_v32  ;;  %v2679_v54 = vadd.f32 %v2606_v18, %v2167_v44  ;;  %v2608_v55 = vmul.f32 0.6931472, %v8459_v50 }
 0x1a4   : > { %v2678_v0 = vadd.f32 %v2604_v52, %v2166_v59 }
 0x1a5   : > { %v8158_v62 = vpack.c.bf16 %v2679_v54, %v2663_v53  ;;  %v2680_v26 = vadd.f32 %v2608_v55, %v2168_v57 }
 0x1a6   : > { %v8148_v22 = vpack.c.bf16 %v2678_v0, %v2662_v16 }
 0x1a7   : > { %v1823_v19 = vpop.f32.mrb[16].mxu0  ;;  %v8156_v45 = vpack.c.bf16 %v2680_v26, %v2664_v56 }
 0x1a8   : > { %v10177_v40 = vadd.f32 %v1823_v19, %v9964_v2  ;;  %v1912_v47 = vpop.f32.mrb[16].mxu1  ;;  %v1825_v60 = vpop.f32.mrb[17].mxu0  ;;  %8149 = vmatprep.subr.bf16.mxu0 %v8148_v22 }
 0x1a9   : > { %v10180_v38 = vadd.f32 %v1912_v47, %v9964_v2  ;;  %v10183_v51 = vadd.f32 %v1825_v60, %v9964_v2  ;;  %v1914_v33 = vpop.f32.mrb[17].mxu1  ;;  %8157 = vmatprep.subr.bf16.mxu1 %v8156_v45  ;;  %8151 = vmatpush1.bf16.msra.mxu0 %v8150_v11 }
 0x1aa   : > { %v2185_v63 = vand.u32 2147483647, %v10177_v40  ;;  %v10187_v35 = vadd.f32 %v1914_v33, %v9964_v2  ;;  %8159 = vmatpush1.bf16.msra.mxu1 %v8158_v62 }
 0x1ab   : > { %v2187_v23 = vand.u32 2147483647, %v10180_v38  ;;  %v2186_v46 = vand.u32 2147483647, %v10183_v51  ;;  %v1829_v27 = vpop.f32.mrb[18].mxu0 }
 0x1ac   : > { %v2249_v7 = vsub.f32 0.0, %v2185_v63  ;;  %v2188_v9 = vand.u32 2147483647, %v10187_v35  ;;  %v1918_v10 = vpop.f32.mrb[18].mxu1  ;;  %7358 = vmatmul.mubr.msk.f32.vlgmr.msra.gmra.mrb[40].mxu0 %vm2717_vm2, %v10064_v14  ;;  %v10195_v37 = vadd.f32 %v1829_v27, %v9979_v49  ;;  %v1831_v15 = vpop.f32.mrb[19].mxu0 }
 0x1ad   : > { %v2251_v48 = vsub.f32 0.0, %v2187_v23  ;;  %v2250_v58 = vsub.f32 0.0, %v2186_v46  ;;  %v10198_v13 = vadd.f32 %v1918_v10, %v9979_v49  ;;  %v1920_v1 = vpop.f32.mrb[19].mxu1  ;;  %7362 = vmatmul.mubr.msk.f32.vlgmr.msra.gmra.mrb[40].mxu1 %vm2717_vm2, %v10064_v14  ;;  %2978 = vmatprep.mubr.f32.mxu0 %v9183_v3  ;;  %v10204_v20 = vadd.f32 %v1831_v15, %v9979_v49 }
 0x1ae   : > { %v2321_v17 = vmul.f32 1.442695, %v2249_v7  ;;  %v2252_v4 = vsub.f32 0.0, %v2188_v9  ;;  %v10207_v21 = vadd.f32 %v1920_v1, %v9979_v49  ;;  %3067 = vmatprep.mubr.f32.mxu1 %v9183_v3  ;;  %v2201_v29 = vand.u32 2147483647, %v10195_v37 }
 0x1af   : > { %v2325_v24 = vmul.f32 1.442695, %v2251_v48  ;;  %v2323_v25 = vmul.f32 1.442695, %v2250_v58  ;;  %v2203_v31 = vand.u32 2147483647, %v10198_v13 }
 0x1b0   : > { %8460 = vpow2.f32 %v2321_v17  ;;  %v2327_v28 = vmul.f32 1.442695, %v2252_v4  ;;  %7359 = vmatmul.mubr.msk.f32.gmra.mrb[42].mxu0 %vm2717_vm2, %v10087_v30  ;;  %v2202_v32 = vand.u32 2147483647, %v10204_v20  ;;  %v1835_v36 = vpop.f32.mrb[20].mxu0  ;;  %v1924_v39 = vpop.f32.mrb[20].mxu1 }
 0x1b1   : > { %8462 = vpow2.f32 %v2325_v24  ;;  %7363 = vmatmul.mubr.msk.f32.gmra.mrb[42].mxu1 %vm2717_vm2, %v10087_v30  ;;  %2984 = vmatprep.mubr.f32.mxu0 %v9183_v3  ;;  %v2265_v41 = vsub.f32 0.0, %v2201_v29  ;;  %v2267_v12 = vsub.f32 0.0, %v2203_v31  ;;  %v2204_v6 = vand.u32 2147483647, %v10207_v21  ;;  %v1837_v61 = vpop.f32.mrb[21].mxu0  ;;  %v1926_v44 = vpop.f32.mrb[21].mxu1 }
 0x1b2   : > { %8464 = vpow2.f32 %v2323_v25  ;;  %3073 = vmatprep.mubr.f32.mxu1 %v9183_v3  ;;  %v2266_v18 = vsub.f32 0.0, %v2202_v32  ;;  %v10221_v50 = vadd.f32 %v1835_v36, %v9996_v8  ;;  %v10224_v42 = vadd.f32 %v1924_v39, %v9996_v8 }
 0x1b3   : > { %8466 = vpow2.f32 %v2327_v28  ;;  %v1841_v11 = vpop.f32.mrb[22].mxu0  ;;  %v2353_v59 = vmul.f32 1.442695, %v2265_v41  ;;  %v2357_v52 = vmul.f32 1.442695, %v2267_v12  ;;  %v2268_v53 = vsub.f32 0.0, %v2204_v6 }
 0x1b4   : > { %v10227_v54 = vadd.f32 %v1837_v61, %v9996_v8  ;;  %v1930_v57 = vpop.f32.mrb[22].mxu1  ;;  %7360 = vmatmul.mubr.msk.f32.gmra.mrb[44].mxu0 %vm2717_vm2, %v10103_v43  ;;  %v2355_v55 = vmul.f32 1.442695, %v2266_v18  ;;  %v2217_v16 = vand.u32 2147483647, %v10221_v50  ;;  %v1843_v62 = vpop.f32.mrb[23].mxu0  ;;  %v10239_v19 = vadd.f32 %v1926_v44, %v9996_v8 }
 0x1b5   : > { %7364 = vmatmul.mubr.msk.f32.gmra.mrb[44].mxu1 %vm2717_vm2, %v10103_v43  ;;  %2990 = vmatprep.mubr.f32.mxu0 %v9183_v3  ;;  %8468 = vpow2.f32 %v2353_v59  ;;  %v2359_v0 = vmul.f32 1.442695, %v2268_v53  ;;  %v2219_v56 = vand.u32 2147483647, %v10224_v42  ;;  %v1932_v45 = vpop.f32.mrb[23].mxu1  ;;  %v10242_v60 = vadd.f32 %v1841_v11, %v10013_v34 }
 0x1b6   : > { %3079 = vmatprep.mubr.f32.mxu1 %v9183_v3  ;;  %8470 = vpow2.f32 %v2357_v52  ;;  %v2281_v26 = vsub.f32 0.0, %v2217_v16  ;;  %v2218_v22 = vand.u32 2147483647, %v10227_v54  ;;  %v2220_v7 = vand.u32 2147483647, %v10239_v19 }
 0x1b7   : > { %8472 = vpow2.f32 %v2355_v55  ;;  %v2283_v47 = vsub.f32 0.0, %v2219_v56  ;;  %v10250_v9 = vadd.f32 %v1930_v57, %v10013_v34  ;;  %v2233_v48 = vand.u32 2147483647, %v10242_v60 }
 0x1b8   : > { %7361 = vmatmul.mubr.msk.f32.gmra.mrb[46].mxu0 %vm2717_vm2, %v10129_v5  ;;  %8474 = vpow2.f32 %v2359_v0  ;;  %v2385_v33 = vmul.f32 1.442695, %v2281_v26  ;;  %v2282_v63 = vsub.f32 0.0, %v2218_v22  ;;  %v2284_v1 = vsub.f32 0.0, %v2220_v7 }
 0x1b9   : > { %7365 = vmatmul.mubr.msk.f32.gmra.mrb[46].mxu1 %vm2717_vm2, %v10129_v5  ;;  %v2389_v46 = vmul.f32 1.442695, %v2283_v47  ;;  %3150 = vmatprep.mubr.f32.mxu0 %v9183_v3  ;;  %v10256_v25 = vadd.f32 %v1843_v62, %v10013_v34  ;;  %v2235_v31 = vand.u32 2147483647, %v10250_v9  ;;  %v2297_v32 = vsub.f32 0.0, %v2233_v48 }
 0x1ba   : > { %v8461_v23 = vpop.eup %8460  ;;  %8476 = vpow2.f32 %v2385_v33  ;;  %3239 = vmatprep.mubr.f32.mxu1 %v9183_v3  ;;  %v2387_v24 = vmul.f32 1.442695, %v2282_v63  ;;  %v2391_v29 = vmul.f32 1.442695, %v2284_v1  ;;  %v10261_v41 = vadd.f32 %v1932_v45, %v10013_v34 }
 0x1bb   : > { %v8463_v27 = vpop.eup %8462  ;;  %v2441_v10 = vadd.f32 1.0, %v8461_v23  ;;  %8478 = vpow2.f32 %v2389_v46  ;;  %v2234_v36 = vand.u32 2147483647, %v10256_v25  ;;  %v2299_v18 = vsub.f32 0.0, %v2235_v31 }
 0x1bc   : > { %v8465_v58 = vpop.eup %8464  ;;  %v2443_v15 = vadd.f32 1.0, %v8463_v27  ;;  %v2236_v11 = vand.u32 2147483647, %v10261_v41  ;;  %v2417_v53 = vmul.f32 1.442695, %v2297_v32  ;;  %v2121_v46 = vmax.f32 %v10177_v40, 0.0 }
 0x1bd   : > { %v8467_v17 = vpop.eup %8466  ;;  %8480 = vlog2.f32 %v2441_v10  ;;  %v2442_v4 = vadd.f32 1.0, %v8465_v58  ;;  %v2298_v57 = vsub.f32 0.0, %v2234_v36  ;;  %v2421_v62 = vmul.f32 1.442695, %v2299_v18 }
 0x1be   : > { %8482 = vlog2.f32 %v2443_v15  ;;  %v2444_v28 = vadd.f32 1.0, %v8467_v17  ;;  %v2300_v16 = vsub.f32 0.0, %v2236_v11  ;;  %v2123_v7 = vmax.f32 %v10180_v38, 0.0 }
 0x1bf   : > { %8484 = vlog2.f32 %v2442_v4  ;;  %v8469_v39 = vpop.eup %8468  ;;  %v2419_v22 = vmul.f32 1.442695, %v2298_v57  ;;  %v2122_v58 = vmax.f32 %v10183_v51, 0.0  ;;  %v2124_v4 = vmax.f32 %v10187_v35, 0.0 }
 0x1c0   : > { %8486 = vlog2.f32 %v2444_v28  ;;  %v8471_v12 = vpop.eup %8470  ;;  %v2457_v6 = vadd.f32 1.0, %v8469_v39  ;;  %v2423_v47 = vmul.f32 1.442695, %v2300_v16  ;;  %v2139_v28 = vmax.f32 %v10198_v13, 0.0 }
 0x1c1   : > { %8488 = vpow2.f32 %v2387_v24  ;;  %v8473_v61 = vpop.eup %8472  ;;  %v2459_v44 = vadd.f32 1.0, %v8471_v12  ;;  %v2137_v24 = vmax.f32 %v10195_v37, 0.0  ;;  %v2138_v38 = vmax.f32 %v10204_v20, 0.0 }
 0x1c2   : > { %8490 = vpow2.f32 %v2391_v29  ;;  %v8475_v59 = vpop.eup %8474  ;;  %v2458_v52 = vadd.f32 1.0, %v8473_v61  ;;  %v2140_v32 = vmax.f32 %v10207_v21, 0.0 }
 0x1c3   : > { %8492 = vlog2.f32 %v2457_v6  ;;  %v2460_v55 = vadd.f32 1.0, %v8475_v59 }
 0x1c4   : > { %8494 = vlog2.f32 %v2459_v44  ;;  %v8477_v0 = vpop.eup %8476 }
 0x1c5   : > { %8496 = vlog2.f32 %v2458_v52  ;;  %v8479_v56 = vpop.eup %8478  ;;  %v2473_v27 = vadd.f32 1.0, %v8477_v0 }
 0x1c6   : > { %8498 = vlog2.f32 %v2460_v55  ;;  %v2475_v15 = vadd.f32 1.0, %v8479_v56 }
 0x1c7   : > { %v8481_v26 = vpop.eup %8480  ;;  %8500 = vpow2.f32 %v2417_v53 }
 0x1c8   : > { %v8483_v45 = vpop.eup %8482  ;;  %8502 = vpow2.f32 %v2421_v62  ;;  %v2514_v48 = vmul.f32 0.6931472, %v8481_v26 }
 0x1c9   : > { %v8485_v33 = vpop.eup %8484  ;;  %8504 = vpow2.f32 %v2419_v22  ;;  %v2518_v17 = vmul.f32 0.6931472, %v8483_v45 }
 0x1ca   : > { %v8487_v63 = vpop.eup %8486  ;;  %8506 = vpow2.f32 %v2423_v47  ;;  %v2516_v40 = vmul.f32 0.6931472, %v8485_v33  ;;  %v2633_v61 = vadd.f32 %v2514_v48, %v2121_v46  ;;  %v2153_v48 = vmax.f32 %v10221_v50, 0.0 }
 0x1cb   : > { %v8489_v23 = vpop.eup %8488  ;;  %v2520_v39 = vmul.f32 0.6931472, %v8487_v63  ;;  %8508 = vlog2.f32 %v2473_v27  ;;  %v2635_v18 = vadd.f32 %v2518_v17, %v2123_v7  ;;  %v2156_v50 = vmax.f32 %v10239_v19, 0.0 }
 0x1cc   : > { %v8491_v10 = vpop.eup %8490  ;;  %v2474_v12 = vadd.f32 1.0, %v8489_v23  ;;  %8510 = vlog2.f32 %v2475_v15  ;;  %v2634_v52 = vadd.f32 %v2516_v40, %v2122_v58  ;;  %v2169_v58 = vmax.f32 %v10242_v60, 0.0 }
 0x1cd   : > { %v8493_v1 = vpop.eup %8492  ;;  %v2476_v59 = vadd.f32 1.0, %v8491_v10  ;;  %v2636_v21 = vadd.f32 %v2520_v39, %v2124_v4  ;;  %v2170_v60 = vmax.f32 %v10256_v25, 0.0 }
 0x1ce   : > { %v8495_v29 = vpop.eup %8494  ;;  %v2546_v31 = vmul.f32 0.6931472, %v8493_v1  ;;  %8512 = vlog2.f32 %v2474_v12 }
 0x1cf   : > { %v8497_v36 = vpop.eup %8496  ;;  %v2550_v51 = vmul.f32 0.6931472, %v8495_v29 }
 0x1d0   : > { %v8499_v6 = vpop.eup %8498  ;;  %v2649_v44 = vadd.f32 %v2546_v31, %v2137_v24  ;;  %v2548_v35 = vmul.f32 0.6931472, %v8497_v36  ;;  %v2155_v24 = vmax.f32 %v10224_v42, 0.0  ;;  %v2154_v31 = vmax.f32 %v10227_v54, 0.0 }
 0x1d1   : > { %v8501_v37 = vpop.eup %8500  ;;  %v2651_v13 = vadd.f32 %v2550_v51, %v2139_v28  ;;  %v2552_v11 = vmul.f32 0.6931472, %v8499_v6  ;;  %v2172_v42 = vmax.f32 %v10261_v41, 0.0 }
 0x1d2   : > { %v8162_v53 = vpack.c.bf16 %v2649_v44, %v2633_v61  ;;  %v2650_v20 = vadd.f32 %v2548_v35, %v2138_v38  ;;  %v2489_v57 = vadd.f32 1.0, %v8501_v37  ;;  %v8503_v0 = vpop.eup %8502 }
 0x1d3   : > { %v8170_v55 = vpack.c.bf16 %v2651_v13, %v2635_v18  ;;  %v2652_v16 = vadd.f32 %v2552_v11, %v2140_v32  ;;  %v8505_v62 = vpop.eup %8504  ;;  %v2491_v26 = vadd.f32 1.0, %v8503_v0  ;;  %v2171_v32 = vmax.f32 %v10250_v9, 0.0 }
 0x1d4   : > { %8514 = vlog2.f32 %v2489_v57  ;;  %v8160_v56 = vpack.c.bf16 %v2650_v20, %v2634_v52  ;;  %v8507_v45 = vpop.eup %8506  ;;  %v2490_v47 = vadd.f32 1.0, %v8505_v62 }
 0x1d5   : > { %8516 = vlog2.f32 %v2476_v59  ;;  %v8168_v22 = vpack.c.bf16 %v2652_v16, %v2636_v21  ;;  %v2492_v33 = vadd.f32 1.0, %v8507_v45  ;;  %v8509_v63 = vpop.eup %8508 }
 0x1d6   : > { %8161 = vmatprep.subr.bf16.mxu0 %v8160_v56  ;;  %8518 = vlog2.f32 %v2491_v26  ;;  %v8511_v23 = vpop.eup %8510  ;;  %v2578_v7 = vmul.f32 0.6931472, %v8509_v63 }
 0x1d7   : > { %8169 = vmatprep.subr.bf16.mxu1 %v8168_v22  ;;  %8163 = vmatpush1.bf16.msra.mxu0 %v8162_v53  ;;  %8520 = vlog2.f32 %v2490_v47  ;;  %v2582_v1 = vmul.f32 0.6931472, %v8511_v23 }
 0x1d8   : > { %8171 = vmatpush1.bf16.msra.mxu1 %v8170_v55  ;;  %8522 = vlog2.f32 %v2492_v33  ;;  %v8513_v46 = vpop.eup %8512  ;;  %v2665_v4 = vadd.f32 %v2578_v7, %v2153_v48 }
 0x1d9   : > { %v2580_v28 = vmul.f32 0.6931472, %v8513_v46  ;;  %v2667_v6 = vadd.f32 %v2582_v1, %v2155_v24 }
 0x1db   : > { %v2666_v35 = vadd.f32 %v2580_v28, %v2154_v31 }
 0x1de   : > { %v8515_v27 = vpop.eup %8514 }
 0x1df   : > { %v8517_v10 = vpop.eup %8516  ;;  %v2610_v15 = vmul.f32 0.6931472, %v8515_v27 }
 0x1e0   : > { %v8519_v17 = vpop.eup %8518  ;;  %v2584_v38 = vmul.f32 0.6931472, %v8517_v10 }
 0x1e1   : > { %v2681_v29 = vadd.f32 %v2610_v15, %v2169_v58  ;;  %v8521_v40 = vpop.eup %8520  ;;  %v2614_v36 = vmul.f32 0.6931472, %v8519_v17 }
 0x1e2   : > { %v8523_v39 = vpop.eup %8522  ;;  %v2612_v12 = vmul.f32 0.6931472, %v8521_v40  ;;  %v2668_v18 = vadd.f32 %v2584_v38, %v2156_v50 }
 0x1e3   : > { %v8166_v51 = vpack.c.bf16 %v2681_v29, %v2665_v4  ;;  %v2683_v61 = vadd.f32 %v2614_v36, %v2171_v32  ;;  %v2616_v44 = vmul.f32 0.6931472, %v8523_v39 }
 0x1e4   : > { %v2682_v37 = vadd.f32 %v2612_v12, %v2170_v60 }
 0x1e5   : > { %v8174_v54 = vpack.c.bf16 %v2683_v61, %v2667_v6  ;;  %v2684_v13 = vadd.f32 %v2616_v44, %v2172_v42 }
 0x1e6   : > { %v8164_v11 = vpack.c.bf16 %v2682_v37, %v2666_v35 }
 0x1e7   : > { %v2001_v9 = vpop.f32.mrb[24].mxu0  ;;  %v8172_v59 = vpack.c.bf16 %v2684_v13, %v2668_v18 }
 0x1e8   : > { %v10281_v52 = vadd.f32 %v2001_v9, %v9964_v2  ;;  %v2090_v19 = vpop.f32.mrb[24].mxu1  ;;  %v2003_v53 = vpop.f32.mrb[25].mxu0  ;;  %8165 = vmatprep.subr.bf16.mxu0 %v8164_v11 }
 0x1e9   : > { %v10284_v25 = vadd.f32 %v2090_v19, %v9964_v2  ;;  %v10287_v41 = vadd.f32 %v2003_v53, %v9964_v2  ;;  %v2092_v20 = vpop.f32.mrb[25].mxu1  ;;  %8173 = vmatprep.subr.bf16.mxu1 %v8172_v59  ;;  %8167 = vmatpush1.bf16.msra.mxu0 %v8166_v51 }
 0x1ea   : > { %v2189_v57 = vand.u32 2147483647, %v10281_v52  ;;  %v10291_v21 = vadd.f32 %v2092_v20, %v9964_v2  ;;  %8175 = vmatpush1.bf16.msra.mxu1 %v8174_v54 }
 0x1eb   : > { %v2191_v55 = vand.u32 2147483647, %v10284_v25  ;;  %v2190_v16 = vand.u32 2147483647, %v10287_v41  ;;  %v2007_v62 = vpop.f32.mrb[26].mxu0 }
 0x1ec   : > { %v2253_v0 = vsub.f32 0.0, %v2189_v57  ;;  %v2192_v56 = vand.u32 2147483647, %v10291_v21  ;;  %v2096_v26 = vpop.f32.mrb[26].mxu1  ;;  %7366 = vmatmul.mubr.msk.f32.vlgmr.msra.gmra.mrb[48].mxu0 %vm2717_vm2, %v10064_v14  ;;  %v10299_v47 = vadd.f32 %v2007_v62, %v9979_v49  ;;  %v2009_v33 = vpop.f32.mrb[27].mxu0 }
 0x1ed   : > { %v2255_v22 = vsub.f32 0.0, %v2191_v55  ;;  %v2254_v45 = vsub.f32 0.0, %v2190_v16  ;;  %v10302_v2 = vadd.f32 %v2096_v26, %v9979_v49  ;;  %v2098_v63 = vpop.f32.mrb[27].mxu1  ;;  %7370 = vmatmul.mubr.msk.f32.vlgmr.msra.gmra.mrb[48].mxu1 %vm2717_vm2, %v10064_v14  ;;  %3156 = vmatprep.mubr.f32.mxu0 %v9183_v3  ;;  %v10308_v7 = vadd.f32 %v2009_v33, %v9979_v49 }
 0x1ee   : > { %v2329_v23 = vmul.f32 1.442695, %v2253_v0  ;;  %v2256_v46 = vsub.f32 0.0, %v2192_v56  ;;  %v10311_v27 = vadd.f32 %v2098_v63, %v9979_v49  ;;  %3245 = vmatprep.mubr.f32.mxu1 %v9183_v3  ;;  %v2205_v15 = vand.u32 2147483647, %v10299_v47 }
 0x1ef   : > { %v2333_v10 = vmul.f32 1.442695, %v2255_v22  ;;  %v2331_v48 = vmul.f32 1.442695, %v2254_v45  ;;  %v2207_v14 = vand.u32 2147483647, %v10302_v2 }
 0x1f0   : > { %8524 = vpow2.f32 %v2329_v23  ;;  %v2335_v58 = vmul.f32 1.442695, %v2256_v46  ;;  %7367 = vmatmul.mubr.msk.f32.gmra.mrb[50].mxu0 %vm2717_vm2, %v10087_v30  ;;  %v2206_v1 = vand.u32 2147483647, %v10308_v7  ;;  %v2013_v17 = vpop.f32.mrb[28].mxu0  ;;  %v2102_v4 = vpop.f32.mrb[28].mxu1 }
 0x1f1   : > { %8526 = vpow2.f32 %v2333_v10  ;;  %7371 = vmatmul.mubr.msk.f32.gmra.mrb[50].mxu1 %vm2717_vm2, %v10087_v30  ;;  %3162 = vmatprep.mubr.f32.mxu0 %v9183_v3  ;;  %v2269_v49 = vsub.f32 0.0, %v2205_v15  ;;  %v2271_v24 = vsub.f32 0.0, %v2207_v14  ;;  %v2208_v28 = vand.u32 2147483647, %v10311_v27  ;;  %v2015_v29 = vpop.f32.mrb[29].mxu0  ;;  %v2104_v40 = vpop.f32.mrb[29].mxu1 }
 0x1f2   : > { %8528 = vpow2.f32 %v2331_v48  ;;  %3251 = vmatprep.mubr.f32.mxu1 %v9183_v3  ;;  %v2270_v31 = vsub.f32 0.0, %v2206_v1  ;;  %v10325_v38 = vadd.f32 %v2013_v17, %v9996_v8  ;;  %v10328_v32 = vadd.f32 %v2102_v4, %v9996_v8 }
 0x1f3   : > { %8530 = vpow2.f32 %v2335_v58  ;;  %v2019_v30 = vpop.f32.mrb[30].mxu0  ;;  %v2361_v36 = vmul.f32 1.442695, %v2269_v49  ;;  %v2365_v39 = vmul.f32 1.442695, %v2271_v24  ;;  %v2272_v50 = vsub.f32 0.0, %v2208_v28 }
 0x1f4   : > { %v10331_v51 = vadd.f32 %v2015_v29, %v9996_v8  ;;  %v2108_v60 = vpop.f32.mrb[30].mxu1  ;;  %7368 = vmatmul.mubr.msk.f32.gmra.mrb[52].mxu0 %vm2717_vm2, %v10103_v43  ;;  %v2363_v12 = vmul.f32 1.442695, %v2270_v31  ;;  %v2221_v6 = vand.u32 2147483647, %v10325_v38  ;;  %v2021_v44 = vpop.f32.mrb[31].mxu0  ;;  %v10343_v18 = vadd.f32 %v2104_v40, %v9996_v8 }
 0x1f5   : > { %7372 = vmatmul.mubr.msk.f32.gmra.mrb[52].mxu1 %vm2717_vm2, %v10103_v43  ;;  %3168 = vmatprep.mubr.f32.mxu0 %v9183_v3  ;;  %8532 = vpow2.f32 %v2361_v36  ;;  %v2367_v61 = vmul.f32 1.442695, %v2272_v50  ;;  %v2223_v42 = vand.u32 2147483647, %v10328_v32  ;;  %v2110_v54 = vpop.f32.mrb[31].mxu1  ;;  %v10346_v43 = vadd.f32 %v2019_v30, %v10013_v34 }
 0x1f6   : > { %3257 = vmatprep.mubr.f32.mxu1 %v9183_v3  ;;  %8534 = vpow2.f32 %v2365_v39  ;;  %v2285_v35 = vsub.f32 0.0, %v2221_v6  ;;  %v2222_v37 = vand.u32 2147483647, %v10331_v51  ;;  %v2224_v8 = vand.u32 2147483647, %v10343_v18 }
 0x1f7   : > { %8536 = vpow2.f32 %v2363_v12  ;;  %v2287_v13 = vsub.f32 0.0, %v2223_v42  ;;  %v10354_v53 = vadd.f32 %v2108_v60, %v10013_v34  ;;  %v2237_v55 = vand.u32 2147483647, %v10346_v43 }
 0x1f8   : > { %7369 = vmatmul.mubr.msk.f32.gmra.mrb[54].mxu0 %vm2717_vm2, %v10129_v5  ;;  %8538 = vpow2.f32 %v2367_v61  ;;  %v2393_v11 = vmul.f32 1.442695, %v2285_v35  ;;  %v2286_v9 = vsub.f32 0.0, %v2222_v37  ;;  %v2288_v56 = vsub.f32 0.0, %v2224_v8 }
 0x1f9   : > { %7373 = vmatmul.mubr.msk.f32.gmra.mrb[54].mxu1 %vm2717_vm2, %v10129_v5  ;;  %v2397_v19 = vmul.f32 1.442695, %v2287_v13  ;;  %3328 = vmatprep.mubr.f32.mxu0 %v9183_v3  ;;  %v10360_v22 = vadd.f32 %v2021_v44, %v10013_v34  ;;  %v2239_v63 = vand.u32 2147483647, %v10354_v53  ;;  %v2301_v23 = vsub.f32 0.0, %v2237_v55 }
 0x1fa   : > { %v8525_v59 = vpop.eup %8524  ;;  %8540 = vpow2.f32 %v2393_v11  ;;  %3417 = vmatprep.mubr.f32.mxu1 %v9183_v3  ;;  %v2395_v26 = vmul.f32 1.442695, %v2286_v9  ;;  %v2399_v33 = vmul.f32 1.442695, %v2288_v56  ;;  %v10365_v48 = vadd.f32 %v2110_v54, %v10013_v34 }
 0x1fb   : > { %v8527_v20 = vpop.eup %8526  ;;  %v2445_v57 = vadd.f32 1.0, %v8525_v59  ;;  %8542 = vpow2.f32 %v2397_v19  ;;  %v2238_v46 = vand.u32 2147483647, %v10360_v22  ;;  %v2303_v17 = vsub.f32 0.0, %v2239_v63 }
 0x1fc   : > { %v8529_v16 = vpop.eup %8528  ;;  %v2447_v0 = vadd.f32 1.0, %v8527_v20  ;;  %v2240_v4 = vand.u32 2147483647, %v10365_v48  ;;  %v2425_v28 = vmul.f32 1.442695, %v2301_v23  ;;  %v2125_v44 = vmax.f32 %v10281_v52, 0.0 }
 0x1fd   : > { %v8531_v5 = vpop.eup %8530  ;;  %8544 = vlog2.f32 %v2445_v57  ;;  %v2446_v62 = vadd.f32 1.0, %v8529_v16  ;;  %v2302_v29 = vsub.f32 0.0, %v2238_v46  ;;  %v2429_v36 = vmul.f32 1.442695, %v2303_v17 }
 0x1fe   : > { %8546 = vlog2.f32 %v2447_v0  ;;  %v2448_v45 = vadd.f32 1.0, %v8531_v5  ;;  %v2304_v31 = vsub.f32 0.0, %v2240_v4  ;;  %v2127_v35 = vmax.f32 %v10284_v25, 0.0 }
 0x1ff   : > { %8548 = vlog2.f32 %v2446_v62  ;;  %v8533_v10 = vpop.eup %8532  ;;  %v2427_v50 = vmul.f32 1.442695, %v2302_v29  ;;  %v2126_v11 = vmax.f32 %v10287_v41, 0.0  ;;  %v2128_v8 = vmax.f32 %v10291_v21, 0.0 }
 0x200   : > { %8550 = vlog2.f32 %v2448_v45  ;;  %v8535_v58 = vpop.eup %8534  ;;  %v2461_v15 = vadd.f32 1.0, %v8533_v10  ;;  %v2431_v12 = vmul.f32 1.442695, %v2304_v31  ;;  %v2141_v20 = vmax.f32 %v10299_v47, 0.0 }
 0x201   : > { %8552 = vpow2.f32 %v2395_v26  ;;  %v8537_v14 = vpop.eup %8536  ;;  %v2463_v1 = vadd.f32 1.0, %v8535_v58  ;;  %v2143_v57 = vmax.f32 %v10302_v2, 0.0  ;;  %v2142_v25 = vmax.f32 %v10308_v7, 0.0 }
 0x202   : > { %8554 = vpow2.f32 %v2399_v33  ;;  %v8539_v49 = vpop.eup %8538  ;;  %v2462_v24 = vadd.f32 1.0, %v8537_v14  ;;  %v2144_v0 = vmax.f32 %v10311_v27, 0.0 }
 0x203   : > { %8556 = vlog2.f32 %v2461_v15  ;;  %v2464_v40 = vadd.f32 1.0, %v8539_v49 }
 0x204   : > { %8558 = vlog2.f32 %v2463_v1  ;;  %v8541_v30 = vpop.eup %8540 }
 0x205   : > { %8560 = vlog2.f32 %v2462_v24  ;;  %v8543_v34 = vpop.eup %8542  ;;  %v2477_v37 = vadd.f32 1.0, %v8541_v30 }
 0x206   : > { %8562 = vlog2.f32 %v2464_v40  ;;  %v2479_v9 = vadd.f32 1.0, %v8543_v34 }
 0x207   : > { %v8545_v39 = vpop.eup %8544  ;;  %8564 = vpow2.f32 %v2425_v28 }
 0x208   : > { %v8547_v60 = vpop.eup %8546  ;;  %8566 = vpow2.f32 %v2429_v36  ;;  %v2522_v13 = vmul.f32 0.6931472, %v8545_v39 }
 0x209   : > { %v8549_v6 = vpop.eup %8548  ;;  %8568 = vpow2.f32 %v2427_v50  ;;  %v2526_v19 = vmul.f32 0.6931472, %v8547_v60 }
 0x20a   : > { %v8551_v61 = vpop.eup %8550  ;;  %8570 = vpow2.f32 %v2431_v12  ;;  %v2524_v52 = vmul.f32 0.6931472, %v8549_v6  ;;  %v2637_v45 = vadd.f32 %v2522_v13, %v2125_v44  ;;  %v2157_v12 = vmax.f32 %v10325_v38, 0.0 }
 0x20b   : > { %v8553_v42 = vpop.eup %8552  ;;  %v2528_v5 = vmul.f32 0.6931472, %v8551_v61  ;;  %8572 = vlog2.f32 %v2477_v37  ;;  %v2639_v63 = vadd.f32 %v2526_v19, %v2127_v35  ;;  %v2173_v6 = vmax.f32 %v10346_v43, 0.0 }
 0x20c   : > { %v8555_v54 = vpop.eup %8554  ;;  %v2478_v62 = vadd.f32 1.0, %v8553_v42  ;;  %8574 = vlog2.f32 %v2479_v9  ;;  %v2638_v10 = vadd.f32 %v2524_v52, %v2126_v11  ;;  %v2159_v37 = vmax.f32 %v10328_v32, 0.0 }
 0x20d   : > { %v8557_v59 = vpop.eup %8556  ;;  %v2480_v46 = vadd.f32 1.0, %v8555_v54  ;;  %v2640_v27 = vadd.f32 %v2528_v5, %v2128_v8  ;;  %v2158_v9 = vmax.f32 %v10331_v51, 0.0  ;;  %v2175_v19 = vmax.f32 %v10354_v53, 0.0 }
 0x20e   : > { %v8559_v55 = vpop.eup %8558  ;;  %v2554_v16 = vmul.f32 0.6931472, %v8557_v59  ;;  %8576 = vlog2.f32 %v2478_v62  ;;  %v2160_v38 = vmax.f32 %v10343_v18, 0.0  ;;  %v2174_v43 = vmax.f32 %v10360_v22, 0.0  ;;  %v9165_v18 = vld [vmem:[%s11922_s3] sm:$0xff]  ;;  %v9166_v22 = vld [vmem:[%s11922_s3 + $0x8] sm:$0xff] }
 0x20f   : > { %v8561_v56 = vpop.eup %8560  ;;  %v2558_v41 = vmul.f32 0.6931472, %v8559_v55  ;;  %v2176_v32 = vmax.f32 %v10365_v48, 0.0  ;;  %v9167_v48 = vld [vmem:[%s11922_s3 + $0x10] sm:$0xff] }
 0x210   : > { %v8563_v26 = vpop.eup %8562  ;;  %v2653_v33 = vadd.f32 %v2554_v16, %v2141_v20  ;;  %v2556_v21 = vmul.f32 0.6931472, %v8561_v56 }
 0x211   : > { %v8565_v47 = vpop.eup %8564  ;;  %v2655_v2 = vadd.f32 %v2558_v41, %v2143_v57  ;;  %v2560_v23 = vmul.f32 0.6931472, %v8563_v26  ;;  %v9168_v26 = vld [vmem:[%s11922_s3 + $0x18] sm:$0xff] }
 0x212   : > { %v8178_v58 = vpack.c.bf16 %v2653_v33, %v2637_v45  ;;  %v2654_v7 = vadd.f32 %v2556_v21, %v2142_v25  ;;  %v2493_v15 = vadd.f32 1.0, %v8565_v47  ;;  %v8567_v17 = vpop.eup %8566  ;;  %v10412_v45 = vpop.permute.xlu0 %2699 }
 0x213   : > { %v8186_v14 = vpack.c.bf16 %v2655_v2, %v2639_v63  ;;  %v2656_v1 = vadd.f32 %v2560_v23, %v2144_v0  ;;  %v8569_v49 = vpop.eup %8568  ;;  %v2495_v24 = vadd.f32 1.0, %v8567_v17 }
 0x214   : > { %8578 = vlog2.f32 %v2493_v15  ;;  %v8176_v4 = vpack.c.bf16 %v2654_v7, %v2638_v10  ;;  %v8571_v29 = vpop.eup %8570  ;;  %v2494_v40 = vadd.f32 1.0, %v8569_v49  ;;  %v10427_v7 = vpop.permute.xlu1 %2704 }
 0x215   : > { %8580 = vlog2.f32 %v2480_v46  ;;  %v8184_v28 = vpack.c.bf16 %v2656_v1, %v2640_v27  ;;  %v2496_v31 = vadd.f32 1.0, %v8571_v29  ;;  %v8573_v30 = vpop.eup %8572 }
 0x216   : > { %8177 = vmatprep.subr.bf16.mxu0 %v8176_v4  ;;  %8582 = vlog2.f32 %v2495_v24  ;;  %v8575_v34 = vpop.eup %8574  ;;  %v2586_v39 = vmul.f32 0.6931472, %v8573_v30 }
 0x217   : > { %8185 = vmatprep.subr.bf16.mxu1 %v8184_v28  ;;  %8179 = vmatpush1.bf16.msra.mxu0 %v8178_v58  ;;  %8584 = vlog2.f32 %v2494_v40  ;;  %v2590_v42 = vmul.f32 0.6931472, %v8575_v34 }
 0x218   : > { %8187 = vmatpush1.bf16.msra.mxu1 %v8186_v14  ;;  %8586 = vlog2.f32 %v2496_v31  ;;  %v8577_v36 = vpop.eup %8576  ;;  %v2669_v35 = vadd.f32 %v2586_v39, %v2157_v12  ;;  %v10444_v12 = vpop.permute.xlu0 %2709 }
 0x219   : > { %v2588_v54 = vmul.f32 0.6931472, %v8577_v36  ;;  %v2671_v52 = vadd.f32 %v2590_v42, %v2159_v37 }
 0x21b   : > { %v2670_v0 = vadd.f32 %v2588_v54, %v2158_v9 }
 0x21e   : > { %v8579_v50 = vpop.eup %8578 }
 0x21f   : > { %v8581_v60 = vpop.eup %8580  ;;  %v2618_v61 = vmul.f32 0.6931472, %v8579_v50 }
 0x220   : > { %v8583_v44 = vpop.eup %8582  ;;  %v2592_v59 = vmul.f32 0.6931472, %v8581_v60 }
 0x221   : > { %v2685_v13 = vadd.f32 %v2618_v61, %v2173_v6  ;;  %v8585_v11 = vpop.eup %8584  ;;  %v2622_v8 = vmul.f32 0.6931472, %v8583_v44 }
 0x222   : > { %v8587_v20 = vpop.eup %8586  ;;  %v2620_v55 = vmul.f32 0.6931472, %v8585_v11  ;;  %v2672_v5 = vadd.f32 %v2592_v59, %v2160_v38 }
 0x223   : > { %v8182_v57 = vpack.c.bf16 %v2685_v13, %v2669_v35  ;;  %v2687_v16 = vadd.f32 %v2622_v8, %v2175_v19  ;;  %v2624_v25 = vmul.f32 0.6931472, %v8587_v20 }
 0x224   : > { %v2686_v56 = vadd.f32 %v2620_v55, %v2174_v43 }
 0x225   : > { %v8190_v51 = vpack.c.bf16 %v2687_v16, %v2671_v52  ;;  %v2688_v41 = vadd.f32 %v2624_v25, %v2176_v32 }
 0x226   : > { %v8180_v62 = vpack.c.bf16 %v2686_v56, %v2670_v0 }
 0x227   : > { %v8188_v53 = vpack.c.bf16 %v2688_v41, %v2672_v5 }
 0x228   : > { %8181 = vmatprep.subr.bf16.mxu0 %v8180_v62 }
 0x229   : > { %8189 = vmatprep.subr.bf16.mxu1 %v8188_v53  ;;  %8183 = vmatpush1.bf16.msra.mxu0 %v8182_v57 }
 0x22a   : > { %8191 = vmatpush1.bf16.msra.mxu1 %v8190_v51  ;;  %v10461_v51 = vpop.permute.xlu1 %2714 }
 0x22c   : > { %7374 = vmatmul.mubr.msk.f32.vlgmr.msra.gmra.mrb[56].mxu0 %vm2717_vm2, %v9165_v18 }
 0x22d   : > { %7378 = vmatmul.mubr.msk.f32.vlgmr.msra.gmra.mrb[56].mxu1 %vm2717_vm2, %v9165_v18  ;;  %3334 = vmatprep.mubr.f32.mxu0 %v9183_v3 }
 0x22e   : > { %3423 = vmatprep.mubr.f32.mxu1 %v9183_v3 }
 0x230   : > { %7375 = vmatmul.mubr.msk.f32.gmra.mrb[58].mxu0 %vm2717_vm2, %v9166_v22 }
 0x231   : > { %7379 = vmatmul.mubr.msk.f32.gmra.mrb[58].mxu1 %vm2717_vm2, %v9166_v22  ;;  %3340 = vmatprep.mubr.f32.mxu0 %v9183_v3 }
 0x232   : > { %3429 = vmatprep.mubr.f32.mxu1 %v9183_v3 }
 0x234   : > { %7376 = vmatmul.mubr.msk.f32.gmra.mrb[60].mxu0 %vm2717_vm2, %v9167_v48 }
 0x235   : > { %7380 = vmatmul.mubr.msk.f32.gmra.mrb[60].mxu1 %vm2717_vm2, %v9167_v48  ;;  %3346 = vmatprep.mubr.f32.mxu0 %v9183_v3 }
 0x236   : > { %3435 = vmatprep.mubr.f32.mxu1 %v9183_v3 }
 0x238   : > { %7377 = vmatmul.mubr.msk.f32.gmra.mrb[62].mxu0 %vm2717_vm2, %v9168_v26 }
 0x239   : > { %7381 = vmatmul.mubr.msk.f32.gmra.mrb[62].mxu1 %vm2717_vm2, %v9168_v26  ;;  %4122 = vmatprep.mubr.f32.mxu0 %v9183_v3 }
 0x23a   : > { %4211 = vmatprep.mubr.f32.mxu1 %v9183_v3 }
 0x23f   : > { %v2796_v33 = vpop.f32.mrb[32].mxu0 }
 0x240   : > { %v10415_v21 = vadd.f32 %v2796_v33, %v10412_v45  ;;  %v2885_v47 = vpop.f32.mrb[32].mxu1  ;;  %v2798_v63 = vpop.f32.mrb[33].mxu0 }
 0x241   : > { %v10418_v2 = vadd.f32 %v2885_v47, %v10412_v45  ;;  %v10421_v23 = vadd.f32 %v2798_v63, %v10412_v45  ;;  %v2887_v46 = vpop.f32.mrb[33].mxu1 }
 0x242   : > { %v3506_v10 = vand.u32 2147483647, %v10415_v21  ;;  %v10425_v58 = vadd.f32 %v2887_v46, %v10412_v45 }
 0x243   : > { %v3508_v15 = vand.u32 2147483647, %v10418_v2  ;;  %v3507_v27 = vand.u32 2147483647, %v10421_v23  ;;  %v2802_v17 = vpop.f32.mrb[34].mxu0 }
 0x244   : > { %v3570_v14 = vsub.f32 0.0, %v3506_v10  ;;  %v3509_v1 = vand.u32 2147483647, %v10425_v58  ;;  %v2891_v4 = vpop.f32.mrb[34].mxu1  ;;  %v10433_v28 = vadd.f32 %v2802_v17, %v10427_v7  ;;  %v2804_v40 = vpop.f32.mrb[35].mxu0 }
 0x245   : > { %v3572_v49 = vsub.f32 0.0, %v3508_v15  ;;  %v3571_v24 = vsub.f32 0.0, %v3507_v27  ;;  %v10436_v29 = vadd.f32 %v2891_v4, %v10427_v7  ;;  %v2893_v31 = vpop.f32.mrb[35].mxu1  ;;  %v10439_v36 = vadd.f32 %v2804_v40, %v10427_v7 }
 0x246   : > { %v3634_v30 = vmul.f32 1.442695, %v3570_v14  ;;  %v3573_v34 = vsub.f32 0.0, %v3509_v1  ;;  %v10442_v39 = vadd.f32 %v2893_v31, %v10427_v7  ;;  %v3522_v61 = vand.u32 2147483647, %v10433_v28 }
 0x247   : > { %v3638_v50 = vmul.f32 1.442695, %v3572_v49  ;;  %v3636_v60 = vmul.f32 1.442695, %v3571_v24  ;;  %v3524_v42 = vand.u32 2147483647, %v10436_v29 }
 0x248   : > { %8588 = vpow2.f32 %v3634_v30  ;;  %v3640_v6 = vmul.f32 1.442695, %v3573_v34  ;;  %v3523_v44 = vand.u32 2147483647, %v10439_v36  ;;  %v2808_v35 = vpop.f32.mrb[36].mxu0  ;;  %v2897_v37 = vpop.f32.mrb[36].mxu1 }
 0x249   : > { %8590 = vpow2.f32 %v3638_v50  ;;  %v3586_v54 = vsub.f32 0.0, %v3522_v61  ;;  %v3588_v13 = vsub.f32 0.0, %v3524_v42  ;;  %v3525_v11 = vand.u32 2147483647, %v10442_v39  ;;  %v2810_v9 = vpop.f32.mrb[37].mxu0  ;;  %v2899_v59 = vpop.f32.mrb[37].mxu1 }
 0x24a   : > { %8592 = vpow2.f32 %v3636_v60  ;;  %v3587_v19 = vsub.f32 0.0, %v3523_v44  ;;  %v10451_v8 = vadd.f32 %v2808_v35, %v10444_v12  ;;  %v10454_v20 = vadd.f32 %v2897_v37, %v10444_v12 }
 0x24b   : > { %8594 = vpow2.f32 %v3640_v6  ;;  %v2814_v38 = vpop.f32.mrb[38].mxu0  ;;  %v3666_v57 = vmul.f32 1.442695, %v3586_v54  ;;  %v3670_v43 = vmul.f32 1.442695, %v3588_v13  ;;  %v3589_v55 = vsub.f32 0.0, %v3525_v11 }
 0x24c   : > { %v10457_v52 = vadd.f32 %v2810_v9, %v10444_v12  ;;  %v2903_v16 = vpop.f32.mrb[38].mxu1  ;;  %v3668_v32 = vmul.f32 1.442695, %v3587_v19  ;;  %v3538_v25 = vand.u32 2147483647, %v10451_v8  ;;  %v2816_v5 = vpop.f32.mrb[39].mxu0  ;;  %v10465_v53 = vadd.f32 %v2899_v59, %v10444_v12 }
 0x24d   : > { %8596 = vpow2.f32 %v3666_v57  ;;  %v3672_v0 = vmul.f32 1.442695, %v3589_v55  ;;  %v3540_v56 = vand.u32 2147483647, %v10454_v20  ;;  %v2905_v18 = vpop.f32.mrb[39].mxu1  ;;  %v10468_v48 = vadd.f32 %v2814_v38, %v10461_v51 }
 0x24e   : > { %8598 = vpow2.f32 %v3670_v43  ;;  %v3602_v41 = vsub.f32 0.0, %v3538_v25  ;;  %v3539_v62 = vand.u32 2147483647, %v10457_v52  ;;  %v3541_v46 = vand.u32 2147483647, %v10465_v53 }
 0x24f   : > { %8600 = vpow2.f32 %v3668_v32  ;;  %v3604_v22 = vsub.f32 0.0, %v3540_v56  ;;  %v10472_v10 = vadd.f32 %v2903_v16, %v10461_v51  ;;  %v3554_v14 = vand.u32 2147483647, %v10468_v48 }
 0x250   : > { %8602 = vpow2.f32 %v3672_v0  ;;  %v3698_v26 = vmul.f32 1.442695, %v3602_v41  ;;  %v3603_v33 = vsub.f32 0.0, %v3539_v62  ;;  %v3605_v4 = vsub.f32 0.0, %v3541_v46 }
 0x251   : > { %v3702_v63 = vmul.f32 1.442695, %v3604_v22  ;;  %v10476_v31 = vadd.f32 %v2816_v5, %v10461_v51  ;;  %v3556_v50 = vand.u32 2147483647, %v10472_v10  ;;  %v3618_v60 = vsub.f32 0.0, %v3554_v14 }
 0x252   : > { %v8589_v47 = vpop.eup %8588  ;;  %8604 = vpow2.f32 %v3698_v26  ;;  %v3700_v40 = vmul.f32 1.442695, %v3603_v33  ;;  %v3704_v34 = vmul.f32 1.442695, %v3605_v4  ;;  %v10481_v42 = vadd.f32 %v2905_v18, %v10461_v51 }
 0x253   : > { %v8591_v15 = vpop.eup %8590  ;;  %v3762_v27 = vadd.f32 1.0, %v8589_v47  ;;  %8606 = vpow2.f32 %v3702_v63  ;;  %v3555_v6 = vand.u32 2147483647, %v10476_v31  ;;  %v3620_v13 = vsub.f32 0.0, %v3556_v50 }
 0x254   : > { %v8593_v1 = vpop.eup %8592  ;;  %v3764_v17 = vadd.f32 1.0, %v8591_v15  ;;  %v3557_v11 = vand.u32 2147483647, %v10481_v42  ;;  %v3730_v19 = vmul.f32 1.442695, %v3618_v60  ;;  %v3442_v22 = vmax.f32 %v10415_v21, 0.0 }
 0x255   : > { %v8595_v49 = vpop.eup %8594  ;;  %8608 = vlog2.f32 %v3762_v27  ;;  %v3763_v24 = vadd.f32 1.0, %v8593_v1  ;;  %v3619_v38 = vsub.f32 0.0, %v3555_v6  ;;  %v3734_v32 = vmul.f32 1.442695, %v3620_v13 }
 0x256   : > { %8610 = vlog2.f32 %v3764_v17  ;;  %v3765_v30 = vadd.f32 1.0, %v8595_v49  ;;  %v3621_v43 = vsub.f32 0.0, %v3557_v11  ;;  %v3444_v26 = vmax.f32 %v10418_v2, 0.0 }
 0x257   : > { %8612 = vlog2.f32 %v3763_v24  ;;  %v8597_v61 = vpop.eup %8596  ;;  %v3732_v0 = vmul.f32 1.442695, %v3619_v38  ;;  %v3443_v46 = vmax.f32 %v10421_v23, 0.0  ;;  %v3445_v1 = vmax.f32 %v10425_v58, 0.0 }
 0x258   : > { %8614 = vlog2.f32 %v3765_v30  ;;  %v8599_v44 = vpop.eup %8598  ;;  %v3778_v35 = vadd.f32 1.0, %v8597_v61  ;;  %v3736_v5 = vmul.f32 1.442695, %v3621_v43  ;;  %v3458_v17 = vmax.f32 %v10433_v28, 0.0 }
 0x259   : > { %8616 = vpow2.f32 %v3700_v40  ;;  %v8601_v37 = vpop.eup %8600  ;;  %v3780_v54 = vadd.f32 1.0, %v8599_v44  ;;  %v3460_v4 = vmax.f32 %v10436_v29, 0.0  ;;  %v3459_v2 = vmax.f32 %v10439_v36, 0.0 }
 0x25a   : > { %8618 = vpow2.f32 %v3704_v34  ;;  %v8603_v9 = vpop.eup %8602  ;;  %v3779_v59 = vadd.f32 1.0, %v8601_v37  ;;  %v3461_v40 = vmax.f32 %v10442_v39, 0.0 }
 0x25b   : > { %8620 = vlog2.f32 %v3778_v35  ;;  %v3781_v57 = vadd.f32 1.0, %v8603_v9 }
 0x25c   : > { %8622 = vlog2.f32 %v3780_v54  ;;  %v8605_v55 = vpop.eup %8604 }
 0x25d   : > { %8624 = vlog2.f32 %v3779_v59  ;;  %v8607_v16 = vpop.eup %8606  ;;  %v3794_v33 = vadd.f32 1.0, %v8605_v55 }
 0x25e   : > { %8626 = vlog2.f32 %v3781_v57  ;;  %v3796_v15 = vadd.f32 1.0, %v8607_v16 }
 0x25f   : > { %v8609_v25 = vpop.eup %8608  ;;  %8628 = vpow2.f32 %v3730_v19 }
 0x260   : > { %v8611_v56 = vpop.eup %8610  ;;  %8630 = vpow2.f32 %v3734_v32  ;;  %v3827_v63 = vmul.f32 0.6931472, %v8609_v25 }
 0x261   : > { %v8613_v41 = vpop.eup %8612  ;;  %8632 = vpow2.f32 %v3732_v0  ;;  %v3831_v14 = vmul.f32 0.6931472, %v8611_v56 }
 0x262   : > { %v8615_v62 = vpop.eup %8614  ;;  %8634 = vpow2.f32 %v3736_v5  ;;  %v3829_v21 = vmul.f32 0.6931472, %v8613_v41  ;;  %v3954_v6 = vadd.f32 %v3827_v63, %v3442_v22  ;;  %v3474_v22 = vmax.f32 %v10451_v8, 0.0 }
 0x263   : > { %v8617_v18 = vpop.eup %8616  ;;  %v3833_v34 = vmul.f32 0.6931472, %v8615_v62  ;;  %8636 = vlog2.f32 %v3794_v33  ;;  %v3956_v44 = vadd.f32 %v3831_v14, %v3444_v26  ;;  %v3490_v26 = vmax.f32 %v10468_v48, 0.0 }
 0x264   : > { %v8619_v47 = vpop.eup %8618  ;;  %v3795_v50 = vadd.f32 1.0, %v8617_v18  ;;  %8638 = vlog2.f32 %v3796_v15  ;;  %v3955_v54 = vadd.f32 %v3829_v21, %v3443_v46  ;;  %v3476_v15 = vmax.f32 %v10454_v20, 0.0 }
 0x265   : > { %v8621_v27 = vpop.eup %8620  ;;  %v3797_v37 = vadd.f32 1.0, %v8619_v47  ;;  %v3957_v39 = vadd.f32 %v3833_v34, %v3445_v1  ;;  %v3477_v8 = vmax.f32 %v10465_v53, 0.0  ;;  %v3491_v48 = vmax.f32 %v10476_v31, 0.0 }
 0x266   : > { %v8623_v49 = vpop.eup %8622  ;;  %v3859_v24 = vmul.f32 0.6931472, %v8621_v27  ;;  %8640 = vlog2.f32 %v3795_v50  ;;  %v3493_v20 = vmax.f32 %v10481_v42, 0.0 }
 0x267   : > { %v8625_v30 = vpop.eup %8624  ;;  %v3863_v23 = vmul.f32 0.6931472, %v8623_v49  ;;  %v3492_v49 = vmax.f32 %v10472_v10, 0.0 }
 0x268   : > { %v8627_v60 = vpop.eup %8626  ;;  %v3970_v61 = vadd.f32 %v3859_v24, %v3458_v17  ;;  %v3861_v58 = vmul.f32 0.6931472, %v8625_v30  ;;  %v3475_v17 = vmax.f32 %v10457_v52, 0.0 }
 0x269   : > { %v8629_v28 = vpop.eup %8628  ;;  %v3972_v29 = vadd.f32 %v3863_v23, %v3460_v4  ;;  %v3865_v35 = vmul.f32 0.6931472, %v8627_v60 }
 0x26a   : > { %v8194_v13 = vpack.c.bf16 %v3970_v61, %v3954_v6  ;;  %v3971_v36 = vadd.f32 %v3861_v58, %v3459_v2  ;;  %v3810_v11 = vadd.f32 1.0, %v8629_v28  ;;  %v8631_v19 = vpop.eup %8630 }
 0x26b   : > { %v8202_v9 = vpack.c.bf16 %v3972_v29, %v3956_v44  ;;  %v3973_v59 = vadd.f32 %v3865_v35, %v3461_v40  ;;  %v8633_v57 = vpop.eup %8632  ;;  %v3812_v43 = vadd.f32 1.0, %v8631_v19 }
 0x26c   : > { %8642 = vlog2.f32 %v3810_v11  ;;  %v8192_v38 = vpack.c.bf16 %v3971_v36, %v3955_v54  ;;  %v8635_v16 = vpop.eup %8634  ;;  %v3811_v32 = vadd.f32 1.0, %v8633_v57 }
 0x26d   : > { %8644 = vlog2.f32 %v3797_v37  ;;  %v8200_v55 = vpack.c.bf16 %v3973_v59, %v3957_v39  ;;  %v3813_v25 = vadd.f32 1.0, %v8635_v16  ;;  %v8637_v0 = vpop.eup %8636  ;;  %v10512_v37 = vld [vmem:[%s11924_s5] sm:$0xff] }
 0x26e   : > { %8193 = vmatprep.subr.bf16.mxu0 %v8192_v38  ;;  %8646 = vlog2.f32 %v3812_v43  ;;  %v8639_v56 = vpop.eup %8638  ;;  %v3891_v41 = vmul.f32 0.6931472, %v8637_v0 }
 0x26f   : > { %8201 = vmatprep.subr.bf16.mxu1 %v8200_v55  ;;  %8195 = vmatpush1.bf16.msra.mxu0 %v8194_v13  ;;  %8648 = vlog2.f32 %v3811_v32  ;;  %v3895_v47 = vmul.f32 0.6931472, %v8639_v56 }
 0x270   : > { %8203 = vmatpush1.bf16.msra.mxu1 %v8202_v9  ;;  %8650 = vlog2.f32 %v3813_v25  ;;  %v8641_v5 = vpop.eup %8640  ;;  %v3986_v46 = vadd.f32 %v3891_v41, %v3474_v22  ;;  %v10535_v25 = vld [vmem:[%s11924_s5 + $0x8] sm:$0xff] }
 0x271   : > { %v3893_v27 = vmul.f32 0.6931472, %v8641_v5  ;;  %v3988_v30 = vadd.f32 %v3895_v47, %v3476_v15  ;;  %v10551_v47 = vld [vmem:[%s11924_s5 + $0x10] sm:$0xff] }
 0x273   : > { %v3987_v50 = vadd.f32 %v3893_v27, %v3475_v17 }
 0x276   : > { %v8643_v62 = vpop.eup %8642 }
 0x277   : > { %v8645_v18 = vpop.eup %8644  ;;  %v3923_v33 = vmul.f32 0.6931472, %v8643_v62 }
 0x278   : > { %v8647_v63 = vpop.eup %8646  ;;  %v3897_v4 = vmul.f32 0.6931472, %v8645_v18 }
 0x279   : > { %v4002_v14 = vadd.f32 %v3923_v33, %v3490_v26  ;;  %v8649_v1 = vpop.eup %8648  ;;  %v3927_v21 = vmul.f32 0.6931472, %v8647_v63 }
 0x27a   : > { %v8651_v24 = vpop.eup %8650  ;;  %v3925_v40 = vmul.f32 0.6931472, %v8649_v1  ;;  %v3989_v6 = vadd.f32 %v3897_v4, %v3477_v8 }
 0x27b   : > { %v8198_v2 = vpack.c.bf16 %v4002_v14, %v3986_v46  ;;  %v4004_v34 = vadd.f32 %v3927_v21, %v3492_v49  ;;  %v3929_v23 = vmul.f32 0.6931472, %v8651_v24 }
 0x27c   : > { %v4003_v60 = vadd.f32 %v3925_v40, %v3491_v48 }
 0x27d   : > { %v8206_v52 = vpack.c.bf16 %v4004_v34, %v3988_v30  ;;  %v4005_v61 = vadd.f32 %v3929_v23, %v3493_v20 }
 0x27e   : > { %v8196_v58 = vpack.c.bf16 %v4003_v60, %v3987_v50  ;;  %v10577_v50 = vld [vmem:[%s11924_s5 + $0x18] sm:$0xff] }
 0x27f   : > { %v2974_v10 = vpop.f32.mrb[40].mxu0  ;;  %v8204_v28 = vpack.c.bf16 %v4005_v61, %v3989_v6 }
 0x280   : > { %v10501_v44 = vadd.f32 %v2974_v10, %v10412_v45  ;;  %v3063_v53 = vpop.f32.mrb[40].mxu1  ;;  %v2976_v29 = vpop.f32.mrb[41].mxu0  ;;  %8197 = vmatprep.subr.bf16.mxu0 %v8196_v58 }
 0x281   : > { %v10504_v31 = vadd.f32 %v3063_v53, %v10412_v45  ;;  %v10507_v42 = vadd.f32 %v2976_v29, %v10412_v45  ;;  %v3065_v35 = vpop.f32.mrb[41].mxu1  ;;  %8205 = vmatprep.subr.bf16.mxu1 %v8204_v28  ;;  %8199 = vmatpush1.bf16.msra.mxu0 %v8198_v2 }
 0x282   : > { %v3510_v54 = vand.u32 2147483647, %v10501_v44  ;;  %v10516_v13 = vadd.f32 %v3065_v35, %v10412_v45  ;;  %8207 = vmatpush1.bf16.msra.mxu1 %v8206_v52 }
 0x283   : > { %v3512_v36 = vand.u32 2147483647, %v10504_v31  ;;  %v3511_v11 = vand.u32 2147483647, %v10507_v42  ;;  %v2980_v59 = vpop.f32.mrb[42].mxu0 }
 0x284   : > { %v3574_v39 = vsub.f32 0.0, %v3510_v54  ;;  %v3513_v9 = vand.u32 2147483647, %v10516_v13  ;;  %v3069_v19 = vpop.f32.mrb[42].mxu1  ;;  %7382 = vmatmul.mubr.msk.f32.vlgmr.msra.gmra.mrb[64].mxu0 %vm2717_vm2, %v10512_v37  ;;  %v10524_v43 = vadd.f32 %v2980_v59, %v10427_v7  ;;  %v2982_v16 = vpop.f32.mrb[43].mxu0 }
 0x285   : > { %v3576_v38 = vsub.f32 0.0, %v3512_v36  ;;  %v3575_v57 = vsub.f32 0.0, %v3511_v11  ;;  %v10527_v55 = vadd.f32 %v3069_v19, %v10427_v7  ;;  %v3071_v32 = vpop.f32.mrb[43].mxu1  ;;  %7386 = vmatmul.mubr.msk.f32.vlgmr.msra.gmra.mrb[64].mxu1 %vm2717_vm2, %v10512_v37  ;;  %4128 = vmatprep.mubr.f32.mxu0 %v9183_v3  ;;  %v10538_v5 = vadd.f32 %v2982_v16, %v10427_v7 }
 0x286   : > { %v3642_v0 = vmul.f32 1.442695, %v3574_v39  ;;  %v3577_v56 = vsub.f32 0.0, %v3513_v9  ;;  %v10541_v41 = vadd.f32 %v3071_v32, %v10427_v7  ;;  %4217 = vmatprep.mubr.f32.mxu1 %v9183_v3  ;;  %v3526_v26 = vand.u32 2147483647, %v10524_v43 }
 0x287   : > { %v3646_v62 = vmul.f32 1.442695, %v3576_v38  ;;  %v3644_v18 = vmul.f32 1.442695, %v3575_v57  ;;  %v3528_v33 = vand.u32 2147483647, %v10527_v55 }
 0x288   : > { %8652 = vpow2.f32 %v3642_v0  ;;  %v3648_v22 = vmul.f32 1.442695, %v3577_v56  ;;  %7383 = vmatmul.mubr.msk.f32.gmra.mrb[66].mxu0 %vm2717_vm2, %v10535_v25  ;;  %v3527_v63 = vand.u32 2147483647, %v10538_v5  ;;  %v2986_v46 = vpop.f32.mrb[44].mxu0  ;;  %v3075_v15 = vpop.f32.mrb[44].mxu1 }
 0x289   : > { %8654 = vpow2.f32 %v3646_v62  ;;  %7387 = vmatmul.mubr.msk.f32.gmra.mrb[66].mxu1 %vm2717_vm2, %v10535_v25  ;;  %4134 = vmatprep.mubr.f32.mxu0 %v9183_v3  ;;  %v3590_v27 = vsub.f32 0.0, %v3526_v26  ;;  %v3592_v14 = vsub.f32 0.0, %v3528_v33  ;;  %v3529_v1 = vand.u32 2147483647, %v10541_v41  ;;  %v2988_v17 = vpop.f32.mrb[45].mxu0  ;;  %v3077_v4 = vpop.f32.mrb[45].mxu1 }
 0x28a   : > { %8656 = vpow2.f32 %v3644_v18  ;;  %4223 = vmatprep.mubr.f32.mxu1 %v9183_v3  ;;  %v3591_v49 = vsub.f32 0.0, %v3527_v63  ;;  %v10560_v21 = vadd.f32 %v2986_v46, %v10444_v12  ;;  %v10563_v24 = vadd.f32 %v3075_v15, %v10444_v12 }
 0x28b   : > { %8658 = vpow2.f32 %v3648_v22  ;;  %v2992_v8 = vpop.f32.mrb[46].mxu0  ;;  %v3674_v2 = vmul.f32 1.442695, %v3590_v27  ;;  %v3678_v48 = vmul.f32 1.442695, %v3592_v14  ;;  %v3593_v40 = vsub.f32 0.0, %v3529_v1 }
 0x28c   : > { %v10566_v30 = vadd.f32 %v2988_v17, %v10444_v12  ;;  %v3081_v34 = vpop.f32.mrb[46].mxu1  ;;  %7384 = vmatmul.mubr.msk.f32.gmra.mrb[68].mxu0 %vm2717_vm2, %v10551_v47  ;;  %v3676_v20 = vmul.f32 1.442695, %v3591_v49  ;;  %v3542_v23 = vand.u32 2147483647, %v10560_v21  ;;  %v2994_v52 = vpop.f32.mrb[47].mxu0  ;;  %v10583_v10 = vadd.f32 %v3077_v4, %v10444_v12 }
 0x28d   : > { %7388 = vmatmul.mubr.msk.f32.gmra.mrb[68].mxu1 %vm2717_vm2, %v10551_v47  ;;  %4140 = vmatprep.mubr.f32.mxu0 %v9183_v3  ;;  %8660 = vpow2.f32 %v3674_v2  ;;  %v3680_v60 = vmul.f32 1.442695, %v3593_v40  ;;  %v3544_v6 = vand.u32 2147483647, %v10563_v24  ;;  %v3083_v28 = vpop.f32.mrb[47].mxu1  ;;  %v10586_v29 = vadd.f32 %v2992_v8, %v10461_v51 }
 0x28e   : > { %4229 = vmatprep.mubr.f32.mxu1 %v9183_v3  ;;  %8662 = vpow2.f32 %v3678_v48  ;;  %v3606_v61 = vsub.f32 0.0, %v3542_v23  ;;  %v3543_v58 = vand.u32 2147483647, %v10566_v30  ;;  %v3545_v39 = vand.u32 2147483647, %v10583_v10 }
 0x28f   : > { %8664 = vpow2.f32 %v3676_v20  ;;  %v3608_v53 = vsub.f32 0.0, %v3544_v6  ;;  %v10594_v9 = vadd.f32 %v3081_v34, %v10461_v51  ;;  %v3558_v38 = vand.u32 2147483647, %v10586_v29 }
 0x290   : > { %7385 = vmatmul.mubr.msk.f32.gmra.mrb[70].mxu0 %vm2717_vm2, %v10577_v50  ;;  %8666 = vpow2.f32 %v3680_v60  ;;  %v3706_v35 = vmul.f32 1.442695, %v3606_v61  ;;  %v3607_v54 = vsub.f32 0.0, %v3543_v58  ;;  %v3609_v32 = vsub.f32 0.0, %v3545_v39 }
 0x291   : > { %7389 = vmatmul.mubr.msk.f32.gmra.mrb[70].mxu1 %vm2717_vm2, %v10577_v50  ;;  %v3710_v11 = vmul.f32 1.442695, %v3608_v53  ;;  %4300 = vmatprep.mubr.f32.mxu0 %v9183_v3  ;;  %v10600_v18 = vadd.f32 %v2994_v52, %v10461_v51  ;;  %v3560_v33 = vand.u32 2147483647, %v10594_v9  ;;  %v3622_v63 = vsub.f32 0.0, %v3558_v38 }
 0x292   : > { %v8653_v36 = vpop.eup %8652  ;;  %8668 = vpow2.f32 %v3706_v35  ;;  %4389 = vmatprep.mubr.f32.mxu1 %v9183_v3  ;;  %v3708_v62 = vmul.f32 1.442695, %v3607_v54  ;;  %v3712_v26 = vmul.f32 1.442695, %v3609_v32  ;;  %v10605_v27 = vadd.f32 %v3083_v28, %v10461_v51 }
 0x293   : > { %v8655_v59 = vpop.eup %8654  ;;  %v3766_v19 = vadd.f32 1.0, %v8653_v36  ;;  %8670 = vpow2.f32 %v3710_v11  ;;  %v3559_v46 = vand.u32 2147483647, %v10600_v18  ;;  %v3624_v49 = vsub.f32 0.0, %v3560_v33 }
 0x294   : > { %v8657_v57 = vpop.eup %8656  ;;  %v3768_v16 = vadd.f32 1.0, %v8655_v59  ;;  %v3561_v8 = vand.u32 2147483647, %v10605_v27  ;;  %v3738_v40 = vmul.f32 1.442695, %v3622_v63  ;;  %v3446_v11 = vmax.f32 %v10501_v44, 0.0 }
 0x295   : > { %v8659_v0 = vpop.eup %8658  ;;  %8672 = vlog2.f32 %v3766_v19  ;;  %v3767_v56 = vadd.f32 1.0, %v8657_v57  ;;  %v3623_v34 = vsub.f32 0.0, %v3559_v46  ;;  %v3742_v52 = vmul.f32 1.442695, %v3624_v49 }
 0x296   : > { %8674 = vlog2.f32 %v3768_v16  ;;  %v3769_v22 = vadd.f32 1.0, %v8659_v0  ;;  %v3625_v23 = vsub.f32 0.0, %v3561_v8  ;;  %v3448_v39 = vmax.f32 %v10504_v31, 0.0 }
 0x297   : > { %8676 = vlog2.f32 %v3767_v56  ;;  %v8661_v15 = vpop.eup %8660  ;;  %v3740_v58 = vmul.f32 1.442695, %v3623_v34  ;;  %v3447_v57 = vmax.f32 %v10507_v42, 0.0  ;;  %v3449_v56 = vmax.f32 %v10516_v13, 0.0 }
 0x298   : > { %8678 = vlog2.f32 %v3769_v22  ;;  %v8663_v14 = vpop.eup %8662  ;;  %v3782_v1 = vadd.f32 1.0, %v8661_v15  ;;  %v3744_v53 = vmul.f32 1.442695, %v3625_v23  ;;  %v3464_v22 = vmax.f32 %v10527_v55, 0.0 }
 0x299   : > { %8680 = vpow2.f32 %v3708_v62  ;;  %v8665_v17 = vpop.eup %8664  ;;  %v3784_v4 = vadd.f32 1.0, %v8663_v14  ;;  %v3462_v62 = vmax.f32 %v10524_v43, 0.0  ;;  %v3463_v31 = vmax.f32 %v10538_v5, 0.0 }
 0x29a   : > { %8682 = vpow2.f32 %v3712_v26  ;;  %v8667_v2 = vpop.eup %8666  ;;  %v3783_v48 = vadd.f32 1.0, %v8665_v17  ;;  %v3465_v63 = vmax.f32 %v10541_v41, 0.0 }
 0x29b   : > { %8684 = vlog2.f32 %v3782_v1  ;;  %v3785_v20 = vadd.f32 1.0, %v8667_v2 }
 0x29c   : > { %8686 = vlog2.f32 %v3784_v4  ;;  %v8669_v60 = vpop.eup %8668 }
 0x29d   : > { %8688 = vlog2.f32 %v3783_v48  ;;  %v8671_v6 = vpop.eup %8670  ;;  %v3798_v59 = vadd.f32 1.0, %v8669_v60 }
 0x29e   : > { %8690 = vlog2.f32 %v3785_v20  ;;  %v3800_v16 = vadd.f32 1.0, %v8671_v6 }
 0x29f   : > { %v8673_v61 = vpop.eup %8672  ;;  %8692 = vpow2.f32 %v3738_v40 }
 0x2a0   : > { %v8675_v28 = vpop.eup %8674  ;;  %8694 = vpow2.f32 %v3742_v52  ;;  %v3835_v38 = vmul.f32 0.6931472, %v8673_v61 }
 0x2a1   : > { %v8677_v35 = vpop.eup %8676  ;;  %8696 = vpow2.f32 %v3740_v58  ;;  %v3839_v0 = vmul.f32 0.6931472, %v8675_v28 }
 0x2a2   : > { %v8679_v54 = vpop.eup %8678  ;;  %8698 = vpow2.f32 %v3744_v53  ;;  %v3837_v44 = vmul.f32 0.6931472, %v8677_v35  ;;  %v3958_v17 = vadd.f32 %v3835_v38, %v3446_v11  ;;  %v3478_v38 = vmax.f32 %v10560_v21, 0.0 }
 0x2a3   : > { %v8681_v36 = vpop.eup %8680  ;;  %v3841_v15 = vmul.f32 0.6931472, %v8679_v54  ;;  %8700 = vlog2.f32 %v3798_v59  ;;  %v3960_v49 = vadd.f32 %v3839_v0, %v3448_v39  ;;  %v3481_v21 = vmax.f32 %v10583_v10, 0.0 }
 0x2a4   : > { %v8683_v19 = vpop.eup %8682  ;;  %v3799_v14 = vadd.f32 1.0, %v8681_v36  ;;  %8702 = vlog2.f32 %v3800_v16  ;;  %v3959_v48 = vadd.f32 %v3837_v44, %v3447_v57  ;;  %v3494_v57 = vmax.f32 %v10586_v29, 0.0 }
 0x2a5   : > { %v8685_v32 = vpop.eup %8684  ;;  %v3801_v2 = vadd.f32 1.0, %v8683_v19  ;;  %v3961_v41 = vadd.f32 %v3841_v15, %v3449_v56  ;;  %v3495_v29 = vmax.f32 %v10600_v18, 0.0 }
 0x2a6   : > { %v8687_v26 = vpop.eup %8686  ;;  %v3867_v33 = vmul.f32 0.6931472, %v8685_v32  ;;  %8704 = vlog2.f32 %v3799_v14 }
 0x2a7   : > { %v8689_v46 = vpop.eup %8688  ;;  %v3871_v42 = vmul.f32 0.6931472, %v8687_v26 }
 0x2a8   : > { %v8691_v1 = vpop.eup %8690  ;;  %v3974_v4 = vadd.f32 %v3867_v33, %v3462_v62  ;;  %v3869_v13 = vmul.f32 0.6931472, %v8689_v46  ;;  %v3480_v62 = vmax.f32 %v10563_v24, 0.0  ;;  %v3479_v33 = vmax.f32 %v10566_v30, 0.0 }
 0x2a9   : > { %v8693_v43 = vpop.eup %8692  ;;  %v3976_v55 = vadd.f32 %v3871_v42, %v3464_v22  ;;  %v3873_v8 = vmul.f32 0.6931472, %v8691_v1  ;;  %v3497_v24 = vmax.f32 %v10605_v27, 0.0 }
 0x2aa   : > { %v8210_v40 = vpack.c.bf16 %v3974_v4, %v3958_v17  ;;  %v3975_v5 = vadd.f32 %v3869_v13, %v3463_v31  ;;  %v3814_v34 = vadd.f32 1.0, %v8693_v43  ;;  %v8695_v60 = vpop.eup %8694 }
 0x2ab   : > { %v8218_v20 = vpack.c.bf16 %v3976_v55, %v3960_v49  ;;  %v3977_v23 = vadd.f32 %v3873_v8, %v3465_v63  ;;  %v8697_v52 = vpop.eup %8696  ;;  %v3816_v61 = vadd.f32 1.0, %v8695_v60  ;;  %v3496_v63 = vmax.f32 %v10594_v9, 0.0 }
 0x2ac   : > { %8706 = vlog2.f32 %v3814_v34  ;;  %v8208_v6 = vpack.c.bf16 %v3975_v5, %v3959_v48  ;;  %v8699_v28 = vpop.eup %8698  ;;  %v3815_v53 = vadd.f32 1.0, %v8697_v52 }
 0x2ad   : > { %8708 = vlog2.f32 %v3801_v2  ;;  %v8216_v58 = vpack.c.bf16 %v3977_v23, %v3961_v41  ;;  %v3817_v35 = vadd.f32 1.0, %v8699_v28  ;;  %v8701_v54 = vpop.eup %8700 }
 0x2ae   : > { %8209 = vmatprep.subr.bf16.mxu0 %v8208_v6  ;;  %8710 = vlog2.f32 %v3816_v61  ;;  %v8703_v36 = vpop.eup %8702  ;;  %v3899_v39 = vmul.f32 0.6931472, %v8701_v54 }
 0x2af   : > { %8217 = vmatprep.subr.bf16.mxu1 %v8216_v58  ;;  %8211 = vmatpush1.bf16.msra.mxu0 %v8210_v40  ;;  %8712 = vlog2.f32 %v3815_v53  ;;  %v3903_v32 = vmul.f32 0.6931472, %v8703_v36 }
 0x2b0   : > { %8219 = vmatpush1.bf16.msra.mxu1 %v8218_v20  ;;  %8714 = vlog2.f32 %v3817_v35  ;;  %v8705_v11 = vpop.eup %8704  ;;  %v3990_v56 = vadd.f32 %v3899_v39, %v3478_v38 }
 0x2b1   : > { %v3901_v22 = vmul.f32 0.6931472, %v8705_v11  ;;  %v3992_v1 = vadd.f32 %v3903_v32, %v3480_v62 }
 0x2b3   : > { %v3991_v13 = vadd.f32 %v3901_v22, %v3479_v33 }
 0x2b6   : > { %v8707_v59 = vpop.eup %8706 }
 0x2b7   : > { %v8709_v19 = vpop.eup %8708  ;;  %v3931_v16 = vmul.f32 0.6931472, %v8707_v59 }
 0x2b8   : > { %v8711_v0 = vpop.eup %8710  ;;  %v3905_v31 = vmul.f32 0.6931472, %v8709_v19 }
 0x2b9   : > { %v4006_v26 = vadd.f32 %v3931_v16, %v3494_v57  ;;  %v8713_v44 = vpop.eup %8712  ;;  %v3935_v46 = vmul.f32 0.6931472, %v8711_v0 }
 0x2ba   : > { %v8715_v15 = vpop.eup %8714  ;;  %v3933_v14 = vmul.f32 0.6931472, %v8713_v44  ;;  %v3993_v49 = vadd.f32 %v3905_v31, %v3481_v21 }
 0x2bb   : > { %v8214_v42 = vpack.c.bf16 %v4006_v26, %v3990_v56  ;;  %v4008_v17 = vadd.f32 %v3935_v46, %v3496_v63  ;;  %v3937_v4 = vmul.f32 0.6931472, %v8715_v15 }
 0x2bc   : > { %v4007_v43 = vadd.f32 %v3933_v14, %v3495_v29 }
 0x2bd   : > { %v8222_v30 = vpack.c.bf16 %v4008_v17, %v3992_v1  ;;  %v4009_v55 = vadd.f32 %v3937_v4, %v3497_v24 }
 0x2be   : > { %v8212_v8 = vpack.c.bf16 %v4007_v43, %v3991_v13 }
 0x2bf   : > { %v3152_v9 = vpop.f32.mrb[48].mxu0  ;;  %v8220_v2 = vpack.c.bf16 %v4009_v55, %v3993_v49 }
 0x2c0   : > { %v10625_v48 = vadd.f32 %v3152_v9, %v10412_v45  ;;  %v3241_v10 = vpop.f32.mrb[48].mxu1  ;;  %v3154_v40 = vpop.f32.mrb[49].mxu0  ;;  %8213 = vmatprep.subr.bf16.mxu0 %v8212_v8 }
 0x2c1   : > { %v10628_v18 = vadd.f32 %v3241_v10, %v10412_v45  ;;  %v10631_v27 = vadd.f32 %v3154_v40, %v10412_v45  ;;  %v3243_v5 = vpop.f32.mrb[49].mxu1  ;;  %8221 = vmatprep.subr.bf16.mxu1 %v8220_v2  ;;  %8215 = vmatpush1.bf16.msra.mxu0 %v8214_v42 }
 0x2c2   : > { %v3514_v34 = vand.u32 2147483647, %v10625_v48  ;;  %v10635_v41 = vadd.f32 %v3243_v5, %v10412_v45  ;;  %8223 = vmatpush1.bf16.msra.mxu1 %v8222_v30 }
 0x2c3   : > { %v3516_v20 = vand.u32 2147483647, %v10628_v18  ;;  %v3515_v23 = vand.u32 2147483647, %v10631_v27  ;;  %v3158_v52 = vpop.f32.mrb[50].mxu0 }
 0x2c4   : > { %v3578_v60 = vsub.f32 0.0, %v3514_v34  ;;  %v3517_v6 = vand.u32 2147483647, %v10635_v41  ;;  %v3247_v61 = vpop.f32.mrb[50].mxu1  ;;  %7390 = vmatmul.mubr.msk.f32.vlgmr.msra.gmra.mrb[72].mxu0 %vm2717_vm2, %v10512_v37  ;;  %v10643_v53 = vadd.f32 %v3158_v52, %v10427_v7  ;;  %v3160_v54 = vpop.f32.mrb[51].mxu0 }
 0x2c5   : > { %v3580_v58 = vsub.f32 0.0, %v3516_v20  ;;  %v3579_v28 = vsub.f32 0.0, %v3515_v23  ;;  %v10646_v35 = vadd.f32 %v3247_v61, %v10427_v7  ;;  %v3249_v36 = vpop.f32.mrb[51].mxu1  ;;  %7394 = vmatmul.mubr.msk.f32.vlgmr.msra.gmra.mrb[72].mxu1 %vm2717_vm2, %v10512_v37  ;;  %4306 = vmatprep.mubr.f32.mxu0 %v9183_v3  ;;  %v10652_v59 = vadd.f32 %v3160_v54, %v10427_v7 }
 0x2c6   : > { %v3650_v11 = vmul.f32 1.442695, %v3578_v60  ;;  %v3581_v39 = vsub.f32 0.0, %v3517_v6  ;;  %v10655_v19 = vadd.f32 %v3249_v36, %v10427_v7  ;;  %4395 = vmatprep.mubr.f32.mxu1 %v9183_v3  ;;  %v3530_v32 = vand.u32 2147483647, %v10643_v53 }
 0x2c7   : > { %v3654_v38 = vmul.f32 1.442695, %v3580_v58  ;;  %v3652_v57 = vmul.f32 1.442695, %v3579_v28  ;;  %v3532_v0 = vand.u32 2147483647, %v10646_v35 }
 0x2c8   : > { %8716 = vpow2.f32 %v3650_v11  ;;  %v3656_v16 = vmul.f32 1.442695, %v3581_v39  ;;  %7391 = vmatmul.mubr.msk.f32.gmra.mrb[74].mxu0 %vm2717_vm2, %v10535_v25  ;;  %v3531_v56 = vand.u32 2147483647, %v10652_v59  ;;  %v3164_v62 = vpop.f32.mrb[52].mxu0  ;;  %v3253_v22 = vpop.f32.mrb[52].mxu1 }
 0x2c9   : > { %8718 = vpow2.f32 %v3654_v38  ;;  %7395 = vmatmul.mubr.msk.f32.gmra.mrb[74].mxu1 %vm2717_vm2, %v10535_v25  ;;  %4312 = vmatprep.mubr.f32.mxu0 %v9183_v3  ;;  %v3594_v26 = vsub.f32 0.0, %v3530_v32  ;;  %v3596_v44 = vsub.f32 0.0, %v3532_v0  ;;  %v3533_v33 = vand.u32 2147483647, %v10655_v19  ;;  %v3166_v31 = vpop.f32.mrb[53].mxu0  ;;  %v3255_v63 = vpop.f32.mrb[53].mxu1 }
 0x2ca   : > { %8720 = vpow2.f32 %v3652_v57  ;;  %4401 = vmatprep.mubr.f32.mxu1 %v9183_v3  ;;  %v3595_v46 = vsub.f32 0.0, %v3531_v56  ;;  %v10669_v15 = vadd.f32 %v3164_v62, %v10444_v12  ;;  %v10672_v21 = vadd.f32 %v3253_v22, %v10444_v12 }
 0x2cb   : > { %8722 = vpow2.f32 %v3656_v16  ;;  %v3170_v42 = vpop.f32.mrb[54].mxu0  ;;  %v3682_v29 = vmul.f32 1.442695, %v3594_v26  ;;  %v3686_v14 = vmul.f32 1.442695, %v3596_v44  ;;  %v3597_v1 = vsub.f32 0.0, %v3533_v33 }
 0x2cc   : > { %v10675_v17 = vadd.f32 %v3166_v31, %v10444_v12  ;;  %v3259_v24 = vpop.f32.mrb[54].mxu1  ;;  %7392 = vmatmul.mubr.msk.f32.gmra.mrb[76].mxu0 %vm2717_vm2, %v10551_v47  ;;  %v3684_v4 = vmul.f32 1.442695, %v3595_v46  ;;  %v3546_v13 = vand.u32 2147483647, %v10669_v15  ;;  %v3172_v30 = vpop.f32.mrb[55].mxu0  ;;  %v10687_v9 = vadd.f32 %v3255_v63, %v10444_v12 }
 0x2cd   : > { %7396 = vmatmul.mubr.msk.f32.gmra.mrb[76].mxu1 %vm2717_vm2, %v10551_v47  ;;  %4318 = vmatprep.mubr.f32.mxu0 %v9183_v3  ;;  %8724 = vpow2.f32 %v3682_v29  ;;  %v3688_v43 = vmul.f32 1.442695, %v3597_v1  ;;  %v3548_v49 = vand.u32 2147483647, %v10672_v21  ;;  %v3261_v2 = vpop.f32.mrb[55].mxu1  ;;  %v10690_v40 = vadd.f32 %v3170_v42, %v10461_v51 }
 0x2ce   : > { %4407 = vmatprep.mubr.f32.mxu1 %v9183_v3  ;;  %8726 = vpow2.f32 %v3686_v14  ;;  %v3610_v55 = vsub.f32 0.0, %v3546_v13  ;;  %v3547_v8 = vand.u32 2147483647, %v10675_v17  ;;  %v3549_v60 = vand.u32 2147483647, %v10687_v9 }
 0x2cf   : > { %8728 = vpow2.f32 %v3684_v4  ;;  %v3612_v10 = vsub.f32 0.0, %v3548_v49  ;;  %v10698_v6 = vadd.f32 %v3259_v24, %v10461_v51  ;;  %v3562_v58 = vand.u32 2147483647, %v10690_v40 }
 0x2d0   : > { %7393 = vmatmul.mubr.msk.f32.gmra.mrb[78].mxu0 %vm2717_vm2, %v10577_v50  ;;  %8730 = vpow2.f32 %v3688_v43  ;;  %v3714_v5 = vmul.f32 1.442695, %v3610_v55  ;;  %v3611_v34 = vsub.f32 0.0, %v3547_v8  ;;  %v3613_v36 = vsub.f32 0.0, %v3549_v60 }
 0x2d1   : > { %7397 = vmatmul.mubr.msk.f32.gmra.mrb[78].mxu1 %vm2717_vm2, %v10577_v50  ;;  %v3718_v23 = vmul.f32 1.442695, %v3612_v10  ;;  %4478 = vmatprep.mubr.f32.mxu0 %v9183_v3  ;;  %v10704_v57 = vadd.f32 %v3172_v30, %v10461_v51  ;;  %v3564_v0 = vand.u32 2147483647, %v10698_v6  ;;  %v3626_v56 = vsub.f32 0.0, %v3562_v58 }
 0x2d2   : > { %v8717_v20 = vpop.eup %8716  ;;  %8732 = vpow2.f32 %v3714_v5  ;;  %4567 = vmatprep.mubr.f32.mxu1 %v9183_v3  ;;  %v3716_v38 = vmul.f32 1.442695, %v3611_v34  ;;  %v3720_v32 = vmul.f32 1.442695, %v3613_v36  ;;  %v10709_v26 = vadd.f32 %v3261_v2, %v10461_v51 }
 0x2d3   : > { %v8719_v52 = vpop.eup %8718  ;;  %v3770_v61 = vadd.f32 1.0, %v8717_v20  ;;  %8734 = vpow2.f32 %v3718_v23  ;;  %v3563_v62 = vand.u32 2147483647, %v10704_v57  ;;  %v3628_v46 = vsub.f32 0.0, %v3564_v0 }
 0x2d4   : > { %v8721_v28 = vpop.eup %8720  ;;  %v3772_v54 = vadd.f32 1.0, %v8719_v52  ;;  %v3565_v42 = vand.u32 2147483647, %v10709_v26  ;;  %v3746_v1 = vmul.f32 1.442695, %v3626_v56  ;;  %v3450_v23 = vmax.f32 %v10625_v48, 0.0 }
 0x2d5   : > { %v8723_v11 = vpop.eup %8722  ;;  %8736 = vlog2.f32 %v3770_v61  ;;  %v3771_v39 = vadd.f32 1.0, %v8721_v28  ;;  %v3627_v24 = vsub.f32 0.0, %v3563_v62  ;;  %v3750_v30 = vmul.f32 1.442695, %v3628_v46 }
 0x2d6   : > { %8738 = vlog2.f32 %v3772_v54  ;;  %v3773_v16 = vadd.f32 1.0, %v8723_v11  ;;  %v3629_v13 = vsub.f32 0.0, %v3565_v42  ;;  %v3452_v60 = vmax.f32 %v10628_v18, 0.0 }
 0x2d7   : > { %8740 = vlog2.f32 %v3771_v39  ;;  %v8725_v22 = vpop.eup %8724  ;;  %v3748_v8 = vmul.f32 1.442695, %v3627_v24  ;;  %v3451_v28 = vmax.f32 %v10631_v27, 0.0  ;;  %v3453_v39 = vmax.f32 %v10635_v41, 0.0 }
 0x2d8   : > { %8742 = vlog2.f32 %v3773_v16  ;;  %v8727_v44 = vpop.eup %8726  ;;  %v3786_v33 = vadd.f32 1.0, %v8725_v22  ;;  %v3752_v10 = vmul.f32 1.442695, %v3629_v13  ;;  %v3468_v16 = vmax.f32 %v10646_v35, 0.0 }
 0x2d9   : > { %8744 = vpow2.f32 %v3716_v38  ;;  %v8729_v31 = vpop.eup %8728  ;;  %v3788_v63 = vadd.f32 1.0, %v8727_v44  ;;  %v3466_v38 = vmax.f32 %v10643_v53, 0.0  ;;  %v3467_v18 = vmax.f32 %v10652_v59, 0.0 }
 0x2da   : > { %8746 = vpow2.f32 %v3720_v32  ;;  %v8731_v29 = vpop.eup %8730  ;;  %v3787_v14 = vadd.f32 1.0, %v8729_v31  ;;  %v3469_v56 = vmax.f32 %v10655_v19, 0.0 }
 0x2db   : > { %8748 = vlog2.f32 %v3786_v33  ;;  %v3789_v4 = vadd.f32 1.0, %v8731_v29 }
 0x2dc   : > { %8750 = vlog2.f32 %v3788_v63  ;;  %v8733_v43 = vpop.eup %8732 }
 0x2dd   : > { %8752 = vlog2.f32 %v3787_v14  ;;  %v8735_v49 = vpop.eup %8734  ;;  %v3802_v52 = vadd.f32 1.0, %v8733_v43 }
 0x2de   : > { %8754 = vlog2.f32 %v3789_v4  ;;  %v3804_v54 = vadd.f32 1.0, %v8735_v49 }
 0x2df   : > { %v8737_v55 = vpop.eup %8736  ;;  %8756 = vpow2.f32 %v3746_v1 }
 0x2e0   : > { %v8739_v2 = vpop.eup %8738  ;;  %8758 = vpow2.f32 %v3750_v30  ;;  %v3843_v58 = vmul.f32 0.6931472, %v8737_v55 }
 0x2e1   : > { %v8741_v5 = vpop.eup %8740  ;;  %8760 = vpow2.f32 %v3748_v8  ;;  %v3847_v11 = vmul.f32 0.6931472, %v8739_v2 }
 0x2e2   : > { %v8743_v34 = vpop.eup %8742  ;;  %8762 = vpow2.f32 %v3752_v10  ;;  %v3845_v48 = vmul.f32 0.6931472, %v8741_v5  ;;  %v3962_v31 = vadd.f32 %v3843_v58, %v3450_v23  ;;  %v3482_v58 = vmax.f32 %v10669_v15, 0.0 }
 0x2e3   : > { %v8745_v20 = vpop.eup %8744  ;;  %v3849_v22 = vmul.f32 0.6931472, %v8743_v34  ;;  %8764 = vlog2.f32 %v3802_v52  ;;  %v3964_v46 = vadd.f32 %v3847_v11, %v3452_v60  ;;  %v3485_v15 = vmax.f32 %v10687_v9, 0.0 }
 0x2e4   : > { %v8747_v61 = vpop.eup %8746  ;;  %v3803_v44 = vadd.f32 1.0, %v8745_v20  ;;  %8766 = vlog2.f32 %v3804_v54  ;;  %v3963_v14 = vadd.f32 %v3845_v48, %v3451_v28  ;;  %v3498_v28 = vmax.f32 %v10690_v40, 0.0 }
 0x2e5   : > { %v8749_v36 = vpop.eup %8748  ;;  %v3805_v29 = vadd.f32 1.0, %v8747_v61  ;;  %v3965_v19 = vadd.f32 %v3849_v22, %v3453_v39  ;;  %v3499_v40 = vmax.f32 %v10704_v57, 0.0 }
 0x2e6   : > { %v8751_v32 = vpop.eup %8750  ;;  %v3875_v0 = vmul.f32 0.6931472, %v8749_v36  ;;  %8768 = vlog2.f32 %v3803_v44 }
 0x2e7   : > { %v8753_v62 = vpop.eup %8752  ;;  %v3879_v27 = vmul.f32 0.6931472, %v8751_v32 }
 0x2e8   : > { %v8755_v33 = vpop.eup %8754  ;;  %v3978_v63 = vadd.f32 %v3875_v0, %v3466_v38  ;;  %v3877_v41 = vmul.f32 0.6931472, %v8753_v62  ;;  %v3484_v38 = vmax.f32 %v10672_v21, 0.0  ;;  %v3483_v0 = vmax.f32 %v10675_v17, 0.0 }
 0x2e9   : > { %v8757_v53 = vpop.eup %8756  ;;  %v3980_v35 = vadd.f32 %v3879_v27, %v3468_v16  ;;  %v3881_v42 = vmul.f32 0.6931472, %v8755_v33  ;;  %v3501_v21 = vmax.f32 %v10709_v26, 0.0 }
 0x2ea   : > { %v8226_v1 = vpack.c.bf16 %v3978_v63, %v3962_v31  ;;  %v3979_v59 = vadd.f32 %v3877_v41, %v3467_v18  ;;  %v3818_v24 = vadd.f32 1.0, %v8757_v53  ;;  %v8759_v43 = vpop.eup %8758 }
 0x2eb   : > { %v8234_v4 = vpack.c.bf16 %v3980_v35, %v3964_v46  ;;  %v3981_v13 = vadd.f32 %v3881_v42, %v3469_v56  ;;  %v8761_v30 = vpop.eup %8760  ;;  %v3820_v55 = vadd.f32 1.0, %v8759_v43  ;;  %v3500_v56 = vmax.f32 %v10698_v6, 0.0 }
 0x2ec   : > { %8770 = vlog2.f32 %v3818_v24  ;;  %v8224_v49 = vpack.c.bf16 %v3979_v59, %v3963_v14  ;;  %v8763_v2 = vpop.eup %8762  ;;  %v3819_v10 = vadd.f32 1.0, %v8761_v30 }
 0x2ed   : > { %8772 = vlog2.f32 %v3805_v29  ;;  %v8232_v8 = vpack.c.bf16 %v3981_v13, %v3965_v19  ;;  %v3821_v5 = vadd.f32 1.0, %v8763_v2  ;;  %v8765_v34 = vpop.eup %8764 }
 0x2ee   : > { %8225 = vmatprep.subr.bf16.mxu0 %v8224_v49  ;;  %8774 = vlog2.f32 %v3820_v55  ;;  %v8767_v20 = vpop.eup %8766  ;;  %v3907_v60 = vmul.f32 0.6931472, %v8765_v34 }
 0x2ef   : > { %8233 = vmatprep.subr.bf16.mxu1 %v8232_v8  ;;  %8227 = vmatpush1.bf16.msra.mxu0 %v8226_v1  ;;  %8776 = vlog2.f32 %v3819_v10  ;;  %v3911_v36 = vmul.f32 0.6931472, %v8767_v20 }
 0x2f0   : > { %8235 = vmatpush1.bf16.msra.mxu1 %v8234_v4  ;;  %8778 = vlog2.f32 %v3821_v5  ;;  %v8769_v23 = vpop.eup %8768  ;;  %v3994_v39 = vadd.f32 %v3907_v60, %v3482_v58 }
 0x2f1   : > { %v3909_v16 = vmul.f32 0.6931472, %v8769_v23  ;;  %v3996_v33 = vadd.f32 %v3911_v36, %v3484_v38 }
 0x2f3   : > { %v3995_v41 = vadd.f32 %v3909_v16, %v3483_v0 }
 0x2f6   : > { %v8771_v52 = vpop.eup %8770 }
 0x2f7   : > { %v8773_v61 = vpop.eup %8772  ;;  %v3939_v54 = vmul.f32 0.6931472, %v8771_v52 }
 0x2f8   : > { %v8775_v11 = vpop.eup %8774  ;;  %v3913_v18 = vmul.f32 0.6931472, %v8773_v61 }
 0x2f9   : > { %v4010_v32 = vadd.f32 %v3939_v54, %v3498_v28  ;;  %v8777_v48 = vpop.eup %8776  ;;  %v3943_v62 = vmul.f32 0.6931472, %v8775_v11 }
 0x2fa   : > { %v8779_v22 = vpop.eup %8778  ;;  %v3941_v44 = vmul.f32 0.6931472, %v8777_v48  ;;  %v3997_v46 = vadd.f32 %v3913_v18, %v3485_v15 }
 0x2fb   : > { %v8230_v27 = vpack.c.bf16 %v4010_v32, %v3994_v39  ;;  %v4012_v31 = vadd.f32 %v3943_v62, %v3500_v56  ;;  %v3945_v63 = vmul.f32 0.6931472, %v8779_v22 }
 0x2fc   : > { %v4011_v53 = vadd.f32 %v3941_v44, %v3499_v40 }
 0x2fd   : > { %v8238_v17 = vpack.c.bf16 %v4012_v31, %v3996_v33  ;;  %v4013_v35 = vadd.f32 %v3945_v63, %v3501_v21 }
 0x2fe   : > { %v8228_v42 = vpack.c.bf16 %v4011_v53, %v3995_v41 }
 0x2ff   : > { %v3330_v6 = vpop.f32.mrb[56].mxu0  ;;  %v8236_v29 = vpack.c.bf16 %v4013_v35, %v3997_v46 }
 0x300   : > { %v10729_v14 = vadd.f32 %v3330_v6, %v10412_v45  ;;  %v3419_v9 = vpop.f32.mrb[56].mxu1  ;;  %v3332_v1 = vpop.f32.mrb[57].mxu0  ;;  %8229 = vmatprep.subr.bf16.mxu0 %v8228_v42 }
 0x301   : > { %v10732_v57 = vadd.f32 %v3419_v9, %v10412_v45  ;;  %v10735_v26 = vadd.f32 %v3332_v1, %v10412_v45  ;;  %v3421_v59 = vpop.f32.mrb[57].mxu1  ;;  %8237 = vmatprep.subr.bf16.mxu1 %v8236_v29  ;;  %8231 = vmatpush1.bf16.msra.mxu0 %v8230_v27 }
 0x302   : > { %v3518_v24 = vand.u32 2147483647, %v10729_v14  ;;  %v10739_v19 = vadd.f32 %v3421_v59, %v10412_v45  ;;  %8239 = vmatpush1.bf16.msra.mxu1 %v8238_v17 }
 0x303   : > { %v3520_v4 = vand.u32 2147483647, %v10732_v57  ;;  %v3519_v13 = vand.u32 2147483647, %v10735_v26  ;;  %v3336_v30 = vpop.f32.mrb[58].mxu0 }
 0x304   : > { %v3582_v43 = vsub.f32 0.0, %v3518_v24  ;;  %v3521_v49 = vand.u32 2147483647, %v10739_v19  ;;  %v3425_v55 = vpop.f32.mrb[58].mxu1  ;;  %7398 = vmatmul.mubr.msk.f32.vlgmr.msra.gmra.mrb[80].mxu0 %vm2717_vm2, %v10512_v37  ;;  %v10747_v10 = vadd.f32 %v3336_v30, %v10427_v7  ;;  %v3338_v5 = vpop.f32.mrb[59].mxu0 }
 0x305   : > { %v3584_v8 = vsub.f32 0.0, %v3520_v4  ;;  %v3583_v2 = vsub.f32 0.0, %v3519_v13  ;;  %v10750_v45 = vadd.f32 %v3425_v55, %v10427_v7  ;;  %v3427_v34 = vpop.f32.mrb[59].mxu1  ;;  %7402 = vmatmul.mubr.msk.f32.vlgmr.msra.gmra.mrb[80].mxu1 %vm2717_vm2, %v10512_v37  ;;  %4484 = vmatprep.mubr.f32.mxu0 %v9183_v3  ;;  %v10756_v60 = vadd.f32 %v3338_v5, %v10427_v7 }
 0x306   : > { %v3658_v20 = vmul.f32 1.442695, %v3582_v43  ;;  %v3585_v23 = vsub.f32 0.0, %v3521_v49  ;;  %v10759_v52 = vadd.f32 %v3427_v34, %v10427_v7  ;;  %4573 = vmatprep.mubr.f32.mxu1 %v9183_v3  ;;  %v3534_v54 = vand.u32 2147483647, %v10747_v10 }
 0x307   : > { %v3662_v61 = vmul.f32 1.442695, %v3584_v8  ;;  %v3660_v58 = vmul.f32 1.442695, %v3583_v2  ;;  %v3536_v37 = vand.u32 2147483647, %v10750_v45 }
 0x308   : > { %8780 = vpow2.f32 %v3658_v20  ;;  %v3664_v28 = vmul.f32 1.442695, %v3585_v23  ;;  %7399 = vmatmul.mubr.msk.f32.gmra.mrb[82].mxu0 %vm2717_vm2, %v10535_v25  ;;  %v3535_v36 = vand.u32 2147483647, %v10756_v60  ;;  %v3342_v11 = vpop.f32.mrb[60].mxu0  ;;  %v3431_v39 = vpop.f32.mrb[60].mxu1 }
 0x309   : > { %8782 = vpow2.f32 %v3662_v61  ;;  %7403 = vmatmul.mubr.msk.f32.gmra.mrb[82].mxu1 %vm2717_vm2, %v10535_v25  ;;  %4490 = vmatprep.mubr.f32.mxu0 %v9183_v3  ;;  %v3598_v7 = vsub.f32 0.0, %v3534_v54  ;;  %v3600_v38 = vsub.f32 0.0, %v3536_v37  ;;  %v3537_v16 = vand.u32 2147483647, %v10759_v52  ;;  %v3344_v32 = vpop.f32.mrb[61].mxu0  ;;  %v3433_v48 = vpop.f32.mrb[61].mxu1 }
 0x30a   : > { %8784 = vpow2.f32 %v3660_v58  ;;  %4579 = vmatprep.mubr.f32.mxu1 %v9183_v3  ;;  %v3599_v0 = vsub.f32 0.0, %v3535_v36  ;;  %v10773_v18 = vadd.f32 %v3342_v11, %v10444_v12  ;;  %v10776_v56 = vadd.f32 %v3431_v39, %v10444_v12 }
 0x30b   : > { %8786 = vpow2.f32 %v3664_v28  ;;  %v3348_v25 = vpop.f32.mrb[62].mxu0  ;;  %v3690_v62 = vmul.f32 1.442695, %v3598_v7  ;;  %v3694_v22 = vmul.f32 1.442695, %v3600_v38  ;;  %v3601_v15 = vsub.f32 0.0, %v3537_v16 }
 0x30c   : > { %v10779_v27 = vadd.f32 %v3344_v32, %v10444_v12  ;;  %v3437_v40 = vpop.f32.mrb[62].mxu1  ;;  %7400 = vmatmul.mubr.msk.f32.gmra.mrb[84].mxu0 %vm2717_vm2, %v10551_v47  ;;  %v3692_v44 = vmul.f32 1.442695, %v3599_v0  ;;  %v3550_v33 = vand.u32 2147483647, %v10773_v18  ;;  %v3350_v63 = vpop.f32.mrb[63].mxu0  ;;  %v10791_v46 = vadd.f32 %v3433_v48, %v10444_v12 }
 0x30d   : > { %7404 = vmatmul.mubr.msk.f32.gmra.mrb[84].mxu1 %vm2717_vm2, %v10551_v47  ;;  %4496 = vmatprep.mubr.f32.mxu0 %v9183_v3  ;;  %8788 = vpow2.f32 %v3690_v62  ;;  %v3696_v31 = vmul.f32 1.442695, %v3601_v15  ;;  %v3552_v21 = vand.u32 2147483647, %v10776_v56  ;;  %v3439_v17 = vpop.f32.mrb[63].mxu1  ;;  %v10794_v47 = vadd.f32 %v3348_v25, %v10461_v51 }
 0x30e   : > { %4585 = vmatprep.mubr.f32.mxu1 %v9183_v3  ;;  %8790 = vpow2.f32 %v3694_v22  ;;  %v3614_v41 = vsub.f32 0.0, %v3550_v33  ;;  %v3551_v53 = vand.u32 2147483647, %v10779_v27  ;;  %v3553_v12 = vand.u32 2147483647, %v10791_v46 }
 0x30f   : > { %8792 = vpow2.f32 %v3692_v44  ;;  %v3616_v35 = vsub.f32 0.0, %v3552_v21  ;;  %v10802_v1 = vadd.f32 %v3437_v40, %v10461_v51  ;;  %v3566_v4 = vand.u32 2147483647, %v10794_v47 }
 0x310   : > { %7401 = vmatmul.mubr.msk.f32.gmra.mrb[86].mxu0 %vm2717_vm2, %v10577_v50  ;;  %8794 = vpow2.f32 %v3696_v31  ;;  %v3722_v42 = vmul.f32 1.442695, %v3614_v41  ;;  %v3615_v6 = vsub.f32 0.0, %v3551_v53  ;;  %v3617_v49 = vsub.f32 0.0, %v3553_v12 }
 0x311   : > { %7405 = vmatmul.mubr.msk.f32.gmra.mrb[86].mxu1 %vm2717_vm2, %v10577_v50  ;;  %v3726_v9 = vmul.f32 1.442695, %v3616_v35  ;;  %4656 = vmatprep.mubr.f32.mxu0 %v9183_v3  ;;  %v10808_v8 = vadd.f32 %v3350_v63, %v10461_v51  ;;  %v3568_v34 = vand.u32 2147483647, %v10802_v1  ;;  %v3630_v20 = vsub.f32 0.0, %v3566_v4 }
 0x312   : > { %v8781_v29 = vpop.eup %8780  ;;  %8796 = vpow2.f32 %v3722_v42  ;;  %4745 = vmatprep.mubr.f32.mxu1 %v9183_v3  ;;  %v3724_v55 = vmul.f32 1.442695, %v3615_v6  ;;  %v3728_v5 = vmul.f32 1.442695, %v3617_v49  ;;  %v10813_v58 = vadd.f32 %v3439_v17, %v10461_v51 }
 0x313   : > { %v8783_v59 = vpop.eup %8782  ;;  %v3774_v24 = vadd.f32 1.0, %v8781_v29  ;;  %8798 = vpow2.f32 %v3726_v9  ;;  %v3567_v23 = vand.u32 2147483647, %v10808_v8  ;;  %v3632_v11 = vsub.f32 0.0, %v3568_v34 }
 0x314   : > { %v8785_v13 = vpop.eup %8784  ;;  %v3776_v43 = vadd.f32 1.0, %v8783_v59  ;;  %v3569_v39 = vand.u32 2147483647, %v10813_v58  ;;  %v3754_v16 = vmul.f32 1.442695, %v3630_v20  ;;  %v3454_v63 = vmax.f32 %v10729_v14, 0.0 }
 0x315   : > { %v8787_v50 = vpop.eup %8786  ;;  %8800 = vlog2.f32 %v3774_v24  ;;  %v3775_v30 = vadd.f32 1.0, %v8785_v13  ;;  %v3631_v32 = vsub.f32 0.0, %v3567_v23  ;;  %v3758_v62 = vmul.f32 1.442695, %v3632_v11 }
 0x316   : > { %8802 = vlog2.f32 %v3776_v43  ;;  %v3777_v2 = vadd.f32 1.0, %v8787_v50  ;;  %v3633_v0 = vsub.f32 0.0, %v3569_v39  ;;  %v3456_v41 = vmax.f32 %v10732_v57, 0.0 }
 0x317   : > { %8804 = vlog2.f32 %v3775_v30  ;;  %v8789_v61 = vpop.eup %8788  ;;  %v3756_v15 = vmul.f32 1.442695, %v3631_v32  ;;  %v3455_v42 = vmax.f32 %v10735_v26, 0.0  ;;  %v3457_v12 = vmax.f32 %v10739_v19, 0.0 }
 0x318   : > { %8806 = vlog2.f32 %v3777_v2  ;;  %v8791_v28 = vpop.eup %8790  ;;  %v3790_v54 = vadd.f32 1.0, %v8789_v61  ;;  %v3760_v44 = vmul.f32 1.442695, %v3633_v0  ;;  %v3470_v59 = vmax.f32 %v10747_v10, 0.0 }
 0x319   : > { %8808 = vpow2.f32 %v3724_v55  ;;  %v8793_v37 = vpop.eup %8792  ;;  %v3792_v36 = vadd.f32 1.0, %v8791_v28  ;;  %v3472_v24 = vmax.f32 %v10750_v45, 0.0  ;;  %v3471_v57 = vmax.f32 %v10756_v60, 0.0 }
 0x31a   : > { %8810 = vpow2.f32 %v3728_v5  ;;  %v8795_v7 = vpop.eup %8794  ;;  %v3791_v38 = vadd.f32 1.0, %v8793_v37  ;;  %v3473_v43 = vmax.f32 %v10759_v52, 0.0 }
 0x31b   : > { %8812 = vlog2.f32 %v3790_v54  ;;  %v3793_v48 = vadd.f32 1.0, %v8795_v7 }
 0x31c   : > { %8814 = vlog2.f32 %v3792_v36  ;;  %v8797_v25 = vpop.eup %8796 }
 0x31d   : > { %8816 = vlog2.f32 %v3791_v38  ;;  %v8799_v51 = vpop.eup %8798  ;;  %v3806_v53 = vadd.f32 1.0, %v8797_v25 }
 0x31e   : > { %8818 = vlog2.f32 %v3793_v48  ;;  %v3808_v6 = vadd.f32 1.0, %v8799_v51 }
 0x31f   : > { %v8801_v22 = vpop.eup %8800  ;;  %8820 = vpow2.f32 %v3754_v16 }
 0x320   : > { %v8803_v40 = vpop.eup %8802  ;;  %8822 = vpow2.f32 %v3758_v62  ;;  %v3851_v35 = vmul.f32 0.6931472, %v8801_v22 }
 0x321   : > { %v8805_v33 = vpop.eup %8804  ;;  %8824 = vpow2.f32 %v3756_v15  ;;  %v3855_v9 = vmul.f32 0.6931472, %v8803_v40 }
 0x322   : > { %v8807_v31 = vpop.eup %8806  ;;  %8826 = vpow2.f32 %v3760_v44  ;;  %v3853_v14 = vmul.f32 0.6931472, %v8805_v33  ;;  %v3966_v2 = vadd.f32 %v3851_v35, %v3454_v63  ;;  %v3486_v44 = vmax.f32 %v10773_v18, 0.0 }
 0x323   : > { %v8809_v21 = vpop.eup %8808  ;;  %v3857_v50 = vmul.f32 0.6931472, %v8807_v31  ;;  %8828 = vlog2.f32 %v3806_v53  ;;  %v3968_v34 = vadd.f32 %v3855_v9, %v3456_v41  ;;  %v3502_v33 = vmax.f32 %v10794_v47, 0.0 }
 0x324   : > { %v8811_v17 = vpop.eup %8810  ;;  %v3807_v30 = vadd.f32 1.0, %v8809_v21  ;;  %8830 = vlog2.f32 %v3808_v6  ;;  %v3967_v61 = vadd.f32 %v3853_v14, %v3455_v42  ;;  %v3488_v53 = vmax.f32 %v10776_v56, 0.0 }
 0x325   : > { %v8813_v29 = vpop.eup %8812  ;;  %v3809_v23 = vadd.f32 1.0, %v8811_v17  ;;  %v3969_v52 = vadd.f32 %v3857_v50, %v3457_v12  ;;  %v3487_v6 = vmax.f32 %v10779_v27, 0.0  ;;  %v3504_v9 = vmax.f32 %v10802_v1, 0.0 }
 0x326   : > { %v8815_v4 = vpop.eup %8814  ;;  %v3883_v13 = vmul.f32 0.6931472, %v8813_v29  ;;  %8832 = vlog2.f32 %v3807_v30  ;;  %v3489_v18 = vmax.f32 %v10791_v46, 0.0  ;;  %v3503_v47 = vmax.f32 %v10808_v8, 0.0  ;;  %v9169_v46 = vld [vmem:[%s11924_s5] sm:$0xff]  ;;  %v9170_v8 = vld [vmem:[%s11924_s5 + $0x8] sm:$0xff] }
 0x327   : > { %v8817_v49 = vpop.eup %8816  ;;  %v3887_v26 = vmul.f32 0.6931472, %v8815_v4  ;;  %v3505_v56 = vmax.f32 %v10813_v58, 0.0  ;;  %v9171_v58 = vld [vmem:[%s11924_s5 + $0x10] sm:$0xff] }
 0x328   : > { %v8819_v55 = vpop.eup %8818  ;;  %v3982_v5 = vadd.f32 %v3883_v13, %v3470_v59  ;;  %v3885_v19 = vmul.f32 0.6931472, %v8817_v49 }
 0x329   : > { %v8821_v10 = vpop.eup %8820  ;;  %v3984_v45 = vadd.f32 %v3887_v26, %v3472_v24  ;;  %v3889_v20 = vmul.f32 0.6931472, %v8819_v55  ;;  %v9172_v55 = vld [vmem:[%s11924_s5 + $0x18] sm:$0xff] }
 0x32a   : > { %v8242_v28 = vpack.c.bf16 %v3982_v5, %v3966_v2  ;;  %v3983_v60 = vadd.f32 %v3885_v19, %v3471_v57  ;;  %v3822_v54 = vadd.f32 1.0, %v8821_v10  ;;  %v8823_v11 = vpop.eup %8822  ;;  %v10860_v2 = vpop.permute.xlu0 %4028 }
 0x32b   : > { %v8250_v37 = vpack.c.bf16 %v3984_v45, %v3968_v34  ;;  %v3985_v36 = vadd.f32 %v3889_v20, %v3473_v43  ;;  %v8825_v7 = vpop.eup %8824  ;;  %v3824_v38 = vadd.f32 1.0, %v8823_v11 }
 0x32c   : > { %8834 = vlog2.f32 %v3822_v54  ;;  %v8240_v39 = vpack.c.bf16 %v3983_v60, %v3967_v61  ;;  %v8827_v32 = vpop.eup %8826  ;;  %v3823_v48 = vadd.f32 1.0, %v8825_v7  ;;  %v10875_v60 = vpop.permute.xlu1 %4033 }
 0x32d   : > { %8836 = vlog2.f32 %v3809_v23  ;;  %v8248_v16 = vpack.c.bf16 %v3985_v36, %v3969_v52  ;;  %v3825_v0 = vadd.f32 1.0, %v8827_v32  ;;  %v8829_v25 = vpop.eup %8828 }
 0x32e   : > { %8241 = vmatprep.subr.bf16.mxu0 %v8240_v39  ;;  %8838 = vlog2.f32 %v3824_v38  ;;  %v8831_v51 = vpop.eup %8830  ;;  %v3915_v22 = vmul.f32 0.6931472, %v8829_v25 }
 0x32f   : > { %8249 = vmatprep.subr.bf16.mxu1 %v8248_v16  ;;  %8243 = vmatpush1.bf16.msra.mxu0 %v8242_v28  ;;  %8840 = vlog2.f32 %v3823_v48  ;;  %v3919_v21 = vmul.f32 0.6931472, %v8831_v51 }
 0x330   : > { %8251 = vmatpush1.bf16.msra.mxu1 %v8250_v37  ;;  %8842 = vlog2.f32 %v3825_v0  ;;  %v8833_v62 = vpop.eup %8832  ;;  %v3998_v41 = vadd.f32 %v3915_v22, %v3486_v44  ;;  %v10892_v44 = vpop.permute.xlu0 %4038 }
 0x331   : > { %v3917_v17 = vmul.f32 0.6931472, %v8833_v62  ;;  %v4000_v14 = vadd.f32 %v3919_v21, %v3488_v53 }
 0x333   : > { %v3999_v43 = vadd.f32 %v3917_v17, %v3487_v6 }
 0x336   : > { %v8835_v15 = vpop.eup %8834 }
 0x337   : > { %v8837_v40 = vpop.eup %8836  ;;  %v3947_v31 = vmul.f32 0.6931472, %v8835_v15 }
 0x338   : > { %v8839_v63 = vpop.eup %8838  ;;  %v3921_v29 = vmul.f32 0.6931472, %v8837_v40 }
 0x339   : > { %v4014_v35 = vadd.f32 %v3947_v31, %v3502_v33  ;;  %v8841_v42 = vpop.eup %8840  ;;  %v3951_v12 = vmul.f32 0.6931472, %v8839_v63 }
 0x33a   : > { %v8843_v59 = vpop.eup %8842  ;;  %v3949_v4 = vmul.f32 0.6931472, %v8841_v42  ;;  %v4001_v50 = vadd.f32 %v3921_v29, %v3489_v18 }
 0x33b   : > { %v8246_v24 = vpack.c.bf16 %v4014_v35, %v3998_v41  ;;  %v4016_v13 = vadd.f32 %v3951_v12, %v3504_v9  ;;  %v3953_v57 = vmul.f32 0.6931472, %v8843_v59 }
 0x33c   : > { %v4015_v49 = vadd.f32 %v3949_v4, %v3503_v47 }
 0x33d   : > { %v8254_v27 = vpack.c.bf16 %v4016_v13, %v4000_v14  ;;  %v4017_v26 = vadd.f32 %v3953_v57, %v3505_v56 }
 0x33e   : > { %v8244_v30 = vpack.c.bf16 %v4015_v49, %v3999_v43 }
 0x33f   : > { %v8252_v1 = vpack.c.bf16 %v4017_v26, %v4001_v50 }
 0x340   : > { %8245 = vmatprep.subr.bf16.mxu0 %v8244_v30 }
 0x341   : > { %8253 = vmatprep.subr.bf16.mxu1 %v8252_v1  ;;  %8247 = vmatpush1.bf16.msra.mxu0 %v8246_v24 }
 0x342   : > { %8255 = vmatpush1.bf16.msra.mxu1 %v8254_v27  ;;  %v10909_v27 = vpop.permute.xlu1 %4043 }
 0x344   : > { %7406 = vmatmul.mubr.msk.f32.vlgmr.msra.gmra.mrb[88].mxu0 %vm2717_vm2, %v9169_v46 }
 0x345   : > { %7410 = vmatmul.mubr.msk.f32.vlgmr.msra.gmra.mrb[88].mxu1 %vm2717_vm2, %v9169_v46  ;;  %4662 = vmatprep.mubr.f32.mxu0 %v9183_v3 }
 0x346   : > { %4751 = vmatprep.mubr.f32.mxu1 %v9183_v3 }
 0x348   : > { %7407 = vmatmul.mubr.msk.f32.gmra.mrb[90].mxu0 %vm2717_vm2, %v9170_v8 }
 0x349   : > { %7411 = vmatmul.mubr.msk.f32.gmra.mrb[90].mxu1 %vm2717_vm2, %v9170_v8  ;;  %4668 = vmatprep.mubr.f32.mxu0 %v9183_v3 }
 0x34a   : > { %4757 = vmatprep.mubr.f32.mxu1 %v9183_v3 }
 0x34c   : > { %7408 = vmatmul.mubr.msk.f32.gmra.mrb[92].mxu0 %vm2717_vm2, %v9171_v58 }
 0x34d   : > { %7412 = vmatmul.mubr.msk.f32.gmra.mrb[92].mxu1 %vm2717_vm2, %v9171_v58  ;;  %4674 = vmatprep.mubr.f32.mxu0 %v9183_v3 }
 0x34e   : > { %4763 = vmatprep.mubr.f32.mxu1 %v9183_v3 }
 0x350   : > { %7409 = vmatmul.mubr.msk.f32.gmra.mrb[94].mxu0 %vm2717_vm2, %v9172_v55 }
 0x351   : > { %7413 = vmatmul.mubr.msk.f32.gmra.mrb[94].mxu1 %vm2717_vm2, %v9172_v55  ;;  %5420 = vmatprep.mubr.f32.mxu0 %v9183_v3 }
 0x352   : > { %5491 = vmatprep.mubr.f32.mxu1 %v9183_v3 }
 0x357   : > { %v4124_v5 = vpop.f32.mrb[64].mxu0 }
 0x358   : > { %v10863_v19 = vadd.f32 %v4124_v5, %v10860_v2  ;;  %v4213_v10 = vpop.f32.mrb[64].mxu1  ;;  %v4126_v34 = vpop.f32.mrb[65].mxu0 }
 0x359   : > { %v10866_v45 = vadd.f32 %v4213_v10, %v10860_v2  ;;  %v10869_v20 = vadd.f32 %v4126_v34, %v10860_v2  ;;  %v4215_v23 = vpop.f32.mrb[65].mxu1 }
 0x35a   : > { %v4834_v61 = vand.u32 2147483647, %v10863_v19  ;;  %v10873_v28 = vadd.f32 %v4215_v23, %v10860_v2 }
 0x35b   : > { %v4836_v54 = vand.u32 2147483647, %v10866_v45  ;;  %v4835_v52 = vand.u32 2147483647, %v10869_v20  ;;  %v4130_v11 = vpop.f32.mrb[66].mxu0 }
 0x35c   : > { %v4898_v37 = vsub.f32 0.0, %v4834_v61  ;;  %v4837_v36 = vand.u32 2147483647, %v10873_v28  ;;  %v4219_v39 = vpop.f32.mrb[66].mxu1  ;;  %v10881_v16 = vadd.f32 %v4130_v11, %v10875_v60  ;;  %v4132_v48 = vpop.f32.mrb[67].mxu0 }
 0x35d   : > { %v4900_v7 = vsub.f32 0.0, %v4836_v54  ;;  %v4899_v38 = vsub.f32 0.0, %v4835_v52  ;;  %v10884_v32 = vadd.f32 %v4219_v39, %v10875_v60  ;;  %v4221_v0 = vpop.f32.mrb[67].mxu1  ;;  %v10887_v62 = vadd.f32 %v4132_v48, %v10875_v60 }
 0x35e   : > { %v4962_v25 = vmul.f32 1.442695, %v4898_v37  ;;  %v4901_v51 = vsub.f32 0.0, %v4837_v36  ;;  %v10890_v22 = vadd.f32 %v4221_v0, %v10875_v60  ;;  %v4850_v31 = vand.u32 2147483647, %v10881_v16 }
 0x35f   : > { %v4966_v15 = vmul.f32 1.442695, %v4900_v7  ;;  %v4964_v40 = vmul.f32 1.442695, %v4899_v38  ;;  %v4852_v21 = vand.u32 2147483647, %v10884_v32 }
 0x360   : > { %8844 = vpow2.f32 %v4962_v25  ;;  %v4968_v33 = vmul.f32 1.442695, %v4901_v51  ;;  %v4851_v63 = vand.u32 2147483647, %v10887_v62  ;;  %v4136_v41 = vpop.f32.mrb[68].mxu0  ;;  %v4225_v53 = vpop.f32.mrb[68].mxu1 }
 0x361   : > { %8846 = vpow2.f32 %v4966_v15  ;;  %v4914_v17 = vsub.f32 0.0, %v4850_v31  ;;  %v4916_v35 = vsub.f32 0.0, %v4852_v21  ;;  %v4853_v42 = vand.u32 2147483647, %v10890_v22  ;;  %v4138_v6 = vpop.f32.mrb[69].mxu0  ;;  %v4227_v29 = vpop.f32.mrb[69].mxu1 }
 0x362   : > { %8848 = vpow2.f32 %v4964_v40  ;;  %v4915_v9 = vsub.f32 0.0, %v4851_v63  ;;  %v10899_v12 = vadd.f32 %v4136_v41, %v10892_v44  ;;  %v10902_v59 = vadd.f32 %v4225_v53, %v10892_v44 }
 0x363   : > { %8850 = vpow2.f32 %v4968_v33  ;;  %v4142_v18 = vpop.f32.mrb[70].mxu0  ;;  %v4994_v24 = vmul.f32 1.442695, %v4914_v17  ;;  %v4998_v47 = vmul.f32 1.442695, %v4916_v35  ;;  %v4917_v4 = vsub.f32 0.0, %v4853_v42 }
 0x364   : > { %v10905_v14 = vadd.f32 %v4138_v6, %v10892_v44  ;;  %v4231_v13 = vpop.f32.mrb[70].mxu1  ;;  %v4996_v56 = vmul.f32 1.442695, %v4915_v9  ;;  %v4866_v57 = vand.u32 2147483647, %v10899_v12  ;;  %v4144_v50 = vpop.f32.mrb[71].mxu0  ;;  %v10913_v1 = vadd.f32 %v4227_v29, %v10892_v44 }
 0x365   : > { %8852 = vpow2.f32 %v4994_v24  ;;  %v5000_v43 = vmul.f32 1.442695, %v4917_v4  ;;  %v4868_v49 = vand.u32 2147483647, %v10902_v59  ;;  %v4233_v46 = vpop.f32.mrb[71].mxu1  ;;  %v10916_v58 = vadd.f32 %v4142_v18, %v10909_v27 }
 0x366   : > { %8854 = vpow2.f32 %v4998_v47  ;;  %v4930_v26 = vsub.f32 0.0, %v4866_v57  ;;  %v4867_v30 = vand.u32 2147483647, %v10905_v14  ;;  %v4869_v23 = vand.u32 2147483647, %v10913_v1 }
 0x367   : > { %8856 = vpow2.f32 %v4996_v56  ;;  %v4932_v8 = vsub.f32 0.0, %v4868_v49  ;;  %v10920_v61 = vadd.f32 %v4231_v13, %v10909_v27  ;;  %v4882_v37 = vand.u32 2147483647, %v10916_v58 }
 0x368   : > { %8858 = vpow2.f32 %v5000_v43  ;;  %v5026_v55 = vmul.f32 1.442695, %v4930_v26  ;;  %v4931_v5 = vsub.f32 0.0, %v4867_v30  ;;  %v4933_v39 = vsub.f32 0.0, %v4869_v23 }
 0x369   : > { %v5030_v34 = vmul.f32 1.442695, %v4932_v8  ;;  %v10924_v0 = vadd.f32 %v4144_v50, %v10909_v27  ;;  %v4884_v15 = vand.u32 2147483647, %v10920_v61  ;;  %v4946_v40 = vsub.f32 0.0, %v4882_v37 }
 0x36a   : > { %v8845_v10 = vpop.eup %8844  ;;  %8860 = vpow2.f32 %v5026_v55  ;;  %v5028_v48 = vmul.f32 1.442695, %v4931_v5  ;;  %v5032_v51 = vmul.f32 1.442695, %v4933_v39  ;;  %v10929_v21 = vadd.f32 %v4233_v46, %v10909_v27 }
 0x36b   : > { %v8847_v54 = vpop.eup %8846  ;;  %v5090_v52 = vadd.f32 1.0, %v8845_v10  ;;  %8862 = vpow2.f32 %v5030_v34  ;;  %v4883_v33 = vand.u32 2147483647, %v10924_v0  ;;  %v4948_v35 = vsub.f32 0.0, %v4884_v15 }
 0x36c   : > { %v8849_v36 = vpop.eup %8848  ;;  %v5092_v11 = vadd.f32 1.0, %v8847_v54  ;;  %v4885_v42 = vand.u32 2147483647, %v10929_v21  ;;  %v5058_v9 = vmul.f32 1.442695, %v4946_v40  ;;  %v4770_v8 = vmax.f32 %v10863_v19, 0.0 }
 0x36d   : > { %v8851_v7 = vpop.eup %8850  ;;  %8864 = vlog2.f32 %v5090_v52  ;;  %v5091_v38 = vadd.f32 1.0, %v8849_v36  ;;  %v4947_v18 = vsub.f32 0.0, %v4883_v33  ;;  %v5062_v56 = vmul.f32 1.442695, %v4948_v35 }
 0x36e   : > { %8866 = vlog2.f32 %v5092_v11  ;;  %v5093_v25 = vadd.f32 1.0, %v8851_v7  ;;  %v4949_v47 = vsub.f32 0.0, %v4885_v42  ;;  %v4772_v55 = vmax.f32 %v10866_v45, 0.0 }
 0x36f   : > { %8868 = vlog2.f32 %v5091_v38  ;;  %v8853_v31 = vpop.eup %8852  ;;  %v5060_v43 = vmul.f32 1.442695, %v4947_v18  ;;  %v4771_v23 = vmax.f32 %v10869_v20, 0.0  ;;  %v4773_v36 = vmax.f32 %v10873_v28, 0.0 }
 0x370   : > { %8870 = vlog2.f32 %v5093_v25  ;;  %v8855_v63 = vpop.eup %8854  ;;  %v5106_v41 = vadd.f32 1.0, %v8853_v31  ;;  %v5064_v50 = vmul.f32 1.442695, %v4949_v47  ;;  %v4786_v11 = vmax.f32 %v10881_v16, 0.0 }
 0x371   : > { %8872 = vpow2.f32 %v5028_v48  ;;  %v8857_v53 = vpop.eup %8856  ;;  %v5108_v17 = vadd.f32 1.0, %v8855_v63  ;;  %v4788_v39 = vmax.f32 %v10884_v32, 0.0  ;;  %v4787_v45 = vmax.f32 %v10887_v62, 0.0 }
 0x372   : > { %8874 = vpow2.f32 %v5032_v51  ;;  %v8859_v6 = vpop.eup %8858  ;;  %v5107_v29 = vadd.f32 1.0, %v8857_v53  ;;  %v4789_v48 = vmax.f32 %v10890_v22, 0.0 }
 0x373   : > { %8876 = vlog2.f32 %v5106_v41  ;;  %v5109_v24 = vadd.f32 1.0, %v8859_v6 }
 0x374   : > { %8878 = vlog2.f32 %v5108_v17  ;;  %v8861_v4 = vpop.eup %8860 }
 0x375   : > { %8880 = vlog2.f32 %v5107_v29  ;;  %v8863_v13 = vpop.eup %8862  ;;  %v5122_v5 = vadd.f32 1.0, %v8861_v4 }
 0x376   : > { %8882 = vlog2.f32 %v5109_v24  ;;  %v5124_v54 = vadd.f32 1.0, %v8863_v13 }
 0x377   : > { %v8865_v57 = vpop.eup %8864  ;;  %8884 = vpow2.f32 %v5058_v9 }
 0x378   : > { %v8867_v49 = vpop.eup %8866  ;;  %8886 = vpow2.f32 %v5062_v56  ;;  %v5155_v34 = vmul.f32 0.6931472, %v8865_v57 }
 0x379   : > { %v8869_v26 = vpop.eup %8868  ;;  %8888 = vpow2.f32 %v5060_v43  ;;  %v5159_v37 = vmul.f32 0.6931472, %v8867_v49 }
 0x37a   : > { %v8871_v30 = vpop.eup %8870  ;;  %8890 = vpow2.f32 %v5064_v50  ;;  %v5157_v19 = vmul.f32 0.6931472, %v8869_v26  ;;  %v5282_v33 = vadd.f32 %v5155_v34, %v4770_v8  ;;  %v4802_v8 = vmax.f32 %v10899_v12, 0.0 }
 0x37b   : > { %v8873_v46 = vpop.eup %8872  ;;  %v5161_v51 = vmul.f32 0.6931472, %v8871_v30  ;;  %8892 = vlog2.f32 %v5122_v5  ;;  %v5284_v63 = vadd.f32 %v5159_v37, %v4772_v55  ;;  %v4818_v55 = vmax.f32 %v10916_v58, 0.0 }
 0x37c   : > { %v8875_v10 = vpop.eup %8874  ;;  %v5123_v15 = vadd.f32 1.0, %v8873_v46  ;;  %8894 = vlog2.f32 %v5124_v54  ;;  %v5283_v17 = vadd.f32 %v5157_v19, %v4771_v23  ;;  %v4804_v54 = vmax.f32 %v10902_v59, 0.0 }
 0x37d   : > { %v8877_v52 = vpop.eup %8876  ;;  %v5125_v53 = vadd.f32 1.0, %v8875_v10  ;;  %v5285_v22 = vadd.f32 %v5161_v51, %v4773_v36  ;;  %v4805_v12 = vmax.f32 %v10913_v1, 0.0  ;;  %v4819_v58 = vmax.f32 %v10924_v0, 0.0 }
 0x37e   : > { %v8879_v7 = vpop.eup %8878  ;;  %v5187_v38 = vmul.f32 0.6931472, %v8877_v52  ;;  %8896 = vlog2.f32 %v5123_v15  ;;  %v4821_v59 = vmax.f32 %v10929_v21, 0.0 }
 0x37f   : > { %v8881_v25 = vpop.eup %8880  ;;  %v5191_v20 = vmul.f32 0.6931472, %v8879_v7  ;;  %v4820_v7 = vmax.f32 %v10920_v61, 0.0 }
 0x380   : > { %v8883_v40 = vpop.eup %8882  ;;  %v5298_v31 = vadd.f32 %v5187_v38, %v4786_v11  ;;  %v5189_v28 = vmul.f32 0.6931472, %v8881_v25  ;;  %v4803_v11 = vmax.f32 %v10905_v14, 0.0 }
 0x381   : > { %v8885_v16 = vpop.eup %8884  ;;  %v5300_v32 = vadd.f32 %v5191_v20, %v4788_v39  ;;  %v5193_v41 = vmul.f32 0.6931472, %v8883_v40 }
 0x382   : > { %v8258_v35 = vpack.c.bf16 %v5298_v31, %v5282_v33  ;;  %v5299_v62 = vadd.f32 %v5189_v28, %v4787_v45  ;;  %v5138_v42 = vadd.f32 1.0, %v8885_v16  ;;  %v8887_v9 = vpop.eup %8886 }
 0x383   : > { %v8266_v6 = vpack.c.bf16 %v5300_v32, %v5284_v63  ;;  %v5301_v29 = vadd.f32 %v5193_v41, %v4789_v48  ;;  %v8889_v24 = vpop.eup %8888  ;;  %v5140_v47 = vadd.f32 1.0, %v8887_v9 }
 0x384   : > { %8898 = vlog2.f32 %v5138_v42  ;;  %v8256_v18 = vpack.c.bf16 %v5299_v62, %v5283_v17  ;;  %v8891_v13 = vpop.eup %8890  ;;  %v5139_v56 = vadd.f32 1.0, %v8889_v24 }
 0x385   : > { %8900 = vlog2.f32 %v5125_v53  ;;  %v8264_v4 = vpack.c.bf16 %v5301_v29, %v5285_v22  ;;  %v5141_v57 = vadd.f32 1.0, %v8891_v13  ;;  %v8893_v43 = vpop.eup %8892  ;;  %v10960_v53 = vld [vmem:[%s11926_s7] sm:$0xff] }
 0x386   : > { %8257 = vmatprep.subr.bf16.mxu0 %v8256_v18  ;;  %8902 = vlog2.f32 %v5140_v47  ;;  %v8895_v49 = vpop.eup %8894  ;;  %v5219_v26 = vmul.f32 0.6931472, %v8893_v43 }
 0x387   : > { %8265 = vmatprep.subr.bf16.mxu1 %v8264_v4  ;;  %8259 = vmatpush1.bf16.msra.mxu0 %v8258_v35  ;;  %8904 = vlog2.f32 %v5139_v56  ;;  %v5223_v10 = vmul.f32 0.6931472, %v8895_v49 }
 0x388   : > { %8267 = vmatpush1.bf16.msra.mxu1 %v8266_v6  ;;  %8906 = vlog2.f32 %v5141_v57  ;;  %v8897_v50 = vpop.eup %8896  ;;  %v5314_v23 = vadd.f32 %v5219_v26, %v4802_v8 }
 0x389   : > { %v5221_v52 = vmul.f32 0.6931472, %v8897_v50  ;;  %v5316_v25 = vadd.f32 %v5223_v10, %v4804_v54 }
 0x38b   : > { %v5315_v15 = vadd.f32 %v5221_v52, %v4803_v11 }
 0x38e   : > { %v8899_v30 = vpop.eup %8898 }
 0x38f   : > { %v8901_v46 = vpop.eup %8900  ;;  %v5251_v5 = vmul.f32 0.6931472, %v8899_v30 }
 0x390   : > { %v8903_v34 = vpop.eup %8902  ;;  %v5225_v39 = vmul.f32 0.6931472, %v8901_v46 }
 0x391   : > { %v5330_v37 = vadd.f32 %v5251_v5, %v4818_v55  ;;  %v8905_v36 = vpop.eup %8904  ;;  %v5255_v19 = vmul.f32 0.6931472, %v8903_v34 }
 0x392   : > { %v8907_v38 = vpop.eup %8906  ;;  %v5253_v48 = vmul.f32 0.6931472, %v8905_v36  ;;  %v5317_v33 = vadd.f32 %v5225_v39, %v4805_v12 }
 0x393   : > { %v8262_v45 = vpack.c.bf16 %v5330_v37, %v5314_v23  ;;  %v5332_v51 = vadd.f32 %v5255_v19, %v4820_v7  ;;  %v5257_v20 = vmul.f32 0.6931472, %v8907_v38 }
 0x394   : > { %v5331_v40 = vadd.f32 %v5253_v48, %v4819_v58 }
 0x395   : > { %v8270_v14 = vpack.c.bf16 %v5332_v51, %v5316_v25  ;;  %v5333_v31 = vadd.f32 %v5257_v20, %v4821_v59 }
 0x396   : > { %v8260_v28 = vpack.c.bf16 %v5331_v40, %v5315_v15 }
 0x397   : > { %v4302_v61 = vpop.f32.mrb[72].mxu0  ;;  %v8268_v16 = vpack.c.bf16 %v5333_v31, %v5317_v33 }
 0x398   : > { %v10949_v63 = vadd.f32 %v4302_v61, %v10860_v2  ;;  %v4391_v1 = vpop.f32.mrb[72].mxu1  ;;  %v4304_v32 = vpop.f32.mrb[73].mxu0  ;;  %8261 = vmatprep.subr.bf16.mxu0 %v8260_v28 }
 0x399   : > { %v10952_v0 = vadd.f32 %v4391_v1, %v10860_v2  ;;  %v10955_v21 = vadd.f32 %v4304_v32, %v10860_v2  ;;  %v4393_v41 = vpop.f32.mrb[73].mxu1  ;;  %8269 = vmatprep.subr.bf16.mxu1 %v8268_v16  ;;  %8263 = vmatpush1.bf16.msra.mxu0 %v8262_v45 }
 0x39a   : > { %v4838_v17 = vand.u32 2147483647, %v10949_v63  ;;  %v10964_v35 = vadd.f32 %v4393_v41, %v10860_v2  ;;  %8271 = vmatpush1.bf16.msra.mxu1 %v8270_v14 }
 0x39b   : > { %v4840_v62 = vand.u32 2147483647, %v10952_v0  ;;  %v4839_v42 = vand.u32 2147483647, %v10955_v21  ;;  %v4308_v29 = vpop.f32.mrb[74].mxu0 }
 0x39c   : > { %v4902_v22 = vsub.f32 0.0, %v4838_v17  ;;  %v4841_v6 = vand.u32 2147483647, %v10964_v35  ;;  %v4397_v9 = vpop.f32.mrb[74].mxu1  ;;  %7414 = vmatmul.mubr.msk.f32.vlgmr.msra.gmra.mrb[96].mxu0 %vm2717_vm2, %v10960_v53  ;;  %v10972_v47 = vadd.f32 %v4308_v29, %v10875_v60  ;;  %v4310_v13 = vpop.f32.mrb[75].mxu0 }
 0x39d   : > { %v4904_v18 = vsub.f32 0.0, %v4840_v62  ;;  %v4903_v24 = vsub.f32 0.0, %v4839_v42  ;;  %v10975_v4 = vadd.f32 %v4397_v9, %v10875_v60  ;;  %v4399_v56 = vpop.f32.mrb[75].mxu1  ;;  %7415 = vmatmul.mubr.msk.f32.vlgmr.msra.gmra.mrb[96].mxu1 %vm2717_vm2, %v10960_v53  ;;  %v10980_v49 = vadd.f32 %v4310_v13, %v10875_v60  ;;  %5562 = vmatprep.mubr.f32.mxu0 %v9183_v3 }
 0x39e   : > { %v4970_v57 = vmul.f32 1.442695, %v4902_v22  ;;  %v4905_v43 = vsub.f32 0.0, %v4841_v6  ;;  %v10983_v50 = vadd.f32 %v4399_v56, %v10875_v60  ;;  %5633 = vmatprep.mubr.f32.mxu1 %v9183_v3  ;;  %v4854_v8 = vand.u32 2147483647, %v10972_v47 }
 0x39f   : > { %v4974_v26 = vmul.f32 1.442695, %v4904_v18  ;;  %v4972_v30 = vmul.f32 1.442695, %v4903_v24  ;;  %v4856_v55 = vand.u32 2147483647, %v10975_v4 }
 0x3a0   : > { %8908 = vpow2.f32 %v4970_v57  ;;  %v4976_v46 = vmul.f32 1.442695, %v4905_v43  ;;  %v4855_v5 = vand.u32 2147483647, %v10980_v49  ;;  %v4314_v10 = vpop.f32.mrb[76].mxu0  ;;  %v4403_v34 = vpop.f32.mrb[76].mxu1 }
 0x3a1   : > { %8910 = vpow2.f32 %v4974_v26  ;;  %v4918_v23 = vsub.f32 0.0, %v4854_v8  ;;  %v4920_v54 = vsub.f32 0.0, %v4856_v55  ;;  %v4857_v52 = vand.u32 2147483647, %v10983_v50  ;;  %v4316_v37 = vpop.f32.mrb[77].mxu0  ;;  %v4405_v36 = vpop.f32.mrb[77].mxu1 }
 0x3a2   : > { %8912 = vpow2.f32 %v4972_v30  ;;  %v4919_v11 = vsub.f32 0.0, %v4855_v5  ;;  %v10992_v39 = vadd.f32 %v4314_v10, %v10892_v44  ;;  %v10995_v7 = vadd.f32 %v4403_v34, %v10892_v44 }
 0x3a3   : > { %8914 = vpow2.f32 %v4976_v46  ;;  %v4320_v19 = vpop.f32.mrb[78].mxu0  ;;  %v5002_v38 = vmul.f32 1.442695, %v4918_v23  ;;  %v5006_v12 = vmul.f32 1.442695, %v4920_v54  ;;  %v4921_v45 = vsub.f32 0.0, %v4857_v52 }
 0x3a4   : > { %v10998_v58 = vadd.f32 %v4316_v37, %v10892_v44  ;;  %v4409_v48 = vpop.f32.mrb[78].mxu1  ;;  %v5004_v25 = vmul.f32 1.442695, %v4919_v11  ;;  %v4870_v51 = vand.u32 2147483647, %v10992_v39  ;;  %v4322_v15 = vpop.f32.mrb[79].mxu0  ;;  %v11004_v14 = vadd.f32 %v4405_v36, %v10892_v44 }
 0x3a5   : > { %8916 = vpow2.f32 %v5002_v38  ;;  %v5008_v59 = vmul.f32 1.442695, %v4921_v45  ;;  %v4872_v20 = vand.u32 2147483647, %v10995_v7  ;;  %v4411_v31 = vpop.f32.mrb[79].mxu1  ;;  %v11007_v61 = vadd.f32 %v4320_v19, %v10909_v27 }
 0x3a6   : > { %8918 = vpow2.f32 %v5006_v12  ;;  %v4934_v40 = vsub.f32 0.0, %v4870_v51  ;;  %v4871_v33 = vand.u32 2147483647, %v10998_v58  ;;  %v4873_v17 = vand.u32 2147483647, %v11004_v14 }
 0x3a7   : > { %8920 = vpow2.f32 %v5004_v25  ;;  %v4936_v28 = vsub.f32 0.0, %v4872_v20  ;;  %v11011_v62 = vadd.f32 %v4409_v48, %v10909_v27  ;;  %v4886_v6 = vand.u32 2147483647, %v11007_v61 }
 0x3a8   : > { %8922 = vpow2.f32 %v5008_v59  ;;  %v5034_v16 = vmul.f32 1.442695, %v4934_v40  ;;  %v4935_v1 = vsub.f32 0.0, %v4871_v33  ;;  %v4937_v18 = vsub.f32 0.0, %v4873_v17 }
 0x3a9   : > { %v5038_v41 = vmul.f32 1.442695, %v4936_v28  ;;  %v11015_v57 = vadd.f32 %v4322_v15, %v10909_v27  ;;  %v4888_v30 = vand.u32 2147483647, %v11011_v62  ;;  %v4950_v46 = vsub.f32 0.0, %v4886_v6 }
 0x3aa   : > { %v8909_v32 = vpop.eup %8908  ;;  %8924 = vpow2.f32 %v5034_v16  ;;  %v5036_v56 = vmul.f32 1.442695, %v4935_v1  ;;  %v5040_v26 = vmul.f32 1.442695, %v4937_v18  ;;  %v11020_v5 = vadd.f32 %v4411_v31, %v10909_v27 }
 0x3ab   : > { %v8911_v42 = vpop.eup %8910  ;;  %v5094_v22 = vadd.f32 1.0, %v8909_v32  ;;  %8926 = vpow2.f32 %v5038_v41  ;;  %v4887_v8 = vand.u32 2147483647, %v11015_v57  ;;  %v4952_v52 = vsub.f32 0.0, %v4888_v30 }
 0x3ac   : > { %v8913_v29 = vpop.eup %8912  ;;  %v5096_v9 = vadd.f32 1.0, %v8911_v42  ;;  %v4889_v37 = vand.u32 2147483647, %v11020_v5  ;;  %v5066_v19 = vmul.f32 1.442695, %v4950_v46  ;;  %v4774_v16 = vmax.f32 %v10949_v63, 0.0 }
 0x3ad   : > { %v8915_v24 = vpop.eup %8914  ;;  %8928 = vlog2.f32 %v5094_v22  ;;  %v5095_v13 = vadd.f32 1.0, %v8913_v29  ;;  %v4951_v38 = vsub.f32 0.0, %v4887_v8  ;;  %v5070_v51 = vmul.f32 1.442695, %v4952_v52 }
 0x3ae   : > { %8930 = vlog2.f32 %v5096_v9  ;;  %v5097_v43 = vadd.f32 1.0, %v8915_v24  ;;  %v4953_v45 = vsub.f32 0.0, %v4889_v37  ;;  %v4776_v1 = vmax.f32 %v10952_v0, 0.0 }
 0x3af   : > { %8932 = vlog2.f32 %v5095_v13  ;;  %v8917_v55 = vpop.eup %8916  ;;  %v5068_v20 = vmul.f32 1.442695, %v4951_v38  ;;  %v4775_v42 = vmax.f32 %v10955_v21, 0.0  ;;  %v4777_v9 = vmax.f32 %v10964_v35, 0.0 }
 0x3b0   : > { %8934 = vlog2.f32 %v5097_v43  ;;  %v8919_v10 = vpop.eup %8918  ;;  %v5110_v34 = vadd.f32 1.0, %v8917_v55  ;;  %v5072_v40 = vmul.f32 1.442695, %v4953_v45  ;;  %v4790_v18 = vmax.f32 %v10972_v47, 0.0 }
 0x3b1   : > { %8936 = vpow2.f32 %v5036_v56  ;;  %v8921_v23 = vpop.eup %8920  ;;  %v5112_v54 = vadd.f32 1.0, %v8919_v10  ;;  %v4792_v24 = vmax.f32 %v10975_v4, 0.0  ;;  %v4791_v0 = vmax.f32 %v10980_v49, 0.0 }
 0x3b2   : > { %8938 = vpow2.f32 %v5040_v26  ;;  %v8923_v36 = vpop.eup %8922  ;;  %v5111_v11 = vadd.f32 1.0, %v8921_v23  ;;  %v4793_v43 = vmax.f32 %v10983_v50, 0.0 }
 0x3b3   : > { %8940 = vlog2.f32 %v5110_v34  ;;  %v5113_v12 = vadd.f32 1.0, %v8923_v36 }
 0x3b4   : > { %8942 = vlog2.f32 %v5112_v54  ;;  %v8925_v48 = vpop.eup %8924 }
 0x3b5   : > { %8944 = vlog2.f32 %v5111_v11  ;;  %v8927_v25 = vpop.eup %8926  ;;  %v5126_v32 = vadd.f32 1.0, %v8925_v48 }
 0x3b6   : > { %8946 = vlog2.f32 %v5113_v12  ;;  %v5128_v22 = vadd.f32 1.0, %v8927_v25 }
 0x3b7   : > { %v8929_v59 = vpop.eup %8928  ;;  %8948 = vpow2.f32 %v5066_v19 }
 0x3b8   : > { %v8931_v15 = vpop.eup %8930  ;;  %8950 = vpow2.f32 %v5070_v51  ;;  %v5163_v17 = vmul.f32 0.6931472, %v8929_v59 }
 0x3b9   : > { %v8933_v33 = vpop.eup %8932  ;;  %8952 = vpow2.f32 %v5068_v20  ;;  %v5167_v29 = vmul.f32 0.6931472, %v8931_v15 }
 0x3ba   : > { %v8935_v31 = vpop.eup %8934  ;;  %8954 = vpow2.f32 %v5072_v40  ;;  %v5165_v63 = vmul.f32 0.6931472, %v8933_v33  ;;  %v5286_v55 = vadd.f32 %v5163_v17, %v4774_v16 }
 0x3bb   : > { %v8937_v28 = vpop.eup %8936  ;;  %v5169_v30 = vmul.f32 0.6931472, %v8935_v31  ;;  %8956 = vlog2.f32 %v5126_v32  ;;  %v5288_v34 = vadd.f32 %v5167_v29, %v4776_v1  ;;  %v4806_v1 = vmax.f32 %v10992_v39, 0.0 }
 0x3bc   : > { %v8939_v41 = vpop.eup %8938  ;;  %v5127_v46 = vadd.f32 1.0, %v8937_v28  ;;  %8958 = vlog2.f32 %v5128_v22  ;;  %v5287_v52 = vadd.f32 %v5165_v63, %v4775_v42  ;;  %v4822_v32 = vmax.f32 %v11007_v61, 0.0 }
 0x3bd   : > { %v8941_v6 = vpop.eup %8940  ;;  %v5129_v54 = vadd.f32 1.0, %v8939_v41  ;;  %v5289_v50 = vadd.f32 %v5169_v30, %v4777_v9  ;;  %v4824_v63 = vmax.f32 %v11011_v62, 0.0  ;;  %v4809_v39 = vmax.f32 %v11004_v14, 0.0 }
 0x3be   : > { %v8943_v13 = vpop.eup %8942  ;;  %v5195_v56 = vmul.f32 0.6931472, %v8941_v6  ;;  %8960 = vlog2.f32 %v5127_v46  ;;  %v4808_v6 = vmax.f32 %v10995_v7, 0.0  ;;  %v4823_v61 = vmax.f32 %v11015_v57, 0.0 }
 0x3bf   : > { %v8945_v26 = vpop.eup %8944  ;;  %v5199_v21 = vmul.f32 0.6931472, %v8943_v13  ;;  %v4825_v7 = vmax.f32 %v11020_v5, 0.0 }
 0x3c0   : > { %v8947_v8 = vpop.eup %8946  ;;  %v5302_v10 = vadd.f32 %v5195_v56, %v4790_v18  ;;  %v5197_v35 = vmul.f32 0.6931472, %v8945_v26 }
 0x3c1   : > { %v8949_v47 = vpop.eup %8948  ;;  %v5304_v4 = vadd.f32 %v5199_v21, %v4792_v24  ;;  %v5201_v23 = vmul.f32 0.6931472, %v8947_v8  ;;  %v4807_v24 = vmax.f32 %v10998_v58, 0.0 }
 0x3c2   : > { %v8274_v37 = vpack.c.bf16 %v5302_v10, %v5286_v55  ;;  %v5303_v49 = vadd.f32 %v5197_v35, %v4791_v0  ;;  %v5142_v36 = vadd.f32 1.0, %v8949_v47  ;;  %v8951_v38 = vpop.eup %8950 }
 0x3c3   : > { %v8282_v11 = vpack.c.bf16 %v5304_v4, %v5288_v34  ;;  %v5305_v19 = vadd.f32 %v5201_v23, %v4793_v43  ;;  %v8953_v45 = vpop.eup %8952  ;;  %v5144_v48 = vadd.f32 1.0, %v8951_v38 }
 0x3c4   : > { %8962 = vlog2.f32 %v5142_v36  ;;  %v8272_v12 = vpack.c.bf16 %v5303_v49, %v5287_v52  ;;  %v8955_v51 = vpop.eup %8954  ;;  %v5143_v59 = vadd.f32 1.0, %v8953_v45 }
 0x3c5   : > { %8964 = vlog2.f32 %v5129_v54  ;;  %v8280_v25 = vpack.c.bf16 %v5305_v19, %v5289_v50  ;;  %v5145_v20 = vadd.f32 1.0, %v8955_v51  ;;  %v8957_v15 = vpop.eup %8956 }
 0x3c6   : > { %8273 = vmatprep.subr.bf16.mxu0 %v8272_v12  ;;  %8966 = vlog2.f32 %v5144_v48  ;;  %v8959_v40 = vpop.eup %8958  ;;  %v5227_v31 = vmul.f32 0.6931472, %v8957_v15 }
 0x3c7   : > { %8281 = vmatprep.subr.bf16.mxu1 %v8280_v25  ;;  %8275 = vmatpush1.bf16.msra.mxu0 %v8274_v37  ;;  %8968 = vlog2.f32 %v5143_v59  ;;  %v5231_v17 = vmul.f32 0.6931472, %v8959_v40 }
 0x3c8   : > { %8283 = vmatpush1.bf16.msra.mxu1 %v8282_v11  ;;  %8970 = vlog2.f32 %v5145_v20  ;;  %v8961_v33 = vpop.eup %8960  ;;  %v5318_v22 = vadd.f32 %v5227_v31, %v4806_v1 }
 0x3c9   : > { %v5229_v29 = vmul.f32 0.6931472, %v8961_v33  ;;  %v5320_v30 = vadd.f32 %v5231_v17, %v4808_v6 }
 0x3cb   : > { %v5319_v8 = vadd.f32 %v5229_v29, %v4807_v24 }
 0x3ce   : > { %v8963_v28 = vpop.eup %8962 }
 0x3cf   : > { %v8965_v16 = vpop.eup %8964  ;;  %v5259_v41 = vmul.f32 0.6931472, %v8963_v28 }
 0x3d0   : > { %v8967_v42 = vpop.eup %8966  ;;  %v5233_v13 = vmul.f32 0.6931472, %v8965_v16 }
 0x3d1   : > { %v5334_v9 = vadd.f32 %v5259_v41, %v4822_v32  ;;  %v8969_v18 = vpop.eup %8968  ;;  %v5263_v56 = vmul.f32 0.6931472, %v8967_v42 }
 0x3d2   : > { %v8971_v0 = vpop.eup %8970  ;;  %v5261_v26 = vmul.f32 0.6931472, %v8969_v18  ;;  %v5321_v10 = vadd.f32 %v5233_v13, %v4809_v39 }
 0x3d3   : > { %v8278_v43 = vpack.c.bf16 %v5334_v9, %v5318_v22  ;;  %v5336_v21 = vadd.f32 %v5263_v56, %v4824_v63  ;;  %v5265_v46 = vmul.f32 0.6931472, %v8971_v0 }
 0x3d4   : > { %v5335_v55 = vadd.f32 %v5261_v26, %v4823_v61 }
 0x3d5   : > { %v8286_v58 = vpack.c.bf16 %v5336_v21, %v5320_v30  ;;  %v5337_v35 = vadd.f32 %v5265_v46, %v4825_v7 }
 0x3d6   : > { %v8276_v47 = vpack.c.bf16 %v5335_v55, %v5319_v8 }
 0x3d7   : > { %v4480_v62 = vpop.f32.mrb[80].mxu0  ;;  %v8284_v34 = vpack.c.bf16 %v5337_v35, %v5321_v10 }
 0x3d8   : > { %v11040_v4 = vadd.f32 %v4480_v62, %v10860_v2  ;;  %v4569_v14 = vpop.f32.mrb[80].mxu1  ;;  %v4482_v23 = vpop.f32.mrb[81].mxu0  ;;  %8277 = vmatprep.subr.bf16.mxu0 %v8276_v47 }
 0x3d9   : > { %v11043_v57 = vadd.f32 %v4569_v14, %v10860_v2  ;;  %v11046_v5 = vadd.f32 %v4482_v23, %v10860_v2  ;;  %v4571_v54 = vpop.f32.mrb[81].mxu1  ;;  %8285 = vmatprep.subr.bf16.mxu1 %v8284_v34  ;;  %8279 = vmatpush1.bf16.msra.mxu0 %v8278_v43 }
 0x3da   : > { %v4842_v52 = vand.u32 2147483647, %v11040_v4  ;;  %v11050_v37 = vadd.f32 %v4571_v54, %v10860_v2  ;;  %8287 = vmatpush1.bf16.msra.mxu1 %v8286_v58 }
 0x3db   : > { %v4844_v49 = vand.u32 2147483647, %v11043_v57  ;;  %v4843_v36 = vand.u32 2147483647, %v11046_v5  ;;  %v4486_v19 = vpop.f32.mrb[82].mxu0 }
 0x3dc   : > { %v4906_v50 = vsub.f32 0.0, %v4842_v52  ;;  %v4845_v11 = vand.u32 2147483647, %v11050_v37  ;;  %v4575_v38 = vpop.f32.mrb[82].mxu1  ;;  %7416 = vmatmul.mubr.msk.f32.vlgmr.msra.gmra.mrb[98].mxu0 %vm2717_vm2, %v10960_v53  ;;  %v11058_v48 = vadd.f32 %v4486_v19, %v10875_v60  ;;  %v4488_v51 = vpop.f32.mrb[83].mxu0 }
 0x3dd   : > { %v4908_v12 = vsub.f32 0.0, %v4844_v49  ;;  %v4907_v45 = vsub.f32 0.0, %v4843_v36  ;;  %v11061_v25 = vadd.f32 %v4575_v38, %v10875_v60  ;;  %v4577_v59 = vpop.f32.mrb[83].mxu1  ;;  %7417 = vmatmul.mubr.msk.f32.vlgmr.msra.gmra.mrb[98].mxu1 %vm2717_vm2, %v10960_v53  ;;  %v11066_v40 = vadd.f32 %v4488_v51, %v10875_v60  ;;  %5704 = vmatprep.mubr.f32.mxu0 %v9183_v3 }
 0x3de   : > { %v4978_v20 = vmul.f32 1.442695, %v4906_v50  ;;  %v4909_v15 = vsub.f32 0.0, %v4845_v11  ;;  %v11069_v33 = vadd.f32 %v4577_v59, %v10875_v60  ;;  %5775 = vmatprep.mubr.f32.mxu1 %v9183_v3  ;;  %v4858_v1 = vand.u32 2147483647, %v11058_v48 }
 0x3df   : > { %v4982_v31 = vmul.f32 1.442695, %v4908_v12  ;;  %v4980_v28 = vmul.f32 1.442695, %v4907_v45  ;;  %v4860_v32 = vand.u32 2147483647, %v11061_v25 }
 0x3e0   : > { %8972 = vpow2.f32 %v4978_v20  ;;  %v4984_v16 = vmul.f32 1.442695, %v4909_v15  ;;  %v4859_v41 = vand.u32 2147483647, %v11066_v40  ;;  %v4492_v17 = vpop.f32.mrb[84].mxu0  ;;  %v4581_v42 = vpop.f32.mrb[84].mxu1 }
 0x3e1   : > { %8974 = vpow2.f32 %v4982_v31  ;;  %v4922_v22 = vsub.f32 0.0, %v4858_v1  ;;  %v4924_v6 = vsub.f32 0.0, %v4860_v32  ;;  %v4861_v29 = vand.u32 2147483647, %v11069_v33  ;;  %v4494_v9 = vpop.f32.mrb[85].mxu0  ;;  %v4583_v18 = vpop.f32.mrb[85].mxu1 }
 0x3e2   : > { %8976 = vpow2.f32 %v4980_v28  ;;  %v4923_v24 = vsub.f32 0.0, %v4859_v41  ;;  %v11078_v13 = vadd.f32 %v4492_v17, %v10892_v44  ;;  %v11081_v63 = vadd.f32 %v4581_v42, %v10892_v44 }
 0x3e3   : > { %8978 = vpow2.f32 %v4984_v16  ;;  %v4498_v56 = vpop.f32.mrb[86].mxu0  ;;  %v5010_v0 = vmul.f32 1.442695, %v4922_v22  ;;  %v5014_v39 = vmul.f32 1.442695, %v4924_v6  ;;  %v4925_v43 = vsub.f32 0.0, %v4861_v29 }
 0x3e4   : > { %v11084_v61 = vadd.f32 %v4494_v9, %v10892_v44  ;;  %v4587_v26 = vpop.f32.mrb[86].mxu1  ;;  %v5012_v30 = vmul.f32 1.442695, %v4923_v24  ;;  %v4874_v21 = vand.u32 2147483647, %v11078_v13  ;;  %v4500_v8 = vpop.f32.mrb[87].mxu0  ;;  %v11090_v58 = vadd.f32 %v4583_v18, %v10892_v44 }
 0x3e5   : > { %8980 = vpow2.f32 %v5010_v0  ;;  %v5016_v7 = vmul.f32 1.442695, %v4925_v43  ;;  %v4876_v46 = vand.u32 2147483647, %v11081_v63  ;;  %v4589_v35 = vpop.f32.mrb[87].mxu1  ;;  %v11093_v62 = vadd.f32 %v4498_v56, %v10909_v27 }
 0x3e6   : > { %8982 = vpow2.f32 %v5014_v39  ;;  %v4938_v55 = vsub.f32 0.0, %v4874_v21  ;;  %v4875_v10 = vand.u32 2147483647, %v11084_v61  ;;  %v4877_v52 = vand.u32 2147483647, %v11090_v58 }
 0x3e7   : > { %8984 = vpow2.f32 %v5012_v30  ;;  %v4940_v47 = vsub.f32 0.0, %v4876_v46  ;;  %v11097_v49 = vadd.f32 %v4587_v26, %v10909_v27  ;;  %v4890_v11 = vand.u32 2147483647, %v11093_v62 }
 0x3e8   : > { %8986 = vpow2.f32 %v5016_v7  ;;  %v5042_v34 = vmul.f32 1.442695, %v4938_v55  ;;  %v4939_v14 = vsub.f32 0.0, %v4875_v10  ;;  %v4941_v12 = vsub.f32 0.0, %v4877_v52 }
 0x3e9   : > { %v5046_v54 = vmul.f32 1.442695, %v4940_v47  ;;  %v11101_v20 = vadd.f32 %v4500_v8, %v10909_v27  ;;  %v4892_v28 = vand.u32 2147483647, %v11097_v49  ;;  %v4954_v16 = vsub.f32 0.0, %v4890_v11 }
 0x3ea   : > { %v8973_v23 = vpop.eup %8972  ;;  %8988 = vpow2.f32 %v5042_v34  ;;  %v5044_v59 = vmul.f32 1.442695, %v4939_v14  ;;  %v5048_v31 = vmul.f32 1.442695, %v4941_v12  ;;  %v11106_v41 = vadd.f32 %v4589_v35, %v10909_v27 }
 0x3eb   : > { %v8975_v36 = vpop.eup %8974  ;;  %v5098_v50 = vadd.f32 1.0, %v8973_v23  ;;  %8990 = vpow2.f32 %v5046_v54  ;;  %v4891_v1 = vand.u32 2147483647, %v11101_v20  ;;  %v4956_v29 = vsub.f32 0.0, %v4892_v28 }
 0x3ec   : > { %v8977_v19 = vpop.eup %8976  ;;  %v5100_v38 = vadd.f32 1.0, %v8975_v36  ;;  %v4893_v9 = vand.u32 2147483647, %v11106_v41  ;;  %v5074_v56 = vmul.f32 1.442695, %v4954_v16  ;;  %v4778_v34 = vmax.f32 %v11040_v4, 0.0 }
 0x3ed   : > { %v8979_v45 = vpop.eup %8978  ;;  %8992 = vlog2.f32 %v5098_v50  ;;  %v5099_v51 = vadd.f32 1.0, %v8977_v19  ;;  %v4955_v0 = vsub.f32 0.0, %v4891_v1  ;;  %v5078_v21 = vmul.f32 1.442695, %v4956_v29 }
 0x3ee   : > { %8994 = vlog2.f32 %v5100_v38  ;;  %v5101_v15 = vadd.f32 1.0, %v8979_v45  ;;  %v4957_v43 = vsub.f32 0.0, %v4893_v9  ;;  %v4780_v14 = vmax.f32 %v11043_v57, 0.0 }
 0x3ef   : > { %8996 = vlog2.f32 %v5099_v51  ;;  %v8981_v32 = vpop.eup %8980  ;;  %v5076_v46 = vmul.f32 1.442695, %v4955_v0  ;;  %v4779_v36 = vmax.f32 %v11046_v5, 0.0  ;;  %v4781_v38 = vmax.f32 %v11050_v37, 0.0 }
 0x3f0   : > { %8998 = vlog2.f32 %v5101_v15  ;;  %v8983_v17 = vpop.eup %8982  ;;  %v5114_v42 = vadd.f32 1.0, %v8981_v32  ;;  %v5080_v55 = vmul.f32 1.442695, %v4957_v43  ;;  %v4794_v12 = vmax.f32 %v11058_v48, 0.0 }
 0x3f1   : > { %9000 = vpow2.f32 %v5044_v59  ;;  %v8985_v22 = vpop.eup %8984  ;;  %v5116_v6 = vadd.f32 1.0, %v8983_v17  ;;  %v4796_v45 = vmax.f32 %v11061_v25, 0.0  ;;  %v4795_v57 = vmax.f32 %v11066_v40, 0.0 }
 0x3f2   : > { %9002 = vpow2.f32 %v5048_v31  ;;  %v8987_v18 = vpop.eup %8986  ;;  %v5115_v24 = vadd.f32 1.0, %v8985_v22  ;;  %v4797_v15 = vmax.f32 %v11069_v33, 0.0 }
 0x3f3   : > { %9004 = vlog2.f32 %v5114_v42  ;;  %v5117_v39 = vadd.f32 1.0, %v8987_v18 }
 0x3f4   : > { %9006 = vlog2.f32 %v5116_v6  ;;  %v8989_v26 = vpop.eup %8988 }
 0x3f5   : > { %9008 = vlog2.f32 %v5115_v24  ;;  %v8991_v30 = vpop.eup %8990  ;;  %v5130_v23 = vadd.f32 1.0, %v8989_v26 }
 0x3f6   : > { %9010 = vlog2.f32 %v5117_v39  ;;  %v5132_v50 = vadd.f32 1.0, %v8991_v30 }
 0x3f7   : > { %v8993_v7 = vpop.eup %8992  ;;  %9012 = vpow2.f32 %v5074_v56 }
 0x3f8   : > { %v8995_v8 = vpop.eup %8994  ;;  %9014 = vpow2.f32 %v5078_v21  ;;  %v5171_v52 = vmul.f32 0.6931472, %v8993_v7 }
 0x3f9   : > { %v8997_v10 = vpop.eup %8996  ;;  %9016 = vpow2.f32 %v5076_v46  ;;  %v5175_v19 = vmul.f32 0.6931472, %v8995_v8 }
 0x3fa   : > { %v8999_v35 = vpop.eup %8998  ;;  %9018 = vpow2.f32 %v5080_v55  ;;  %v5173_v4 = vmul.f32 0.6931472, %v8997_v10  ;;  %v5290_v32 = vadd.f32 %v5171_v52, %v4778_v34 }
 0x3fb   : > { %v9001_v47 = vpop.eup %9000  ;;  %v5177_v28 = vmul.f32 0.6931472, %v8999_v35  ;;  %9020 = vlog2.f32 %v5130_v23  ;;  %v5292_v42 = vadd.f32 %v5175_v19, %v4780_v14  ;;  %v4810_v14 = vmax.f32 %v11078_v13, 0.0 }
 0x3fc   : > { %v9003_v54 = vpop.eup %9002  ;;  %v5131_v16 = vadd.f32 1.0, %v9001_v47  ;;  %9022 = vlog2.f32 %v5132_v50  ;;  %v5291_v29 = vadd.f32 %v5173_v4, %v4779_v36  ;;  %v4826_v23 = vmax.f32 %v11093_v62, 0.0 }
 0x3fd   : > { %v9005_v11 = vpop.eup %9004  ;;  %v5133_v6 = vadd.f32 1.0, %v9003_v54  ;;  %v5293_v33 = vadd.f32 %v5177_v28, %v4781_v38  ;;  %v4828_v4 = vmax.f32 %v11097_v49, 0.0  ;;  %v4813_v13 = vmax.f32 %v11090_v58, 0.0 }
 0x3fe   : > { %v9007_v51 = vpop.eup %9006  ;;  %v5203_v59 = vmul.f32 0.6931472, %v9005_v11  ;;  %9024 = vlog2.f32 %v5131_v16  ;;  %v4812_v11 = vmax.f32 %v11081_v63, 0.0  ;;  %v4827_v62 = vmax.f32 %v11101_v20, 0.0 }
 0x3ff   : > { %v9009_v31 = vpop.eup %9008  ;;  %v5207_v5 = vmul.f32 0.6931472, %v9007_v51  ;;  %v4829_v63 = vmax.f32 %v11106_v41, 0.0 }
 0x400   : > { %v9011_v1 = vpop.eup %9010  ;;  %v5306_v17 = vadd.f32 %v5203_v59, %v4794_v12  ;;  %v5205_v37 = vmul.f32 0.6931472, %v9009_v31 }
 0x401   : > { %v9013_v48 = vpop.eup %9012  ;;  %v5308_v25 = vadd.f32 %v5207_v5, %v4796_v45  ;;  %v5209_v22 = vmul.f32 0.6931472, %v9011_v1  ;;  %v4811_v45 = vmax.f32 %v11084_v61, 0.0 }
 0x402   : > { %v8290_v9 = vpack.c.bf16 %v5306_v17, %v5290_v32  ;;  %v5307_v40 = vadd.f32 %v5205_v37, %v4795_v57  ;;  %v5146_v18 = vadd.f32 1.0, %v9013_v48  ;;  %v9015_v0 = vpop.eup %9014 }
 0x403   : > { %v8298_v24 = vpack.c.bf16 %v5308_v25, %v5292_v42  ;;  %v5309_v56 = vadd.f32 %v5209_v22, %v4797_v15  ;;  %v9017_v43 = vpop.eup %9016  ;;  %v5148_v26 = vadd.f32 1.0, %v9015_v0 }
 0x404   : > { %9026 = vlog2.f32 %v5146_v18  ;;  %v8288_v39 = vpack.c.bf16 %v5307_v40, %v5291_v29  ;;  %v9019_v21 = vpop.eup %9018  ;;  %v5147_v7 = vadd.f32 1.0, %v9017_v43 }
 0x405   : > { %9028 = vlog2.f32 %v5133_v6  ;;  %v8296_v30 = vpack.c.bf16 %v5309_v56, %v5293_v33  ;;  %v5149_v46 = vadd.f32 1.0, %v9019_v21  ;;  %v9021_v8 = vpop.eup %9020 }
 0x406   : > { %8289 = vmatprep.subr.bf16.mxu0 %v8288_v39  ;;  %9030 = vlog2.f32 %v5148_v26  ;;  %v9023_v55 = vpop.eup %9022  ;;  %v5235_v35 = vmul.f32 0.6931472, %v9021_v8 }
 0x407   : > { %8297 = vmatprep.subr.bf16.mxu1 %v8296_v30  ;;  %8291 = vmatpush1.bf16.msra.mxu0 %v8290_v9  ;;  %9032 = vlog2.f32 %v5147_v7  ;;  %v5239_v52 = vmul.f32 0.6931472, %v9023_v55 }
 0x408   : > { %8299 = vmatpush1.bf16.msra.mxu1 %v8298_v24  ;;  %9034 = vlog2.f32 %v5149_v46  ;;  %v9025_v10 = vpop.eup %9024  ;;  %v5322_v50 = vadd.f32 %v5235_v35, %v4810_v14 }
 0x409   : > { %v5237_v19 = vmul.f32 0.6931472, %v9025_v10  ;;  %v5324_v28 = vadd.f32 %v5239_v52, %v4812_v11 }
 0x40b   : > { %v5323_v1 = vadd.f32 %v5237_v19, %v4811_v45 }
 0x40e   : > { %v9027_v47 = vpop.eup %9026 }
 0x40f   : > { %v9029_v34 = vpop.eup %9028  ;;  %v5267_v54 = vmul.f32 0.6931472, %v9027_v47 }
 0x410   : > { %v9031_v36 = vpop.eup %9030  ;;  %v5241_v51 = vmul.f32 0.6931472, %v9029_v34 }
 0x411   : > { %v5338_v38 = vadd.f32 %v5267_v54, %v4826_v23  ;;  %v9033_v12 = vpop.eup %9032  ;;  %v5271_v59 = vmul.f32 0.6931472, %v9031_v36 }
 0x412   : > { %v9035_v57 = vpop.eup %9034  ;;  %v5269_v31 = vmul.f32 0.6931472, %v9033_v12  ;;  %v5325_v17 = vadd.f32 %v5241_v51, %v4813_v13 }
 0x413   : > { %v8294_v15 = vpack.c.bf16 %v5338_v38, %v5322_v50  ;;  %v5340_v5 = vadd.f32 %v5271_v59, %v4828_v4  ;;  %v5273_v16 = vmul.f32 0.6931472, %v9035_v57 }
 0x414   : > { %v5339_v32 = vadd.f32 %v5269_v31, %v4827_v62 }
 0x415   : > { %v8302_v61 = vpack.c.bf16 %v5340_v5, %v5324_v28  ;;  %v5341_v37 = vadd.f32 %v5273_v16, %v4829_v63 }
 0x416   : > { %v8292_v48 = vpack.c.bf16 %v5339_v32, %v5323_v1 }
 0x417   : > { %v4658_v49 = vpop.f32.mrb[88].mxu0  ;;  %v8300_v42 = vpack.c.bf16 %v5341_v37, %v5325_v17 }
 0x418   : > { %v11126_v25 = vadd.f32 %v4658_v49, %v10860_v2  ;;  %v4747_v58 = vpop.f32.mrb[88].mxu1  ;;  %v4660_v22 = vpop.f32.mrb[89].mxu0  ;;  %8293 = vmatprep.subr.bf16.mxu0 %v8292_v48 }
 0x419   : > { %v11129_v20 = vadd.f32 %v4747_v58, %v10860_v2  ;;  %v11132_v41 = vadd.f32 %v4660_v22, %v10860_v2  ;;  %v4749_v6 = vpop.f32.mrb[89].mxu1  ;;  %8301 = vmatprep.subr.bf16.mxu1 %v8300_v42  ;;  %8295 = vmatpush1.bf16.msra.mxu0 %v8294_v15 }
 0x41a   : > { %v4846_v29 = vand.u32 2147483647, %v11126_v25  ;;  %v11136_v9 = vadd.f32 %v4749_v6, %v10860_v2  ;;  %8303 = vmatpush1.bf16.msra.mxu1 %v8302_v61 }
 0x41b   : > { %v4848_v40 = vand.u32 2147483647, %v11129_v20  ;;  %v4847_v18 = vand.u32 2147483647, %v11132_v41  ;;  %v4664_v56 = vpop.f32.mrb[90].mxu0 }
 0x41c   : > { %v4910_v33 = vsub.f32 0.0, %v4846_v29  ;;  %v4849_v24 = vand.u32 2147483647, %v11136_v9  ;;  %v4753_v0 = vpop.f32.mrb[90].mxu1  ;;  %7418 = vmatmul.mubr.msk.f32.vlgmr.msra.gmra.mrb[100].mxu0 %vm2717_vm2, %v10960_v53  ;;  %v11144_v26 = vadd.f32 %v4664_v56, %v10875_v60  ;;  %v4666_v30 = vpop.f32.mrb[91].mxu0 }
 0x41d   : > { %v4912_v39 = vsub.f32 0.0, %v4848_v40  ;;  %v4911_v43 = vsub.f32 0.0, %v4847_v18  ;;  %v11147_v2 = vadd.f32 %v4753_v0, %v10875_v60  ;;  %v4755_v21 = vpop.f32.mrb[91].mxu1  ;;  %7419 = vmatmul.mubr.msk.f32.vlgmr.msra.gmra.mrb[100].mxu1 %vm2717_vm2, %v10960_v53  ;;  %v11152_v8 = vadd.f32 %v4666_v30, %v10875_v60  ;;  %5846 = vmatprep.mubr.f32.mxu0 %v9183_v3 }
 0x41e   : > { %v4986_v7 = vmul.f32 1.442695, %v4910_v33  ;;  %v4913_v46 = vsub.f32 0.0, %v4849_v24  ;;  %v11155_v55 = vadd.f32 %v4755_v21, %v10875_v60  ;;  %5917 = vmatprep.mubr.f32.mxu1 %v9183_v3  ;;  %v4862_v34 = vand.u32 2147483647, %v11144_v26 }
 0x41f   : > { %v4990_v10 = vmul.f32 1.442695, %v4912_v39  ;;  %v4988_v35 = vmul.f32 1.442695, %v4911_v43  ;;  %v4864_v53 = vand.u32 2147483647, %v11147_v2 }
 0x420   : > { %9036 = vpow2.f32 %v4986_v7  ;;  %v4992_v47 = vmul.f32 1.442695, %v4913_v46  ;;  %v4863_v14 = vand.u32 2147483647, %v11152_v8  ;;  %v4670_v23 = vpop.f32.mrb[92].mxu0  ;;  %v4759_v54 = vpop.f32.mrb[92].mxu1 }
 0x421   : > { %9038 = vpow2.f32 %v4990_v10  ;;  %v4926_v60 = vsub.f32 0.0, %v4862_v34  ;;  %v4928_v52 = vsub.f32 0.0, %v4864_v53  ;;  %v4865_v36 = vand.u32 2147483647, %v11155_v55  ;;  %v4672_v50 = vpop.f32.mrb[93].mxu0  ;;  %v4761_v11 = vpop.f32.mrb[93].mxu1 }
 0x422   : > { %9040 = vpow2.f32 %v4988_v35  ;;  %v4927_v3 = vsub.f32 0.0, %v4863_v14  ;;  %v11164_v19 = vadd.f32 %v4670_v23, %v10892_v44  ;;  %v11167_v38 = vadd.f32 %v4759_v54, %v10892_v44 }
 0x423   : > { %9042 = vpow2.f32 %v4992_v47  ;;  %v4676_v12 = vpop.f32.mrb[94].mxu0  ;;  %v5018_v45 = vmul.f32 1.442695, %v4926_v60  ;;  %v5022_v51 = vmul.f32 1.442695, %v4928_v52  ;;  %v4929_v4 = vsub.f32 0.0, %v4865_v36 }
 0x424   : > { %v11170_v59 = vadd.f32 %v4672_v50, %v10892_v44  ;;  %v4765_v57 = vpop.f32.mrb[94].mxu1  ;;  %v5020_v13 = vmul.f32 1.442695, %v4927_v3  ;;  %v4878_v15 = vand.u32 2147483647, %v11164_v19  ;;  %v4678_v28 = vpop.f32.mrb[95].mxu0  ;;  %v11176_v16 = vadd.f32 %v4761_v11, %v10892_v44 }
 0x425   : > { %9044 = vpow2.f32 %v5018_v45  ;;  %v5024_v62 = vmul.f32 1.442695, %v4929_v4  ;;  %v4880_v31 = vand.u32 2147483647, %v11167_v38  ;;  %v4767_v1 = vpop.f32.mrb[95].mxu1  ;;  %v11179_v17 = vadd.f32 %v4676_v12, %v10909_v27 }
 0x426   : > { %9046 = vpow2.f32 %v5022_v51  ;;  %v4942_v5 = vsub.f32 0.0, %v4878_v15  ;;  %v4879_v63 = vand.u32 2147483647, %v11170_v59  ;;  %v4881_v42 = vand.u32 2147483647, %v11176_v16 }
 0x427   : > { %9048 = vpow2.f32 %v5020_v13  ;;  %v4944_v32 = vsub.f32 0.0, %v4880_v31  ;;  %v11183_v58 = vadd.f32 %v4765_v57, %v10909_v27  ;;  %v4894_v44 = vand.u32 2147483647, %v11179_v17 }
 0x428   : > { %9050 = vpow2.f32 %v5024_v62  ;;  %v5050_v61 = vmul.f32 1.442695, %v4942_v5  ;;  %v4943_v37 = vsub.f32 0.0, %v4879_v63  ;;  %v4945_v18 = vsub.f32 0.0, %v4881_v42 }
 0x429   : > { %v5054_v49 = vmul.f32 1.442695, %v4944_v32  ;;  %v11187_v0 = vadd.f32 %v4678_v28, %v10909_v27  ;;  %v4896_v30 = vand.u32 2147483647, %v11183_v58  ;;  %v4958_v21 = vsub.f32 0.0, %v4894_v44 }
 0x42a   : > { %v9037_v48 = vpop.eup %9036  ;;  %9052 = vpow2.f32 %v5050_v61  ;;  %v5052_v56 = vmul.f32 1.442695, %v4943_v37  ;;  %v5056_v43 = vmul.f32 1.442695, %v4945_v18  ;;  %v11192_v10 = vadd.f32 %v4767_v1, %v10909_v27 }
 0x42b   : > { %v9039_v22 = vpop.eup %9038  ;;  %v5102_v6 = vadd.f32 1.0, %v9037_v48  ;;  %9054 = vpow2.f32 %v5054_v49  ;;  %v4895_v7 = vand.u32 2147483647, %v11187_v0  ;;  %v4960_v14 = vsub.f32 0.0, %v4896_v30 }
 0x42c   : > { %v9041_v29 = vpop.eup %9040  ;;  %v5104_v40 = vadd.f32 1.0, %v9039_v22  ;;  %v4897_v23 = vand.u32 2147483647, %v11192_v10  ;;  %v5082_v52 = vmul.f32 1.442695, %v4958_v21  ;;  %v4782_v31 = vmax.f32 %v11126_v25, 0.0 }
 0x42d   : > { %v9043_v33 = vpop.eup %9042  ;;  %9056 = vlog2.f32 %v5102_v6  ;;  %v5103_v24 = vadd.f32 1.0, %v9041_v29  ;;  %v4959_v36 = vsub.f32 0.0, %v4895_v7  ;;  %v5086_v12 = vmul.f32 1.442695, %v4960_v14 }
 0x42e   : > { %9058 = vlog2.f32 %v5104_v40  ;;  %v5105_v39 = vadd.f32 1.0, %v9043_v33  ;;  %v4961_v11 = vsub.f32 0.0, %v4897_v23  ;;  %v4784_v28 = vmax.f32 %v11129_v20, 0.0 }
 0x42f   : > { %9060 = vlog2.f32 %v5103_v24  ;;  %v9045_v46 = vpop.eup %9044  ;;  %v5084_v51 = vmul.f32 1.442695, %v4959_v36  ;;  %v4783_v32 = vmax.f32 %v11132_v41, 0.0  ;;  %v4785_v49 = vmax.f32 %v11136_v9, 0.0 }
 0x430   : > { %9062 = vlog2.f32 %v5105_v39  ;;  %v9047_v35 = vpop.eup %9046  ;;  %v5118_v47 = vadd.f32 1.0, %v9045_v46  ;;  %v5088_v57 = vmul.f32 1.442695, %v4961_v11  ;;  %v4798_v42 = vmax.f32 %v11144_v26, 0.0 }
 0x431   : > { %9064 = vpow2.f32 %v5052_v56  ;;  %v9049_v34 = vpop.eup %9048  ;;  %v5120_v53 = vadd.f32 1.0, %v9047_v35  ;;  %v4800_v22 = vmax.f32 %v11147_v2, 0.0  ;;  %v4799_v20 = vmax.f32 %v11152_v8, 0.0 }
 0x432   : > { %9066 = vpow2.f32 %v5056_v43  ;;  %v9051_v54 = vpop.eup %9050  ;;  %v5119_v60 = vadd.f32 1.0, %v9049_v34  ;;  %v4801_v29 = vmax.f32 %v11155_v55, 0.0 }
 0x433   : > { %9068 = vlog2.f32 %v5118_v47  ;;  %v5121_v50 = vadd.f32 1.0, %v9051_v54 }
 0x434   : > { %9070 = vlog2.f32 %v5120_v53  ;;  %v9053_v3 = vpop.eup %9052 }
 0x435   : > { %9072 = vlog2.f32 %v5119_v60  ;;  %v9055_v27 = vpop.eup %9054  ;;  %v5134_v5 = vadd.f32 1.0, %v9053_v3 }
 0x436   : > { %9074 = vlog2.f32 %v5121_v50  ;;  %v5136_v61 = vadd.f32 1.0, %v9055_v27 }
 0x437   : > { %v9057_v45 = vpop.eup %9056  ;;  %9076 = vpow2.f32 %v5082_v52 }
 0x438   : > { %v9059_v4 = vpop.eup %9058  ;;  %9078 = vpow2.f32 %v5086_v12  ;;  %v5179_v1 = vmul.f32 0.6931472, %v9057_v45 }
 0x439   : > { %v9061_v13 = vpop.eup %9060  ;;  %9080 = vpow2.f32 %v5084_v51  ;;  %v5183_v48 = vmul.f32 0.6931472, %v9059_v4  ;;  %v4814_v4 = vmax.f32 %v11164_v19, 0.0  ;;  %v4817_v19 = vmax.f32 %v11176_v16, 0.0  ;;  %v9173_v16 = vld [vmem:[%s11926_s7] sm:$0xff] }
 0x43a   : > { %v9063_v15 = vpop.eup %9062  ;;  %9082 = vpow2.f32 %v5088_v57  ;;  %v5181_v25 = vmul.f32 0.6931472, %v9061_v13  ;;  %v5294_v56 = vadd.f32 %v5179_v1, %v4782_v31  ;;  %v4830_v57 = vmax.f32 %v11179_v17, 0.0 }
 0x43b   : > { %v9065_v62 = vpop.eup %9064  ;;  %v5185_v18 = vmul.f32 0.6931472, %v9063_v15  ;;  %9084 = vlog2.f32 %v5134_v5  ;;  %v5296_v43 = vadd.f32 %v5183_v48, %v4784_v28  ;;  %v4816_v28 = vmax.f32 %v11167_v38, 0.0 }
 0x43c   : > { %v9067_v63 = vpop.eup %9066  ;;  %v5135_v33 = vadd.f32 1.0, %v9065_v62  ;;  %9086 = vlog2.f32 %v5136_v61  ;;  %v5295_v7 = vadd.f32 %v5181_v25, %v4783_v32  ;;  %v4815_v32 = vmax.f32 %v11170_v59, 0.0 }
 0x43d   : > { %v9069_v37 = vpop.eup %9068  ;;  %v5137_v21 = vadd.f32 1.0, %v9067_v63  ;;  %v5297_v55 = vadd.f32 %v5185_v18, %v4785_v49  ;;  %v4831_v17 = vmax.f32 %v11187_v0, 0.0  ;;  %v4833_v38 = vmax.f32 %v11192_v10, 0.0  ;;  %v11216_v0 = vpop.permute.xlu0 %5350 }
 0x43e   : > { %v9071_v6 = vpop.eup %9070  ;;  %v5211_v44 = vmul.f32 0.6931472, %v9069_v37  ;;  %9088 = vlog2.f32 %v5135_v33  ;;  %v4832_v37 = vmax.f32 %v11183_v58, 0.0 }
 0x43f   : > { %v9073_v40 = vpop.eup %9072  ;;  %v5215_v41 = vmul.f32 0.6931472, %v9071_v6 }
 0x440   : > { %v9075_v24 = vpop.eup %9074  ;;  %v5310_v39 = vadd.f32 %v5211_v44, %v4798_v42  ;;  %v5213_v9 = vmul.f32 0.6931472, %v9073_v40 }
 0x441   : > { %v9077_v26 = vpop.eup %9076  ;;  %v5312_v2 = vadd.f32 %v5215_v41, %v4800_v22  ;;  %v5217_v30 = vmul.f32 0.6931472, %v9075_v24 }
 0x442   : > { %v8306_v46 = vpack.c.bf16 %v5310_v39, %v5294_v56  ;;  %v5311_v8 = vadd.f32 %v5213_v9, %v4799_v20  ;;  %v5150_v35 = vadd.f32 1.0, %v9077_v26  ;;  %v9079_v53 = vpop.eup %9078 }
 0x443   : > { %v8314_v47 = vpack.c.bf16 %v5312_v2, %v5296_v43  ;;  %v5313_v34 = vadd.f32 %v5217_v30, %v4801_v29  ;;  %v9081_v23 = vpop.eup %9080  ;;  %v5152_v54 = vadd.f32 1.0, %v9079_v53 }
 0x444   : > { %9090 = vlog2.f32 %v5150_v35  ;;  %v8304_v14 = vpack.c.bf16 %v5311_v8, %v5295_v7  ;;  %v9083_v52 = vpop.eup %9082  ;;  %v5151_v36 = vadd.f32 1.0, %v9081_v23 }
 0x445   : > { %9092 = vlog2.f32 %v5137_v21  ;;  %v8312_v60 = vpack.c.bf16 %v5313_v34, %v5297_v55  ;;  %v5153_v50 = vadd.f32 1.0, %v9083_v52  ;;  %v9085_v11 = vpop.eup %9084 }
 0x446   : > { %8305 = vmatprep.subr.bf16.mxu0 %v8304_v14  ;;  %9094 = vlog2.f32 %v5152_v54  ;;  %v9087_v3 = vpop.eup %9086  ;;  %v5243_v12 = vmul.f32 0.6931472, %v9085_v11 }
 0x447   : > { %8313 = vmatprep.subr.bf16.mxu1 %v8312_v60  ;;  %8307 = vmatpush1.bf16.msra.mxu0 %v8306_v46  ;;  %9096 = vlog2.f32 %v5151_v36  ;;  %v5247_v15 = vmul.f32 0.6931472, %v9087_v3 }
 0x448   : > { %8315 = vmatpush1.bf16.msra.mxu1 %v8314_v47  ;;  %9098 = vlog2.f32 %v5153_v50  ;;  %v9089_v27 = vpop.eup %9088  ;;  %v5326_v31 = vadd.f32 %v5243_v12, %v4814_v4 }
 0x449   : > { %v5245_v5 = vmul.f32 0.6931472, %v9089_v27  ;;  %v5328_v6 = vadd.f32 %v5247_v15, %v4816_v28 }
 0x44b   : > { %v5327_v20 = vadd.f32 %v5245_v5, %v4815_v32 }
 0x44e   : > { %v9091_v45 = vpop.eup %9090 }
 0x44f   : > { %v9093_v51 = vpop.eup %9092  ;;  %v5275_v13 = vmul.f32 0.6931472, %v9091_v45 }
 0x450   : > { %v9095_v62 = vpop.eup %9094  ;;  %v5249_v61 = vmul.f32 0.6931472, %v9093_v51 }
 0x451   : > { %v5342_v63 = vadd.f32 %v5275_v13, %v4830_v57  ;;  %v9097_v1 = vpop.eup %9096  ;;  %v5279_v48 = vmul.f32 0.6931472, %v9095_v62 }
 0x452   : > { %v9099_v49 = vpop.eup %9098  ;;  %v5277_v22 = vmul.f32 0.6931472, %v9097_v1  ;;  %v5329_v40 = vadd.f32 %v5249_v61, %v4817_v19 }
 0x453   : > { %v8310_v42 = vpack.c.bf16 %v5342_v63, %v5326_v31  ;;  %v5344_v25 = vadd.f32 %v5279_v48, %v4832_v37  ;;  %v5281_v44 = vmul.f32 0.6931472, %v9099_v49 }
 0x454   : > { %v5343_v29 = vadd.f32 %v5277_v22, %v4831_v17 }
 0x455   : > { %v8318_v59 = vpack.c.bf16 %v5344_v25, %v5328_v6  ;;  %v5345_v18 = vadd.f32 %v5281_v44, %v4833_v38 }
 0x456   : > { %v8308_v41 = vpack.c.bf16 %v5343_v29, %v5327_v20 }
 0x457   : > { %v8316_v58 = vpack.c.bf16 %v5345_v18, %v5329_v40 }
 0x458   : > { %8309 = vmatprep.subr.bf16.mxu0 %v8308_v41 }
 0x459   : > { %8317 = vmatprep.subr.bf16.mxu1 %v8316_v58  ;;  %8311 = vmatpush1.bf16.msra.mxu0 %v8310_v42 }
 0x45a   : > { %8319 = vmatpush1.bf16.msra.mxu1 %v8318_v59 }
 0x45c   : > { %7420 = vmatmul.mubr.msk.f32.vlgmr.msra.gmra.mrb[102].mxu0 %vm2717_vm2, %v9173_v16 }
 0x45d   : > { %7421 = vmatmul.mubr.msk.f32.vlgmr.msra.gmra.mrb[102].mxu1 %vm2717_vm2, %v9173_v16 }
 0x46f   : > { %v5422_v10 = vpop.f32.mrb[96].mxu0 }
 0x470   : > { %v11219_v33 = vadd.f32 %v5422_v10, %v11216_v0  ;;  %v5493_v24 = vpop.f32.mrb[96].mxu1  ;;  %v5424_v56 = vpop.f32.mrb[97].mxu0 }
 0x471   : > { %v11222_v39 = vadd.f32 %v5493_v24, %v11216_v0  ;;  %v5495_v9 = vpop.f32.mrb[97].mxu1  ;;  %v11234_v52 = vadd.f32 %v5424_v56, %v11216_v0 }
 0x472   : > { %v5924_v26 = vrot.slane %v11219_v33, 4  ;;  %v11231_v60 = vadd.f32 %v5495_v9, %v11216_v0 }
 0x473   : > { %v5936_v43 = vrot.slane %v11222_v39, 4  ;;  %v5930_v11 = vrot.slane %v11234_v52, 4 }
 0x474   : > { %v5925_v2 = vmax.f32 %v11219_v33, %v5924_v26  ;;  %v5942_v36 = vrot.slane %v11231_v60, 4 }
 0x475   : > { %v5937_v30 = vmax.f32 %v11222_v39, %v5936_v43  ;;  %v5931_v4 = vmax.f32 %v11234_v52, %v5930_v11 }
 0x476   : > { %v5926_v21 = vrot.slane %v5925_v2, 2  ;;  %v5943_v45 = vmax.f32 %v11231_v60, %v5942_v36 }
 0x477   : > { %v5938_v7 = vrot.slane %v5937_v30, 2  ;;  %v5932_v28 = vrot.slane %v5931_v4, 2 }
 0x478   : > { %v5927_v46 = vmax.f32 %v5925_v2, %v5926_v21  ;;  %v5944_v62 = vrot.slane %v5943_v45, 2 }
 0x479   : > { %v5939_v8 = vmax.f32 %v5937_v30, %v5938_v7  ;;  %v5933_v48 = vmax.f32 %v5931_v4, %v5932_v28 }
 0x47a   : > { %v5928_v35 = vrot.slane %v5927_v46, 1  ;;  %v5945_v61 = vmax.f32 %v5943_v45, %v5944_v62 }
 0x47b   : > { %v5940_v55 = vrot.slane %v5939_v8, 1  ;;  %v5934_v19 = vrot.slane %v5933_v48, 1 }
 0x47c   : > { %v5929_v47 = vmax.f32 %v5927_v46, %v5928_v35  ;;  %v5946_v49 = vrot.slane %v5945_v61, 1 }
 0x47d   : > { %v5941_v34 = vmax.f32 %v5939_v8, %v5940_v55  ;;  %v5935_v17 = vmax.f32 %v5933_v48, %v5934_v19 }
 0x47e   : > { %v6020_v53 = vsub.f32 %v11219_v33, %v5929_v47  ;;  %v5947_v42 = vmax.f32 %v5945_v61, %v5946_v49 }
 0x47f   : > { %v6022_v14 = vsub.f32 %v11222_v39, %v5941_v34  ;;  %v6021_v44 = vsub.f32 %v11234_v52, %v5935_v17 }
 0x480   : > { %v6036_v23 = vmul.f32 1.442695, %v6020_v53  ;;  %v6023_v6 = vsub.f32 %v11231_v60, %v5947_v42 }
 0x481   : > { %v6040_v54 = vmul.f32 1.442695, %v6022_v14  ;;  %v6038_v41 = vmul.f32 1.442695, %v6021_v44 }
 0x482   : > { %9100 = vpow2.f32 %v6036_v23  ;;  %v6042_v59 = vmul.f32 1.442695, %v6023_v6 }
 0x483   : > { %9102 = vpow2.f32 %v6040_v54 }
 0x48c   : > { %v9101_v50 = vpop.eup %9100 }
 0x48d   : > { %v9103_v3 = vpop.eup %9102  ;;  %v6068_v27 = vrot.slane %v9101_v50, 4 }
 0x48e   : > { %v6080_v12 = vrot.slane %v9103_v3, 4 }
 0x48f   : > { %v6069_v51 = vadd.f32 %v9101_v50, %v6068_v27 }
 0x490   : > { %v6081_v57 = vadd.f32 %v9103_v3, %v6080_v12 }
 0x491   : > { %v6070_v13 = vrot.slane %v6069_v51, 2 }
 0x492   : > { %v6082_v15 = vrot.slane %v6081_v57, 2 }
 0x493   : > { %v6071_v31 = vadd.f32 %v6070_v13, %v6069_v51 }
 0x494   : > { %v6083_v5 = vadd.f32 %v6082_v15, %v6081_v57 }
 0x495   : > { %v6072_v63 = vrot.slane %v6071_v31, 1 }
 0x496   : > { %v6084_v1 = vrot.slane %v6083_v5, 1 }
 0x497   : > { %v6073_v32 = vadd.f32 %v6072_v63, %v6071_v31 }
 0x498   : > { %v6085_v37 = vadd.f32 %v6084_v1, %v6083_v5 }
 0x499   : > { %9104 = vlog2.f32 %v6073_v32 }
 0x49a   : > { %9106 = vlog2.f32 %v6085_v37 }
 0x49b   : > { %9108 = vpow2.f32 %v6042_v59 }
 0x49c   : > { %9110 = vpow2.f32 %v6038_v41 }
 0x4a3   : > { %v9105_v22 = vpop.eup %9104 }
 0x4a4   : > { %v9107_v25 = vpop.eup %9106  ;;  %v6165_v38 = vmul.f32 0.6931472, %v9105_v22 }
 0x4a5   : > { %v6169_v20 = vmul.f32 0.6931472, %v9107_v25  ;;  %v9109_v9 = vpop.eup %9108 }
 0x4a6   : > { %v6196_v29 = vadd.f32 %v6165_v38, %v5929_v47  ;;  %v9111_v26 = vpop.eup %9110  ;;  %v6086_v43 = vrot.slane %v9109_v9, 4 }
 0x4a7   : > { %v6198_v40 = vadd.f32 %v6169_v20, %v5941_v34  ;;  %v6074_v2 = vrot.slane %v9111_v26, 4 }
 0x4a8   : > { %v6212_v18 = vsub.f32 %v11219_v33, %v6196_v29  ;;  %v6087_v30 = vadd.f32 %v9109_v9, %v6086_v43 }
 0x4a9   : > { %v6214_v58 = vsub.f32 %v11222_v39, %v6198_v40  ;;  %v6075_v21 = vadd.f32 %v9111_v26, %v6074_v2 }
 0x4aa   : > { %6228 = vxpose.xlu1.b32.start.end [1/1] (short) %v6212_v18, 128  ;;  %v6088_v7 = vrot.slane %v6087_v30, 2 }
 0x4ab   : > { %6292 = vxpose.xlu0.b32.start.end [1/1] (short) %v6214_v58, 128  ;;  %v6076_v33 = vrot.slane %v6075_v21, 2 }
 0x4ac   : > { %v6089_v39 = vadd.f32 %v6088_v7, %v6087_v30 }
 0x4ad   : > { %v6077_v35 = vadd.f32 %v6076_v33, %v6075_v21 }
 0x4ae   : > { %v6090_v47 = vrot.slane %v6089_v39, 1 }
 0x4af   : > { %v5564_v16 = vpop.f32.mrb[98].mxu0  ;;  %v6078_v53 = vrot.slane %v6077_v35, 1 }
 0x4b0   : > { %v11244_v10 = vpop.f32.mrb[98].mxu1  ;;  %v5566_v24 = vpop.f32.mrb[99].mxu0  ;;  %v11250_v8 = vadd.f32 %v5564_v16, %v11216_v0  ;;  %v6091_v23 = vadd.f32 %v6090_v47, %v6089_v39 }
 0x4b1   : > { %v5637_v56 = vpop.f32.mrb[99].mxu1  ;;  %v11247_v46 = vadd.f32 %v5566_v24, %v11216_v0  ;;  %v6079_v36 = vadd.f32 %v6078_v53, %v6077_v35  ;;  %v11273_v59 = vadd.f32 %v11244_v10, %v11216_v0 }
 0x4b2   : > { %v5948_v34 = vrot.slane %v11250_v8, 4  ;;  %9112 = vlog2.f32 %v6091_v23  ;;  %v11269_v29 = vadd.f32 %v5637_v56, %v11216_v0 }
 0x4b3   : > { %v5954_v55 = vrot.slane %v11247_v46, 4  ;;  %9114 = vlog2.f32 %v6079_v36  ;;  %v5960_v16 = vrot.slane %v11273_v59, 4 }
 0x4b4   : > { %v5949_v54 = vmax.f32 %v11250_v8, %v5948_v34  ;;  %v5966_v41 = vrot.slane %v11269_v29, 4 }
 0x4b5   : > { %v5955_v14 = vmax.f32 %v11247_v46, %v5954_v55  ;;  %v5961_v43 = vmax.f32 %v11273_v59, %v5960_v16 }
 0x4b6   : > { %v5950_v11 = vrot.slane %v5949_v54, 2  ;;  %v5967_v9 = vmax.f32 %v11269_v29, %v5966_v41 }
 0x4b7   : > { %v5956_v50 = vrot.slane %v5955_v14, 2  ;;  %v5962_v2 = vrot.slane %v5961_v43, 2 }
 0x4b8   : > { %v5951_v27 = vmax.f32 %v5949_v54, %v5950_v11  ;;  %v5968_v56 = vrot.slane %v5967_v9, 2 }
 0x4b9   : > { %v5957_v3 = vmax.f32 %v5955_v14, %v5956_v50  ;;  %v5963_v21 = vmax.f32 %v5961_v43, %v5962_v2 }
 0x4ba   : > { %v5952_v45 = vrot.slane %v5951_v27, 1  ;;  %v5969_v30 = vmax.f32 %v5967_v9, %v5968_v56 }
 0x4bb   : > { %v5958_v12 = vrot.slane %v5957_v3, 1  ;;  %v5964_v33 = vrot.slane %v5963_v21, 1 }
 0x4bc   : > { %v9113_v51 = vpop.eup %9112  ;;  %v5953_v13 = vmax.f32 %v5951_v27, %v5952_v45  ;;  %v5970_v10 = vrot.slane %v5969_v30, 1 }
 0x4bd   : > { %v9115_v4 = vpop.eup %9114  ;;  %v5959_v57 = vmax.f32 %v5957_v3, %v5958_v12  ;;  %v6171_v15 = vmul.f32 0.6931472, %v9113_v51  ;;  %v11281_v47 = vmax.f32 %v5963_v21, %v5964_v33 }
 0x4be   : > { %v6167_v62 = vmul.f32 0.6931472, %v9115_v4  ;;  %v6024_v28 = vsub.f32 %v11250_v8, %v5953_v13  ;;  %v11279_v35 = vmax.f32 %v5969_v30, %v5970_v10 }
 0x4bf   : > { %v6025_v31 = vsub.f32 %v11247_v46, %v5959_v57  ;;  %v6199_v5 = vadd.f32 %v6171_v15, %v5947_v42  ;;  %v6026_v23 = vsub.f32 %v11273_v59, %v11281_v47 }
 0x4c0   : > { %v6197_v63 = vadd.f32 %v6167_v62, %v5935_v17  ;;  %v6044_v32 = vmul.f32 1.442695, %v6024_v28  ;;  %v6027_v53 = vsub.f32 %v11269_v29, %v11279_v35 }
 0x4c1   : > { %v6046_v1 = vmul.f32 1.442695, %v6025_v31  ;;  %v6215_v61 = vsub.f32 %v11231_v60, %v6199_v5  ;;  %v6048_v11 = vmul.f32 1.442695, %v6026_v23 }
 0x4c2   : > { %v6213_v37 = vsub.f32 %v11234_v52, %v6197_v63  ;;  %v6050_v36 = vmul.f32 1.442695, %v6027_v53 }
 0x4c3   : > { %9116 = vpow2.f32 %v6046_v1 }
 0x4c4   : > { %9118 = vpow2.f32 %v6044_v32 }
 0x4cd   : > { %v9117_v42 = vpop.eup %9116 }
 0x4ce   : > { %v9119_v17 = vpop.eup %9118  ;;  %v6098_v6 = vrot.slane %v9117_v42, 4 }
 0x4cf   : > { %v6092_v25 = vrot.slane %v9119_v17, 4 }
 0x4d0   : > { %v6099_v38 = vadd.f32 %v9117_v42, %v6098_v6 }
 0x4d1   : > { %v6093_v60 = vadd.f32 %v9119_v17, %v6092_v25 }
 0x4d2   : > { %v6100_v44 = vrot.slane %v6099_v38, 2 }
 0x4d3   : > { %v6094_v52 = vrot.slane %v6093_v60, 2 }
 0x4d4   : > { %v6101_v20 = vadd.f32 %v6100_v44, %v6099_v38 }
 0x4d5   : > { %v6095_v40 = vadd.f32 %v6094_v52, %v6093_v60 }
 0x4d6   : > { %v6102_v18 = vrot.slane %v6101_v20, 1 }
 0x4d7   : > { %v6096_v58 = vrot.slane %v6095_v40, 1 }
 0x4d8   : > { %v6103_v24 = vadd.f32 %v6102_v18, %v6101_v20 }
 0x4d9   : > { %v6097_v26 = vadd.f32 %v6096_v58, %v6095_v40 }
 0x4da   : > { %9120 = vlog2.f32 %v6103_v24 }
 0x4db   : > { %9122 = vlog2.f32 %v6097_v26 }
 0x4dc   : > { %9124 = vpow2.f32 %v6050_v36 }
 0x4dd   : > { %9126 = vpow2.f32 %v6048_v11 }
 0x4e4   : > { %v9121_v7 = vpop.eup %9120 }
 0x4e5   : > { %v9123_v39 = vpop.eup %9122  ;;  %v6175_v55 = vmul.f32 0.6931472, %v9121_v7 }
 0x4e6   : > { %v6173_v34 = vmul.f32 0.6931472, %v9123_v39  ;;  %v9125_v51 = vpop.eup %9124 }
 0x4e7   : > { %6324 = vxpose.xlu1.b32.start.end [1/1] (short) %v6215_v61, 128  ;;  %v6201_v14 = vadd.f32 %v6175_v55, %v5959_v57  ;;  %v6110_v31 = vrot.slane %v9125_v51, 4 }
 0x4e8   : > { %6260 = vxpose.xlu0.b32.start.end [1/1] (short) %v6213_v37, 128  ;;  %v6200_v54 = vadd.f32 %v6173_v34, %v5953_v13  ;;  %v9127_v13 = vpop.eup %9126 }
 0x4e9   : > { %v6217_v50 = vsub.f32 %v11247_v46, %v6201_v14  ;;  %v6104_v5 = vrot.slane %v9127_v13, 4  ;;  %v6111_v32 = vadd.f32 %v9125_v51, %v6110_v31 }
 0x4ea   : > { %v6216_v3 = vsub.f32 %v11250_v8, %v6200_v54 }
 0x4eb   : > { %v6105_v61 = vadd.f32 %v9127_v13, %v6104_v5  ;;  %v6112_v17 = vrot.slane %v6111_v32, 2 }
 0x4ed   : > { %v6106_v6 = vrot.slane %v6105_v61, 2  ;;  %v6113_v60 = vadd.f32 %v6112_v17, %v6111_v32 }
 0x4ef   : > { %v11260_v48 = vpop.f32.mrb[100].mxu0  ;;  %v6107_v44 = vadd.f32 %v6106_v6, %v6105_v61  ;;  %v6114_v41 = vrot.slane %v6113_v60, 1 }
 0x4f0   : > { %v11262_v49 = vpop.f32.mrb[100].mxu1  ;;  %v11264_v19 = vpop.f32.mrb[101].mxu0  ;;  %v11334_v40 = vadd.f32 %v11260_v48, %v11216_v0 }
 0x4f1   : > { %v11266_v22 = vpop.f32.mrb[101].mxu1  ;;  %v11330_v52 = vadd.f32 %v11264_v19, %v11216_v0  ;;  %v6108_v58 = vrot.slane %v6107_v44, 1  ;;  %v6115_v48 = vadd.f32 %v6114_v41, %v6113_v60 }
 0x4f2   : > { %v5972_v19 = vrot.slane %v11334_v40, 4 }
 0x4f3   : > { %v5978_v16 = vrot.slane %v11330_v52, 4  ;;  %v6109_v26 = vadd.f32 %v6108_v58, %v6107_v44  ;;  %9128 = vlog2.f32 %v6115_v48 }
 0x4f4   : > { %v5973_v2 = vmax.f32 %v11334_v40, %v5972_v19 }
 0x4f5   : > { %v5979_v43 = vmax.f32 %v11330_v52, %v5978_v16  ;;  %9130 = vlog2.f32 %v6109_v26 }
 0x4f6   : > { %v5974_v7 = vrot.slane %v5973_v2, 2 }
 0x4f7   : > { %v5980_v21 = vrot.slane %v5979_v43, 2 }
 0x4f8   : > { %v5975_v34 = vmax.f32 %v5973_v2, %v5974_v7 }
 0x4f9   : > { %v5981_v39 = vmax.f32 %v5979_v43, %v5980_v21 }
 0x4fb   : > { %v5982_v54 = vrot.slane %v5981_v39, 1 }
 0x4fd   : > { %v9129_v14 = vpop.eup %9128 }
 0x4ff   : > { %v9131_v23 = vpop.eup %9130 }
 0x524   : > { %6388 = vxpose.xlu1.b32.start.end [1/1] (short) %v6217_v50, 128  ;;  %v5976_v50 = vrot.slane %v5975_v34, 1 }
 0x525   : > { %6356 = vxpose.xlu0.b32.start.end [1/1] (short) %v6216_v3, 128  ;;  %v6179_v3 = vmul.f32 0.6931472, %v9129_v14 }
 0x527   : > { %v6203_v13 = vadd.f32 %v6179_v3, %v11279_v35 }
 0x529   : > { %v6219_v35 = vsub.f32 %v11269_v29, %v6203_v13 }
 0x52a   : > { %v6244_v27 = vpop.trf.xlu1 }
 0x52b   : > { %v6308_v46 = vpop.trf.xlu0  ;;  %6741 = vst.msk [vmem:[%s11294_s18] sm:$0xff] %vm6740_vm3, %v6244_v27  ;;  %v6177_v27 = vmul.f32 0.6931472, %v9131_v23 }
 0x52c   : > { %6773 = vst.msk [vmem:[%s11294_s18 + $0x100] sm:$0xff] %vm6740_vm3, %v6308_v46  ;;  %v11364_v46 = vmax.f32 %v5981_v39, %v5982_v54 }
 0x52e   : > { %v6245_v8 = vpop.trf.xlu1  ;;  %v6029_v31 = vsub.f32 %v11330_v52, %v11364_v46 }
 0x52f   : > { %v6309_v12 = vpop.trf.xlu0  ;;  %6742 = vst.msk [vmem:[%s11294_s18 + $0x8] sm:$0xff] %vm6740_vm3, %v6245_v8  ;;  %v11302_v45 = vpop.f32.mrb[102].mxu0 }
 0x530   : > { %6774 = vst.msk [vmem:[%s11294_s18 + $0x108] sm:$0xff] %vm6740_vm3, %v6309_v12  ;;  %v11306_v4 = vpop.f32.mrb[102].mxu1  ;;  %v11308_v57 = vpop.f32.mrb[103].mxu0  ;;  %v11366_v12 = vmax.f32 %v5975_v34, %v5976_v50 }
 0x531   : > { %v11310_v15 = vpop.f32.mrb[103].mxu1 }
 0x532   : > { %v6246_v62 = vpop.trf.xlu1  ;;  %v6028_v5 = vsub.f32 %v11334_v40, %v11366_v12 }
 0x533   : > { %v6310_v28 = vpop.trf.xlu0  ;;  %6743 = vst.msk [vmem:[%s11294_s18 + $0x10] sm:$0xff] %vm6740_vm3, %v6246_v62  ;;  %v6202_v62 = vadd.f32 %v6177_v27, %v11281_v47  ;;  %v6054_v47 = vmul.f32 1.442695, %v6029_v31 }
 0x534   : > { %6775 = vst.msk [vmem:[%s11294_s18 + $0x110] sm:$0xff] %vm6740_vm3, %v6310_v28  ;;  %v6052_v61 = vmul.f32 1.442695, %v6028_v5 }
 0x535   : > { %9132 = vpow2.f32 %v6054_v47 }
 0x536   : > { %v6247_v63 = vpop.trf.xlu1  ;;  %9134 = vpow2.f32 %v6052_v61 }
 0x537   : > { %v6311_v1 = vpop.trf.xlu0  ;;  %6744 = vst.msk [vmem:[%s11294_s18 + $0x18] sm:$0xff] %vm6740_vm3, %v6247_v63 }
 0x538   : > { %6776 = vst.msk [vmem:[%s11294_s18 + $0x118] sm:$0xff] %vm6740_vm3, %v6311_v1  ;;  %v6218_v1 = vsub.f32 %v11273_v59, %v6202_v62 }
 0x53a   : > { %v6248_v37 = vpop.trf.xlu1 }
 0x53b   : > { %v6312_v42 = vpop.trf.xlu0  ;;  %6745 = vst.msk [vmem:[%s11294_s18 + $0x20] sm:$0xff] %vm6740_vm3, %v6248_v37 }
 0x53c   : > { %6777 = vst.msk [vmem:[%s11294_s18 + $0x120] sm:$0xff] %vm6740_vm3, %v6312_v42 }
 0x53e   : > { %v6249_v25 = vpop.trf.xlu1 }
 0x53f   : > { %v6313_v38 = vpop.trf.xlu0  ;;  %6746 = vst.msk [vmem:[%s11294_s18 + $0x28] sm:$0xff] %vm6740_vm3, %v6249_v25 }
 0x540   : > { %6778 = vst.msk [vmem:[%s11294_s18 + $0x128] sm:$0xff] %vm6740_vm3, %v6313_v38  ;;  %v9133_v38 = vpop.eup %9132 }
 0x541   : > { %v9135_v60 = vpop.eup %9134 }
 0x542   : > { %v6250_v20 = vpop.trf.xlu1  ;;  %v6116_v41 = vrot.slane %v9135_v60, 4 }
 0x543   : > { %v6314_v18 = vpop.trf.xlu0  ;;  %6747 = vst.msk [vmem:[%s11294_s18 + $0x30] sm:$0xff] %vm6740_vm3, %v6250_v20  ;;  %v6122_v20 = vrot.slane %v9133_v38, 4 }
 0x544   : > { %6779 = vst.msk [vmem:[%s11294_s18 + $0x130] sm:$0xff] %vm6740_vm3, %v6314_v18  ;;  %v6117_v19 = vadd.f32 %v9135_v60, %v6116_v41 }
 0x546   : > { %v6251_v24 = vpop.trf.xlu1  ;;  %v6118_v43 = vrot.slane %v6117_v19, 2 }
 0x547   : > { %v6315_v9 = vpop.trf.xlu0  ;;  %6748 = vst.msk [vmem:[%s11294_s18 + $0x38] sm:$0xff] %vm6740_vm3, %v6251_v24  ;;  %v6123_v24 = vadd.f32 %v9133_v38, %v6122_v20 }
 0x548   : > { %6780 = vst.msk [vmem:[%s11294_s18 + $0x138] sm:$0xff] %vm6740_vm3, %v6315_v9  ;;  %v6119_v21 = vadd.f32 %v6118_v43, %v6117_v19 }
 0x549   : > { %v6124_v26 = vrot.slane %v6123_v24, 2 }
 0x54a   : > { %v6252_v56 = vpop.trf.xlu1  ;;  %v6120_v34 = vrot.slane %v6119_v21, 1 }
 0x54b   : > { %v6316_v30 = vpop.trf.xlu0  ;;  %6749 = vst.msk [vmem:[%s11294_s18 + $0x40] sm:$0xff] %vm6740_vm3, %v6252_v56 }
 0x54c   : > { %6781 = vst.msk [vmem:[%s11294_s18 + $0x140] sm:$0xff] %vm6740_vm3, %v6316_v30  ;;  %v6125_v30 = vadd.f32 %v6124_v26, %v6123_v24  ;;  %v6121_v54 = vadd.f32 %v6120_v34, %v6119_v21 }
 0x54e   : > { %v6253_v10 = vpop.trf.xlu1 }
 0x54f   : > { %v6317_v33 = vpop.trf.xlu0  ;;  %6750 = vst.msk [vmem:[%s11294_s18 + $0x48] sm:$0xff] %vm6740_vm3, %v6253_v10  ;;  %v11418_v10 = vadd.f32 %v11266_v22, %v11216_v0 }
 0x550   : > { %6782 = vst.msk [vmem:[%s11294_s18 + $0x148] sm:$0xff] %vm6740_vm3, %v6317_v33  ;;  %v11422_v33 = vadd.f32 %v11262_v49, %v11216_v0 }
 0x552   : > { %v6254_v55 = vpop.trf.xlu1  ;;  %v5984_v22 = vrot.slane %v11422_v33, 4 }
 0x553   : > { %v6318_v53 = vpop.trf.xlu0  ;;  %6751 = vst.msk [vmem:[%s11294_s18 + $0x50] sm:$0xff] %vm6740_vm3, %v6254_v55  ;;  %v6126_v55 = vrot.slane %v6125_v30, 1 }
 0x554   : > { %6783 = vst.msk [vmem:[%s11294_s18 + $0x150] sm:$0xff] %vm6740_vm3, %v6318_v53  ;;  %v5990_v53 = vrot.slane %v11418_v10, 4 }
 0x555   : > { %v6127_v49 = vadd.f32 %v6126_v55, %v6125_v30 }
 0x556   : > { %v6255_v36 = vpop.trf.xlu1 }
 0x557   : > { %v6319_v11 = vpop.trf.xlu0  ;;  %6752 = vst.msk [vmem:[%s11294_s18 + $0x58] sm:$0xff] %vm6740_vm3, %v6255_v36  ;;  %v5991_v36 = vmax.f32 %v11418_v10, %v5990_v53  ;;  %9136 = vlog2.f32 %v6127_v49 }
 0x558   : > { %6784 = vst.msk [vmem:[%s11294_s18 + $0x158] sm:$0xff] %vm6740_vm3, %v6319_v11  ;;  %v5985_v11 = vmax.f32 %v11422_v33, %v5984_v22  ;;  %9138 = vlog2.f32 %v6121_v54 }
 0x559   : > { %v5992_v27 = vrot.slane %v5991_v36, 2 }
 0x55a   : > { %v6256_v8 = vpop.trf.xlu1 }
 0x55b   : > { %v6320_v51 = vpop.trf.xlu0  ;;  %6753 = vst.msk [vmem:[%s11294_s18 + $0x60] sm:$0xff] %vm6740_vm3, %v6256_v8  ;;  %v5993_v62 = vmax.f32 %v5991_v36, %v5992_v27 }
 0x55c   : > { %6785 = vst.msk [vmem:[%s11294_s18 + $0x160] sm:$0xff] %vm6740_vm3, %v6320_v51  ;;  %v5986_v51 = vrot.slane %v5985_v11, 2 }
 0x55e   : > { %v6257_v28 = vpop.trf.xlu1 }
 0x55f   : > { %v6321_v63 = vpop.trf.xlu0  ;;  %6754 = vst.msk [vmem:[%s11294_s18 + $0x68] sm:$0xff] %vm6740_vm3, %v6257_v28  ;;  %v5987_v28 = vmax.f32 %v5985_v11, %v5986_v51 }
 0x560   : > { %6786 = vst.msk [vmem:[%s11294_s18 + $0x168] sm:$0xff] %vm6740_vm3, %v6321_v63 }
 0x561   : > { %v9137_v63 = vpop.eup %9136 }
 0x562   : > { %v6258_v32 = vpop.trf.xlu1  ;;  %6452 = vxpose.xlu1.b32.start.end [1/1] (short) %v6219_v35, 128  ;;  %v9139_v35 = vpop.eup %9138 }
 0x563   : > { %v6322_v37 = vpop.trf.xlu0  ;;  %6420 = vxpose.xlu0.b32.start.end [1/1] (short) %v6218_v1, 128  ;;  %6755 = vst.msk [vmem:[%s11294_s18 + $0x70] sm:$0xff] %vm6740_vm3, %v6258_v32  ;;  %v5994_v1 = vrot.slane %v5993_v62, 1  ;;  %v5988_v32 = vrot.slane %v5987_v28, 1 }
 0x564   : > { %6787 = vst.msk [vmem:[%s11294_s18 + $0x170] sm:$0xff] %vm6740_vm3, %v6322_v37  ;;  %v6183_v37 = vmul.f32 0.6931472, %v9137_v63 }
 0x566   : > { %v6259_v42 = vpop.trf.xlu1 }
 0x567   : > { %v6323_v29 = vpop.trf.xlu0  ;;  %6756 = vst.msk [vmem:[%s11294_s18 + $0x78] sm:$0xff] %vm6740_vm3, %v6259_v42  ;;  %v6181_v42 = vmul.f32 0.6931472, %v9139_v35 }
 0x568   : > { %6788 = vst.msk [vmem:[%s11294_s18 + $0x178] sm:$0xff] %vm6740_vm3, %v6323_v29  ;;  %v11452_v29 = vmax.f32 %v5993_v62, %v5994_v1 }
 0x569   : > { %v6204_v38 = vadd.f32 %v6181_v42, %v11366_v12 }
 0x56a   : > { %v6340_v59 = vpop.trf.xlu1  ;;  %v6031_v60 = vsub.f32 %v11418_v10, %v11452_v29 }
 0x56b   : > { %v6276_v17 = vpop.trf.xlu0  ;;  %6789 = vst.msk [vmem:[%s11294_s18 + $0x180] sm:$0xff] %vm6740_vm3, %v6340_v59  ;;  %v6220_v41 = vsub.f32 %v11334_v40, %v6204_v38 }
 0x56c   : > { %6757 = vst.msk [vmem:[%s11294_s18 + $0x80] sm:$0xff] %vm6740_vm3, %v6276_v17  ;;  %v11454_v17 = vmax.f32 %v5987_v28, %v5988_v32  ;;  %v6058_v12 = vmul.f32 1.442695, %v6031_v60 }
 0x56e   : > { %v6341_v6 = vpop.trf.xlu1  ;;  %v6030_v20 = vsub.f32 %v11422_v33, %v11454_v17  ;;  %9140 = vpow2.f32 %v6058_v12 }
 0x56f   : > { %v6277_v25 = vpop.trf.xlu0  ;;  %6790 = vst.msk [vmem:[%s11294_s18 + $0x188] sm:$0xff] %vm6740_vm3, %v6341_v6 }
 0x570   : > { %6758 = vst.msk [vmem:[%s11294_s18 + $0x88] sm:$0xff] %vm6740_vm3, %v6277_v25  ;;  %v6205_v25 = vadd.f32 %v6183_v37, %v11364_v46 }
 0x572   : > { %v6342_v44 = vpop.trf.xlu1  ;;  %v6221_v46 = vsub.f32 %v11330_v52, %v6205_v25 }
 0x573   : > { %v6278_v18 = vpop.trf.xlu0  ;;  %6791 = vst.msk [vmem:[%s11294_s18 + $0x190] sm:$0xff] %vm6740_vm3, %v6342_v44 }
 0x574   : > { %6759 = vst.msk [vmem:[%s11294_s18 + $0x90] sm:$0xff] %vm6740_vm3, %v6278_v18 }
 0x576   : > { %v6343_v58 = vpop.trf.xlu1 }
 0x577   : > { %v6279_v16 = vpop.trf.xlu0  ;;  %6792 = vst.msk [vmem:[%s11294_s18 + $0x198] sm:$0xff] %vm6740_vm3, %v6343_v58 }
 0x578   : > { %6760 = vst.msk [vmem:[%s11294_s18 + $0x98] sm:$0xff] %vm6740_vm3, %v6279_v16  ;;  %v6056_v16 = vmul.f32 1.442695, %v6030_v20  ;;  %v9141_v43 = vpop.eup %9140 }
 0x579   : > { %v6134_v30 = vrot.slane %v9141_v43, 4 }
 0x57a   : > { %v6344_v9 = vpop.trf.xlu1  ;;  %9142 = vpow2.f32 %v6056_v16 }
 0x57b   : > { %v6280_v48 = vpop.trf.xlu0  ;;  %6793 = vst.msk [vmem:[%s11294_s18 + $0x1a0] sm:$0xff] %vm6740_vm3, %v6344_v9  ;;  %v6135_v34 = vadd.f32 %v9141_v43, %v6134_v30 }
 0x57c   : > { %6761 = vst.msk [vmem:[%s11294_s18 + $0xa0] sm:$0xff] %vm6740_vm3, %v6280_v48 }
 0x57e   : > { %v6345_v56 = vpop.trf.xlu1 }
 0x57f   : > { %v6281_v2 = vpop.trf.xlu0  ;;  %6794 = vst.msk [vmem:[%s11294_s18 + $0x1a8] sm:$0xff] %vm6740_vm3, %v6345_v56 }
 0x580   : > { %6762 = vst.msk [vmem:[%s11294_s18 + $0xa8] sm:$0xff] %vm6740_vm3, %v6281_v2 }
 0x582   : > { %v6346_v7 = vpop.trf.xlu1 }
 0x583   : > { %v6282_v39 = vpop.trf.xlu0  ;;  %6795 = vst.msk [vmem:[%s11294_s18 + $0x1b0] sm:$0xff] %vm6740_vm3, %v6346_v7 }
 0x584   : > { %6763 = vst.msk [vmem:[%s11294_s18 + $0xb0] sm:$0xff] %vm6740_vm3, %v6282_v39  ;;  %v9143_v56 = vpop.eup %9142 }
 0x585   : > { %v6128_v7 = vrot.slane %v9143_v56, 4 }
 0x586   : > { %v6347_v14 = vpop.trf.xlu1 }
 0x587   : > { %v6283_v23 = vpop.trf.xlu0  ;;  %6796 = vst.msk [vmem:[%s11294_s18 + $0x1b8] sm:$0xff] %vm6740_vm3, %v6347_v14  ;;  %v6129_v53 = vadd.f32 %v9143_v56, %v6128_v7 }
 0x588   : > { %6764 = vst.msk [vmem:[%s11294_s18 + $0xb8] sm:$0xff] %vm6740_vm3, %v6283_v23  ;;  %v6136_v23 = vrot.slane %v6135_v34, 2 }
 0x589   : > { %v6130_v49 = vrot.slane %v6129_v53, 2 }
 0x58a   : > { %v6348_v50 = vpop.trf.xlu1 }
 0x58b   : > { %v6284_v3 = vpop.trf.xlu0  ;;  %6797 = vst.msk [vmem:[%s11294_s18 + $0x1c0] sm:$0xff] %vm6740_vm3, %v6348_v50  ;;  %v6137_v50 = vadd.f32 %v6136_v23, %v6135_v34  ;;  %v6131_v11 = vadd.f32 %v6130_v49, %v6129_v53 }
 0x58c   : > { %6765 = vst.msk [vmem:[%s11294_s18 + $0xc0] sm:$0xff] %vm6740_vm3, %v6284_v3  ;;  %v11506_v3 = vadd.f32 %v11308_v57, %v11216_v0 }
 0x58d   : > { %v6132_v62 = vrot.slane %v6131_v11, 1 }
 0x58e   : > { %v6349_v8 = vpop.trf.xlu1 }
 0x58f   : > { %v6285_v13 = vpop.trf.xlu0  ;;  %6798 = vst.msk [vmem:[%s11294_s18 + $0x1c8] sm:$0xff] %vm6740_vm3, %v6349_v8  ;;  %v11510_v8 = vadd.f32 %v11302_v45, %v11216_v0  ;;  %v6133_v63 = vadd.f32 %v6132_v62, %v6131_v11 }
 0x590   : > { %6766 = vst.msk [vmem:[%s11294_s18 + $0xc8] sm:$0xff] %vm6740_vm3, %v6285_v13  ;;  %v6138_v13 = vrot.slane %v6137_v50, 1 }
 0x591   : > { %v5996_v57 = vrot.slane %v11510_v8, 4 }
 0x592   : > { %v6350_v31 = vpop.trf.xlu1  ;;  %v6139_v45 = vadd.f32 %v6138_v13, %v6137_v50 }
 0x593   : > { %v6286_v5 = vpop.trf.xlu0  ;;  %6799 = vst.msk [vmem:[%s11294_s18 + $0x1d0] sm:$0xff] %vm6740_vm3, %v6350_v31  ;;  %v6002_v31 = vrot.slane %v11506_v3, 4 }
 0x594   : > { %6767 = vst.msk [vmem:[%s11294_s18 + $0xd0] sm:$0xff] %vm6740_vm3, %v6286_v5  ;;  %9144 = vlog2.f32 %v6139_v45 }
 0x595   : > { %v6003_v35 = vmax.f32 %v11506_v3, %v6002_v31  ;;  %9146 = vlog2.f32 %v6133_v63 }
 0x596   : > { %v6351_v47 = vpop.trf.xlu1 }
 0x597   : > { %v6287_v61 = vpop.trf.xlu0  ;;  %6800 = vst.msk [vmem:[%s11294_s18 + $0x1d8] sm:$0xff] %vm6740_vm3, %v6351_v47  ;;  %v5997_v47 = vmax.f32 %v11510_v8, %v5996_v57 }
 0x598   : > { %6768 = vst.msk [vmem:[%s11294_s18 + $0xd8] sm:$0xff] %vm6740_vm3, %v6287_v61  ;;  %v6004_v61 = vrot.slane %v6003_v35, 2 }
 0x599   : > { %v5998_v42 = vrot.slane %v5997_v47, 2 }
 0x59a   : > { %v6352_v59 = vpop.trf.xlu1 }
 0x59b   : > { %v6288_v6 = vpop.trf.xlu0  ;;  %6801 = vst.msk [vmem:[%s11294_s18 + $0x1e0] sm:$0xff] %vm6740_vm3, %v6352_v59  ;;  %v5999_v38 = vmax.f32 %v5997_v47, %v5998_v42 }
 0x59c   : > { %6769 = vst.msk [vmem:[%s11294_s18 + $0xe0] sm:$0xff] %vm6740_vm3, %v6288_v6  ;;  %v6005_v6 = vmax.f32 %v6003_v35, %v6004_v61 }
 0x59e   : > { %v6353_v44 = vpop.trf.xlu1 }
 0x59f   : > { %v6289_v18 = vpop.trf.xlu0  ;;  %6802 = vst.msk [vmem:[%s11294_s18 + $0x1e8] sm:$0xff] %vm6740_vm3, %v6353_v44  ;;  %v9145_v44 = vpop.eup %9144 }
 0x5a0   : > { %6770 = vst.msk [vmem:[%s11294_s18 + $0xe8] sm:$0xff] %vm6740_vm3, %v6289_v18  ;;  %v9147_v20 = vpop.eup %9146  ;;  %v6006_v18 = vrot.slane %v6005_v6, 1 }
 0x5a1   : > { %v6185_v16 = vmul.f32 0.6931472, %v9147_v20 }
 0x5a2   : > { %v6354_v58 = vpop.trf.xlu1  ;;  %6516 = vxpose.xlu1.b32.start.end [1/1] (short) %v6221_v46, 128 }
 0x5a3   : > { %v6290_v24 = vpop.trf.xlu0  ;;  %6484 = vxpose.xlu0.b32.start.end [1/1] (short) %v6220_v41, 128  ;;  %6803 = vst.msk [vmem:[%s11294_s18 + $0x1f0] sm:$0xff] %vm6740_vm3, %v6354_v58  ;;  %v6000_v41 = vrot.slane %v5999_v38, 1  ;;  %v6187_v58 = vmul.f32 0.6931472, %v9145_v44 }
 0x5a4   : > { %6771 = vst.msk [vmem:[%s11294_s18 + $0xf0] sm:$0xff] %vm6740_vm3, %v6290_v24  ;;  %v11540_v24 = vmax.f32 %v6005_v6, %v6006_v18 }
 0x5a6   : > { %v6355_v19 = vpop.trf.xlu1 }
 0x5a7   : > { %v6291_v52 = vpop.trf.xlu0  ;;  %6804 = vst.msk [vmem:[%s11294_s18 + $0x1f8] sm:$0xff] %vm6740_vm3, %v6355_v19 }
 0x5a8   : > { %6772 = vst.msk [vmem:[%s11294_s18 + $0xf8] sm:$0xff] %vm6740_vm3, %v6291_v52  ;;  %v11542_v52 = vmax.f32 %v5999_v38, %v6000_v41 }
 0x5aa   : > { %v6404_v40 = vpop.trf.xlu1  ;;  %v6032_v56 = vsub.f32 %v11510_v8, %v11542_v52 }
 0x5ab   : > { %v6372_v9 = vpop.trf.xlu0  ;;  %6821 = vst.msk [vmem:[%s11294_s18 + $0x280] sm:$0xff] %vm6740_vm3, %v6404_v40 }
 0x5ac   : > { %6805 = vst.msk [vmem:[%s11294_s18 + $0x200] sm:$0xff] %vm6740_vm3, %v6372_v9  ;;  %v6207_v9 = vadd.f32 %v6187_v58, %v11452_v29  ;;  %v6060_v7 = vmul.f32 1.442695, %v6032_v56 }
 0x5ae   : > { %v6405_v48 = vpop.trf.xlu1  ;;  %v6223_v29 = vsub.f32 %v11418_v10, %v6207_v9 }
 0x5af   : > { %v6373_v26 = vpop.trf.xlu0  ;;  %6822 = vst.msk [vmem:[%s11294_s18 + $0x288] sm:$0xff] %vm6740_vm3, %v6405_v48  ;;  %v6206_v48 = vadd.f32 %v6185_v16, %v11454_v17 }
 0x5b0   : > { %6806 = vst.msk [vmem:[%s11294_s18 + $0x208] sm:$0xff] %vm6740_vm3, %v6373_v26  ;;  %v6033_v26 = vsub.f32 %v11506_v3, %v11540_v24 }
 0x5b1   : > { %v6222_v30 = vsub.f32 %v11422_v33, %v6206_v48 }
 0x5b2   : > { %v6406_v2 = vpop.trf.xlu1  ;;  %v6062_v17 = vmul.f32 1.442695, %v6033_v26 }
 0x5b3   : > { %v6374_v21 = vpop.trf.xlu0  ;;  %6823 = vst.msk [vmem:[%s11294_s18 + $0x290] sm:$0xff] %vm6740_vm3, %v6406_v2 }
 0x5b4   : > { %6807 = vst.msk [vmem:[%s11294_s18 + $0x210] sm:$0xff] %vm6740_vm3, %v6374_v21  ;;  %9148 = vpow2.f32 %v6062_v17 }
 0x5b5   : > { %9150 = vpow2.f32 %v6060_v7 }
 0x5b6   : > { %v6407_v39 = vpop.trf.xlu1 }
 0x5b7   : > { %v6375_v55 = vpop.trf.xlu0  ;;  %6824 = vst.msk [vmem:[%s11294_s18 + $0x298] sm:$0xff] %vm6740_vm3, %v6407_v39 }
 0x5b8   : > { %6808 = vst.msk [vmem:[%s11294_s18 + $0x218] sm:$0xff] %vm6740_vm3, %v6375_v55 }
 0x5ba   : > { %v6408_v14 = vpop.trf.xlu1 }
 0x5bb   : > { %v6376_v22 = vpop.trf.xlu0  ;;  %6825 = vst.msk [vmem:[%s11294_s18 + $0x2a0] sm:$0xff] %vm6740_vm3, %v6408_v14 }
 0x5bc   : > { %6809 = vst.msk [vmem:[%s11294_s18 + $0x220] sm:$0xff] %vm6740_vm3, %v6376_v22 }
 0x5be   : > { %v6409_v54 = vpop.trf.xlu1  ;;  %v9149_v22 = vpop.eup %9148 }
 0x5bf   : > { %v6377_v36 = vpop.trf.xlu0  ;;  %6826 = vst.msk [vmem:[%s11294_s18 + $0x2a8] sm:$0xff] %vm6740_vm3, %v6409_v54  ;;  %v9151_v23 = vpop.eup %9150  ;;  %v6146_v54 = vrot.slane %v9149_v22, 4 }
 0x5c0   : > { %6810 = vst.msk [vmem:[%s11294_s18 + $0x228] sm:$0xff] %vm6740_vm3, %v6377_v36  ;;  %v6140_v50 = vrot.slane %v9151_v23, 4 }
 0x5c2   : > { %v6410_v27 = vpop.trf.xlu1  ;;  %v6141_v13 = vadd.f32 %v9151_v23, %v6140_v50 }
 0x5c3   : > { %v6378_v51 = vpop.trf.xlu0  ;;  %6827 = vst.msk [vmem:[%s11294_s18 + $0x2b0] sm:$0xff] %vm6740_vm3, %v6410_v27 }
 0x5c4   : > { %6811 = vst.msk [vmem:[%s11294_s18 + $0x230] sm:$0xff] %vm6740_vm3, %v6378_v51  ;;  %v6147_v51 = vadd.f32 %v9149_v22, %v6146_v54  ;;  %v6142_v57 = vrot.slane %v6141_v13, 2 }
 0x5c6   : > { %v6411_v28 = vpop.trf.xlu1  ;;  %v6143_v35 = vadd.f32 %v6142_v57, %v6141_v13 }
 0x5c7   : > { %v6379_v5 = vpop.trf.xlu0  ;;  %6828 = vst.msk [vmem:[%s11294_s18 + $0x2b8] sm:$0xff] %vm6740_vm3, %v6411_v28  ;;  %v6148_v28 = vrot.slane %v6147_v51, 2 }
 0x5c8   : > { %6812 = vst.msk [vmem:[%s11294_s18 + $0x238] sm:$0xff] %vm6740_vm3, %v6379_v5  ;;  %v6144_v42 = vrot.slane %v6143_v35, 1 }
 0x5c9   : > { %v6149_v63 = vadd.f32 %v6148_v28, %v6147_v51 }
 0x5ca   : > { %v6412_v1 = vpop.trf.xlu1 }
 0x5cb   : > { %v6380_v32 = vpop.trf.xlu0  ;;  %6829 = vst.msk [vmem:[%s11294_s18 + $0x2c0] sm:$0xff] %vm6740_vm3, %v6412_v1  ;;  %v11594_v1 = vadd.f32 %v11310_v15, %v11216_v0 }
 0x5cc   : > { %6813 = vst.msk [vmem:[%s11294_s18 + $0x240] sm:$0xff] %vm6740_vm3, %v6380_v32  ;;  %v11598_v32 = vadd.f32 %v11306_v4, %v11216_v0  ;;  %v6145_v4 = vadd.f32 %v6144_v42, %v6143_v35 }
 0x5ce   : > { %v6413_v37 = vpop.trf.xlu1  ;;  %v6008_v15 = vrot.slane %v11598_v32, 4 }
 0x5cf   : > { %v6381_v59 = vpop.trf.xlu0  ;;  %6830 = vst.msk [vmem:[%s11294_s18 + $0x2c8] sm:$0xff] %vm6740_vm3, %v6413_v37  ;;  %v6150_v37 = vrot.slane %v6149_v63, 1 }
 0x5d0   : > { %6814 = vst.msk [vmem:[%s11294_s18 + $0x248] sm:$0xff] %vm6740_vm3, %v6381_v59  ;;  %v6014_v59 = vrot.slane %v11594_v1, 4  ;;  %v6009_v44 = vmax.f32 %v11598_v32, %v6008_v15 }
 0x5d1   : > { %v6151_v0 = vadd.f32 %v6150_v37, %v6149_v63 }
 0x5d2   : > { %v6414_v25 = vpop.trf.xlu1  ;;  %v6015_v38 = vmax.f32 %v11594_v1, %v6014_v59  ;;  %v6010_v41 = vrot.slane %v6009_v44, 2 }
 0x5d3   : > { %v6382_v60 = vpop.trf.xlu0  ;;  %6831 = vst.msk [vmem:[%s11294_s18 + $0x2d0] sm:$0xff] %vm6740_vm3, %v6414_v25  ;;  %9152 = vlog2.f32 %v6151_v0 }
 0x5d4   : > { %6815 = vst.msk [vmem:[%s11294_s18 + $0x250] sm:$0xff] %vm6740_vm3, %v6382_v60  ;;  %9154 = vlog2.f32 %v6145_v4  ;;  %v6016_v18 = vrot.slane %v6015_v38, 2 }
 0x5d6   : > { %v6415_v46 = vpop.trf.xlu1  ;;  %v6017_v58 = vmax.f32 %v6015_v38, %v6016_v18 }
 0x5d7   : > { %v6383_v12 = vpop.trf.xlu0  ;;  %6832 = vst.msk [vmem:[%s11294_s18 + $0x2d8] sm:$0xff] %vm6740_vm3, %v6415_v46 }
 0x5d8   : > { %6816 = vst.msk [vmem:[%s11294_s18 + $0x258] sm:$0xff] %vm6740_vm3, %v6383_v12  ;;  %v6018_v26 = vrot.slane %v6017_v58, 1 }
 0x5da   : > { %v6416_v19 = vpop.trf.xlu1  ;;  %v11628_v17 = vmax.f32 %v6017_v58, %v6018_v26 }
 0x5db   : > { %v6384_v40 = vpop.trf.xlu0  ;;  %6833 = vst.msk [vmem:[%s11294_s18 + $0x2e0] sm:$0xff] %vm6740_vm3, %v6416_v19  ;;  %v6011_v19 = vmax.f32 %v6009_v44, %v6010_v41 }
 0x5dc   : > { %6817 = vst.msk [vmem:[%s11294_s18 + $0x260] sm:$0xff] %vm6740_vm3, %v6384_v40 }
 0x5dd   : > { %v9153_v9 = vpop.eup %9152  ;;  %v6012_v56 = vrot.slane %v6011_v19, 1 }
 0x5de   : > { %v6417_v43 = vpop.trf.xlu1  ;;  %v9155_v48 = vpop.eup %9154 }
 0x5df   : > { %v6385_v2 = vpop.trf.xlu0  ;;  %6834 = vst.msk [vmem:[%s11294_s18 + $0x2e8] sm:$0xff] %vm6740_vm3, %v6417_v43  ;;  %v11630_v7 = vmax.f32 %v6011_v19, %v6012_v56 }
 0x5e0   : > { %6818 = vst.msk [vmem:[%s11294_s18 + $0x268] sm:$0xff] %vm6740_vm3, %v6385_v2 }
 0x5e2   : > { %v6418_v21 = vpop.trf.xlu1  ;;  %6580 = vxpose.xlu1.b32.start.end [1/1] (short) %v6223_v29, 128  ;;  %v6191_v29 = vmul.f32 0.6931472, %v9153_v9 }
 0x5e3   : > { %v6386_v39 = vpop.trf.xlu0  ;;  %6548 = vxpose.xlu0.b32.start.end [1/1] (short) %v6222_v30, 128  ;;  %6835 = vst.msk [vmem:[%s11294_s18 + $0x2f0] sm:$0xff] %vm6740_vm3, %v6418_v21  ;;  %v6189_v30 = vmul.f32 0.6931472, %v9155_v48 }
 0x5e4   : > { %6819 = vst.msk [vmem:[%s11294_s18 + $0x270] sm:$0xff] %vm6740_vm3, %v6386_v39 }
 0x5e6   : > { %v6419_v55 = vpop.trf.xlu1 }
 0x5e7   : > { %v6387_v10 = vpop.trf.xlu0  ;;  %6836 = vst.msk [vmem:[%s11294_s18 + $0x2f8] sm:$0xff] %vm6740_vm3, %v6419_v55  ;;  %v6209_v55 = vadd.f32 %v6191_v29, %v11540_v24 }
 0x5e8   : > { %6820 = vst.msk [vmem:[%s11294_s18 + $0x278] sm:$0xff] %vm6740_vm3, %v6387_v10  ;;  %v6208_v10 = vadd.f32 %v6189_v30, %v11542_v52 }
 0x5e9   : > { %v6225_v24 = vsub.f32 %v11506_v3, %v6209_v55 }
 0x5ea   : > { %v6468_v33 = vpop.trf.xlu1  ;;  %v6224_v22 = vsub.f32 %v11510_v8, %v6208_v10 }
 0x5eb   : > { %v6436_v34 = vpop.trf.xlu0  ;;  %6853 = vst.msk [vmem:[%s11294_s18 + $0x380] sm:$0xff] %vm6740_vm3, %v6468_v33  ;;  %v6035_v33 = vsub.f32 %v11594_v1, %v11628_v17 }
 0x5ec   : > { %6837 = vst.msk [vmem:[%s11294_s18 + $0x300] sm:$0xff] %vm6740_vm3, %v6436_v34 }
 0x5ed   : > { %v6066_v52 = vmul.f32 1.442695, %v6035_v33 }
 0x5ee   : > { %v6469_v53 = vpop.trf.xlu1 }
 0x5ef   : > { %v6437_v14 = vpop.trf.xlu0  ;;  %6854 = vst.msk [vmem:[%s11294_s18 + $0x388] sm:$0xff] %vm6740_vm3, %v6469_v53  ;;  %v6034_v53 = vsub.f32 %v11598_v32, %v11630_v7  ;;  %9156 = vpow2.f32 %v6066_v52 }
 0x5f0   : > { %6838 = vst.msk [vmem:[%s11294_s18 + $0x308] sm:$0xff] %vm6740_vm3, %v6437_v14 }
 0x5f2   : > { %v6470_v49 = vpop.trf.xlu1 }
 0x5f3   : > { %v6438_v36 = vpop.trf.xlu0  ;;  %6855 = vst.msk [vmem:[%s11294_s18 + $0x390] sm:$0xff] %vm6740_vm3, %v6470_v49  ;;  %v6064_v49 = vmul.f32 1.442695, %v6034_v53 }
 0x5f4   : > { %6839 = vst.msk [vmem:[%s11294_s18 + $0x310] sm:$0xff] %vm6740_vm3, %v6438_v36 }
 0x5f5   : > { %9158 = vpow2.f32 %v6064_v49 }
 0x5f6   : > { %v6471_v11 = vpop.trf.xlu1 }
 0x5f7   : > { %v6439_v27 = vpop.trf.xlu0  ;;  %6856 = vst.msk [vmem:[%s11294_s18 + $0x398] sm:$0xff] %vm6740_vm3, %v6471_v11 }
 0x5f8   : > { %6840 = vst.msk [vmem:[%s11294_s18 + $0x318] sm:$0xff] %vm6740_vm3, %v6439_v27 }
 0x5f9   : > { %v9157_v51 = vpop.eup %9156 }
 0x5fa   : > { %v6472_v62 = vpop.trf.xlu1 }
 0x5fb   : > { %v6440_v31 = vpop.trf.xlu0  ;;  %6857 = vst.msk [vmem:[%s11294_s18 + $0x3a0] sm:$0xff] %vm6740_vm3, %v6472_v62 }
 0x5fc   : > { %6841 = vst.msk [vmem:[%s11294_s18 + $0x320] sm:$0xff] %vm6740_vm3, %v6440_v31  ;;  %v6158_v31 = vrot.slane %v9157_v51, 4 }
 0x5fe   : > { %v6473_v5 = vpop.trf.xlu1  ;;  %v6159_v63 = vadd.f32 %v9157_v51, %v6158_v31 }
 0x5ff   : > { %v6441_v45 = vpop.trf.xlu0  ;;  %6858 = vst.msk [vmem:[%s11294_s18 + $0x3a8] sm:$0xff] %vm6740_vm3, %v6473_v5  ;;  %v9159_v13 = vpop.eup %9158 }
 0x600   : > { %6842 = vst.msk [vmem:[%s11294_s18 + $0x328] sm:$0xff] %vm6740_vm3, %v6441_v45  ;;  %v6152_v57 = vrot.slane %v9159_v13, 4  ;;  %v6160_v37 = vrot.slane %v6159_v63, 2 }
 0x602   : > { %v6474_v47 = vpop.trf.xlu1  ;;  %v6153_v35 = vadd.f32 %v9159_v13, %v6152_v57  ;;  %v6161_v15 = vadd.f32 %v6160_v37, %v6159_v63 }
 0x603   : > { %v6442_v61 = vpop.trf.xlu0  ;;  %6859 = vst.msk [vmem:[%s11294_s18 + $0x3b0] sm:$0xff] %vm6740_vm3, %v6474_v47 }
 0x604   : > { %6843 = vst.msk [vmem:[%s11294_s18 + $0x330] sm:$0xff] %vm6740_vm3, %v6442_v61  ;;  %v6154_v42 = vrot.slane %v6153_v35, 2  ;;  %v6162_v38 = vrot.slane %v6161_v15, 1 }
 0x606   : > { %v6475_v6 = vpop.trf.xlu1  ;;  %v6163_v18 = vadd.f32 %v6162_v38, %v6161_v15 }
 0x607   : > { %v6443_v25 = vpop.trf.xlu0  ;;  %6860 = vst.msk [vmem:[%s11294_s18 + $0x3b8] sm:$0xff] %vm6740_vm3, %v6475_v6 }
 0x608   : > { %6844 = vst.msk [vmem:[%s11294_s18 + $0x338] sm:$0xff] %vm6740_vm3, %v6443_v25  ;;  %v6155_v25 = vadd.f32 %v6154_v42, %v6153_v35  ;;  %9160 = vlog2.f32 %v6163_v18 }
 0x60a   : > { %v6476_v60 = vpop.trf.xlu1 }
 0x60b   : > { %v6444_v20 = vpop.trf.xlu0  ;;  %6861 = vst.msk [vmem:[%s11294_s18 + $0x3c0] sm:$0xff] %vm6740_vm3, %v6476_v60  ;;  %v6156_v60 = vrot.slane %v6155_v25, 1 }
 0x60c   : > { %6845 = vst.msk [vmem:[%s11294_s18 + $0x340] sm:$0xff] %vm6740_vm3, %v6444_v20 }
 0x60e   : > { %v6477_v46 = vpop.trf.xlu1 }
 0x60f   : > { %v6445_v12 = vpop.trf.xlu0  ;;  %6862 = vst.msk [vmem:[%s11294_s18 + $0x3c8] sm:$0xff] %vm6740_vm3, %v6477_v46  ;;  %v6157_v46 = vadd.f32 %v6156_v60, %v6155_v25 }
 0x610   : > { %6846 = vst.msk [vmem:[%s11294_s18 + $0x348] sm:$0xff] %vm6740_vm3, %v6445_v12 }
 0x611   : > { %9162 = vlog2.f32 %v6157_v46 }
 0x612   : > { %v6478_v16 = vpop.trf.xlu1  ;;  %v9161_v9 = vpop.eup %9160 }
 0x613   : > { %v6446_v40 = vpop.trf.xlu0  ;;  %6863 = vst.msk [vmem:[%s11294_s18 + $0x3d0] sm:$0xff] %vm6740_vm3, %v6478_v16  ;;  %v6195_v56 = vmul.f32 0.6931472, %v9161_v9 }
 0x614   : > { %6847 = vst.msk [vmem:[%s11294_s18 + $0x350] sm:$0xff] %vm6740_vm3, %v6446_v40 }
 0x616   : > { %v6479_v43 = vpop.trf.xlu1 }
 0x617   : > { %v6447_v2 = vpop.trf.xlu0  ;;  %6864 = vst.msk [vmem:[%s11294_s18 + $0x3d8] sm:$0xff] %vm6740_vm3, %v6479_v43 }
 0x618   : > { %6848 = vst.msk [vmem:[%s11294_s18 + $0x358] sm:$0xff] %vm6740_vm3, %v6447_v2 }
 0x61a   : > { %v6480_v21 = vpop.trf.xlu1 }
 0x61b   : > { %v6448_v39 = vpop.trf.xlu0  ;;  %6865 = vst.msk [vmem:[%s11294_s18 + $0x3e0] sm:$0xff] %vm6740_vm3, %v6480_v21  ;;  %v9163_v48 = vpop.eup %9162  ;;  %v6211_v21 = vadd.f32 %v6195_v56, %v11628_v17 }
 0x61c   : > { %6849 = vst.msk [vmem:[%s11294_s18 + $0x360] sm:$0xff] %vm6740_vm3, %v6448_v39  ;;  %v6193_v2 = vmul.f32 0.6931472, %v9163_v48 }
 0x61d   : > { %v6227_v33 = vsub.f32 %v11594_v1, %v6211_v21 }
 0x61e   : > { %v6481_v34 = vpop.trf.xlu1  ;;  %v6210_v39 = vadd.f32 %v6193_v2, %v11630_v7 }
 0x61f   : > { %v6449_v14 = vpop.trf.xlu0  ;;  %6866 = vst.msk [vmem:[%s11294_s18 + $0x3e8] sm:$0xff] %vm6740_vm3, %v6481_v34 }
 0x620   : > { %6850 = vst.msk [vmem:[%s11294_s18 + $0x368] sm:$0xff] %vm6740_vm3, %v6449_v14  ;;  %v6226_v34 = vsub.f32 %v11598_v32, %v6210_v39 }
 0x622   : > { %v6482_v23 = vpop.trf.xlu1  ;;  %6644 = vxpose.xlu1.b32.start.end [1/1] (short) %v6225_v24, 128 }
 0x623   : > { %v6450_v54 = vpop.trf.xlu0  ;;  %6612 = vxpose.xlu0.b32.start.end [1/1] (short) %v6224_v22, 128  ;;  %6867 = vst.msk [vmem:[%s11294_s18 + $0x3f0] sm:$0xff] %vm6740_vm3, %v6482_v23 }
 0x624   : > { %6851 = vst.msk [vmem:[%s11294_s18 + $0x370] sm:$0xff] %vm6740_vm3, %v6450_v54 }
 0x626   : > { %v6483_v36 = vpop.trf.xlu1 }
 0x627   : > { %v6451_v3 = vpop.trf.xlu0  ;;  %6868 = vst.msk [vmem:[%s11294_s18 + $0x3f8] sm:$0xff] %vm6740_vm3, %v6483_v36 }
 0x628   : > { %6852 = vst.msk [vmem:[%s11294_s18 + $0x378] sm:$0xff] %vm6740_vm3, %v6451_v3 }
 0x62a   : > { %v6532_v8 = vpop.trf.xlu1 }
 0x62b   : > { %v6500_v50 = vpop.trf.xlu0  ;;  %6885 = vst.msk [vmem:[%s11294_s18 + $0x480] sm:$0xff] %vm6740_vm3, %v6532_v8 }
 0x62c   : > { %6869 = vst.msk [vmem:[%s11294_s18 + $0x400] sm:$0xff] %vm6740_vm3, %v6500_v50 }
 0x62e   : > { %v6533_v11 = vpop.trf.xlu1 }
 0x62f   : > { %v6501_v27 = vpop.trf.xlu0  ;;  %6886 = vst.msk [vmem:[%s11294_s18 + $0x488] sm:$0xff] %vm6740_vm3, %v6533_v11 }
 0x630   : > { %6870 = vst.msk [vmem:[%s11294_s18 + $0x408] sm:$0xff] %vm6740_vm3, %v6501_v27 }
 0x632   : > { %v6534_v62 = vpop.trf.xlu1 }
 0x633   : > { %v6502_v28 = vpop.trf.xlu0  ;;  %6887 = vst.msk [vmem:[%s11294_s18 + $0x490] sm:$0xff] %vm6740_vm3, %v6534_v62 }
 0x634   : > { %6871 = vst.msk [vmem:[%s11294_s18 + $0x410] sm:$0xff] %vm6740_vm3, %v6502_v28 }
 0x636   : > { %v6535_v5 = vpop.trf.xlu1 }
 0x637   : > { %v6503_v45 = vpop.trf.xlu0  ;;  %6888 = vst.msk [vmem:[%s11294_s18 + $0x498] sm:$0xff] %vm6740_vm3, %v6535_v5 }
 0x638   : > { %6872 = vst.msk [vmem:[%s11294_s18 + $0x418] sm:$0xff] %vm6740_vm3, %v6503_v45 }
 0x63a   : > { %v6536_v47 = vpop.trf.xlu1 }
 0x63b   : > { %v6504_v61 = vpop.trf.xlu0  ;;  %6889 = vst.msk [vmem:[%s11294_s18 + $0x4a0] sm:$0xff] %vm6740_vm3, %v6536_v47 }
 0x63c   : > { %6873 = vst.msk [vmem:[%s11294_s18 + $0x420] sm:$0xff] %vm6740_vm3, %v6504_v61 }
 0x63e   : > { %v6537_v59 = vpop.trf.xlu1 }
 0x63f   : > { %v6505_v6 = vpop.trf.xlu0  ;;  %6890 = vst.msk [vmem:[%s11294_s18 + $0x4a8] sm:$0xff] %vm6740_vm3, %v6537_v59 }
 0x640   : > { %6874 = vst.msk [vmem:[%s11294_s18 + $0x428] sm:$0xff] %vm6740_vm3, %v6505_v6 }
 0x642   : > { %v6538_v0 = vpop.trf.xlu1 }
 0x643   : > { %v6506_v4 = vpop.trf.xlu0  ;;  %6891 = vst.msk [vmem:[%s11294_s18 + $0x4b0] sm:$0xff] %vm6740_vm3, %v6538_v0 }
 0x644   : > { %6875 = vst.msk [vmem:[%s11294_s18 + $0x430] sm:$0xff] %vm6740_vm3, %v6506_v4 }
 0x646   : > { %v6539_v44 = vpop.trf.xlu1 }
 0x647   : > { %v6507_v20 = vpop.trf.xlu0  ;;  %6892 = vst.msk [vmem:[%s11294_s18 + $0x4b8] sm:$0xff] %vm6740_vm3, %v6539_v44 }
 0x648   : > { %6876 = vst.msk [vmem:[%s11294_s18 + $0x438] sm:$0xff] %vm6740_vm3, %v6507_v20 }
 0x64a   : > { %v6540_v41 = vpop.trf.xlu1 }
 0x64b   : > { %v6508_v12 = vpop.trf.xlu0  ;;  %6893 = vst.msk [vmem:[%s11294_s18 + $0x4c0] sm:$0xff] %vm6740_vm3, %v6540_v41 }
 0x64c   : > { %6877 = vst.msk [vmem:[%s11294_s18 + $0x440] sm:$0xff] %vm6740_vm3, %v6508_v12 }
 0x64e   : > { %v6541_v58 = vpop.trf.xlu1 }
 0x64f   : > { %v6509_v16 = vpop.trf.xlu0  ;;  %6894 = vst.msk [vmem:[%s11294_s18 + $0x4c8] sm:$0xff] %vm6740_vm3, %v6541_v58 }
 0x650   : > { %6878 = vst.msk [vmem:[%s11294_s18 + $0x448] sm:$0xff] %vm6740_vm3, %v6509_v16 }
 0x652   : > { %v6542_v19 = vpop.trf.xlu1 }
 0x653   : > { %v6510_v40 = vpop.trf.xlu0  ;;  %6895 = vst.msk [vmem:[%s11294_s18 + $0x4d0] sm:$0xff] %vm6740_vm3, %v6542_v19 }
 0x654   : > { %6879 = vst.msk [vmem:[%s11294_s18 + $0x450] sm:$0xff] %vm6740_vm3, %v6510_v40 }
 0x656   : > { %v6543_v26 = vpop.trf.xlu1 }
 0x657   : > { %v6511_v43 = vpop.trf.xlu0  ;;  %6896 = vst.msk [vmem:[%s11294_s18 + $0x4d8] sm:$0xff] %vm6740_vm3, %v6543_v26 }
 0x658   : > { %6880 = vst.msk [vmem:[%s11294_s18 + $0x458] sm:$0xff] %vm6740_vm3, %v6511_v43 }
 0x65a   : > { %v6544_v29 = vpop.trf.xlu1 }
 0x65b   : > { %v6512_v30 = vpop.trf.xlu0  ;;  %6897 = vst.msk [vmem:[%s11294_s18 + $0x4e0] sm:$0xff] %vm6740_vm3, %v6544_v29 }
 0x65c   : > { %6881 = vst.msk [vmem:[%s11294_s18 + $0x460] sm:$0xff] %vm6740_vm3, %v6512_v30 }
 0x65e   : > { %v6545_v55 = vpop.trf.xlu1 }
 0x65f   : > { %v6513_v10 = vpop.trf.xlu0  ;;  %6898 = vst.msk [vmem:[%s11294_s18 + $0x4e8] sm:$0xff] %vm6740_vm3, %v6545_v55 }
 0x660   : > { %6882 = vst.msk [vmem:[%s11294_s18 + $0x468] sm:$0xff] %vm6740_vm3, %v6513_v10 }
 0x662   : > { %v6546_v53 = vpop.trf.xlu1  ;;  %6708 = vxpose.xlu1.b32.start.end [1/1] (short) %v6227_v33, 128 }
 0x663   : > { %v6514_v17 = vpop.trf.xlu0  ;;  %6676 = vxpose.xlu0.b32.start.end [1/1] (short) %v6226_v34, 128  ;;  %6899 = vst.msk [vmem:[%s11294_s18 + $0x4f0] sm:$0xff] %vm6740_vm3, %v6546_v53 }
 0x664   : > { %6883 = vst.msk [vmem:[%s11294_s18 + $0x470] sm:$0xff] %vm6740_vm3, %v6514_v17 }
 0x666   : > { %v6547_v7 = vpop.trf.xlu1 }
 0x667   : > { %v6515_v14 = vpop.trf.xlu0  ;;  %6900 = vst.msk [vmem:[%s11294_s18 + $0x4f8] sm:$0xff] %vm6740_vm3, %v6547_v7 }
 0x668   : > { %6884 = vst.msk [vmem:[%s11294_s18 + $0x478] sm:$0xff] %vm6740_vm3, %v6515_v14 }
 0x66a   : > { %v6596_v1 = vpop.trf.xlu1 }
 0x66b   : > { %v6564_v32 = vpop.trf.xlu0  ;;  %6917 = vst.msk [vmem:[%s11294_s18 + $0x580] sm:$0xff] %vm6740_vm3, %v6596_v1 }
 0x66c   : > { %6901 = vst.msk [vmem:[%s11294_s18 + $0x500] sm:$0xff] %vm6740_vm3, %v6564_v32 }
 0x66e   : > { %v6597_v24 = vpop.trf.xlu1 }
 0x66f   : > { %v6565_v22 = vpop.trf.xlu0  ;;  %6918 = vst.msk [vmem:[%s11294_s18 + $0x588] sm:$0xff] %vm6740_vm3, %v6597_v24 }
 0x670   : > { %6902 = vst.msk [vmem:[%s11294_s18 + $0x508] sm:$0xff] %vm6740_vm3, %v6565_v22 }
 0x672   : > { %v6598_v52 = vpop.trf.xlu1 }
 0x673   : > { %v6566_v23 = vpop.trf.xlu0  ;;  %6919 = vst.msk [vmem:[%s11294_s18 + $0x590] sm:$0xff] %vm6740_vm3, %v6598_v52 }
 0x674   : > { %6903 = vst.msk [vmem:[%s11294_s18 + $0x510] sm:$0xff] %vm6740_vm3, %v6566_v23 }
 0x676   : > { %v6599_v49 = vpop.trf.xlu1 }
 0x677   : > { %v6567_v54 = vpop.trf.xlu0  ;;  %6920 = vst.msk [vmem:[%s11294_s18 + $0x598] sm:$0xff] %vm6740_vm3, %v6599_v49 }
 0x678   : > { %6904 = vst.msk [vmem:[%s11294_s18 + $0x518] sm:$0xff] %vm6740_vm3, %v6567_v54 }
 0x67a   : > { %v6600_v36 = vpop.trf.xlu1 }
 0x67b   : > { %v6568_v3 = vpop.trf.xlu0  ;;  %6921 = vst.msk [vmem:[%s11294_s18 + $0x5a0] sm:$0xff] %vm6740_vm3, %v6600_v36 }
 0x67c   : > { %6905 = vst.msk [vmem:[%s11294_s18 + $0x520] sm:$0xff] %vm6740_vm3, %v6568_v3 }
 0x67e   : > { %v6601_v8 = vpop.trf.xlu1 }
 0x67f   : > { %v6569_v50 = vpop.trf.xlu0  ;;  %6922 = vst.msk [vmem:[%s11294_s18 + $0x5a8] sm:$0xff] %vm6740_vm3, %v6601_v8 }
 0x680   : > { %6906 = vst.msk [vmem:[%s11294_s18 + $0x528] sm:$0xff] %vm6740_vm3, %v6569_v50 }
 0x682   : > { %v6602_v11 = vpop.trf.xlu1 }
 0x683   : > { %v6570_v27 = vpop.trf.xlu0  ;;  %6923 = vst.msk [vmem:[%s11294_s18 + $0x5b0] sm:$0xff] %vm6740_vm3, %v6602_v11 }
 0x684   : > { %6907 = vst.msk [vmem:[%s11294_s18 + $0x530] sm:$0xff] %vm6740_vm3, %v6570_v27 }
 0x686   : > { %v6603_v51 = vpop.trf.xlu1 }
 0x687   : > { %v6571_v13 = vpop.trf.xlu0  ;;  %6924 = vst.msk [vmem:[%s11294_s18 + $0x5b8] sm:$0xff] %vm6740_vm3, %v6603_v51 }
 0x688   : > { %6908 = vst.msk [vmem:[%s11294_s18 + $0x538] sm:$0xff] %vm6740_vm3, %v6571_v13 }
 0x68a   : > { %v6604_v62 = vpop.trf.xlu1 }
 0x68b   : > { %v6572_v31 = vpop.trf.xlu0  ;;  %6925 = vst.msk [vmem:[%s11294_s18 + $0x5c0] sm:$0xff] %vm6740_vm3, %v6604_v62 }
 0x68c   : > { %6909 = vst.msk [vmem:[%s11294_s18 + $0x540] sm:$0xff] %vm6740_vm3, %v6572_v31 }
 0x68e   : > { %v6605_v28 = vpop.trf.xlu1 }
 0x68f   : > { %v6573_v57 = vpop.trf.xlu0  ;;  %6926 = vst.msk [vmem:[%s11294_s18 + $0x5c8] sm:$0xff] %vm6740_vm3, %v6605_v28 }
 0x690   : > { %6910 = vst.msk [vmem:[%s11294_s18 + $0x548] sm:$0xff] %vm6740_vm3, %v6573_v57 }
 0x692   : > { %v6606_v5 = vpop.trf.xlu1 }
 0x693   : > { %v6574_v45 = vpop.trf.xlu0  ;;  %6927 = vst.msk [vmem:[%s11294_s18 + $0x5d0] sm:$0xff] %vm6740_vm3, %v6606_v5 }
 0x694   : > { %6911 = vst.msk [vmem:[%s11294_s18 + $0x550] sm:$0xff] %vm6740_vm3, %v6574_v45 }
 0x696   : > { %v6607_v63 = vpop.trf.xlu1 }
 0x697   : > { %v6575_v35 = vpop.trf.xlu0  ;;  %6928 = vst.msk [vmem:[%s11294_s18 + $0x5d8] sm:$0xff] %vm6740_vm3, %v6607_v63 }
 0x698   : > { %6912 = vst.msk [vmem:[%s11294_s18 + $0x558] sm:$0xff] %vm6740_vm3, %v6575_v35 }
 0x69a   : > { %v6608_v47 = vpop.trf.xlu1 }
 0x69b   : > { %v6576_v61 = vpop.trf.xlu0  ;;  %6929 = vst.msk [vmem:[%s11294_s18 + $0x5e0] sm:$0xff] %vm6740_vm3, %v6608_v47 }
 0x69c   : > { %6913 = vst.msk [vmem:[%s11294_s18 + $0x560] sm:$0xff] %vm6740_vm3, %v6576_v61 }
 0x69e   : > { %v6609_v37 = vpop.trf.xlu1 }
 0x69f   : > { %v6577_v42 = vpop.trf.xlu0  ;;  %6930 = vst.msk [vmem:[%s11294_s18 + $0x5e8] sm:$0xff] %vm6740_vm3, %v6609_v37 }
 0x6a0   : > { %6914 = vst.msk [vmem:[%s11294_s18 + $0x568] sm:$0xff] %vm6740_vm3, %v6577_v42 }
 0x6a2   : > { %v6610_v59 = vpop.trf.xlu1 }
 0x6a3   : > { %v6578_v6 = vpop.trf.xlu0  ;;  %6931 = vst.msk [vmem:[%s11294_s18 + $0x5f0] sm:$0xff] %vm6740_vm3, %v6610_v59 }
 0x6a4   : > { %6915 = vst.msk [vmem:[%s11294_s18 + $0x570] sm:$0xff] %vm6740_vm3, %v6578_v6 }
 0x6a6   : > { %v6611_v15 = vpop.trf.xlu1 }
 0x6a7   : > { %v6579_v25 = vpop.trf.xlu0  ;;  %6932 = vst.msk [vmem:[%s11294_s18 + $0x5f8] sm:$0xff] %vm6740_vm3, %v6611_v15 }
 0x6a8   : > { %6916 = vst.msk [vmem:[%s11294_s18 + $0x578] sm:$0xff] %vm6740_vm3, %v6579_v25 }
 0x6aa   : > { %v6660_v0 = vpop.trf.xlu1 }
 0x6ab   : > { %v6628_v4 = vpop.trf.xlu0  ;;  %6949 = vst.msk [vmem:[%s11294_s18 + $0x680] sm:$0xff] %vm6740_vm3, %v6660_v0 }
 0x6ac   : > { %6933 = vst.msk [vmem:[%s11294_s18 + $0x600] sm:$0xff] %vm6740_vm3, %v6628_v4 }
 0x6ae   : > { %v6661_v38 = vpop.trf.xlu1 }
 0x6af   : > { %v6629_v60 = vpop.trf.xlu0  ;;  %6950 = vst.msk [vmem:[%s11294_s18 + $0x688] sm:$0xff] %vm6740_vm3, %v6661_v38 }
 0x6b0   : > { %6934 = vst.msk [vmem:[%s11294_s18 + $0x608] sm:$0xff] %vm6740_vm3, %v6629_v60 }
 0x6b2   : > { %v6662_v44 = vpop.trf.xlu1 }
 0x6b3   : > { %v6630_v20 = vpop.trf.xlu0  ;;  %6951 = vst.msk [vmem:[%s11294_s18 + $0x690] sm:$0xff] %vm6740_vm3, %v6662_v44 }
 0x6b4   : > { %6935 = vst.msk [vmem:[%s11294_s18 + $0x610] sm:$0xff] %vm6740_vm3, %v6630_v20 }
 0x6b6   : > { %v6663_v18 = vpop.trf.xlu1 }
 0x6b7   : > { %v6631_v46 = vpop.trf.xlu0  ;;  %6952 = vst.msk [vmem:[%s11294_s18 + $0x698] sm:$0xff] %vm6740_vm3, %v6663_v18 }
 0x6b8   : > { %6936 = vst.msk [vmem:[%s11294_s18 + $0x618] sm:$0xff] %vm6740_vm3, %v6631_v46 }
 0x6ba   : > { %v6664_v41 = vpop.trf.xlu1 }
 0x6bb   : > { %v6632_v12 = vpop.trf.xlu0  ;;  %6953 = vst.msk [vmem:[%s11294_s18 + $0x6a0] sm:$0xff] %vm6740_vm3, %v6664_v41 }
 0x6bc   : > { %6937 = vst.msk [vmem:[%s11294_s18 + $0x620] sm:$0xff] %vm6740_vm3, %v6632_v12 }
 0x6be   : > { %v6665_v58 = vpop.trf.xlu1 }
 0x6bf   : > { %v6633_v16 = vpop.trf.xlu0  ;;  %6954 = vst.msk [vmem:[%s11294_s18 + $0x6a8] sm:$0xff] %vm6740_vm3, %v6665_v58 }
 0x6c0   : > { %6938 = vst.msk [vmem:[%s11294_s18 + $0x628] sm:$0xff] %vm6740_vm3, %v6633_v16 }
 0x6c2   : > { %v6666_v19 = vpop.trf.xlu1 }
 0x6c3   : > { %v6634_v40 = vpop.trf.xlu0  ;;  %6955 = vst.msk [vmem:[%s11294_s18 + $0x6b0] sm:$0xff] %vm6740_vm3, %v6666_v19 }
 0x6c4   : > { %6939 = vst.msk [vmem:[%s11294_s18 + $0x630] sm:$0xff] %vm6740_vm3, %v6634_v40 }
 0x6c6   : > { %v6667_v9 = vpop.trf.xlu1 }
 0x6c7   : > { %v6635_v48 = vpop.trf.xlu0  ;;  %6956 = vst.msk [vmem:[%s11294_s18 + $0x6b8] sm:$0xff] %vm6740_vm3, %v6667_v9 }
 0x6c8   : > { %6940 = vst.msk [vmem:[%s11294_s18 + $0x638] sm:$0xff] %vm6740_vm3, %v6635_v48 }
 0x6ca   : > { %v6668_v26 = vpop.trf.xlu1 }
 0x6cb   : > { %v6636_v43 = vpop.trf.xlu0  ;;  %6957 = vst.msk [vmem:[%s11294_s18 + $0x6c0] sm:$0xff] %vm6740_vm3, %v6668_v26 }
 0x6cc   : > { %6941 = vst.msk [vmem:[%s11294_s18 + $0x640] sm:$0xff] %vm6740_vm3, %v6636_v43 }
 0x6ce   : > { %v6669_v56 = vpop.trf.xlu1 }
 0x6cf   : > { %v6637_v2 = vpop.trf.xlu0  ;;  %6958 = vst.msk [vmem:[%s11294_s18 + $0x6c8] sm:$0xff] %vm6740_vm3, %v6669_v56 }
 0x6d0   : > { %6942 = vst.msk [vmem:[%s11294_s18 + $0x648] sm:$0xff] %vm6740_vm3, %v6637_v2 }
 0x6d2   : > { %v6670_v29 = vpop.trf.xlu1 }
 0x6d3   : > { %v6638_v30 = vpop.trf.xlu0  ;;  %6959 = vst.msk [vmem:[%s11294_s18 + $0x6d0] sm:$0xff] %vm6740_vm3, %v6670_v29 }
 0x6d4   : > { %6943 = vst.msk [vmem:[%s11294_s18 + $0x650] sm:$0xff] %vm6740_vm3, %v6638_v30 }
 0x6d6   : > { %v6671_v21 = vpop.trf.xlu1 }
 0x6d7   : > { %v6639_v39 = vpop.trf.xlu0  ;;  %6960 = vst.msk [vmem:[%s11294_s18 + $0x6d8] sm:$0xff] %vm6740_vm3, %v6671_v21 }
 0x6d8   : > { %6944 = vst.msk [vmem:[%s11294_s18 + $0x658] sm:$0xff] %vm6740_vm3, %v6639_v39 }
 0x6da   : > { %v6672_v55 = vpop.trf.xlu1 }
 0x6db   : > { %v6640_v10 = vpop.trf.xlu0  ;;  %6961 = vst.msk [vmem:[%s11294_s18 + $0x6e0] sm:$0xff] %vm6740_vm3, %v6672_v55 }
 0x6dc   : > { %6945 = vst.msk [vmem:[%s11294_s18 + $0x660] sm:$0xff] %vm6740_vm3, %v6640_v10 }
 0x6de   : > { %v6673_v33 = vpop.trf.xlu1 }
 0x6df   : > { %v6641_v34 = vpop.trf.xlu0  ;;  %6962 = vst.msk [vmem:[%s11294_s18 + $0x6e8] sm:$0xff] %vm6740_vm3, %v6673_v33 }
 0x6e0   : > { %6946 = vst.msk [vmem:[%s11294_s18 + $0x668] sm:$0xff] %vm6740_vm3, %v6641_v34 }
 0x6e2   : > { %v6674_v53 = vpop.trf.xlu1 }
 0x6e3   : > { %v6642_v17 = vpop.trf.xlu0  ;;  %6963 = vst.msk [vmem:[%s11294_s18 + $0x6f0] sm:$0xff] %vm6740_vm3, %v6674_v53 }
 0x6e4   : > { %6947 = vst.msk [vmem:[%s11294_s18 + $0x670] sm:$0xff] %vm6740_vm3, %v6642_v17 }
 0x6e6   : > { %v6675_v7 = vpop.trf.xlu1 }
 0x6e7   : > { %v6643_v14 = vpop.trf.xlu0  ;;  %6964 = vst.msk [vmem:[%s11294_s18 + $0x6f8] sm:$0xff] %vm6740_vm3, %v6675_v7 }
 0x6e8   : > { %6948 = vst.msk [vmem:[%s11294_s18 + $0x678] sm:$0xff] %vm6740_vm3, %v6643_v14 }
 0x6ea   : > { %v6724_v1 = vpop.trf.xlu1 }
 0x6eb   : > { %v6692_v32 = vpop.trf.xlu0  ;;  %6981 = vst.msk [vmem:[%s11294_s18 + $0x780] sm:$0xff] %vm6740_vm3, %v6724_v1 }
 0x6ec   : > { %6965 = vst.msk [vmem:[%s11294_s18 + $0x700] sm:$0xff] %vm6740_vm3, %v6692_v32 }
 0x6ee   : > { %v6725_v24 = vpop.trf.xlu1 }
 0x6ef   : > { %v6693_v22 = vpop.trf.xlu0  ;;  %6982 = vst.msk [vmem:[%s11294_s18 + $0x788] sm:$0xff] %vm6740_vm3, %v6725_v24 }
 0x6f0   : > { %6966 = vst.msk [vmem:[%s11294_s18 + $0x708] sm:$0xff] %vm6740_vm3, %v6693_v22 }
 0x6f2   : > { %v6726_v52 = vpop.trf.xlu1 }
 0x6f3   : > { %v6694_v23 = vpop.trf.xlu0  ;;  %6983 = vst.msk [vmem:[%s11294_s18 + $0x790] sm:$0xff] %vm6740_vm3, %v6726_v52 }
 0x6f4   : > { %6967 = vst.msk [vmem:[%s11294_s18 + $0x710] sm:$0xff] %vm6740_vm3, %v6694_v23 }
 0x6f6   : > { %v6727_v49 = vpop.trf.xlu1 }
 0x6f7   : > { %v6695_v54 = vpop.trf.xlu0  ;;  %6984 = vst.msk [vmem:[%s11294_s18 + $0x798] sm:$0xff] %vm6740_vm3, %v6727_v49 }
 0x6f8   : > { %6968 = vst.msk [vmem:[%s11294_s18 + $0x718] sm:$0xff] %vm6740_vm3, %v6695_v54 }
 0x6fa   : > { %v6728_v36 = vpop.trf.xlu1 }
 0x6fb   : > { %v6696_v3 = vpop.trf.xlu0  ;;  %6985 = vst.msk [vmem:[%s11294_s18 + $0x7a0] sm:$0xff] %vm6740_vm3, %v6728_v36 }
 0x6fc   : > { %6969 = vst.msk [vmem:[%s11294_s18 + $0x720] sm:$0xff] %vm6740_vm3, %v6696_v3 }
 0x6fe   : > { %v6729_v8 = vpop.trf.xlu1 }
 0x6ff   : > { %v6697_v50 = vpop.trf.xlu0  ;;  %6986 = vst.msk [vmem:[%s11294_s18 + $0x7a8] sm:$0xff] %vm6740_vm3, %v6729_v8 }
 0x700   : > { %6970 = vst.msk [vmem:[%s11294_s18 + $0x728] sm:$0xff] %vm6740_vm3, %v6697_v50 }
 0x702   : > { %v6730_v11 = vpop.trf.xlu1 }
 0x703   : > { %v6698_v27 = vpop.trf.xlu0  ;;  %6987 = vst.msk [vmem:[%s11294_s18 + $0x7b0] sm:$0xff] %vm6740_vm3, %v6730_v11 }
 0x704   : > { %6971 = vst.msk [vmem:[%s11294_s18 + $0x730] sm:$0xff] %vm6740_vm3, %v6698_v27 }
 0x706   : > { %v6731_v51 = vpop.trf.xlu1 }
 0x707   : > { %v6699_v13 = vpop.trf.xlu0  ;;  %6988 = vst.msk [vmem:[%s11294_s18 + $0x7b8] sm:$0xff] %vm6740_vm3, %v6731_v51 }
 0x708   : > { %6972 = vst.msk [vmem:[%s11294_s18 + $0x738] sm:$0xff] %vm6740_vm3, %v6699_v13 }
 0x70a   : > { %v6732_v62 = vpop.trf.xlu1 }
 0x70b   : > { %v6700_v31 = vpop.trf.xlu0  ;;  %6989 = vst.msk [vmem:[%s11294_s18 + $0x7c0] sm:$0xff] %vm6740_vm3, %v6732_v62 }
 0x70c   : > { %6973 = vst.msk [vmem:[%s11294_s18 + $0x740] sm:$0xff] %vm6740_vm3, %v6700_v31 }
 0x70e   : > { %v6733_v28 = vpop.trf.xlu1 }
 0x70f   : > { %v6701_v57 = vpop.trf.xlu0  ;;  %6990 = vst.msk [vmem:[%s11294_s18 + $0x7c8] sm:$0xff] %vm6740_vm3, %v6733_v28 }
 0x710   : > { %6974 = vst.msk [vmem:[%s11294_s18 + $0x748] sm:$0xff] %vm6740_vm3, %v6701_v57 }
 0x712   : > { %v6734_v5 = vpop.trf.xlu1 }
 0x713   : > { %v6702_v45 = vpop.trf.xlu0  ;;  %6991 = vst.msk [vmem:[%s11294_s18 + $0x7d0] sm:$0xff] %vm6740_vm3, %v6734_v5 }
 0x714   : > { %6975 = vst.msk [vmem:[%s11294_s18 + $0x750] sm:$0xff] %vm6740_vm3, %v6702_v45 }
 0x716   : > { %v6735_v63 = vpop.trf.xlu1 }
 0x717   : > { %v6703_v35 = vpop.trf.xlu0  ;;  %6992 = vst.msk [vmem:[%s11294_s18 + $0x7d8] sm:$0xff] %vm6740_vm3, %v6735_v63 }
 0x718   : > { %6976 = vst.msk [vmem:[%s11294_s18 + $0x758] sm:$0xff] %vm6740_vm3, %v6703_v35 }
 0x71a   : > { %v6736_v47 = vpop.trf.xlu1 }
 0x71b   : > { %v6704_v61 = vpop.trf.xlu0  ;;  %6993 = vst.msk [vmem:[%s11294_s18 + $0x7e0] sm:$0xff] %vm6740_vm3, %v6736_v47 }
 0x71c   : > { %6977 = vst.msk [vmem:[%s11294_s18 + $0x760] sm:$0xff] %vm6740_vm3, %v6704_v61 }
 0x71e   : > { %v6737_v37 = vpop.trf.xlu1 }
 0x71f   : > { %v6705_v42 = vpop.trf.xlu0  ;;  %6994 = vst.msk [vmem:[%s11294_s18 + $0x7e8] sm:$0xff] %vm6740_vm3, %v6737_v37 }
 0x720   : > { %6978 = vst.msk [vmem:[%s11294_s18 + $0x768] sm:$0xff] %vm6740_vm3, %v6705_v42 }
 0x722   : > { %v6738_v59 = vpop.trf.xlu1 }
 0x723   : > { %v6706_v6 = vpop.trf.xlu0  ;;  %6995 = vst.msk [vmem:[%s11294_s18 + $0x7f0] sm:$0xff] %vm6740_vm3, %v6738_v59 }
 0x724   : > { %6979 = vst.msk [vmem:[%s11294_s18 + $0x770] sm:$0xff] %vm6740_vm3, %v6706_v6 }
 0x726   : > { %v6739_v15 = vpop.trf.xlu1 }
 0x727   : > { %v6707_v25 = vpop.trf.xlu0  ;;  %6996 = vst.msk [vmem:[%s11294_s18 + $0x7f8] sm:$0xff] %vm6740_vm3, %v6739_v15 }
 0x728   : > { %6980 = vst.msk [vmem:[%s11294_s18 + $0x778] sm:$0xff] %vm6740_vm3, %v6707_v25 }
 0x729 PF: > { %s19_s30 = sadd.s32 1, %s9180_s30  }
 0x72a   : > { %p16_p4 = scmp.ge.s32.totalorder %s19_s30, 5  }
 0x72c   :  { %18 = sbr.rel (!%p16_p4) target bundleno = 1 (0x1), region = 86 }

</bundles_post_ra>
